<compile_context>
chip_gen: v5e
topology: v5e:2x2
jax: 0.10.0
libtpu: 0.0.40
codegen_flags: <defaults>
</compile_context>

<pallas_src>
import math

import jax
import jax.numpy as jnp
from jax.experimental import pallas as pl
from jax.experimental.pallas import tpu as pltpu


def _pos_embed_kernel(y_ref, x_ref, inv_ref, ph_ref, out_ref):
    """Elementwise FMA + sin; channels on sublanes, pixels on lanes.

    y_ref  : (1, 1, TP)  f32   y_embed pixel chunk (cumsum over H, normalized)
    x_ref  : (1, 1, TP)  f32   x_embed pixel chunk (cumsum over W, normalized)
    inv_ref: (F, 1)      f32   1 / dim_t   (per channel within a half)
    ph_ref : (F, 1)      f32   0 for even channels, pi/2 for odd (cos(t)=sin(t+pi/2))
    out_ref: (1, C, TP)        C = 2F, NCHW-native (channels x pixels)
    """
    F = inv_ref.shape[0]
    y = y_ref[0]              # (1, TP)
    x = x_ref[0]              # (1, TP)
    inv = inv_ref[...]        # (F, 1)
    ph = ph_ref[...]          # (F, 1)
    # Keep the FMA + sin in f32 (v5e has no bf16 VPU/EUP); cast only at the store.
    out_ref[0, :F, :] = jnp.sin(y * inv + ph).astype(out_ref.dtype)   # pos_y channels
    out_ref[0, F:, :] = jnp.sin(x * inv + ph).astype(out_ref.dtype)   # pos_x channels


def _pick_tile_pixels(hw, c, out_elem_bytes, budget_bytes, min_chunks=1):
    """Largest lane-aligned pixel chunk whose output block fits `budget_bytes`.

    Must be a multiple of 128 (lane width) and divide H*W, unless it equals H*W.
    `min_chunks` > 1 forces at least that many grid steps (megacore sharding when B==1).
    """
    if hw % 128 != 0:
        # TODO(synk): pixel count not lane-aligned; fall back to one full-row block
        # (last block dim == full array dim is allowed).  For very large un-aligned
        # feature maps this block may exceed v7x VMEM; split along H in that case.
        return hw
    max_tp = max(128, budget_bytes // (c * out_elem_bytes))
    if min_chunks > 1:
        max_tp = min(max_tp, max(128, hw // min_chunks))
    tp = min(hw, (max_tp // 128) * 128)
    while tp >= 128:
        if hw % tp == 0:
            return tp
        tp -= 128
    return hw


def position_embedding_sine(mask, *, num_pos_feats=64, temperature=10000,
                            normalize=False, scale=None, out_dtype=jnp.float32,
                            tile_pixels=None, block_budget_bytes=8 << 20):
    """mask: (B, H, W) bool (True = padded).

    Returns (B, 2*num_pos_feats, H, W) in `out_dtype` (NCHW, matching the PyTorch
    module's permute(0, 3, 1, 2) output), written NCHW-natively by the kernel.
    """
    if scale is not None and normalize is False:
        raise ValueError("normalize should be True if scale is passed")
    if scale is None:
        scale = 2 * math.pi
    if num_pos_feats % 2 != 0:
        raise ValueError("num_pos_feats must be even")

    B, H, W = mask.shape
    F = num_pos_feats
    C = 2 * F
    HW = H * W

    # Glue (tiny (B,H,W) work, bandwidth-trivial vs. the (B,C,H,W) output).
    not_mask = (~mask).astype(jnp.float32)
    y_embed = jnp.cumsum(not_mask, axis=1)
    x_embed = jnp.cumsum(not_mask, axis=2)
    if normalize:
        eps = 1e-6
        y_embed = y_embed / (y_embed[:, -1:, :] + eps) * scale
        x_embed = x_embed / (x_embed[:, :, -1:] + eps) * scale

    # Flatten pixels onto the lane axis (free, contiguous reshape).
    y_flat = y_embed.reshape(B, 1, HW)
    x_flat = x_embed.reshape(B, 1, HW)

    # Per-channel constants, hoisted out of the kernel body (DMA'd once, constant map).
    # Channel i (within each half): angle = embed * temperature**(-2*(i//2)/F),
    # even i -> sin, odd i -> cos == sin(t + pi/2).
    idx = jnp.arange(F, dtype=jnp.float32)
    dim_t = jnp.float32(temperature) ** (2.0 * jnp.floor(idx / 2.0) / F)
    inv_dim_t = (1.0 / dim_t).reshape(F, 1)
    phase = jnp.where((jnp.arange(F) % 2) == 1,
                      jnp.float32(math.pi / 2.0), jnp.float32(0.0)).reshape(F, 1)

    out_elem_bytes = jnp.dtype(out_dtype).itemsize
    if tile_pixels is None:
        TP = _pick_tile_pixels(HW, C, out_elem_bytes, block_budget_bytes,
                               min_chunks=2 if B == 1 else 1)
    else:
        TP = tile_pixels
        if TP != HW and (HW % TP != 0 or TP % 128 != 0):
            raise ValueError(
                "tile_pixels must divide H*W and be a multiple of 128 (or == H*W)")
    n_chunks = HW // TP

    # VMEM: double-buffered output block + 2 double-buffered input blocks + constants.
    out_block = C * TP * out_elem_bytes
    in_block = TP * 4
    vmem_need = 2 * (out_block + 2 * in_block) + (256 << 10)
    vmem_limit = max(32 << 20, int(vmem_need * 1.25))

    out = pl.pallas_call(
        _pos_embed_kernel,
        out_shape=jax.ShapeDtypeStruct((B, C, HW), out_dtype),
        grid_spec=pltpu.PrefetchScalarGridSpec(
            num_scalar_prefetch=0,
            grid=(B, n_chunks),
            in_specs=[
                pl.BlockSpec((1, 1, TP), lambda b, p: (b, 0, p)),   # y_embed chunk
                pl.BlockSpec((1, 1, TP), lambda b, p: (b, 0, p)),   # x_embed chunk
                pl.BlockSpec((F, 1), lambda b, p: (0, 0)),          # inv_dim_t (const)
                pl.BlockSpec((F, 1), lambda b, p: (0, 0)),          # phase     (const)
            ],
            out_specs=pl.BlockSpec((1, C, TP), lambda b, p: (b, 0, p)),
        ),
        compiler_params=pltpu.CompilerParams(
            dimension_semantics=("parallel", "parallel"),
            vmem_limit_bytes=vmem_limit),
    )(y_flat, x_flat, inv_dim_t, phase)

    # Free reshape back to (B, C, H, W) -- same memory layout as the kernel's output.
    return out.reshape(B, C, H, W)


def _reference(mask, *, num_pos_feats, temperature, normalize, scale):
    """Pure-JAX transcription of the PyTorch forward, for verification."""
    if scale is None:
        scale = 2 * math.pi
    not_mask = (~mask).astype(jnp.float32)
    y_embed = jnp.cumsum(not_mask, axis=1)
    x_embed = jnp.cumsum(not_mask, axis=2)
    if normalize:
        eps = 1e-6
        y_embed = y_embed / (y_embed[:, -1:, :] + eps) * scale
        x_embed = x_embed / (x_embed[:, :, -1:] + eps) * scale
    dim_t = jnp.arange(num_pos_feats, dtype=jnp.float32)
    dim_t = temperature ** (2 * jnp.floor(dim_t / 2) / num_pos_feats)
    pos_x = x_embed[:, :, :, None] / dim_t
    pos_y = y_embed[:, :, :, None] / dim_t
    B, H, W = mask.shape
    pos_x = jnp.stack((jnp.sin(pos_x[..., 0::2]), jnp.cos(pos_x[..., 1::2])),
                      axis=4).reshape(B, H, W, -1)
    pos_y = jnp.stack((jnp.sin(pos_y[..., 0::2]), jnp.cos(pos_y[..., 1::2])),
                      axis=4).reshape(B, H, W, -1)
    return jnp.transpose(jnp.concatenate((pos_y, pos_x), axis=3), (0, 3, 1, 2))


if __name__ == "__main__":
    key = jax.random.PRNGKey(0)

    B, Cin, H, W = 2, 4, 16, 16
    num_pos_feats = 64          # -> output channels = 128

    # x is only carried for shape/device in the original module; build it anyway.
    x = jax.random.normal(key, (B, Cin, H, W), dtype=jnp.float32)

    # Deterministic padding mask (True = padded), like a NestedTensor mask.
    valid_h = jnp.array([16, 11], dtype=jnp.int32)
    valid_w = jnp.array([13, 16], dtype=jnp.int32)
    hh = jnp.arange(H)[None, :, None]
    ww = jnp.arange(W)[None, None, :]
    mask = (hh >= valid_h[:, None, None]) | (ww >= valid_w[:, None, None])

    ok = True
    for normalize in (False, True):
        ref = _reference(mask, num_pos_feats=num_pos_feats, temperature=10000,
                         normalize=normalize, scale=None)

        # f32 path (bit-level comparable to the PyTorch module); exercise both the
        # auto-picked single-chunk grid and a forced multi-chunk (128-pixel) grid.
        for tile_pixels in (None, 128):
            pos = position_embedding_sine(mask, num_pos_feats=num_pos_feats,
                                          temperature=10000, normalize=normalize,
                                          scale=None, tile_pixels=tile_pixels)
            pos = jax.block_until_ready(pos)
            ok &= (pos.shape == (B, 2 * num_pos_feats, H, W))
            ok &= bool(jnp.allclose(pos, ref, atol=1e-4, rtol=1e-4))

        # Opt-in bf16 store (write-bound kernel => ~2x fewer HBM bytes); looser tol.
        pos_bf16 = position_embedding_sine(mask, num_pos_feats=num_pos_feats,
                                           temperature=10000, normalize=normalize,
                                           scale=None, out_dtype=jnp.bfloat16)
        pos_bf16 = jax.block_until_ready(pos_bf16)
        ok &= bool(jnp.allclose(pos_bf16.astype(jnp.float32), ref,
                                atol=2e-2, rtol=2e-2))

    if ok:
        print("KERNEL_OK")
</pallas_src>

<mosaic_0001>
module attributes {stable_mosaic.version = 11 : i64} {
  func.func @_pos_embed_kernel(%arg0: i32, %arg1: i32, %arg2: memref<1x1x256xf32, #tpu.memory_space<vmem>>, %arg3: memref<1x1x256xf32, #tpu.memory_space<vmem>>, %arg4: memref<64x1xf32, #tpu.memory_space<vmem>>, %arg5: memref<64x1xf32, #tpu.memory_space<vmem>>, %arg6: memref<1x128x256xf32, #tpu.memory_space<vmem>>) attributes {dimension_semantics = [#tpu.dimension_semantics<parallel>, #tpu.dimension_semantics<parallel>], iteration_bounds = array<i64: 2, 1>, scalar_prefetch = 0 : i64, scratch_operands = 0 : i64, tpu.core_type = #tpu.core_type<tc>, window_params = [{transform_indices = @transform_0, window_bounds = array<i64: 1, 1, 256>}, {transform_indices = @transform_1, window_bounds = array<i64: 1, 1, 256>}, {pipeline_mode = #tpu.pipeline_mode<synchronous>, transform_indices = @transform_2, window_bounds = array<i64: 64, 1>}, {pipeline_mode = #tpu.pipeline_mode<synchronous>, transform_indices = @transform_3, window_bounds = array<i64: 64, 1>}, {transform_indices = @transform_4, window_bounds = array<i64: 1, 128, 256>}]} {
    %c0 = arith.constant 0 : index
    %c0_0 = arith.constant 0 : index
    %c0_1 = arith.constant 0 : index
    %0 = vector.load %arg2[%c0, %c0_0, %c0_1] : memref<1x1x256xf32, #tpu.memory_space<vmem>>, vector<1x1x256xf32>
    %1 = vector.shape_cast %0 : vector<1x1x256xf32> to vector<1x256xf32>
    %c0_2 = arith.constant 0 : index
    %c0_3 = arith.constant 0 : index
    %c0_4 = arith.constant 0 : index
    %2 = vector.load %arg3[%c0_2, %c0_3, %c0_4] : memref<1x1x256xf32, #tpu.memory_space<vmem>>, vector<1x1x256xf32>
    %3 = vector.shape_cast %2 : vector<1x1x256xf32> to vector<1x256xf32>
    %c0_5 = arith.constant 0 : index
    %c0_6 = arith.constant 0 : index
    %4 = vector.load %arg4[%c0_5, %c0_6] : memref<64x1xf32, #tpu.memory_space<vmem>>, vector<64x1xf32>
    %c0_7 = arith.constant 0 : index
    %c0_8 = arith.constant 0 : index
    %5 = vector.load %arg5[%c0_7, %c0_8] : memref<64x1xf32, #tpu.memory_space<vmem>>, vector<64x1xf32>
    %6 = vector.broadcast %1 : vector<1x256xf32> to vector<64x256xf32>
    %7 = vector.broadcast %4 : vector<64x1xf32> to vector<64x256xf32>
    %8 = arith.mulf %6, %7 : vector<64x256xf32>
    %9 = vector.broadcast %5 : vector<64x1xf32> to vector<64x256xf32>
    %10 = arith.addf %8, %9 : vector<64x256xf32>
    %11 = math.sin %10 : vector<64x256xf32>
    %c0_9 = arith.constant 0 : index
    %c0_10 = arith.constant 0 : index
    %c0_11 = arith.constant 0 : index
    %12 = vector.load %arg6[%c0_9, %c0_10, %c0_11] : memref<1x128x256xf32, #tpu.memory_space<vmem>>, vector<1x64x256xf32>
    %13 = vector.shape_cast %12 : vector<1x64x256xf32> to vector<64x256xf32>
    %14 = vector.shape_cast %11 : vector<64x256xf32> to vector<1x64x256xf32>
    tpu.vector_store %arg6[%c0_9, %c0_10, %c0_11], %14 {strides = array<i32>} : memref<1x128x256xf32, #tpu.memory_space<vmem>>, vector<1x64x256xf32>,
    %15 = vector.broadcast %3 : vector<1x256xf32> to vector<64x256xf32>
    %16 = vector.broadcast %4 : vector<64x1xf32> to vector<64x256xf32>
    %17 = arith.mulf %15, %16 : vector<64x256xf32>
    %18 = vector.broadcast %5 : vector<64x1xf32> to vector<64x256xf32>
    %19 = arith.addf %17, %18 : vector<64x256xf32>
    %20 = math.sin %19 : vector<64x256xf32>
    %c0_12 = arith.constant 0 : index
    %c64 = arith.constant 64 : index
    %c0_13 = arith.constant 0 : index
    %21 = vector.load %arg6[%c0_12, %c64, %c0_13] : memref<1x128x256xf32, #tpu.memory_space<vmem>>, vector<1x64x256xf32>
    %22 = vector.shape_cast %21 : vector<1x64x256xf32> to vector<64x256xf32>
    %23 = vector.shape_cast %20 : vector<64x256xf32> to vector<1x64x256xf32>
    tpu.vector_store %arg6[%c0_12, %c64, %c0_13], %23 {strides = array<i32>} : memref<1x128x256xf32, #tpu.memory_space<vmem>>, vector<1x64x256xf32>,
    return
  }
  func.func @transform_0(%arg0: i32, %arg1: i32) -> (i32, i32, i32) {
    %c0_i32 = arith.constant 0 : i32
    %c0_i32_0 = arith.constant 0 : i32
    return %arg0, %c0_i32, %arg1 : i32, i32, i32
  }
  func.func @transform_1(%arg0: i32, %arg1: i32) -> (i32, i32, i32) {
    %c0_i32 = arith.constant 0 : i32
    %c0_i32_0 = arith.constant 0 : i32
    return %arg0, %c0_i32, %arg1 : i32, i32, i32
  }
  func.func @transform_2(%arg0: i32, %arg1: i32) -> (i32, i32) {
    %c0_i32 = arith.constant 0 : i32
    %c0_i32_0 = arith.constant 0 : i32
    %c0_i32_1 = arith.constant 0 : i32
    return %c0_i32, %c0_i32_0 : i32, i32
  }
  func.func @transform_3(%arg0: i32, %arg1: i32) -> (i32, i32) {
    %c0_i32 = arith.constant 0 : i32
    %c0_i32_0 = arith.constant 0 : i32
    %c0_i32_1 = arith.constant 0 : i32
    return %c0_i32, %c0_i32_0 : i32, i32
  }
  func.func @transform_4(%arg0: i32, %arg1: i32) -> (i32, i32, i32) {
    %c0_i32 = arith.constant 0 : i32
    %c0_i32_0 = arith.constant 0 : i32
    return %arg0, %c0_i32, %arg1 : i32, i32, i32
  }
}

</mosaic_0001>

<bundles_post_ra>
// kernel: tpu_custom_call.1
= control target key start
LH: loop header
LB: loop body
LE: loop exit
PB: predicated region body
PF: predicated region fallthrough
CT: control target
= control target key end

     0   :  { %9 = vsyncpa [#allocation3], 0  ;;  %s9807_s0 = inlined_call_operand.vmem [shape: f32[2,1,256], index: 0, kind: input, shape index: {}]   ;;  %s9808_s1 = inlined_call_operand.vmem [shape: f32[2,1,256], index: 1, kind: input, shape index: {}]   ;;  %s9809_s2 = inlined_call_operand.vmem [shape: f32[64,1], index: 2, kind: input, shape index: {}]   ;;  %s9810_s3 = inlined_call_operand.vmem [shape: f32[64,1], index: 3, kind: input, shape index: {}]   ;;  %s9811_s4 = inlined_call_operand.hbm [shape: f32[2,128,256], index: 4, kind: output, shape index: {}]  }
   0x1   :  { %11 = vsyncpa [#allocation3 + $0x1], 0  ;;  %s5821_s15 = smov 0   ;;  %s5823_s16 = smov 0  }
   0x2   :  { %s5825_s17 = smov 0   ;;  %s5827_s18 = smov 0  }
   0x3   :  { %s5829_s19 = smov 0   ;;  %s5831_s20 = smov 0  }
   0x4 LB: > { %s5530_s21 = sadd.s32 4294967295, %s5785_s20   ;;  %s5531_s22 = sadd.s32 4294967294, %s5785_s20   ;;  %s5785_s20 = sphi %s5831_s20, %s17_s20   ;;  %s5781_s19 = sphi %s5829_s19, %s9924_s19   ;;  %s5777_s18 = sphi %s5827_s18, %s9923_s18   ;;  %s5773_s17 = sphi %s5825_s17, %s9922_s17   ;;  %s5769_s16 = sphi %s5823_s16, %s9921_s16   ;;  %s5765_s15 = sphi %s5821_s15, %s9920_s15  }
   0x5   : > { %s29_s23 = sadd.s32 1, %s5781_s19  ;;  %s136_s24 = sadd.s32 1, %s5773_s17 }
   0x6   : > { %p31_p0 = scmp.ge.s32.totalorder %s29_s23, 2  ;;  %p146_p1 = scmp.ne.s32.totalorder %s5773_s17, %s5769_s16 }
   0x7   : > { %p147_p2 = scmp.eq.s32.totalorder %s5530_s21, 1  ;;  %p152_p3 = scmp.ne.s32.totalorder %s5769_s16, %s5765_s15 }
   0x8   : > { %s9926_s23 = smov (%p31_p0, %s29_s23), 0  ;;  %p153_p5 = scmp.eq.s32.totalorder %s5531_s22, 1 }
   0x9   : > { %p5861_p4 = por %p147_p2, %p146_p1  ;;  %s131_s26 = ssub.s32 %s5781_s19, %s9926_s23 }
   0xa   : > { %p5534_p6 = scmp.ge.s32.totalorder %s5785_s20, 1  ;;  %p134_p7 = scmp.eq.s32.totalorder %s131_s26, 0 }
   0xb   : > { %p5868_p8 = por %p153_p5, %p152_p3  ;;  %p201_p9 = scmp.lt.s32.totalorder %s5785_s20, 3 }
   0xc   : > { %s5874_s28 = scalar_select %p134_p7, %s5773_s17, %s136_s24  }
   0xd   : > { %p202_p10 = pnand %p5534_p6, %p201_p9 }
   0xf   : > { %205 = sbr.rel (%p202_p10) target bundleno = 1393 (0x571), region = 36 }
  0x14   : > { %v263_v0 = vld [vmem:[%s9809_s2 + $0x20] sm:$0xff]  ;;  %v261_v1 = vld [vmem:[%s9809_s2 + $0x10] sm:$0xff]  ;;  %v5787_v3 = vmov 0   ;;  %v264_v4 = vld [vmem:[%s9809_s2 + $0x28] sm:$0xff]  ;;  %p239_p11 = scmp.lt.s32.totalorder %s5777_s18, 1  ;;  %s235_s8 = sand.u32 1, %s5769_s16  }
  0x15   : > { %v259_v2 = vld [vmem:[%s9809_s2] sm:$0xff]  ;;  %5706 = vset.pattern.permute.xlu2 %v5787_v3  ;;  %5705 = vset.pattern.permute.xlu1 %v5787_v3  ;;  %v262_v5 = vld [vmem:[%s9809_s2 + $0x18] sm:$0xff]  ;;  %v260_v6 = vld [vmem:[%s9809_s2 + $0x8] sm:$0xff]  ;;  %v9817_v45 = vmov 683565275   ;;  %s5535_s9 = sshll.u32 %s235_s8, 8 }
  0x16   : > { %5704 = vset.pattern.permute.xlu0 %v5787_v3  ;;  %302 = vperm.xlu2 %5706, %v263_v0   ;;  %v267_v7 = vld [vmem:[%s9810_s3] sm:$0xff]  ;;  %v266_v8 = vld [vmem:[%s9809_s2 + $0x38] sm:$0xff]  ;;  %v265_v9 = vld [vmem:[%s9809_s2 + $0x30] sm:$0xff]  ;;  %s5931_s29 = scalar_select %p239_p11, %s5777_s18, 1  ;;  %v9827_v47 = vmov 2475754826  }
  0x17   : > { %292 = vperm.xlu1 %5705, %v261_v1   ;;  %282 = vperm.xlu0 %5704, %v259_v2   ;;  %v270_v10 = vld [vmem:[%s9810_s3 + $0x18] sm:$0xff]  ;;  %v269_v11 = vld [vmem:[%s9810_s3 + $0x10] sm:$0xff]  ;;  %v268_v12 = vld [vmem:[%s9810_s3 + $0x8] sm:$0xff]  ;;  %v9825_v51 = vmov 2131351028   ;;  %s6274_s10 = scalar_lea.vmem [#allocation2], %s5535_s9 }
  0x18   : > { %v273_v13 = vld [vmem:[%s9810_s3 + $0x30] sm:$0xff]  ;;  %v272_v14 = vld [vmem:[%s9810_s3 + $0x28] sm:$0xff]  ;;  %v271_v15 = vld [vmem:[%s9810_s3 + $0x20] sm:$0xff]  ;;  %s5536_s30 = sshll.u32 %s5931_s29, 1  ;;  %v9821_v54 = vmov 2102212464  }
  0x19   : > { %v274_v16 = vld [vmem:[%s9810_s3 + $0x38] sm:$0xff]  ;;  %s245_s7 = scalar_lea.vmem %s9807_s0, %s5536_s30  ;;  %v9819_v57 = vmov 920167782   ;;  %v9815_v60 = vmov 1326507024   ;;  %s254_s13 = scalar_lea.vmem %s9808_s1, %s5536_s30 }
  0x1a   : > { %v257_v19 = vld [vmem:[%s245_s7] sm:$0x3]  ;;  %s5639_s14 = sshll.u32 %s5777_s18, 8  ;;  %s5436_s26 = sshll.u32 %s6274_s10, 4  ;;  %s5437_s26 = int_to_ptr.vmem [resolvable:$true] %s5436_s26 }
  0x1b   : > { %v5941_v20 = vperm.slane %v257_v19, 0  ;;  %v5943_v21 = vperm.slane %v257_v19, 1  ;;  %s5435_s24 = scalar_lea.hbm %s9811_s4, %s5639_s14  ;;  %s5422_s18 = scalar_lea.sflag [#allocation3], %s235_s8 }
  0x1c   : > { %s5438_s29 = sshll.u32 %s5435_s24, 4  ;;  %s5727_s9 = scalar_lea.hbm %s9811_s4, 512  ;;  %s5439_s29 = int_to_ptr.hbm [resolvable:$true] %s5438_s29 }
  0x1d   : > { %s5721_s30 = sshra.s32 %s5439_s29, 4  ;;  %s5722_s30 = int_to_ptr.hbm [resolvable:$true] %s5721_s30 }
  0x1e   : > { %307 = vperm.xlu2 %5706, %v264_v4   ;;  %s5723_s5 = scalar_lea.hbm %s5722_s30, 256  ;;  %p5728_p1 = scmp.lt.s32.totalorder %s5722_s30, %s9811_s4 }
  0x1f   : > { %297 = vperm.xlu1 %5705, %v262_v5   ;;  %287 = vperm.xlu0 %5704, %v260_v6   ;;  %p5724_p12 = scmp.ne.s32.totalorder %s5722_s30, %s5723_s5  ;;  %p5729_p2 = scmp.lt.s32.totalorder %s5727_s9, %s5723_s5 }
  0x21   : > { %p5725_p13 = pnand %p5724_p12, %p5861_p4  ;;  %p5730_p3 = por %p5729_p2, %p5728_p1 }
  0x23   : > { %p5726_p0 = pneg %p5725_p13 }
  0x25   : > { %p5731_p5 = pnand %p5730_p3, %p5726_p0 }
  0x26   : > { %338 = vperm.xlu2 %5706, %v267_v7  }
  0x27   : > { %317 = vperm.xlu1 %5705, %v266_v8   ;;  %312 = vperm.xlu0 %5704, %v265_v9  }
  0x2e   : > { %353 = vperm.xlu2 %5706, %v270_v10  }
  0x2f   : > { %348 = vperm.xlu1 %5705, %v269_v11   ;;  %343 = vperm.xlu0 %5704, %v268_v12  }
  0x36   : > { %368 = vperm.xlu2 %5706, %v273_v13  }
  0x37   : > { %363 = vperm.xlu1 %5705, %v272_v14   ;;  %358 = vperm.xlu0 %5704, %v271_v15  }
  0x3f   : > { %373 = vperm.xlu0 %5704, %v274_v16  }
  0x70   : > { %v5928_v17 = vpop.permute.xlu2 %302 }
  0x71   : > { %9841 = vst [vmem:[#allocation5_spill] sm:$0xff] %v5928_v17 }
  0x78   : > { %v5939_v18 = vpop.permute.xlu2 %307 }
  0x79   : > { %9842 = vst [vmem:[#allocation6_spill] sm:$0xff] %v5939_v18 }
  0x80   : > { %v5951_v25 = vpop.permute.xlu2 %338 }
  0x89   : > { %v5945_v22 = vpop.permute.xlu0 %282 }
  0x8a   : > { %v320_v23 = vmul.f32 %v5945_v22, %v5941_v20  ;;  %v321_v24 = vmul.f32 %v5945_v22, %v5943_v21 }
  0x8c   : > { %v5954_v26 = vadd.f32 %v5951_v25, %v320_v23  ;;  %v5957_v27 = vadd.f32 %v5951_v25, %v321_v24 }
  0x8e   : > { %v395_v28 = vand.u32 2139095040, %v5954_v26  ;;  %v550_v29 = vand.u32 2139095040, %v5957_v27  ;;  %v392_v32 = vand.u32 2147483647, %v5954_v26  ;;  %v547_v43 = vand.u32 2147483647, %v5957_v27 }
  0x8f   : > { %vm394_vm15 = vcmp.lt.s32.totalorder %v5954_v26, 0 }
  0x90   : > { %v396_v30 = vshrl.u32 %v395_v28, 23  ;;  %v551_v31 = vshrl.u32 %v550_v29, 23  ;;  %v399_v37 = vand.u32 8388607, %v392_v32  ;;  %v554_v4 = vand.u32 8388607, %v547_v43 }
  0x91   : > { %v5992_v9 = vpop.permute.xlu0 %287 }
  0x92   : > { %v5538_v33 = vadd.s32 4294967169, %v396_v30  ;;  %v5541_v34 = vadd.s32 4294967169, %v551_v31  ;;  %v400_v41 = vor.u32 8388608, %v399_v37  ;;  %v555_v14 = vor.u32 8388608, %v554_v4 }
  0x94   : > { %v402_v35 = vadd.s32 1, %v5538_v33  ;;  %v557_v36 = vadd.s32 1, %v5541_v34  ;;  %v5982_v5 = vshll.u32 %v400_v41, 8 }
  0x96   : > { %vm403_vm0 = vcmp.gt.s32.totalorder %v402_v35, 0  ;;  %vm558_vm1 = vcmp.gt.s32.totalorder %v557_v36, 0  ;;  %v441_v19 = vand.u32 65535, %v5982_v5  ;;  %v442_v34 = vshrl.u32 %v5982_v5, 16 }
  0x97   : > { %v404_v38 = vsel %vm403_vm0, %v402_v35, 0  ;;  %v559_v40 = vsel %vm558_vm1, %v557_v36, 0  ;;  %v6017_v35 = vmul.f32 %v5992_v9, %v5941_v20 }
  0x98   : > { %v406_v39 = vand.u32 31, %v404_v38  ;;  %v5965_v44 = vshrl.u32 %v404_v38, 5  ;;  %v5969_v49 = vand.u32 31, %v559_v40  ;;  %v6021_v38 = vshll.u32 %v555_v14, 8 }
  0x9a   : > { %v407_v42 = vsub.s32 32, %v406_v39  ;;  %v409_v46 = vshll.u32 %v9817_v45, %v406_v39  ;;  %v412_v48 = vshll.u32 %v9827_v47, %v406_v39  ;;  %v415_v53 = vshll.u32 %v9825_v51, %v406_v39 }
  0x9b   : > { %v418_v56 = vshll.u32 %v9821_v54, %v406_v39  ;;  %v421_v59 = vshll.u32 %v9819_v57, %v406_v39  ;;  %vm424_vm2 = vcmp.lt.s32.totalorder %v5965_v44, 1  ;;  %v5985_v6 = vsub.s32 32, %v5969_v49 }
  0x9c   : > { %v410_v50 = vshrl.u32 %v9827_v47, %v407_v42  ;;  %v413_v52 = vshrl.u32 %v9825_v51, %v407_v42  ;;  %v416_v55 = vshrl.u32 %v9821_v54, %v407_v42  ;;  %v419_v58 = vshrl.u32 %v9819_v57, %v407_v42 }
  0x9d   : > { %v422_v61 = vshrl.u32 %v9815_v60, %v407_v42  ;;  %vm427_vm3 = vcmp.lt.s32.totalorder %v5965_v44, 4  ;;  %vm426_vm4 = vcmp.lt.s32.totalorder %v5965_v44, 3  ;;  %vm425_vm5 = vcmp.lt.s32.totalorder %v5965_v44, 2 }
  0x9e   : > { %v411_v62 = vor.u32 %v410_v50, %v409_v46  ;;  %v414_v63 = vor.u32 %v413_v52, %v412_v48  ;;  %v417_v0 = vor.u32 %v416_v55, %v415_v53  ;;  %v420_v1 = vor.u32 %v419_v58, %v418_v56 }
  0x9f   : > { %v423_v2 = vor.u32 %v422_v61, %v421_v59  ;;  %v565_v23 = vshrl.u32 %v9827_v47, %v5985_v6  ;;  %v408_v31 = vshrl.u32 %v9817_v45, %v407_v42  ;;  %v564_v37 = vshll.u32 %v9817_v45, %v5969_v49 }
  0xa0   : > { %v432_v7 = vsel %vm424_vm2, %v411_v62, %v414_v63  ;;  %v436_v8 = vsel %vm424_vm2, %v414_v63, %v417_v0  ;;  %v433_v10 = vsel %vm427_vm3, %v420_v1, 920167782  ;;  %v429_v33 = vsel %vm427_vm3, %v417_v0, 2102212464 }
  0xa1   : > { %v437_v11 = vsel %vm427_vm3, %v423_v2, 1326507024  ;;  %v434_v12 = vsel %vm426_vm4, %v417_v0, %v433_v10  ;;  %v428_v39 = vsel %vm424_vm2, %v408_v31, %v411_v62  ;;  %v6025_v46 = vshrl.u32 %v559_v40, 5 }
  0xa2   : > { %v438_v13 = vsel %vm426_vm4, %v420_v1, %v437_v11  ;;  %v435_v15 = vsel %vm425_vm5, %v432_v7, %v434_v12  ;;  %v430_v48 = vsel %vm426_vm4, %v414_v63, %v429_v33  ;;  %v6029_v52 = vor.u32 %v565_v23, %v564_v37  ;;  %v6037_v1 = vpop.permute.xlu0 %312 }
  0xa3   : > { %v439_v16 = vsel %vm425_vm5, %v436_v8, %v438_v13  ;;  %v465_v29 = vand.u32 65535, %v435_v15  ;;  %v466_v30 = vshrl.u32 %v435_v15, 16  ;;  %v567_v53 = vshll.u32 %v9827_v47, %v5969_v49 }
  0xa4   : > { %v443_v24 = vand.u32 65535, %v439_v16  ;;  %v444_v28 = vshrl.u32 %v439_v16, 16  ;;  %v568_v58 = vshrl.u32 %v9825_v51, %v5985_v6  ;;  %v570_v59 = vshll.u32 %v9825_v51, %v5969_v49 }
  0xa5   : > { %v468_v42 = vmul.u32 %v466_v30, %v441_v19  ;;  %v469_v50 = vmul.u32 %v465_v29, %v442_v34  ;;  %v467_v40 = vmul.u32 %v465_v29, %v441_v19  ;;  %v470_v62 = vmul.u32 %v466_v30, %v442_v34 }
  0xa6   : > { %v446_v36 = vmul.u32 %v444_v28, %v441_v19  ;;  %v447_v41 = vmul.u32 %v443_v24, %v442_v34  ;;  %v445_v55 = vmul.u32 %v443_v24, %v441_v19  ;;  %v448_v61 = vmul.u32 %v444_v28, %v442_v34 }
  0xa7   : > { %v471_v0 = vshll.u32 %v468_v42, 16  ;;  %v473_v8 = vshll.u32 %v469_v50, 16  ;;  %v571_v13 = vshrl.u32 %v9821_v54, %v5985_v6  ;;  %v6044_v16 = vor.u32 %v568_v58, %v567_v53 }
  0xa8   : > { %v449_v56 = vshll.u32 %v446_v36, 16  ;;  %v450_v63 = vshrl.u32 %v446_v36, 16  ;;  %v451_v2 = vshll.u32 %v447_v41, 16  ;;  %v573_v24 = vshll.u32 %v9821_v54, %v5969_v49 }
  0xa9   : > { %vm475_vm7 = vc.u32 %v467_v40, %v471_v0  ;;  %v477_v10 = vadd.s32 %v471_v0, %v467_v40  ;;  %v574_v28 = vshrl.u32 %v9819_v57, %v5985_v6  ;;  %v472_v29 = vshrl.u32 %v468_v42, 16 }
  0xaa   : > { %vm453_vm6 = vc.u32 %v445_v55, %v449_v56  ;;  %v455_v4 = vadd.s32 %v449_v56, %v445_v55  ;;  %v476_v12 = vsel %vm475_vm7, 1, %v5787_v3  ;;  %v576_v31 = vshll.u32 %v9819_v57, %v5969_v49 }
  0xab   : > { %v454_v7 = vsel %vm453_vm6, 1, %v5787_v3  ;;  %v478_v15 = vadd.s32 %v476_v12, %v470_v62  ;;  %vm479_vm9 = vc.u32 %v477_v10, %v473_v8  ;;  %v577_v33 = vshrl.u32 %v9815_v60, %v5985_v6 }
  0xac   : > { %v456_v11 = vadd.s32 %v454_v7, %v448_v61  ;;  %vm457_vm8 = vc.u32 %v455_v4, %v451_v2  ;;  %v480_v23 = vsel %vm479_vm9, 1, %v5787_v3  ;;  %v452_v34 = vshrl.u32 %v447_v41, 16 }
  0xad   : > { %v458_v14 = vsel %vm457_vm8, 1, %v5787_v3  ;;  %v482_v30 = vadd.s32 %v480_v23, %v478_v15  ;;  %v572_v37 = vor.u32 %v571_v13, %v570_v59  ;;  %v575_v53 = vor.u32 %v574_v28, %v573_v24  ;;  %v6070_v59 = vpop.permute.xlu0 %343 }
  0xae   : > { %v460_v19 = vadd.s32 %v458_v14, %v456_v11  ;;  %v474_v55 = vshrl.u32 %v469_v50, 16  ;;  %v578_v58 = vor.u32 %v577_v33, %v576_v31  ;;  %vm579_vm10 = vcmp.lt.s32.totalorder %v6025_v46, 1 }
  0xaf   : > { %v483_v56 = vadd.s32 %v482_v30, %v472_v29  ;;  %v6058_v40 = vadd.s32 %v477_v10, %v473_v8  ;;  %vm582_vm11 = vcmp.lt.s32.totalorder %v6025_v46, 4  ;;  %v587_v49 = vsel %vm579_vm10, %v6029_v52, %v6044_v16 }
  0xb0   : > { %v461_v36 = vadd.s32 %v460_v19, %v450_v63  ;;  %v431_v41 = vsel %vm425_vm5, %v428_v39, %v430_v48  ;;  %vm581_vm12 = vcmp.lt.s32.totalorder %v6025_v46, 3  ;;  %v588_v50 = vsel %vm582_vm11, %v575_v53, 920167782 }
  0xb1   : > { %v484_v42 = vadd.s32 %v483_v56, %v474_v55  ;;  %vm580_vm14 = vcmp.lt.s32.totalorder %v6025_v46, 2  ;;  %v589_v62 = vsel %vm581_vm12, %v572_v37, %v588_v50  ;;  %v591_v44 = vsel %vm579_vm10, %v6044_v16, %v572_v37 }
  0xb2   : > { %v6056_v61 = vadd.s32 %v461_v36, %v452_v34  ;;  %v590_v48 = vsel %vm580_vm14, %v587_v49, %v589_v62  ;;  %v592_v0 = vsel %vm582_vm11, %v578_v58, 1326507024  ;;  %v596_v63 = vand.u32 65535, %v6021_v38 }
  0xb3   : > { %v488_v39 = vadd.s32 1, %v484_v42  ;;  %v485_v2 = vmul.u32 %v5982_v5, %v431_v41  ;;  %v593_v4 = vsel %vm581_vm12, %v575_v53, %v592_v0  ;;  %v620_v7 = vand.u32 65535, %v590_v48 }
  0xb4   : > { %vm487_vm13 = vc.u32 %v6056_v61, %v6058_v40  ;;  %v621_v8 = vshrl.u32 %v590_v48, 16  ;;  %v6090_v10 = vadd.f32 %v6070_v59, %v6017_v35  ;;  %v594_v12 = vsel %vm580_vm14, %v591_v44, %v593_v4 }
  0xb5   : > { %v489_v11 = vsel %vm487_vm13, %v488_v39, %v484_v42  ;;  %v597_v13 = vshrl.u32 %v6021_v38, 16  ;;  %v563_v15 = vshrl.u32 %v9817_v45, %v5985_v6  ;;  %v598_v5 = vand.u32 65535, %v594_v12 }
  0xb6   : > { %v490_v14 = vadd.s32 %v489_v11, %v485_v2  ;;  %v599_v19 = vshrl.u32 %v594_v12, 16  ;;  %v623_v23 = vmul.u32 %v621_v8, %v596_v63  ;;  %v584_v31 = vsel %vm582_vm11, %v572_v37, 2102212464 }
  0xb7   : > { %v624_v24 = vmul.u32 %v620_v7, %v597_v13  ;;  %v583_v35 = vsel %vm579_vm10, %v563_v15, %v6029_v52  ;;  %v602_v30 = vmul.u32 %v598_v5, %v597_v13  ;;  %v622_v33 = vmul.u32 %v620_v7, %v596_v63 }
  0xb8   : > { %v491_v28 = vadd.s32 536870912, %v490_v14  ;;  %v601_v29 = vmul.u32 %v599_v19, %v596_v63  ;;  %v626_v34 = vshll.u32 %v623_v23, 16  ;;  %v705_v6 = vand.u32 2139095040, %v6090_v10 }
  0xb9   : > { %v600_v53 = vmul.u32 %v598_v5, %v596_v63  ;;  %v625_v56 = vmul.u32 %v621_v8, %v597_v13  ;;  %v603_v58 = vmul.u32 %v599_v19, %v597_v13  ;;  %v628_v49 = vshll.u32 %v624_v24, 16 }
  0xba   : > { %v492_v36 = vshrl.u32 %v491_v28, 30  ;;  %v604_v55 = vshll.u32 %v601_v29, 16  ;;  %vm630_vm0 = vc.u32 %v622_v33, %v626_v34  ;;  %v632_v41 = vadd.s32 %v626_v34, %v622_v33 }
  0xbb   : > { %v606_v50 = vshll.u32 %v602_v30, 16  ;;  %v631_v37 = vsel %vm630_vm0, 1, %v5787_v3  ;;  %v585_v48 = vsel %vm581_vm12, %v6044_v16, %v584_v31  ;;  %v702_v7 = vand.u32 2147483647, %v6090_v10 }
  0xbc   : > { %v493_v42 = vshll.u32 %v492_v36, 30  ;;  %vm608_vm1 = vc.u32 %v600_v53, %v604_v55  ;;  %v610_v52 = vadd.s32 %v604_v55, %v600_v53  ;;  %v516_v62 = vsub.s32 4, %v492_v36 }
  0xbd   : > { %v609_v44 = vsel %vm608_vm1, 1, %v5787_v3  ;;  %vm634_vm2 = vc.u32 %v632_v41, %v628_v49  ;;  %v633_v2 = vadd.s32 %v631_v37, %v625_v56  ;;  %v605_v11 = vshrl.u32 %v601_v29, 16 }
  0xbe   : > { %v494_v39 = vsub.s32 %v490_v14, %v493_v42  ;;  %v611_v0 = vadd.s32 %v609_v44, %v603_v58  ;;  %vm612_vm3 = vc.u32 %v610_v52, %v606_v50  ;;  %v635_v4 = vsel %vm634_vm2, 1, %v5787_v3 }
  0xbf   : > { %v613_v63 = vsel %vm612_vm3, 1, %v5787_v3  ;;  %v517_v13 = vsel %vm394_vm15, %v516_v62, %v492_v36  ;;  %v627_v14 = vshrl.u32 %v623_v23, 16  ;;  %v637_v15 = vadd.s32 %v635_v4, %v633_v2 }
  0xc0   : > { %vm495_vm4 = vcmp.lt.s32.totalorder %v494_v39, 0  ;;  %v496_v8 = vsub.s32 0, %v494_v39  ;;  %v615_v12 = vadd.s32 %v613_v63, %v611_v0  ;;  %v706_v5 = vshrl.u32 %v705_v6, 23 }
  0xc1   : > { %vm6116_vm5 = vcmp.le.f32.partialorder %v392_v32, 0.7853982  ;;  %v607_v28 = vshrl.u32 %v602_v30, 16  ;;  %v629_v34 = vshrl.u32 %v624_v24, 16  ;;  %v638_v53 = vadd.s32 %v637_v15, %v627_v14 }
  0xc2   : > { %v497_v19 = vsel %vm495_vm4, %v496_v8, %v494_v39  ;;  %v616_v31 = vadd.s32 %v615_v12, %v605_v11  ;;  %v5544_v29 = vadd.s32 4294967169, %v706_v5  ;;  %v519_v55 = vsel %vm6116_vm5, 0, %v517_v13 }
  0xc3   : > { %v498_v33 = vclz %v497_v19  ;;  %v586_v23 = vsel %vm580_vm14, %v583_v35, %v585_v48  ;;  %v636_v36 = vadd.s32 %v632_v41, %v628_v49  ;;  %v639_v32 = vadd.s32 %v638_v53, %v629_v34 }
  0xc4   : > { %v617_v6 = vadd.s32 %v616_v31, %v607_v28  ;;  %v709_v58 = vand.u32 8388607, %v702_v7  ;;  %v712_v42 = vadd.s32 1, %v5544_v29  ;;  %v486_v24 = vadd.s32 %v6058_v40, %v6056_v61 }
  0xc5   : > { %v5539_v56 = vadd.s32 4294967294, %v498_v33  ;;  %v643_v30 = vadd.s32 1, %v639_v32  ;;  %v536_v52 = vadd.s32 3, %v519_v55  ;;  %v640_v46 = vmul.u32 %v6021_v38, %v586_v23 }
  0xc6   : > { %vm642_vm6 = vc.u32 %v617_v6, %v636_v36  ;;  %vm713_vm8 = vcmp.gt.s32.totalorder %v712_v42, 0  ;;  %v710_v44 = vor.u32 8388608, %v709_v58  ;;  %v323_v37 = vmul.f32 %v5992_v9, %v5943_v21 }
  0xc7   : > { %vm5540_vm7 = vcmp.lt.s32.totalorder %v5539_v56, 0  ;;  %v714_v35 = vsel %vm713_vm8, %v712_v42, 0  ;;  %v644_v41 = vsel %vm642_vm6, %v643_v30, %v639_v32  ;;  %v6134_v12 = vand.u32 3, %v536_v52  ;;  %v6151_v32 = vpop.permute.xlu1 %292 }
  0xc8   : > { %v501_v50 = vsel %vm5540_vm7, 0, %v5539_v56  ;;  %v645_v48 = vadd.s32 %v644_v41, %v640_v46  ;;  %v716_v0 = vand.u32 31, %v714_v35  ;;  %v6132_v40 = vadd.f32 %v6070_v59, %v323_v37 }
  0xc9   : > { %v502_v62 = vsub.s32 32, %v501_v50  ;;  %v506_v49 = vsub.s32 4294967266, %v501_v50  ;;  %v503_v63 = vshll.u32 %v494_v39, %v501_v50  ;;  %v6136_v13 = vshll.u32 %v710_v44, 8 }
  0xca   : > { %v646_v4 = vadd.s32 536870912, %v645_v48  ;;  %v717_v8 = vsub.s32 32, %v716_v0  ;;  %v6138_v14 = vadd.s32 %v636_v36, %v617_v6  ;;  %v719_v28 = vshll.u32 %v9817_v45, %v716_v0 }
  0xcb   : > { %v504_v2 = vshrl.u32 %v486_v24, %v502_v62  ;;  %v507_v61 = vadd.s32 127, %v506_v49  ;;  %vm549_vm9 = vcmp.lt.s32.totalorder %v5957_v27, 0  ;;  %v6146_v53 = vshrl.u32 %v714_v35, 5 }
  0xcc   : > { %v647_v15 = vshrl.u32 %v646_v4, 30  ;;  %v720_v5 = vshrl.u32 %v9827_v47, %v717_v8  ;;  %v723_v39 = vshrl.u32 %v9825_v51, %v717_v8  ;;  %v726_v31 = vshrl.u32 %v9821_v54, %v717_v8 }
  0xcd   : > { %v505_v11 = vor.u32 %v504_v2, %v503_v63  ;;  %v508_v38 = vshll.u32 %v507_v61, 23  ;;  %v729_v33 = vshrl.u32 %v9819_v57, %v717_v8  ;;  %v722_v29 = vshll.u32 %v9827_v47, %v716_v0 }
  0xce   : > { %v648_v34 = vshll.u32 %v647_v15, 30  ;;  %v728_v55 = vshll.u32 %v9821_v54, %v716_v0  ;;  %v721_v36 = vor.u32 %v720_v5, %v719_v28  ;;  %v725_v56 = vshll.u32 %v9825_v51, %v716_v0 }
  0xcf   : > { %v509_v19 = vor.u32 4788187, %v508_v38  ;;  %v512_v6 = vcvt.s32.f32 %v505_v11  ;;  %v6155_v42 = vor.u32 %v723_v39, %v722_v29  ;;  %v732_v30 = vshrl.u32 %v9815_v60, %v717_v8 }
  0xd0   : > { %v6153_v58 = vsub.s32 %v645_v48, %v648_v34  ;;  %v730_v24 = vor.u32 %v729_v33, %v728_v55  ;;  %vm6160_vm10 = vcmp.le.f32.partialorder %v547_v43, 0.7853982  ;;  %v727_v46 = vor.u32 %v726_v31, %v725_v56 }
  0xd1   : > { %v510_v23 = vand.u32 2147483647, %v509_v19  ;;  %v6165_v35 = vand.u32 65535, %v6136_v13  ;;  %v860_v62 = vand.u32 2139095040, %v6132_v40  ;;  %v671_v41 = vsub.s32 4, %v647_v15 }
  0xd2   : > { %vm650_vm11 = vcmp.lt.s32.totalorder %v6153_v58, 0  ;;  %v651_v49 = vsub.s32 0, %v6153_v58  ;;  %v731_v44 = vshll.u32 %v9819_v57, %v716_v0  ;;  %vm734_vm12 = vcmp.lt.s32.totalorder %v6146_v53, 1 }
  0xd3   : > { %v513_v50 = vmul.f32 %v512_v6, %v510_v23  ;;  %vm736_vm13 = vcmp.lt.s32.totalorder %v6146_v53, 3  ;;  %vm737_vm14 = vcmp.lt.s32.totalorder %v6146_v53, 4  ;;  %v742_v63 = vsel %vm734_vm12, %v721_v36, %v6155_v42 }
  0xd4   : > { %v652_v43 = vsel %vm650_vm11, %v651_v49, %v6153_v58  ;;  %v733_v48 = vor.u32 %v732_v30, %v731_v44  ;;  %v743_v2 = vsel %vm737_vm14, %v730_v24, 920167782  ;;  %v752_v11 = vshrl.u32 %v6136_v13, 16 }
  0xd5   : > { %v514_v37 = vxor.u32 2147483648, %v513_v50  ;;  %v653_v61 = vclz %v652_v43  ;;  %v744_v4 = vsel %vm736_vm13, %v727_v46, %v743_v2  ;;  %v718_v5 = vshrl.u32 %v9817_v45, %v717_v8 }
  0xd6   : > { %vm735_vm0 = vcmp.lt.s32.totalorder %v6146_v53, 2  ;;  %v6192_v39 = vshrl.u32 %v860_v62, 23  ;;  %v6198_v31 = vsel %vm549_vm9, %v671_v41, %v647_v15  ;;  %v746_v16 = vsel %vm734_vm12, %v6155_v42, %v727_v46  ;;  %v6209_v15 = vpop.permute.xlu1 %297 }
  0xd7   : > { %v515_v0 = vsel %vm394_vm15, %v514_v37, %v513_v50  ;;  %v5542_v28 = vadd.s32 4294967294, %v653_v61  ;;  %v745_v33 = vsel %vm735_vm0, %v742_v63, %v744_v4  ;;  %v747_v8 = vsel %vm737_vm14, %v733_v48, 1326507024 }
  0xd8   : > { %v6188_v38 = vsel %vm6116_vm5, %v5954_v26, %v515_v0  ;;  %v775_v34 = vand.u32 65535, %v745_v33  ;;  %v776_v29 = vshrl.u32 %v745_v33, 16  ;;  %v748_v6 = vsel %vm736_vm13, %v730_v24, %v747_v8 }
  0xd9   : > { %v520_v19 = vmul.f32 %v6188_v38, %v6188_v38  ;;  %vm5543_vm15 = vcmp.lt.s32.totalorder %v5542_v28, 0  ;;  %v674_v30 = vsel %vm6160_vm10, 0, %v6198_v31  ;;  %v739_v50 = vsel %vm737_vm14, %v727_v46, 2102212464 }
  0xda   : > { %v656_v56 = vsel %vm5543_vm15, 0, %v5542_v28  ;;  %v749_v62 = vsel %vm735_vm0, %v746_v16, %v748_v6  ;;  %v6220_v37 = vsel %vm734_vm12, %v718_v5, %v721_v36  ;;  %v777_v63 = vmul.u32 %v775_v34, %v6165_v35 }
  0xdb   : > { %v521_v55 = vmul.f32 -0.001358992, %v520_v19  ;;  %v528_v23 = vmul.f32 -0.00019511016, %v520_v19  ;;  %v657_v44 = vsub.s32 32, %v656_v56  ;;  %v661_v24 = vsub.s32 4294967266, %v656_v56 }
  0xdc   : > { %v753_v43 = vand.u32 65535, %v749_v62  ;;  %v754_v48 = vshrl.u32 %v749_v62, 16  ;;  %v6225_v46 = vmul.u32 %v776_v29, %v6165_v35  ;;  %v658_v4 = vshll.u32 %v6153_v58, %v656_v56 }
  0xdd   : > { %v522_v49 = vadd.f32 0.041655596, %v521_v55  ;;  %v529_v41 = vadd.f32 0.008332121, %v528_v23  ;;  %v659_v61 = vshrl.u32 %v6138_v14, %v657_v44  ;;  %v662_v28 = vadd.s32 127, %v661_v24 }
  0xde   : > { %v756_v33 = vmul.u32 %v754_v48, %v6165_v35  ;;  %v757_v16 = vmul.u32 %v753_v43, %v752_v11  ;;  %v6229_v8 = vmul.u32 %v775_v34, %v752_v11  ;;  %v780_v55 = vmul.u32 %v776_v29, %v752_v11 }
  0xdf   : > { %v523_v2 = vmul.f32 %v522_v49, %v520_v19  ;;  %v530_v0 = vmul.f32 %v529_v41, %v520_v19  ;;  %vm539_vm1 = vcmp.eq.s32.totalorder %v6134_v12, 0  ;;  %vm542_vm2 = vcmp.eq.s32.totalorder %v6134_v12, 2 }
  0xe0   : > { %v660_v14 = vor.u32 %v659_v61, %v658_v4  ;;  %v663_v23 = vshll.u32 %v662_v28, 23  ;;  %v755_v6 = vmul.u32 %v753_v43, %v6165_v35  ;;  %v759_v62 = vshll.u32 %v756_v33, 16  ;;  %v6239_v43 = vpop.permute.xlu1 %317 }
  0xe1   : > { %v524_v36 = vadd.f32 -0.4999988, %v523_v2  ;;  %v531_v5 = vadd.f32 -0.16666654, %v530_v0  ;;  %vm538_vm3 = vcmp.lt.s32.totalorder %v6134_v12, 2  ;;  %v758_v49 = vmul.u32 %v754_v48, %v752_v11 }
  0xe2   : > { %v761_v41 = vshll.u32 %v757_v16, 16  ;;  %vm535_vm4 = vweird.f32 %v5954_v26  ;;  %v664_v34 = vor.u32 4788187, %v663_v23  ;;  %vm763_vm5 = vc.u32 %v755_v6, %v759_v62 }
  0xe3   : > { %v525_v58 = vmul.f32 %v524_v36, %v520_v19  ;;  %v532_v56 = vmul.f32 %v531_v5, %v520_v19  ;;  %v765_v29 = vadd.s32 %v759_v62, %v755_v6  ;;  %v781_v44 = vshll.u32 %v6225_v46, 16 }
  0xe4   : > { %v760_v0 = vshrl.u32 %v756_v33, 16  ;;  %v764_v35 = vsel %vm763_vm5, 1, %v5787_v3  ;;  %v665_v19 = vand.u32 2147483647, %v664_v34  ;;  %v667_v61 = vcvt.s32.f32 %v660_v14 }
  0xe5   : > { %v526_v24 = vadd.f32 1.0, %v525_v58  ;;  %v533_v2 = vadd.f32 1.0, %v532_v56  ;;  %v766_v11 = vadd.s32 %v764_v35, %v758_v49  ;;  %vm767_vm6 = vc.u32 %v765_v29, %v761_v41 }
  0xe6   : > { %v768_v28 = vsel %vm767_vm6, 1, %v5787_v3  ;;  %v783_v36 = vshll.u32 %v6229_v8, 16  ;;  %v668_v5 = vmul.f32 %v667_v61, %v665_v19  ;;  %vm785_vm7 = vc.u32 %v777_v63, %v781_v44 }
  0xe7   : > { %v534_v48 = vmul.f32 %v533_v2, %v6188_v38  ;;  %v543_v4 = vxor.u32 2147483648, %v526_v24  ;;  %v770_v23 = vadd.s32 %v768_v28, %v766_v11  ;;  %v787_v33 = vadd.s32 %v781_v44, %v777_v63 }
  0xe8   : > { %v740_v14 = vsel %vm736_vm13, %v6155_v42, %v739_v50  ;;  %v762_v62 = vshrl.u32 %v757_v16, 16  ;;  %v786_v58 = vsel %vm785_vm7, 1, %v5787_v3  ;;  %v669_v38 = vxor.u32 2147483648, %v668_v5 }
  0xe9   : > { %v540_v6 = vxor.u32 2147483648, %v534_v48  ;;  %v771_v56 = vadd.s32 %v770_v23, %v760_v0  ;;  %v788_v49 = vadd.s32 %v786_v58, %v780_v55  ;;  %vm789_vm8 = vc.u32 %v787_v33, %v783_v36 }
  0xea   : > { %v544_v34 = vsel %vm542_vm2, %v543_v4, %v534_v48  ;;  %v790_v63 = vsel %vm789_vm8, 1, %v5787_v3  ;;  %v5547_v29 = vadd.s32 4294967169, %v6192_v39  ;;  %v670_v50 = vsel %vm549_vm9, %v669_v38, %v668_v5 }
  0xeb   : > { %v541_v41 = vsel %vm539_vm1, %v526_v24, %v540_v6  ;;  %v782_v16 = vshrl.u32 %v6225_v46, 16  ;;  %v792_v55 = vadd.s32 %v790_v63, %v788_v49  ;;  %v6266_v24 = vsel %vm6160_vm10, %v5957_v27, %v670_v50 }
  0xec   : > { %v545_v42 = vsel %vm538_vm3, %v541_v41, %v544_v34  ;;  %v6268_v2 = vadd.s32 %v771_v56, %v762_v62  ;;  %v867_v39 = vadd.s32 1, %v5547_v29  ;;  %v675_v12 = vmul.f32 %v6266_v24, %v6266_v24 }
  0xed   : > { %v546_v44 = vsel %vm535_vm4, nan, %v545_v42  ;;  %v784_v0 = vshrl.u32 %v6229_v8, 16  ;;  %v793_v35 = vadd.s32 %v792_v55, %v782_v16  ;;  %v857_v46 = vand.u32 2147483647, %v6132_v40  ;;  %v6286_v8 = vpop.permute.xlu1 %348 }
  0xee   : > { %2872 = vst [vmem:[%s6274_s10] sm:$0xff] %v546_v44  ;;  %v691_v26 = vadd.s32 3, %v674_v30  ;;  %v741_v19 = vsel %vm735_vm0, %v6220_v37, %v740_v14  ;;  %v6284_v61 = vadd.s32 %v787_v33, %v783_v36  ;;  %vm868_vm9 = vcmp.gt.s32.totalorder %v867_v39, 0 }
  0xef   : > { %v676_v11 = vmul.f32 -0.001358992, %v675_v12  ;;  %v683_v48 = vmul.f32 -0.00019511016, %v675_v12  ;;  %v794_v4 = vadd.s32 %v793_v35, %v784_v0  ;;  %v869_v28 = vsel %vm868_vm9, %v867_v39, 0 }
  0xf0   : > { %v324_v5 = vmul.f32 %v6151_v32, %v5941_v20  ;;  %vm797_vm10 = vc.u32 %v6268_v2, %v6284_v61  ;;  %v871_v52 = vand.u32 31, %v869_v28  ;;  %v325_v53 = vmul.f32 %v6151_v32, %v5943_v21 }
  0xf1   : > { %v677_v31 = vadd.f32 0.041655596, %v676_v11  ;;  %v684_v30 = vadd.f32 0.008332121, %v683_v48  ;;  %v798_v37 = vadd.s32 1, %v794_v4  ;;  %v795_v23 = vmul.u32 %v6136_v13, %v741_v19 }
  0xf2   : > { %v6295_v36 = vadd.f32 %v6286_v8, %v324_v5  ;;  %v864_v33 = vand.u32 8388607, %v857_v46  ;;  %v6300_v6 = vsub.s32 32, %v871_v52  ;;  %v692_v58 = vand.u32 3, %v691_v26 }
  0xf3   : > { %v678_v14 = vmul.f32 %v677_v31, %v675_v12  ;;  %v685_v62 = vmul.f32 %v684_v30, %v675_v12  ;;  %v799_v38 = vsel %vm797_vm10, %v798_v37, %v794_v4  ;;  %v6302_v49 = vshrl.u32 %v869_v28, 5 }
  0xf4   : > { %v800_v56 = vadd.s32 %v799_v38, %v795_v23  ;;  %v875_v41 = vshrl.u32 %v9827_v47, %v6300_v6  ;;  %v878_v34 = vshrl.u32 %v9825_v51, %v6300_v6  ;;  %v874_v29 = vshll.u32 %v9817_v45, %v871_v52 }
  0xf5   : > { %v679_v63 = vadd.f32 -0.4999988, %v678_v14  ;;  %v686_v13 = vadd.f32 -0.16666654, %v685_v62  ;;  %v884_v42 = vshrl.u32 %v9819_v57, %v6300_v6  ;;  %v877_v16 = vshll.u32 %v9827_v47, %v871_v52 }
  0xf6   : > { %v801_v50 = vadd.s32 536870912, %v800_v56  ;;  %v881_v55 = vshrl.u32 %v9821_v54, %v6300_v6  ;;  %v883_v44 = vshll.u32 %v9821_v54, %v871_v52  ;;  %vm693_vm11 = vcmp.lt.s32.totalorder %v692_v58, 2 }
  0xf7   : > { %v680_v39 = vmul.f32 %v679_v63, %v675_v12  ;;  %v687_v0 = vmul.f32 %v686_v13, %v675_v12  ;;  %v876_v35 = vor.u32 %v875_v41, %v874_v29  ;;  %v880_v26 = vshll.u32 %v9825_v51, %v871_v52 }
  0xf8   : > { %vm690_vm12 = vweird.f32 %v5957_v27  ;;  %v6317_v19 = vshrl.u32 %v801_v50, 30  ;;  %v6319_v11 = vor.u32 %v878_v34, %v877_v16  ;;  %v885_v48 = vor.u32 %v884_v42, %v883_v44 }
  0xf9   : > { %v887_v4 = vshrl.u32 %v9815_v60, %v6300_v6  ;;  %v681_v28 = vadd.f32 1.0, %v680_v39  ;;  %v688_v5 = vadd.f32 1.0, %v687_v0  ;;  %v865_v31 = vor.u32 8388608, %v864_v33 }
  0xfa   : > { %v886_v30 = vshll.u32 %v9819_v57, %v871_v52  ;;  %vm694_vm13 = vcmp.eq.s32.totalorder %v692_v58, 0  ;;  %v803_v12 = vshll.u32 %v6317_v19, 30  ;;  %v882_v37 = vor.u32 %v881_v55, %v880_v26 }
  0xfb   : > { %vm889_vm14 = vcmp.lt.s32.totalorder %v6302_v49, 1  ;;  %v689_v23 = vmul.f32 %v688_v5, %v6266_v24  ;;  %v698_v14 = vxor.u32 2147483648, %v681_v28  ;;  %vm892_vm0 = vcmp.lt.s32.totalorder %v6302_v49, 4 }
  0xfc   : > { %v888_v62 = vor.u32 %v887_v4, %v886_v30  ;;  %vm697_vm15 = vcmp.eq.s32.totalorder %v692_v58, 2  ;;  %v804_v38 = vsub.s32 %v800_v56, %v803_v12  ;;  %v897_v33 = vsel %vm889_vm14, %v876_v35, %v6319_v11 }
  0xfd   : > { %v898_v52 = vsel %vm892_vm0, %v885_v48, 920167782  ;;  %v695_v41 = vxor.u32 2147483648, %v689_v23  ;;  %vm890_vm1 = vcmp.lt.s32.totalorder %v6302_v49, 2  ;;  %vm891_vm2 = vcmp.lt.s32.totalorder %v6302_v49, 3 }
  0xfe   : > { %v6335_v34 = vshll.u32 %v865_v31, 8  ;;  %v699_v24 = vsel %vm697_vm15, %v698_v14, %v689_v23  ;;  %vm805_vm3 = vcmp.lt.s32.totalorder %v804_v38, 0  ;;  %v806_v63 = vsub.s32 0, %v804_v38 }
  0xff   : > { %v899_v56 = vsel %vm891_vm2, %v882_v37, %v898_v52  ;;  %v696_v13 = vsel %vm694_vm13, %v681_v28, %v695_v41  ;;  %v901_v42 = vsel %vm889_vm14, %v6319_v11, %v882_v37  ;;  %v902_v50 = vsel %vm892_vm0, %v888_v62, 1326507024 }
 0x100   : > { %v900_v29 = vsel %vm890_vm1, %v897_v33, %v899_v56  ;;  %v6348_v16 = vadd.f32 %v6286_v8, %v325_v53  ;;  %v700_v55 = vsel %vm693_vm11, %v696_v13, %v699_v24  ;;  %v807_v44 = vsel %vm805_vm3, %v806_v63, %v804_v38 }
 0x101   : > { %v903_v39 = vsel %vm891_vm2, %v885_v48, %v902_v50  ;;  %v701_v0 = vsel %vm690_vm12, nan, %v700_v55  ;;  %v796_v26 = vadd.s32 %v6284_v61, %v6268_v2  ;;  %v808_v4 = vclz %v807_v44 }
 0x102   : > { %v904_v28 = vsel %vm890_vm1, %v901_v42, %v903_v39  ;;  %v873_v53 = vshrl.u32 %v9817_v45, %v6300_v6  ;;  %v907_v58 = vshrl.u32 %v6335_v34, 16  ;;  %v930_v31 = vand.u32 65535, %v900_v29  ;;  %2873 = vst [vmem:[%s6274_s10 + $0x8] sm:$0xff] %v701_v0 }
 0x103   : > { %v908_v5 = vand.u32 65535, %v904_v28  ;;  %vm704_vm4 = vcmp.lt.s32.totalorder %v6090_v10, 0  ;;  %v5545_v48 = vadd.s32 4294967294, %v808_v4  ;;  %v906_v27 = vand.u32 65535, %v6335_v34 }
 0x104   : > { %v909_v30 = vshrl.u32 %v904_v28, 16  ;;  %v931_v12 = vshrl.u32 %v900_v29, 16  ;;  %v826_v2 = vsub.s32 4, %v6317_v19  ;;  %v893_v61 = vsel %vm889_vm14, %v873_v53, %v876_v35 }
 0x105   : > { %v912_v23 = vmul.u32 %v908_v5, %v907_v58  ;;  %v9812_v6 = vand.u32 2147483647, %v6295_v36  ;;  %vm5546_vm5 = vcmp.lt.s32.totalorder %v5545_v48, 0  ;;  %v894_v14 = vsel %vm892_vm0, %v882_v37, 2102212464 }
 0x106   : > { %v911_v62 = vmul.u32 %v909_v30, %v906_v27  ;;  %v933_v33 = vmul.u32 %v931_v12, %v906_v27  ;;  %v811_v52 = vsel %vm5546_vm5, 0, %v5545_v48  ;;  %v910_v41 = vmul.u32 %v908_v5, %v906_v27 }
 0x107   : > { %v932_v24 = vmul.u32 %v930_v31, %v906_v27  ;;  %v934_v63 = vmul.u32 %v930_v31, %v907_v58  ;;  %v812_v56 = vsub.s32 32, %v811_v52  ;;  %v816_v13 = vsub.s32 4294967266, %v811_v52 }
 0x108   : > { %v913_v29 = vmul.u32 %v909_v30, %v907_v58  ;;  %v914_v42 = vshll.u32 %v911_v62, 16  ;;  %v813_v50 = vshll.u32 %v804_v38, %v811_v52  ;;  %v916_v55 = vshll.u32 %v912_v23, 16 }
 0x109   : > { %v935_v35 = vmul.u32 %v931_v12, %v907_v58  ;;  %v936_v44 = vshll.u32 %v933_v33, 16  ;;  %v814_v39 = vshrl.u32 %v796_v26, %v812_v56  ;;  %v817_v0 = vadd.s32 127, %v816_v13 }
 0x10a   : > { %vm918_vm6 = vc.u32 %v910_v41, %v914_v42  ;;  %v920_v4 = vadd.s32 %v914_v42, %v910_v41  ;;  %v938_v28 = vshll.u32 %v934_v63, 16  ;;  %v827_v38 = vsel %vm704_vm4, %v826_v2, %v6317_v19 }
 0x10b   : > { %v919_v37 = vsel %vm918_vm6, 1, %v5787_v3  ;;  %vm940_vm7 = vc.u32 %v932_v24, %v936_v44  ;;  %v942_v53 = vadd.s32 %v936_v44, %v932_v24  ;;  %v815_v5 = vor.u32 %v814_v39, %v813_v50 }
 0x10c   : > { %v818_v48 = vshll.u32 %v817_v0, 23  ;;  %v921_v31 = vadd.s32 %v919_v37, %v913_v29  ;;  %vm922_vm8 = vc.u32 %v920_v4, %v916_v55  ;;  %v941_v26 = vsel %vm940_vm7, 1, %v5787_v3 }
 0x10d   : > { %v923_v58 = vsel %vm922_vm8, 1, %v5787_v3  ;;  %vm944_vm9 = vc.u32 %v942_v53, %v938_v28  ;;  %v915_v30 = vshrl.u32 %v911_v62, 16  ;;  %v943_v52 = vadd.s32 %v941_v26, %v935_v35 }
 0x10e   : > { %v819_v27 = vor.u32 4788187, %v818_v48  ;;  %v925_v12 = vadd.s32 %v923_v58, %v921_v31  ;;  %v917_v41 = vshrl.u32 %v912_v23, 16  ;;  %v937_v56 = vshrl.u32 %v933_v33, 16 }
 0x10f   : > { %v945_v24 = vsel %vm944_vm9, 1, %v5787_v3  ;;  %v1015_v13 = vand.u32 2139095040, %v6295_v36  ;;  %v822_v42 = vcvt.s32.f32 %v815_v5  ;;  %v895_v19 = vsel %vm891_vm2, %v6319_v11, %v894_v14 }
 0x110   : > { %v820_v29 = vand.u32 2147483647, %v819_v27  ;;  %v926_v50 = vadd.s32 %v925_v12, %v915_v30  ;;  %v947_v55 = vadd.s32 %v945_v24, %v943_v52  ;;  %v939_v2 = vshrl.u32 %v934_v63, 16 }
 0x111   : > { %v1016_v44 = vshrl.u32 %v1015_v13, 23  ;;  %v1019_v62 = vand.u32 8388607, %v9812_v6  ;;  %v1170_v39 = vand.u32 2139095040, %v6348_v16  ;;  %vm703_vm10 = vcmp.le.f32.partialorder %v702_v7, 0.7853982 }
 0x112   : > { %v823_v35 = vmul.f32 %v822_v42, %v820_v29  ;;  %v927_v23 = vadd.s32 %v926_v50, %v917_v41  ;;  %v948_v33 = vadd.s32 %v947_v55, %v937_v56  ;;  %v946_v0 = vadd.s32 %v942_v53, %v938_v28 }
 0x113   : > { %v5550_v4 = vadd.s32 4294967169, %v1016_v44  ;;  %v829_v5 = vsel %vm703_vm10, 0, %v827_v38  ;;  %v896_v11 = vsel %vm890_vm1, %v893_v61, %v895_v19  ;;  %v1020_v63 = vor.u32 8388608, %v1019_v62 }
 0x114   : > { %v824_v37 = vxor.u32 2147483648, %v823_v35  ;;  %v949_v14 = vadd.s32 %v948_v33, %v939_v2  ;;  %vm952_vm11 = vc.u32 %v927_v23, %v946_v0  ;;  %v1171_v26 = vshrl.u32 %v1170_v39, 23 }
 0x115   : > { %v1022_v48 = vadd.s32 1, %v5550_v4  ;;  %v846_v30 = vadd.s32 3, %v829_v5  ;;  %v950_v7 = vmul.u32 %v6335_v34, %v896_v11  ;;  %v6393_v12 = vshll.u32 %v1020_v63, 8 }
 0x116   : > { %v825_v31 = vsel %vm704_vm4, %v824_v37, %v823_v35  ;;  %v953_v58 = vadd.s32 1, %v949_v14  ;;  %v5553_v56 = vadd.s32 4294967169, %v1171_v26  ;;  %v6399_v29 = vmul.f32 %v6209_v15, %v5941_v20 }
 0x117   : > { %v828_v27 = vsel %vm703_vm10, %v6090_v10, %v825_v31  ;;  %vm1023_vm12 = vcmp.gt.s32.totalorder %v1022_v48, 0  ;;  %v6395_v24 = vand.u32 3, %v846_v30  ;;  %vm859_vm13 = vcmp.lt.s32.totalorder %v6132_v40, 0 }
 0x118   : > { %v830_v28 = vmul.f32 %v828_v27, %v828_v27  ;;  %v954_v53 = vsel %vm952_vm11, %v953_v58, %v949_v14  ;;  %v1024_v38 = vsel %vm1023_vm12, %v1022_v48, 0  ;;  %v6402_v55 = vadd.s32 %v946_v0, %v927_v23 }
 0x119   : > { %v955_v49 = vadd.s32 %v954_v53, %v950_v7  ;;  %v1026_v61 = vand.u32 31, %v1024_v38  ;;  %v6405_v2 = vand.u32 65535, %v6393_v12  ;;  %v6408_v44 = vshrl.u32 %v6393_v12, 16 }
 0x11a   : > { %v831_v52 = vmul.f32 -0.001358992, %v830_v28  ;;  %v838_v41 = vmul.f32 -0.00019511016, %v830_v28  ;;  %v6410_v33 = vshrl.u32 %v1024_v38, 5  ;;  %v6412_v39 = vadd.s32 1, %v5553_v56 }
 0x11b   : > { %v956_v13 = vadd.s32 536870912, %v955_v49  ;;  %v1027_v50 = vsub.s32 32, %v1026_v61  ;;  %vm852_vm14 = vcmp.eq.s32.totalorder %v6395_v24, 2  ;;  %v1029_v37 = vshll.u32 %v9817_v45, %v1026_v61 }
 0x11c   : > { %v832_v42 = vadd.f32 0.041655596, %v831_v52  ;;  %v839_v34 = vadd.f32 0.008332121, %v838_v41  ;;  %v1032_v23 = vshll.u32 %v9827_v47, %v1026_v61  ;;  %v1035_v0 = vshll.u32 %v9825_v51, %v1026_v61 }
 0x11d   : > { %v957_v19 = vshrl.u32 %v956_v13, 30  ;;  %v1030_v14 = vshrl.u32 %v9827_v47, %v1027_v50  ;;  %v1036_v63 = vshrl.u32 %v9821_v54, %v1027_v50  ;;  %vm849_vm0 = vcmp.eq.s32.totalorder %v6395_v24, 0 }
 0x11e   : > { %v833_v62 = vmul.f32 %v832_v42, %v830_v28  ;;  %v840_v35 = vmul.f32 %v839_v34, %v830_v28  ;;  %v1033_v31 = vshrl.u32 %v9825_v51, %v1027_v50  ;;  %v1039_v58 = vshrl.u32 %v9819_v57, %v1027_v50 }
 0x11f   : > { %v958_v4 = vshll.u32 %v957_v19, 30  ;;  %v1042_v26 = vshrl.u32 %v9815_v60, %v1027_v50  ;;  %vm848_vm15 = vcmp.lt.s32.totalorder %v6395_v24, 2  ;;  %v981_v53 = vsub.s32 4, %v957_v19 }
 0x120   : > { %v834_v5 = vadd.f32 -0.4999988, %v833_v62  ;;  %v841_v11 = vadd.f32 -0.16666654, %v840_v35  ;;  %v1038_v38 = vshll.u32 %v9821_v54, %v1026_v61  ;;  %vm845_vm1 = vweird.f32 %v6090_v10 }
 0x121   : > { %v6421_v48 = vsub.s32 %v955_v49, %v958_v4  ;;  %v1028_v52 = vshrl.u32 %v9817_v45, %v1027_v50  ;;  %v1041_v41 = vshll.u32 %v9819_v57, %v1026_v61  ;;  %v1031_v42 = vor.u32 %v1030_v14, %v1029_v37 }
 0x122   : > { %v835_v30 = vmul.f32 %v834_v5, %v830_v28  ;;  %v842_v7 = vmul.f32 %v841_v11, %v830_v28  ;;  %v1037_v34 = vor.u32 %v1036_v63, %v1035_v0  ;;  %v1034_v62 = vor.u32 %v1033_v31, %v1032_v23 }
 0x123   : > { %vm960_vm2 = vcmp.lt.s32.totalorder %v6421_v48, 0  ;;  %v961_v49 = vsub.s32 0, %v6421_v48  ;;  %v1040_v35 = vor.u32 %v1039_v58, %v1038_v38  ;;  %v1043_v4 = vor.u32 %v1042_v26, %v1041_v41 }
 0x124   : > { %v836_v56 = vadd.f32 1.0, %v835_v30  ;;  %v843_v13 = vadd.f32 1.0, %v842_v7  ;;  %vm6436_vm3 = vcmp.le.f32.partialorder %v857_v46, 0.7853982  ;;  %v6442_v61 = vsel %vm859_vm13, %v981_v53, %v957_v19 }
 0x125   : > { %v962_v28 = vsel %vm960_vm2, %v961_v49, %v6421_v48  ;;  %vm1044_vm4 = vcmp.lt.s32.totalorder %v6410_v33, 1  ;;  %vm1045_vm5 = vcmp.lt.s32.totalorder %v6410_v33, 2  ;;  %vm1046_vm6 = vcmp.lt.s32.totalorder %v6410_v33, 3 }
 0x126   : > { %v844_v5 = vmul.f32 %v843_v13, %v828_v27  ;;  %v853_v11 = vxor.u32 2147483648, %v836_v56  ;;  %v963_v50 = vclz %v962_v28  ;;  %vm1047_vm7 = vcmp.lt.s32.totalorder %v6410_v33, 4 }
 0x127   : > { %v1049_v23 = vsel %vm1047_vm7, %v1037_v34, 2102212464  ;;  %v1052_v0 = vsel %vm1044_vm4, %v1031_v42, %v1034_v62  ;;  %v1053_v14 = vsel %vm1047_vm7, %v1040_v35, 920167782  ;;  %v1056_v19 = vsel %vm1044_vm4, %v1034_v62, %v1037_v34 }
 0x128   : > { %v850_v27 = vxor.u32 2147483648, %v844_v5  ;;  %v854_v46 = vsel %vm852_vm14, %v853_v11, %v844_v5  ;;  %v5548_v37 = vadd.s32 4294967294, %v963_v50  ;;  %v1057_v63 = vsel %vm1047_vm7, %v1043_v4, 1326507024 }
 0x129   : > { %v1054_v58 = vsel %vm1046_vm6, %v1037_v34, %v1053_v14  ;;  %v1058_v26 = vsel %vm1046_vm6, %v1040_v35, %v1057_v63  ;;  %v1048_v13 = vsel %vm1044_vm4, %v1028_v52, %v1031_v42  ;;  %v1050_v34 = vsel %vm1046_vm6, %v1034_v62, %v1049_v23 }
 0x12a   : > { %v851_v31 = vsel %vm849_vm0, %v836_v56, %v850_v27  ;;  %vm5549_vm8 = vcmp.lt.s32.totalorder %v5548_v37, 0  ;;  %v1055_v53 = vsel %vm1045_vm5, %v1052_v0, %v1054_v58  ;;  %v1059_v38 = vsel %vm1045_vm5, %v1056_v19, %v1058_v26 }
 0x12b   : > { %v855_v30 = vsel %vm848_vm15, %v851_v31, %v854_v46  ;;  %v966_v7 = vsel %vm5549_vm8, 0, %v5548_v37  ;;  %v1063_v24 = vand.u32 65535, %v1059_v38  ;;  %v1064_v28 = vshrl.u32 %v1059_v38, 16 }
 0x12c   : > { %v856_v49 = vsel %vm845_vm1, nan, %v855_v30  ;;  %v967_v41 = vsub.s32 32, %v966_v7  ;;  %v971_v56 = vsub.s32 4294967266, %v966_v7  ;;  %v1086_v35 = vshrl.u32 %v1055_v53, 16 }
 0x12d   : > { %2874 = vst [vmem:[%s6274_s10 + $0x10] sm:$0xff] %v856_v49  ;;  %v968_v4 = vshll.u32 %v6421_v48, %v966_v7  ;;  %v1085_v50 = vand.u32 65535, %v1055_v53  ;;  %v984_v10 = vsel %vm6436_vm3, 0, %v6442_v61  ;;  %v1066_v27 = vmul.u32 %v1064_v28, %v6405_v2 }
 0x12e   : > { %v969_v5 = vshrl.u32 %v6402_v55, %v967_v41  ;;  %v972_v11 = vadd.s32 127, %v971_v56  ;;  %v1067_v52 = vmul.u32 %v1063_v24, %v6408_v44  ;;  %v1167_v42 = vand.u32 2147483647, %v6348_v16 }
 0x12f   : > { %v6483_v37 = vsel %vm1045_vm5, %v1048_v13, %v1050_v34  ;;  %v1088_v55 = vmul.u32 %v1086_v35, %v6405_v2  ;;  %v1065_v48 = vmul.u32 %v1063_v24, %v6405_v2  ;;  %v1068_v23 = vmul.u32 %v1064_v28, %v6408_v44 }
 0x130   : > { %v970_v62 = vor.u32 %v969_v5, %v968_v4  ;;  %v973_v46 = vshll.u32 %v972_v11, 23  ;;  %v1069_v0 = vshll.u32 %v1066_v27, 16  ;;  %vm1178_vm9 = vcmp.gt.s32.totalorder %v6412_v39, 0 }
 0x131   : > { %v1071_v14 = vshll.u32 %v1067_v52, 16  ;;  %v1087_v19 = vmul.u32 %v1085_v50, %v6405_v2  ;;  %v1089_v63 = vmul.u32 %v1085_v50, %v6408_v44  ;;  %v1091_v58 = vshll.u32 %v1088_v55, 16 }
 0x132   : > { %v974_v61 = vor.u32 4788187, %v973_v46  ;;  %v977_v31 = vcvt.s32.f32 %v970_v62  ;;  %vm1073_vm10 = vc.u32 %v1065_v48, %v1069_v0  ;;  %v1075_v33 = vadd.s32 %v1069_v0, %v1065_v48 }
 0x133   : > { %v1074_v30 = vsel %vm1073_vm10, 1, %v5787_v3  ;;  %v1090_v7 = vmul.u32 %v1086_v35, %v6408_v44  ;;  %v1093_v53 = vshll.u32 %v1089_v63, 16  ;;  %vm1095_vm12 = vc.u32 %v1087_v19, %v1091_v58 }
 0x134   : > { %v975_v26 = vand.u32 2147483647, %v974_v61  ;;  %v1076_v38 = vadd.s32 %v1074_v30, %v1068_v23  ;;  %vm1077_vm11 = vc.u32 %v1075_v33, %v1071_v14  ;;  %v1097_v49 = vadd.s32 %v1091_v58, %v1087_v19 }
 0x135   : > { %v1078_v56 = vsel %vm1077_vm11, 1, %v5787_v3  ;;  %v1096_v2 = vsel %vm1095_vm12, 1, %v5787_v3  ;;  %v1179_v13 = vsel %vm1178_vm9, %v6412_v39, 0  ;;  %v1070_v34 = vshrl.u32 %v1066_v27, 16 }
 0x136   : > { %v978_v41 = vmul.f32 %v977_v31, %v975_v26  ;;  %v1080_v24 = vadd.s32 %v1078_v56, %v1076_v38  ;;  %v1098_v28 = vadd.s32 %v1096_v2, %v1090_v7  ;;  %vm1099_vm14 = vc.u32 %v1097_v49, %v1093_v53 }
 0x137   : > { %v1100_v44 = vsel %vm1099_vm14, 1, %v5787_v3  ;;  %v6501_v35 = vand.u32 8388607, %v1167_v42  ;;  %v1181_v5 = vand.u32 31, %v1179_v13  ;;  %v1072_v11 = vshrl.u32 %v1067_v52, 16 }
 0x138   : > { %v979_v4 = vxor.u32 2147483648, %v978_v41  ;;  %v1081_v50 = vadd.s32 %v1080_v24, %v1070_v34  ;;  %v1092_v62 = vshrl.u32 %v1088_v55, 16  ;;  %v1102_v46 = vadd.s32 %v1100_v44, %v1098_v28 }
 0x139   : > { %v1001_v39 = vadd.s32 3, %v984_v10  ;;  %v1105_v27 = vmul.u32 %v6393_v12, %v6483_v37  ;;  %v6507_v23 = vsub.s32 32, %v1181_v5  ;;  %v1094_v14 = vshrl.u32 %v1089_v63, 16 }
 0x13a   : > { %v980_v48 = vsel %vm859_vm13, %v979_v4, %v978_v41  ;;  %v6512_v61 = vadd.s32 %v1081_v50, %v1072_v11  ;;  %v1103_v52 = vadd.s32 %v1102_v46, %v1092_v62  ;;  %v6514_v55 = vadd.s32 %v1097_v49, %v1093_v53  ;;  %v6539_v4 = vpop.permute.xlu2 %353 }
 0x13b   : > { %v983_v0 = vsel %vm6436_vm3, %v6132_v40, %v980_v48  ;;  %v6516_v31 = vshrl.u32 %v1179_v13, 5  ;;  %v1184_v10 = vshll.u32 %v9817_v45, %v1181_v5  ;;  %v1187_v12 = vshll.u32 %v9827_v47, %v1181_v5 }
 0x13c   : > { %v985_v19 = vmul.f32 %v983_v0, %v983_v0  ;;  %v1104_v33 = vadd.s32 %v1103_v52, %v1094_v14  ;;  %v1188_v37 = vshrl.u32 %v9825_v51, %v6507_v23  ;;  %v1191_v6 = vshrl.u32 %v9821_v54, %v6507_v23 }
 0x13d   : > { %vm1107_vm13 = vc.u32 %v6512_v61, %v6514_v55  ;;  %v1190_v63 = vshll.u32 %v9825_v51, %v1181_v5  ;;  %v1185_v7 = vshrl.u32 %v9827_v47, %v6507_v23  ;;  %v1193_v53 = vshll.u32 %v9821_v54, %v1181_v5 }
 0x13e   : > { %v986_v58 = vmul.f32 -0.001358992, %v985_v19  ;;  %v993_v26 = vmul.f32 -0.00019511016, %v985_v19  ;;  %v1108_v30 = vadd.s32 1, %v1104_v33  ;;  %v1194_v38 = vshrl.u32 %v9819_v57, %v6507_v23 }
 0x13f   : > { %v1196_v56 = vshll.u32 %v9819_v57, %v1181_v5  ;;  %v1197_v2 = vshrl.u32 %v9815_v60, %v6507_v23  ;;  %v6535_v34 = vor.u32 %v1188_v37, %v1187_v12  ;;  %v6537_v24 = vor.u32 %v1191_v6, %v1190_v63 }
 0x140   : > { %v987_v49 = vadd.f32 0.041655596, %v986_v58  ;;  %v994_v41 = vadd.f32 0.008332121, %v993_v26  ;;  %v1109_v13 = vsel %vm1107_vm13, %v1108_v30, %v1104_v33  ;;  %v1195_v28 = vor.u32 %v1194_v38, %v1193_v53 }
 0x141   : > { %v1110_v50 = vadd.s32 %v1109_v13, %v1105_v27  ;;  %v1198_v62 = vor.u32 %v1197_v2, %v1196_v56  ;;  %v6543_v46 = vadd.f32 %v6539_v4, %v6399_v29  ;;  %v1002_v5 = vand.u32 3, %v1001_v39 }
 0x142   : > { %v988_v44 = vmul.f32 %v987_v49, %v985_v19  ;;  %v995_v11 = vmul.f32 %v994_v41, %v985_v19  ;;  %v1175_v48 = vor.u32 8388608, %v6501_v35  ;;  %v6546_v14 = vor.u32 %v1185_v7, %v1184_v10 }
 0x143   : > { %v1111_v12 = vadd.s32 536870912, %v1110_v50  ;;  %vm1202_vm0 = vcmp.lt.s32.totalorder %v6516_v31, 4  ;;  %vm1199_vm15 = vcmp.lt.s32.totalorder %v6516_v31, 1  ;;  %vm1201_vm1 = vcmp.lt.s32.totalorder %v6516_v31, 3 }
 0x144   : > { %v989_v52 = vadd.f32 -0.4999988, %v988_v44  ;;  %v996_v33 = vadd.f32 -0.16666654, %v995_v11  ;;  %v1208_v27 = vsel %vm1202_vm0, %v1195_v28, 920167782  ;;  %v1211_v10 = vsel %vm1199_vm15, %v6535_v34, %v6537_v24 }
 0x145   : > { %v1212_v29 = vsel %vm1202_vm0, %v1198_v62, 1326507024  ;;  %v6555_v35 = vshrl.u32 %v1111_v12, 30  ;;  %vm1200_vm2 = vcmp.lt.s32.totalorder %v6516_v31, 2  ;;  %v1207_v6 = vsel %vm1199_vm15, %v6546_v14, %v6535_v34 }
 0x146   : > { %v990_v39 = vmul.f32 %v989_v52, %v985_v19  ;;  %v997_v37 = vmul.f32 %v996_v33, %v985_v19  ;;  %v1213_v58 = vsel %vm1201_vm1, %v1195_v28, %v1212_v29  ;;  %v6568_v26 = vshll.u32 %v1175_v48, 8 }
 0x147   : > { %v1113_v30 = vshll.u32 %v6555_v35, 30  ;;  %v1209_v7 = vsel %vm1201_vm1, %v6537_v24, %v1208_v27  ;;  %vm1000_vm3 = vweird.f32 %v6132_v40  ;;  %v1214_v53 = vsel %vm1200_vm2, %v1211_v10, %v1213_v58 }
 0x148   : > { %v991_v19 = vadd.f32 1.0, %v990_v39  ;;  %v998_v63 = vadd.f32 1.0, %v997_v37  ;;  %v1325_v38 = vand.u32 2139095040, %v6543_v46  ;;  %vm1007_vm4 = vcmp.eq.s32.totalorder %v1002_v5, 2 }
 0x149   : > { %v1114_v56 = vsub.s32 %v1110_v50, %v1113_v30  ;;  %v1210_v2 = vsel %vm1200_vm2, %v1207_v6, %v1209_v7  ;;  %v1216_v13 = vand.u32 65535, %v6568_v26  ;;  %v1218_v28 = vand.u32 65535, %v1214_v53 }
 0x14a   : > { %v999_v49 = vmul.f32 %v998_v63, %v983_v0  ;;  %v1008_v41 = vxor.u32 2147483648, %v991_v19  ;;  %v1219_v44 = vshrl.u32 %v1214_v53, 16  ;;  %v1217_v48 = vshrl.u32 %v6568_v26, 16 }
 0x14b   : > { %vm1115_vm5 = vcmp.lt.s32.totalorder %v1114_v56, 0  ;;  %v1116_v62 = vsub.s32 0, %v1114_v56  ;;  %vm1003_vm6 = vcmp.lt.s32.totalorder %v1002_v5, 2  ;;  %vm1004_vm7 = vcmp.eq.s32.totalorder %v1002_v5, 0 }
 0x14c   : > { %v1005_v11 = vxor.u32 2147483648, %v999_v49  ;;  %v1009_v52 = vsel %vm1007_vm4, %v1008_v41, %v999_v49  ;;  %v1221_v33 = vmul.u32 %v1219_v44, %v1216_v13  ;;  %v1222_v50 = vmul.u32 %v1218_v28, %v1217_v48 }
 0x14d   : > { %v1117_v12 = vsel %vm1115_vm5, %v1116_v62, %v1114_v56  ;;  %v1241_v27 = vshrl.u32 %v1210_v2, 16  ;;  %vm1014_vm8 = vcmp.lt.s32.totalorder %v6295_v36, 0  ;;  %v1240_v10 = vand.u32 65535, %v1210_v2 }
 0x14e   : > { %v1006_v0 = vsel %vm1004_vm7, %v991_v19, %v1005_v11  ;;  %v1118_v39 = vclz %v1117_v12  ;;  %v1224_v37 = vshll.u32 %v1221_v33, 16  ;;  %v1106_v58 = vadd.s32 %v6514_v55, %v6512_v61 }
 0x14f   : > { %v1010_v29 = vsel %vm1003_vm6, %v1006_v0, %v1009_v52  ;;  %v1183_v5 = vshrl.u32 %v9817_v45, %v6507_v23  ;;  %v1220_v19 = vmul.u32 %v1218_v28, %v1216_v13  ;;  %v1136_v30 = vsub.s32 4, %v6555_v35 }
 0x150   : > { %v1011_v6 = vsel %vm1000_vm3, nan, %v1010_v29  ;;  %v5551_v63 = vadd.s32 4294967294, %v1118_v39  ;;  %v1204_v7 = vsel %vm1202_vm0, %v6537_v24, 2102212464  ;;  %v1223_v53 = vmul.u32 %v1219_v44, %v1217_v48 }
 0x151   : > { %2875 = vst [vmem:[%s6274_s10 + $0x18] sm:$0xff] %v1011_v6  ;;  %v1226_v49 = vshll.u32 %v1222_v50, 16  ;;  %vm1228_vm9 = vc.u32 %v1220_v19, %v1224_v37  ;;  %v1230_v40 = vadd.s32 %v1224_v37, %v1220_v19  ;;  %v1243_v41 = vmul.u32 %v1241_v27, %v1216_v13 }
 0x152   : > { %v9849_v2 = vand.u32 2147483647, %v6295_v36  ;;  %vm5552_vm11 = vcmp.lt.s32.totalorder %v5551_v63, 0  ;;  %v1225_v23 = vshrl.u32 %v1221_v33, 16  ;;  %v1229_v55 = vsel %vm1228_vm9, 1, %v5787_v3 }
 0x153   : > { %v1244_v28 = vmul.u32 %v1240_v10, %v1217_v48  ;;  %v1121_v11 = vsel %vm5552_vm11, 0, %v5551_v63  ;;  %v1231_v62 = vadd.s32 %v1229_v55, %v1223_v53  ;;  %vm1232_vm12 = vc.u32 %v1230_v40, %v1226_v49 }
 0x154   : > { %vm6596_vm10 = vcmp.le.f32.partialorder %v9849_v2, 0.7853982  ;;  %v1246_v24 = vshll.u32 %v1243_v41, 16  ;;  %v1122_v44 = vsub.s32 32, %v1121_v11  ;;  %v1126_v52 = vsub.s32 4294967266, %v1121_v11 }
 0x155   : > { %v1233_v0 = vsel %vm1232_vm12, 1, %v5787_v3  ;;  %v1242_v12 = vmul.u32 %v1240_v10, %v1216_v13  ;;  %v1123_v29 = vshll.u32 %v1114_v56, %v1121_v11  ;;  %v1245_v37 = vmul.u32 %v1241_v27, %v1217_v48 }
 0x156   : > { %v1235_v39 = vadd.s32 %v1233_v0, %v1231_v62  ;;  %v1248_v6 = vshll.u32 %v1244_v28, 16  ;;  %v1124_v19 = vshrl.u32 %v1106_v58, %v1122_v44  ;;  %v1127_v2 = vadd.s32 127, %v1126_v52 }
 0x157   : > { %vm1250_vm14 = vc.u32 %v1242_v12, %v1246_v24  ;;  %v1252_v33 = vadd.s32 %v1246_v24, %v1242_v12  ;;  %v1137_v63 = vsel %vm1014_vm8, %v1136_v30, %v6555_v35  ;;  %v1326_v40 = vshrl.u32 %v1325_v38, 23 }
 0x158   : > { %v1236_v53 = vadd.s32 %v1235_v39, %v1225_v23  ;;  %v1251_v49 = vsel %vm1250_vm14, 1, %v5787_v3  ;;  %v1125_v55 = vor.u32 %v1124_v19, %v1123_v29  ;;  %v1128_v13 = vshll.u32 %v1127_v2, 23 }
 0x159   : > { %v1253_v56 = vadd.s32 %v1251_v49, %v1245_v37  ;;  %vm1254_vm13 = vc.u32 %v1252_v33, %v1248_v6  ;;  %v1203_v48 = vsel %vm1199_vm15, %v1183_v5, %v6546_v14  ;;  %v1227_v27 = vshrl.u32 %v1222_v50, 16 }
 0x15a   : > { %v1255_v10 = vsel %vm1254_vm13, 1, %v5787_v3  ;;  %v5556_v58 = vadd.s32 4294967169, %v1326_v40  ;;  %v1129_v11 = vor.u32 4788187, %v1128_v13  ;;  %v1205_v35 = vsel %vm1201_vm1, %v6535_v34, %v1204_v7 }
 0x15b   : > { %v1247_v30 = vshrl.u32 %v1243_v41, 16  ;;  %v1257_v23 = vadd.s32 %v1255_v10, %v1253_v56  ;;  %v1139_v38 = vsel %vm6596_vm10, 0, %v1137_v63  ;;  %v1237_v62 = vadd.s32 %v1236_v53, %v1227_v27 }
 0x15c   : > { %v1332_v24 = vadd.s32 1, %v5556_v58  ;;  %v1130_v44 = vand.u32 2147483647, %v1129_v11  ;;  %v1132_v52 = vcvt.s32.f32 %v1125_v55  ;;  %v1249_v0 = vshrl.u32 %v1244_v28, 16 }
 0x15d   : > { %v1258_v14 = vadd.s32 %v1257_v23, %v1247_v30  ;;  %v1206_v50 = vsel %vm1200_vm2, %v1203_v48, %v1205_v35  ;;  %v1256_v5 = vadd.s32 %v1252_v33, %v1248_v6  ;;  %v9813_v12 = vand.u32 2147483647, %v6543_v46 }
 0x15e   : > { %vm1333_vm0 = vcmp.gt.s32.totalorder %v1332_v24, 0  ;;  %v1133_v29 = vmul.f32 %v1132_v52, %v1130_v44  ;;  %v1156_v34 = vadd.s32 3, %v1139_v38  ;;  %v327_v2 = vmul.f32 %v6209_v15, %v5943_v21 }
 0x15f   : > { %v1259_v7 = vadd.s32 %v1258_v14, %v1249_v0  ;;  %v1334_v41 = vsel %vm1333_vm0, %v1332_v24, 0  ;;  %vm1262_vm15 = vc.u32 %v1237_v62, %v1256_v5  ;;  %v6624_v28 = vmul.f32 %v5928_v17, %v5941_v20 }
 0x160   : > { %v1336_v39 = vand.u32 31, %v1334_v41  ;;  %v1134_v37 = vxor.u32 2147483648, %v1133_v29  ;;  %v1260_v31 = vmul.u32 %v6568_v26, %v1206_v50  ;;  %v6631_v63 = vand.u32 3, %v1156_v34 }
 0x161   : > { %v1263_v19 = vadd.s32 1, %v1259_v7  ;;  %v1329_v49 = vand.u32 8388607, %v9813_v12  ;;  %v6640_v13 = vshrl.u32 %v1334_v41, 5  ;;  %v6666_v41 = vadd.f32 %v6539_v4, %v327_v2 }
 0x162   : > { %v6627_v6 = vsub.s32 32, %v1336_v39  ;;  %v1135_v33 = vsel %vm1014_vm8, %v1134_v37, %v1133_v29  ;;  %v1339_v58 = vshll.u32 %v9817_v45, %v1336_v39  ;;  %v1342_v11 = vshll.u32 %v9827_v47, %v1336_v39 }
 0x163   : > { %v1264_v53 = vsel %vm1262_vm15, %v1263_v19, %v1259_v7  ;;  %v6638_v40 = vsel %vm6596_vm10, %v6295_v36, %v1135_v33  ;;  %v1348_v35 = vshll.u32 %v9821_v54, %v1336_v39  ;;  %v1345_v38 = vshll.u32 %v9825_v51, %v1336_v39 }
 0x164   : > { %v1265_v55 = vadd.s32 %v1264_v53, %v1260_v31  ;;  %v1340_v26 = vshrl.u32 %v9827_v47, %v6627_v6  ;;  %v1140_v56 = vmul.f32 %v6638_v40, %v6638_v40  ;;  %v1343_v48 = vshrl.u32 %v9825_v51, %v6627_v6 }
 0x165   : > { %v1346_v27 = vshrl.u32 %v9821_v54, %v6627_v6  ;;  %v1349_v61 = vshrl.u32 %v9819_v57, %v6627_v6  ;;  %v1352_v24 = vshrl.u32 %v9815_v60, %v6627_v6  ;;  %v1351_v14 = vshll.u32 %v9819_v57, %v1336_v39 }
 0x166   : > { %v1266_v10 = vadd.s32 536870912, %v1265_v55  ;;  %v1141_v30 = vmul.f32 -0.001358992, %v1140_v56  ;;  %v1148_v23 = vmul.f32 -0.00019511016, %v1140_v56  ;;  %v1341_v52 = vor.u32 %v1340_v26, %v1339_v58 }
 0x167   : > { %v1350_v0 = vor.u32 %v1349_v61, %v1348_v35  ;;  %v6661_v34 = vor.u32 %v1343_v48, %v1342_v11  ;;  %v6663_v7 = vor.u32 %v1346_v27, %v1345_v38  ;;  %v6668_v37 = vadd.s32 %v1256_v5, %v1237_v62 }
 0x168   : > { %v6658_v44 = vshrl.u32 %v1266_v10, 30  ;;  %v1142_v50 = vadd.f32 0.041655596, %v1141_v30  ;;  %v1149_v29 = vadd.f32 0.008332121, %v1148_v23  ;;  %v1330_v31 = vor.u32 8388608, %v1329_v49 }
 0x169   : > { %v1353_v26 = vor.u32 %v1352_v24, %v1351_v14  ;;  %vm1357_vm1 = vcmp.lt.s32.totalorder %v6640_v13, 4  ;;  %vm1354_vm2 = vcmp.lt.s32.totalorder %v6640_v13, 1  ;;  %vm1356_vm3 = vcmp.lt.s32.totalorder %v6640_v13, 3 }
 0x16a   : > { %v1268_v19 = vshll.u32 %v6658_v44, 30  ;;  %v1143_v33 = vmul.f32 %v1142_v50, %v1140_v56  ;;  %v1150_v53 = vmul.f32 %v1149_v29, %v1140_v56  ;;  %v1363_v2 = vsel %vm1357_vm1, %v1350_v0, 920167782 }
 0x16b   : > { %vm1162_vm4 = vcmp.eq.s32.totalorder %v6631_v63, 2  ;;  %v1362_v5 = vsel %vm1354_vm2, %v1341_v52, %v6661_v34  ;;  %v1364_v49 = vsel %vm1356_vm3, %v6663_v7, %v1363_v2  ;;  %vm1159_vm5 = vcmp.eq.s32.totalorder %v6631_v63, 0 }
 0x16c   : > { %v6672_v39 = vsub.s32 %v1265_v55, %v1268_v19  ;;  %v1144_v48 = vadd.f32 -0.4999988, %v1143_v33  ;;  %v1151_v62 = vadd.f32 -0.16666654, %v1150_v53  ;;  %vm1355_vm7 = vcmp.lt.s32.totalorder %v6640_v13, 2 }
 0x16d   : > { %v6689_v27 = vshll.u32 %v1330_v31, 8  ;;  %vm1158_vm8 = vcmp.lt.s32.totalorder %v6631_v63, 2  ;;  %v1366_v58 = vsel %vm1354_vm2, %v6661_v34, %v6663_v7  ;;  %v1367_v11 = vsel %vm1357_vm1, %v1353_v26, 1326507024 }
 0x16e   : > { %vm1270_vm6 = vcmp.lt.s32.totalorder %v6672_v39, 0  ;;  %v1271_v55 = vsub.s32 0, %v6672_v39  ;;  %v1145_v61 = vmul.f32 %v1144_v48, %v1140_v56  ;;  %v1152_v10 = vmul.f32 %v1151_v62, %v1140_v56 }
 0x16f   : > { %vm1155_vm9 = vweird.f32 %v6295_v36  ;;  %v1365_v30 = vsel %vm1355_vm7, %v1362_v5, %v1364_v49  ;;  %v1368_v56 = vsel %vm1356_vm3, %v1350_v0, %v1367_v11  ;;  %v1480_v23 = vand.u32 2139095040, %v6666_v41 }
 0x170   : > { %v1272_v35 = vsel %vm1270_vm6, %v1271_v55, %v6672_v39  ;;  %v1146_v38 = vadd.f32 1.0, %v1145_v61  ;;  %v1153_v24 = vadd.f32 1.0, %v1152_v10  ;;  %v1369_v50 = vsel %vm1355_vm7, %v1366_v58, %v1368_v56 }
 0x171   : > { %v1273_v14 = vclz %v1272_v35  ;;  %v1338_v29 = vshrl.u32 %v9817_v45, %v6627_v6  ;;  %v1371_v19 = vand.u32 65535, %v6689_v27  ;;  %v1372_v31 = vshrl.u32 %v6689_v27, 16 }
 0x172   : > { %v1373_v33 = vand.u32 65535, %v1369_v50  ;;  %v1154_v53 = vmul.f32 %v1153_v24, %v6638_v40  ;;  %v1163_v26 = vxor.u32 2147483648, %v1146_v38  ;;  %v1374_v2 = vshrl.u32 %v1369_v50, 16 }
 0x173   : > { %v5554_v0 = vadd.s32 4294967294, %v1273_v14  ;;  %v1291_v48 = vsub.s32 4, %v6658_v44  ;;  %v1396_v5 = vshrl.u32 %v1365_v30, 16  ;;  %v1481_v49 = vshrl.u32 %v1480_v23, 23 }
 0x174   : > { %v6713_v62 = vmul.u32 %v1373_v33, %v1372_v31  ;;  %v1160_v55 = vxor.u32 2147483648, %v1154_v53  ;;  %v1358_v6 = vsel %vm1354_vm2, %v1338_v29, %v1341_v52  ;;  %v1376_v61 = vmul.u32 %v1374_v2, %v1371_v19 }
 0x175   : > { %vm5555_vm10 = vcmp.lt.s32.totalorder %v5554_v0, 0  ;;  %v1164_v10 = vsel %vm1162_vm4, %v1163_v26, %v1154_v53  ;;  %v1375_v40 = vmul.u32 %v1373_v33, %v1371_v19  ;;  %v1395_v11 = vand.u32 65535, %v1365_v30 }
 0x176   : > { %v1276_v58 = vsel %vm5555_vm10, 0, %v5554_v0  ;;  %v1161_v35 = vsel %vm1159_vm5, %v1146_v38, %v1160_v55  ;;  %vm1169_vm11 = vcmp.lt.s32.totalorder %v6348_v16, 0  ;;  %v1378_v24 = vmul.u32 %v1374_v2, %v1372_v31 }
 0x177   : > { %v1277_v56 = vsub.s32 32, %v1276_v58  ;;  %v1281_v23 = vsub.s32 4294967266, %v1276_v58  ;;  %v1165_v14 = vsel %vm1158_vm8, %v1161_v35, %v1164_v10  ;;  %v1379_v52 = vshll.u32 %v1376_v61, 16 }
 0x178   : > { %v1381_v50 = vshll.u32 %v6713_v62, 16  ;;  %v1398_v29 = vmul.u32 %v1396_v5, %v1371_v19  ;;  %v1166_v33 = vsel %vm1155_vm9, nan, %v1165_v14  ;;  %v1278_v30 = vshll.u32 %v6672_v39, %v1276_v58 }
 0x179   : > { %v1279_v38 = vshrl.u32 %v6668_v37, %v1277_v56  ;;  %v1282_v53 = vadd.s32 127, %v1281_v23  ;;  %vm1383_vm12 = vc.u32 %v1375_v40, %v1379_v52  ;;  %v1385_v26 = vadd.s32 %v1379_v52, %v1375_v40  ;;  %2876 = vst [vmem:[%s6274_s10 + $0x20] sm:$0xff] %v1166_v33 }
 0x17a   : > { %v1399_v0 = vmul.u32 %v1395_v11, %v1372_v31  ;;  %v1401_v55 = vshll.u32 %v1398_v29, 16  ;;  %v1384_v10 = vsel %vm1383_vm12, 1, %v5787_v3  ;;  %v1397_v35 = vmul.u32 %v1395_v11, %v1371_v19 }
 0x17b   : > { %v1280_v2 = vor.u32 %v1279_v38, %v1278_v30  ;;  %v1283_v63 = vshll.u32 %v1282_v53, 23  ;;  %v1359_v36 = vsel %vm1357_vm1, %v6663_v7, 2102212464  ;;  %v1380_v14 = vshrl.u32 %v1376_v61, 16 }
 0x17c   : > { %v1386_v12 = vadd.s32 %v1384_v10, %v1378_v24  ;;  %vm1387_vm14 = vc.u32 %v1385_v26, %v1381_v50  ;;  %v1400_v58 = vmul.u32 %v1396_v5, %v1372_v31  ;;  %vm1405_vm13 = vc.u32 %v1397_v35, %v1401_v55 }
 0x17d   : > { %v1284_v39 = vor.u32 4788187, %v1283_v63  ;;  %v1388_v37 = vsel %vm1387_vm14, 1, %v5787_v3  ;;  %v1403_v56 = vshll.u32 %v1399_v0, 16  ;;  %v1406_v23 = vsel %vm1405_vm13, 1, %v5787_v3 }
 0x17e   : > { %v1390_v40 = vadd.s32 %v1388_v37, %v1386_v12  ;;  %v1407_v52 = vadd.s32 %v1401_v55, %v1397_v35  ;;  %v1287_v30 = vcvt.s32.f32 %v1280_v2  ;;  %v1408_v19 = vadd.s32 %v1406_v23, %v1400_v58 }
 0x17f   : > { %v1285_v33 = vand.u32 2147483647, %v1284_v39  ;;  %v5559_v11 = vadd.s32 4294967169, %v1481_v49  ;;  %v1292_v7 = vsel %vm1169_vm11, %v1291_v48, %v6658_v44  ;;  %v1360_v61 = vsel %vm1356_vm3, %v6661_v34, %v1359_v36 }
 0x180   : > { %v1391_v24 = vadd.s32 %v1390_v40, %v1380_v14  ;;  %vm1409_vm0 = vc.u32 %v1407_v52, %v1403_v56  ;;  %v1382_v12 = vshrl.u32 %v6713_v62, 16  ;;  %vm6746_vm15 = vcmp.le.f32.partialorder %v1167_v42, 0.7853982 }
 0x181   : > { %v1288_v31 = vmul.f32 %v1287_v30, %v1285_v33  ;;  %v1410_v5 = vsel %vm1409_vm0, 1, %v5787_v3  ;;  %v1487_v50 = vadd.s32 1, %v5559_v11  ;;  %v1402_v38 = vshrl.u32 %v1398_v29, 16 }
 0x182   : > { %v1412_v44 = vadd.s32 %v1410_v5, %v1408_v19  ;;  %v9814_v48 = vand.u32 2147483647, %v6666_v41  ;;  %v1294_v34 = vsel %vm6746_vm15, 0, %v1292_v7  ;;  %v6753_v26 = vadd.s32 %v1391_v24, %v1382_v12  ;;  %v6792_v24 = vpop.permute.xlu0 %358 }
 0x183   : > { %v1289_v53 = vxor.u32 2147483648, %v1288_v31  ;;  %vm1488_vm1 = vcmp.gt.s32.totalorder %v1487_v50, 0  ;;  %v1361_v62 = vsel %vm1355_vm7, %v1358_v6, %v1360_v61  ;;  %v1404_v55 = vshrl.u32 %v1399_v0, 16  ;;  %9854 = vst [vmem:[#allocation7_spill] sm:$0xff] %v6792_v24 }
 0x184   : > { %v1413_v2 = vadd.s32 %v1412_v44, %v1402_v38  ;;  %v1489_v42 = vsel %vm1488_vm1, %v1487_v50, 0  ;;  %v6759_v63 = vmul.f32 %v5928_v17, %v5943_v21  ;;  %v6763_v10 = vadd.s32 %v1407_v52, %v1403_v56 }
 0x185   : > { %v1290_v29 = vsel %vm1169_vm11, %v1289_v53, %v1288_v31  ;;  %v1491_v35 = vand.u32 31, %v1489_v42  ;;  %v1311_v13 = vadd.s32 3, %v1294_v34  ;;  %v1484_v0 = vand.u32 8388607, %v9814_v48 }
 0x186   : > { %v6768_v36 = vsel %vm6746_vm15, %v6348_v16, %v1290_v29  ;;  %v1414_v6 = vadd.s32 %v1413_v2, %v1404_v55  ;;  %v1415_v39 = vmul.u32 %v6689_v27, %v1361_v62  ;;  %vm1417_vm2 = vc.u32 %v6753_v26, %v6763_v10 }
 0x187   : > { %v1295_v14 = vmul.f32 %v6768_v36, %v6768_v36  ;;  %v6777_v37 = vsub.s32 32, %v1491_v35  ;;  %v6779_v40 = vshrl.u32 %v1489_v42, 5  ;;  %v1494_v56 = vshll.u32 %v9817_v45, %v1491_v35 }
 0x188   : > { %v1418_v58 = vadd.s32 1, %v1414_v6  ;;  %v1497_v23 = vshll.u32 %v9827_v47, %v1491_v35  ;;  %v1503_v19 = vshll.u32 %v9821_v54, %v1491_v35  ;;  %v1500_v50 = vshll.u32 %v9825_v51, %v1491_v35 }
 0x189   : > { %v1296_v52 = vmul.f32 -0.001358992, %v1295_v14  ;;  %v1303_v33 = vmul.f32 -0.00019511016, %v1295_v14  ;;  %v1495_v30 = vshrl.u32 %v9827_v47, %v6777_v37  ;;  %v1498_v11 = vshrl.u32 %v9825_v51, %v6777_v37 }
 0x18a   : > { %v1419_v27 = vsel %vm1417_vm2, %v1418_v58, %v1414_v6  ;;  %v1501_v7 = vshrl.u32 %v9821_v54, %v6777_v37  ;;  %v1504_v61 = vshrl.u32 %v9819_v57, %v6777_v37  ;;  %v1506_v44 = vshll.u32 %v9819_v57, %v1491_v35 }
 0x18b   : > { %v1297_v31 = vadd.f32 0.041655596, %v1296_v52  ;;  %v1304_v12 = vadd.f32 0.008332121, %v1303_v33  ;;  %v1420_v5 = vadd.s32 %v1419_v27, %v1415_v39  ;;  %v6795_v49 = vor.u32 %v1495_v30, %v1494_v56 }
 0x18c   : > { %v1505_v38 = vor.u32 %v1504_v61, %v1503_v19  ;;  %v1507_v53 = vshrl.u32 %v9815_v60, %v6777_v37  ;;  %v6800_v2 = vor.u32 %v1498_v11, %v1497_v23  ;;  %v6804_v42 = vadd.f32 %v6792_v24, %v6624_v28 }
 0x18d   : > { %v1298_v34 = vmul.f32 %v1297_v31, %v1295_v14  ;;  %v1305_v62 = vmul.f32 %v1304_v12, %v1295_v14  ;;  %v1421_v55 = vadd.s32 536870912, %v1420_v5  ;;  %v1485_v29 = vor.u32 8388608, %v1484_v0 }
 0x18e   : > { %v1502_v6 = vor.u32 %v1501_v7, %v1500_v50  ;;  %v1508_v39 = vor.u32 %v1507_v53, %v1506_v44  ;;  %vm1512_vm3 = vcmp.lt.s32.totalorder %v6779_v40, 4  ;;  %v1312_v35 = vand.u32 3, %v1311_v13 }
 0x18f   : > { %v1299_v58 = vadd.f32 -0.4999988, %v1298_v34  ;;  %v1306_v56 = vadd.f32 -0.16666654, %v1305_v62  ;;  %v6806_v52 = vshrl.u32 %v1421_v55, 30  ;;  %vm1509_vm4 = vcmp.lt.s32.totalorder %v6779_v40, 1 }
 0x190   : > { %vm1511_vm5 = vcmp.lt.s32.totalorder %v6779_v40, 3  ;;  %v1518_v23 = vsel %vm1512_vm3, %v1505_v38, 920167782  ;;  %v1517_v30 = vsel %vm1509_vm4, %v6795_v49, %v6800_v2  ;;  %vm1310_vm6 = vweird.f32 %v6348_v16 }
 0x191   : > { %v1300_v33 = vmul.f32 %v1299_v58, %v1295_v14  ;;  %v1307_v28 = vmul.f32 %v1306_v56, %v1295_v14  ;;  %v1423_v0 = vshll.u32 %v6806_v52, 30  ;;  %vm1510_vm7 = vcmp.lt.s32.totalorder %v6779_v40, 2 }
 0x192   : > { %v1519_v13 = vsel %vm1511_vm5, %v1502_v6, %v1518_v23  ;;  %v1522_v19 = vsel %vm1512_vm3, %v1508_v39, 1326507024  ;;  %v6824_v27 = vshll.u32 %v1485_v29, 8  ;;  %v1521_v61 = vsel %vm1509_vm4, %v6800_v2, %v1502_v6 }
 0x193   : > { %v1301_v14 = vadd.f32 1.0, %v1300_v33  ;;  %v1308_v11 = vadd.f32 1.0, %v1307_v28  ;;  %v1424_v7 = vsub.s32 %v1420_v5, %v1423_v0  ;;  %vm1313_vm8 = vcmp.lt.s32.totalorder %v1312_v35, 2 }
 0x194   : > { %vm1314_vm9 = vcmp.eq.s32.totalorder %v1312_v35, 0  ;;  %v1520_v31 = vsel %vm1510_vm7, %v1517_v30, %v1519_v13  ;;  %v1523_v12 = vsel %vm1511_vm5, %v1505_v38, %v1522_v19  ;;  %vm1317_vm11 = vcmp.eq.s32.totalorder %v1312_v35, 2 }
 0x195   : > { %v1309_v50 = vmul.f32 %v1308_v11, %v6768_v36  ;;  %v1318_v44 = vxor.u32 2147483648, %v1301_v14  ;;  %vm1425_vm10 = vcmp.lt.s32.totalorder %v1424_v7, 0  ;;  %v1426_v53 = vsub.s32 0, %v1424_v7 }
 0x196   : > { %v1524_v5 = vsel %vm1510_vm7, %v1521_v61, %v1523_v12  ;;  %v1526_v34 = vand.u32 65535, %v6824_v27  ;;  %v1551_v62 = vshrl.u32 %v1520_v31, 16  ;;  %v1527_v39 = vshrl.u32 %v6824_v27, 16 }
 0x197   : > { %v1315_v55 = vxor.u32 2147483648, %v1309_v50  ;;  %v1427_v29 = vsel %vm1425_vm10, %v1426_v53, %v1424_v7  ;;  %v1528_v58 = vand.u32 65535, %v1524_v5  ;;  %v1416_v38 = vadd.s32 %v6763_v10, %v6753_v26 }
 0x198   : > { %v1428_v56 = vclz %v1427_v29  ;;  %v1529_v36 = vshrl.u32 %v1524_v5, 16  ;;  %v1550_v23 = vand.u32 65535, %v1520_v31  ;;  %v1319_v28 = vsel %vm1317_vm11, %v1318_v44, %v1309_v50 }
 0x199   : > { %v1316_v33 = vsel %vm1314_vm9, %v1301_v14, %v1315_v55  ;;  %v9824_v0 = vand.u32 2147483647, %v6804_v42  ;;  %v1635_v30 = vand.u32 2139095040, %v6804_v42  ;;  %v1532_v11 = vmul.u32 %v1528_v58, %v1527_v39 }
 0x19a   : > { %v1320_v13 = vsel %vm1313_vm8, %v1316_v33, %v1319_v28  ;;  %v5557_v19 = vadd.s32 4294967294, %v1428_v56  ;;  %v1553_v61 = vmul.u32 %v1551_v62, %v1526_v34  ;;  %vm1324_vm12 = vcmp.lt.s32.totalorder %v6543_v46, 0 }
 0x19b   : > { %v1321_v12 = vsel %vm1310_vm6, nan, %v1320_v13  ;;  %v1493_v26 = vshrl.u32 %v9817_v45, %v6777_v37  ;;  %v1514_v10 = vsel %vm1512_vm3, %v1502_v6, 2102212464  ;;  %v1531_v14 = vmul.u32 %v1529_v36, %v1526_v34 }
 0x19c   : > { %vm5558_vm14 = vcmp.lt.s32.totalorder %v5557_v19, 0  ;;  %v1446_v31 = vsub.s32 4, %v6806_v52  ;;  %v1552_v35 = vmul.u32 %v1550_v23, %v1526_v34  ;;  %v1554_v50 = vmul.u32 %v1550_v23, %v1527_v39  ;;  %2877 = vst [vmem:[%s6274_s10 + $0x28] sm:$0xff] %v1321_v12 }
 0x19d   : > { %v1431_v44 = vsel %vm5558_vm14, 0, %v5557_v19  ;;  %v1530_v53 = vmul.u32 %v1528_v58, %v1526_v34  ;;  %v1533_v5 = vmul.u32 %v1529_v36, %v1527_v39  ;;  %v1534_v16 = vshll.u32 %v1531_v14, 16 }
 0x19e   : > { %v1432_v55 = vsub.s32 32, %v1431_v44  ;;  %v1436_v29 = vsub.s32 4294967266, %v1431_v44  ;;  %v1536_v56 = vshll.u32 %v1532_v11, 16  ;;  %v1556_v33 = vshll.u32 %v1553_v61, 16 }
 0x19f   : > { %v9855_v37 = vand.u32 2147483647, %v6543_v46  ;;  %v1433_v6 = vshll.u32 %v1424_v7, %v1431_v44  ;;  %vm1538_vm0 = vc.u32 %v1530_v53, %v1534_v16  ;;  %v1540_v13 = vadd.s32 %v1534_v16, %v1530_v53 }
 0x1a0   : > { %v1555_v48 = vmul.u32 %v1551_v62, %v1527_v39  ;;  %v1434_v23 = vshrl.u32 %v1416_v38, %v1432_v55  ;;  %v1437_v12 = vadd.s32 127, %v1436_v29  ;;  %v1539_v34 = vsel %vm1538_vm0, 1, %v5787_v3 }
 0x1a1   : > { %vm6855_vm13 = vcmp.le.f32.partialorder %v9855_v37, 0.7853982  ;;  %v1558_v58 = vshll.u32 %v1554_v50, 16  ;;  %v1541_v36 = vadd.s32 %v1539_v34, %v1533_v5  ;;  %vm1542_vm15 = vc.u32 %v1540_v13, %v1536_v56 }
 0x1a2   : > { %vm1560_vm1 = vc.u32 %v1552_v35, %v1556_v33  ;;  %v1562_v19 = vadd.s32 %v1556_v33, %v1552_v35  ;;  %v1435_v60 = vor.u32 %v1434_v23, %v1433_v6  ;;  %v1438_v45 = vshll.u32 %v1437_v12, 23 }
 0x1a3   : > { %v1543_v37 = vsel %vm1542_vm15, 1, %v5787_v3  ;;  %v1561_v57 = vsel %vm1560_vm1, 1, %v5787_v3  ;;  %v1535_v54 = vshrl.u32 %v1531_v14, 16  ;;  %v1447_v39 = vsel %vm1324_vm12, %v1446_v31, %v6806_v52 }
 0x1a4   : > { %v1545_v7 = vadd.s32 %v1543_v37, %v1541_v36  ;;  %v1563_v44 = vadd.s32 %v1561_v57, %v1555_v48  ;;  %vm1564_vm2 = vc.u32 %v1562_v19, %v1558_v58  ;;  %v1439_v62 = vor.u32 4788187, %v1438_v45 }
 0x1a5   : > { %v1537_v38 = vshrl.u32 %v1532_v11, 16  ;;  %v1565_v53 = vsel %vm1564_vm2, 1, %v5787_v3  ;;  %v1557_v35 = vshrl.u32 %v1553_v61, 16  ;;  %v1636_v55 = vshrl.u32 %v1635_v30, 23 }
 0x1a6   : > { %v1546_v5 = vadd.s32 %v1545_v7, %v1535_v54  ;;  %v1567_v16 = vadd.s32 %v1565_v53, %v1563_v44  ;;  %v1440_v29 = vand.u32 2147483647, %v1439_v62  ;;  %v1442_v56 = vcvt.s32.f32 %v1435_v60 }
 0x1a7   : > { %v1513_v14 = vsel %vm1509_vm4, %v1493_v26, %v6795_v49  ;;  %v1515_v45 = vsel %vm1511_vm5, %v6800_v2, %v1514_v10  ;;  %v1559_v48 = vshrl.u32 %v1554_v50, 16  ;;  %v5562_v11 = vadd.s32 4294967169, %v1636_v55 }
 0x1a8   : > { %v1547_v57 = vadd.s32 %v1546_v5, %v1537_v38  ;;  %v1568_v52 = vadd.s32 %v1567_v16, %v1557_v35  ;;  %v6874_v54 = vadd.f32 %v6792_v24, %v6759_v63  ;;  %v1443_v61 = vmul.f32 %v1442_v56, %v1440_v29 }
 0x1a9   : > { %v1449_v60 = vsel %vm6855_vm13, 0, %v1447_v39  ;;  %v1566_v30 = vadd.s32 %v1562_v19, %v1558_v58  ;;  %v1516_v49 = vsel %vm1510_vm7, %v1513_v14, %v1515_v45  ;;  %v1639_v2 = vand.u32 8388607, %v9824_v0 }
 0x1aa   : > { %v1569_v26 = vadd.s32 %v1568_v52, %v1559_v48  ;;  %v1642_v10 = vadd.s32 1, %v5562_v11  ;;  %v1444_v31 = vxor.u32 2147483648, %v1443_v61  ;;  %v1466_v50 = vadd.s32 3, %v1449_v60 }
 0x1ab   : > { %vm1572_vm3 = vc.u32 %v1547_v57, %v1566_v30  ;;  %v1570_v6 = vmul.u32 %v6824_v27, %v1516_v49  ;;  %v9823_v23 = vand.u32 2147483647, %v6874_v54  ;;  %v1640_v34 = vor.u32 8388608, %v1639_v2 }
 0x1ac   : > { %v1573_v33 = vadd.s32 1, %v1569_v26  ;;  %vm1643_vm4 = vcmp.gt.s32.totalorder %v1642_v10, 0  ;;  %v1445_v63 = vsel %vm1324_vm12, %v1444_v31, %v1443_v61  ;;  %v6891_v37 = vmul.f32 %v5939_v18, %v5941_v20 }
 0x1ad   : > { %v1644_v13 = vsel %vm1643_vm4, %v1642_v10, 0  ;;  %v1448_v40 = vsel %vm6855_vm13, %v6543_v46, %v1445_v63  ;;  %v6895_v62 = vand.u32 3, %v1466_v50  ;;  %v6897_v38 = vadd.s32 %v1566_v30, %v1547_v57 }
 0x1ae   : > { %v1574_v12 = vsel %vm1572_vm3, %v1573_v33, %v1569_v26  ;;  %v1646_v58 = vand.u32 31, %v1644_v13  ;;  %v1450_v36 = vmul.f32 %v1448_v40, %v1448_v40  ;;  %v6899_v28 = vshll.u32 %v1640_v34, 8 }
 0x1af   : > { %v1575_v19 = vadd.s32 %v1574_v12, %v1570_v6  ;;  %v1790_v53 = vand.u32 2139095040, %v6874_v54  ;;  %v6904_v5 = vand.u32 8388607, %v9823_v23  ;;  %v6910_v56 = vshrl.u32 %v1644_v13, 5 }
 0x1b0   : > { %v6893_v7 = vsub.s32 32, %v1646_v58  ;;  %v1451_v44 = vmul.f32 -0.001358992, %v1450_v36  ;;  %v1458_v27 = vmul.f32 -0.00019511016, %v1450_v36  ;;  %v1652_v26 = vshll.u32 %v9827_v47, %v1646_v58 }
 0x1b1   : > { %v1576_v39 = vadd.s32 536870912, %v1575_v19  ;;  %v9858_v45 = vmov 2102212464   ;;  %v9859_v48 = vmov 920167782   ;;  %v1655_v2 = vshll.u32 %v9825_v51, %v1646_v58 }
 0x1b2   : > { %v1452_v35 = vadd.f32 0.041655596, %v1451_v44  ;;  %v1459_v16 = vadd.f32 0.008332121, %v1458_v27  ;;  %v1650_v29 = vshrl.u32 %v9827_v47, %v6893_v7  ;;  %v1653_v14 = vshrl.u32 %v9825_v51, %v6893_v7 }
 0x1b3   : > { %v6906_v55 = vshrl.u32 %v1576_v39, 30  ;;  %v1656_v57 = vshrl.u32 %v9858_v45, %v6893_v7  ;;  %v1659_v52 = vshrl.u32 %v9859_v48, %v6893_v7  ;;  %v9860_v30 = vmov 683565275  }
 0x1b4   : > { %v1453_v11 = vmul.f32 %v1452_v35, %v1450_v36  ;;  %v1460_v61 = vmul.f32 %v1459_v16, %v1450_v36  ;;  %v1649_v49 = vshll.u32 %v9860_v30, %v1646_v58  ;;  %v1658_v10 = vshll.u32 %v9858_v45, %v1646_v58 }
 0x1b5   : > { %v1578_v60 = vshll.u32 %v6906_v55, 30  ;;  %v9861_v31 = vmov 1326507024   ;;  %vm1472_vm5 = vcmp.eq.s32.totalorder %v6895_v62, 2  ;;  %vm1469_vm6 = vcmp.eq.s32.totalorder %v6895_v62, 0 }
 0x1b6   : > { %v1662_v50 = vshrl.u32 %v9861_v31, %v6893_v7  ;;  %v1454_v33 = vadd.f32 -0.4999988, %v1453_v11  ;;  %v1461_v63 = vadd.f32 -0.16666654, %v1460_v61  ;;  %v1651_v13 = vor.u32 %v1650_v29, %v1649_v49 }
 0x1b7   : > { %v6926_v6 = vsub.s32 %v1575_v19, %v1578_v60  ;;  %v6929_v12 = vor.u32 %v1653_v14, %v1652_v26  ;;  %v1657_v34 = vor.u32 %v1656_v57, %v1655_v2  ;;  %v1660_v44 = vor.u32 %v1659_v52, %v1658_v10 }
 0x1b8   : > { %v1661_v27 = vshll.u32 %v9859_v48, %v1646_v58  ;;  %v1455_v39 = vmul.f32 %v1454_v33, %v1450_v36  ;;  %v1462_v35 = vmul.f32 %v1461_v63, %v1450_v36  ;;  %vm1468_vm7 = vcmp.lt.s32.totalorder %v6895_v62, 2 }
 0x1b9   : > { %vm1580_vm8 = vcmp.lt.s32.totalorder %v6926_v6, 0  ;;  %v1581_v16 = vsub.s32 0, %v6926_v6  ;;  %vm1465_vm9 = vweird.f32 %v6543_v46  ;;  %vm1479_vm10 = vcmp.lt.s32.totalorder %v6666_v41, 0 }
 0x1ba   : > { %v1663_v19 = vor.u32 %v1662_v50, %v1661_v27  ;;  %vm1664_vm11 = vcmp.lt.s32.totalorder %v6910_v56, 1  ;;  %v1681_v29 = vand.u32 65535, %v6899_v28  ;;  %v1791_v14 = vshrl.u32 %v1790_v53, 23 }
 0x1bb   : > { %v1456_v57 = vadd.f32 1.0, %v1455_v39  ;;  %v1463_v58 = vadd.f32 1.0, %v1462_v35  ;;  %v1582_v36 = vsel %vm1580_vm8, %v1581_v16, %v6926_v6  ;;  %vm1667_vm12 = vcmp.lt.s32.totalorder %v6910_v56, 4 }
 0x1bc   : > { %v1583_v52 = vclz %v1582_v36  ;;  %vm1666_vm14 = vcmp.lt.s32.totalorder %v6910_v56, 3  ;;  %v1672_v11 = vsel %vm1664_vm11, %v1651_v13, %v6929_v12  ;;  %v1673_v61 = vsel %vm1667_vm12, %v1660_v44, 920167782 }
 0x1bd   : > { %v1464_v60 = vmul.f32 %v1463_v58, %v1448_v40  ;;  %v1473_v49 = vxor.u32 2147483648, %v1456_v57  ;;  %v1674_v53 = vsel %vm1666_vm14, %v1657_v34, %v1673_v61  ;;  %v1682_v26 = vshrl.u32 %v6899_v28, 16 }
 0x1be   : > { %v5560_v2 = vadd.s32 4294967294, %v1583_v52  ;;  %vm1665_vm13 = vcmp.lt.s32.totalorder %v6910_v56, 2  ;;  %v1676_v10 = vsel %vm1664_vm11, %v6929_v12, %v1657_v34  ;;  %v5565_v50 = vadd.s32 4294967169, %v1791_v14 }
 0x1bf   : > { %v1470_v33 = vxor.u32 2147483648, %v1464_v60  ;;  %v1601_v63 = vsub.s32 4, %v6906_v55  ;;  %v1675_v40 = vsel %vm1665_vm13, %v1672_v11, %v1674_v53  ;;  %v1677_v27 = vsel %vm1667_vm12, %v1663_v19, 1326507024 }
 0x1c0   : > { %v1474_v39 = vsel %vm1472_vm5, %v1473_v49, %v1464_v60  ;;  %vm5561_vm0 = vcmp.lt.s32.totalorder %v5560_v2, 0  ;;  %v1678_v35 = vsel %vm1666_vm14, %v1660_v44, %v1677_v27  ;;  %v1706_v16 = vshrl.u32 %v1675_v40, 16 }
 0x1c1   : > { %v1471_v14 = vsel %vm1469_vm6, %v1456_v57, %v1470_v33  ;;  %v1586_v58 = vsel %vm5561_vm0, 0, %v5560_v2  ;;  %v1679_v36 = vsel %vm1665_vm13, %v1676_v10, %v1678_v35  ;;  %v1705_v52 = vand.u32 65535, %v1675_v40 }
 0x1c2   : > { %v1475_v19 = vsel %vm1468_vm7, %v1471_v14, %v1474_v39  ;;  %v1587_v11 = vsub.s32 32, %v1586_v58  ;;  %v1591_v61 = vsub.s32 4294967266, %v1586_v58  ;;  %v1648_v60 = vshrl.u32 %v9860_v30, %v6893_v7 }
 0x1c3   : > { %v1476_v44 = vsel %vm1465_vm9, nan, %v1475_v19  ;;  %v6976_v57 = vsel %vm1479_vm10, %v1601_v63, %v6906_v55  ;;  %v1683_v49 = vand.u32 65535, %v1679_v36  ;;  %v1684_v53 = vshrl.u32 %v1679_v36, 16 }
 0x1c4   : > { %v1588_v2 = vshll.u32 %v6926_v6, %v1586_v58  ;;  %v1589_v62 = vshrl.u32 %v6897_v38, %v1587_v11  ;;  %v1592_v10 = vadd.s32 127, %v1591_v61  ;;  %v1708_v33 = vmul.u32 %v1706_v16, %v1681_v29  ;;  %2878 = vst [vmem:[%s6274_s10 + $0x30] sm:$0xff] %v1476_v44 }
 0x1c5   : > { %v1668_v7 = vsel %vm1664_vm11, %v1648_v60, %v1651_v13  ;;  %v1686_v40 = vmul.u32 %v1684_v53, %v1681_v29  ;;  %v1687_v46 = vmul.u32 %v1683_v49, %v1682_v26  ;;  %v1709_v27 = vmul.u32 %v1705_v52, %v1682_v26 }
 0x1c6   : > { %v9862_v39 = vand.u32 2147483647, %v6666_v41  ;;  %v1590_v63 = vor.u32 %v1589_v62, %v1588_v2  ;;  %v1593_v35 = vshll.u32 %v1592_v10, 23  ;;  %v1669_v38 = vsel %vm1667_vm12, %v1657_v34, 2102212464 }
 0x1c7   : > { %v1711_v6 = vshll.u32 %v1708_v33, 16  ;;  %v1685_v14 = vmul.u32 %v1683_v49, %v1681_v29  ;;  %v1688_v58 = vmul.u32 %v1684_v53, %v1682_v26  ;;  %v1689_v36 = vshll.u32 %v1686_v40, 16 }
 0x1c8   : > { %vm6985_vm15 = vcmp.le.f32.partialorder %v9862_v39, 0.7853982  ;;  %v1707_v19 = vmul.u32 %v1705_v52, %v1681_v29  ;;  %v1594_v13 = vor.u32 4788187, %v1593_v35  ;;  %v1597_v11 = vcvt.s32.f32 %v1590_v63 }
 0x1c9   : > { %v1691_v61 = vshll.u32 %v1687_v46, 16  ;;  %v1710_v60 = vmul.u32 %v1706_v16, %v1682_v26  ;;  %vm1693_vm1 = vc.u32 %v1685_v14, %v1689_v36  ;;  %v1695_v44 = vadd.s32 %v1689_v36, %v1685_v14 }
 0x1ca   : > { %v1713_v39 = vshll.u32 %v1709_v27, 16  ;;  %vm1715_vm2 = vc.u32 %v1707_v19, %v1711_v6  ;;  %v1595_v23 = vand.u32 2147483647, %v1594_v13  ;;  %v1694_v2 = vsel %vm1693_vm1, 1, %v5787_v3 }
 0x1cb   : > { %v1716_v62 = vsel %vm1715_vm2, 1, %v5787_v3  ;;  %v1717_v10 = vadd.s32 %v1711_v6, %v1707_v19  ;;  %v1696_v34 = vadd.s32 %v1694_v2, %v1688_v58  ;;  %vm1697_vm3 = vc.u32 %v1695_v44, %v1691_v61 }
 0x1cc   : > { %v1718_v49 = vadd.s32 %v1716_v62, %v1710_v60  ;;  %v1797_v53 = vadd.s32 1, %v5565_v50  ;;  %v1598_v0 = vmul.f32 %v1597_v11, %v1595_v23  ;;  %v1670_v29 = vsel %vm1666_vm14, %v6929_v12, %v1669_v38 }
 0x1cd   : > { %v1698_v26 = vsel %vm1697_vm3, 1, %v5787_v3  ;;  %vm1719_vm4 = vc.u32 %v1717_v10, %v1713_v39  ;;  %v1690_v16 = vshrl.u32 %v1686_v40, 16  ;;  %v1712_v14 = vshrl.u32 %v1708_v33, 16 }
 0x1ce   : > { %v1700_v52 = vadd.s32 %v1698_v26, %v1696_v34  ;;  %v1720_v63 = vsel %vm1719_vm4, 1, %v5787_v3  ;;  %vm1798_vm5 = vcmp.gt.s32.totalorder %v1797_v53, 0  ;;  %v1599_v35 = vxor.u32 2147483648, %v1598_v0 }
 0x1cf   : > { %v1722_v6 = vadd.s32 %v1720_v63, %v1718_v49  ;;  %v1799_v58 = vsel %vm1798_vm5, %v1797_v53, 0  ;;  %v1604_v23 = vsel %vm6985_vm15, 0, %v6976_v57  ;;  %v1692_v50 = vshrl.u32 %v1687_v46, 16 }
 0x1d0   : > { %v1701_v36 = vadd.s32 %v1700_v52, %v1690_v16  ;;  %v1801_v19 = vand.u32 31, %v1799_v58  ;;  %v1600_v12 = vsel %vm1479_vm10, %v1599_v35, %v1598_v0  ;;  %v1671_v40 = vsel %vm1665_vm13, %v1668_v7, %v1670_v29 }
 0x1d1   : > { %v1714_v38 = vshrl.u32 %v1709_v27, 16  ;;  %v1723_v13 = vadd.s32 %v1722_v6, %v1712_v14  ;;  %v7008_v33 = vsel %vm6985_vm15, %v6666_v41, %v1600_v12  ;;  %v7012_v61 = vadd.s32 %v1717_v10, %v1713_v39  ;;  %v7040_v14 = vpop.permute.xlu1 %363 }
 0x1d2   : > { %v7010_v11 = vadd.s32 %v1701_v36, %v1692_v50  ;;  %v7014_v57 = vsub.s32 32, %v1801_v19  ;;  %v7018_v46 = vmul.f32 %v5939_v18, %v5943_v21  ;;  %v1605_v0 = vmul.f32 %v7008_v33, %v7008_v33  ;;  %9865 = vst [vmem:[#allocation8_spill] sm:$0xff] %v7040_v14 }
 0x1d3   : > { %v1724_v56 = vadd.s32 %v1723_v13, %v1714_v38  ;;  %v1795_v7 = vor.u32 8388608, %v6904_v5  ;;  %v1621_v27 = vadd.s32 3, %v1604_v23  ;;  %v1725_v55 = vmul.u32 %v6899_v28, %v1671_v40 }
 0x1d4   : > { %vm1727_vm6 = vc.u32 %v7010_v11, %v7012_v61  ;;  %v7026_v60 = vshrl.u32 %v1799_v58, 5  ;;  %v1606_v44 = vmul.f32 -0.001358992, %v1605_v0  ;;  %v1613_v39 = vmul.f32 -0.00019511016, %v1605_v0 }
 0x1d5   : > { %v1728_v2 = vadd.s32 1, %v1724_v56  ;;  %v1805_v62 = vshrl.u32 %v9827_v47, %v7014_v57  ;;  %v1808_v10 = vshrl.u32 %v9825_v51, %v7014_v57  ;;  %v1811_v5 = vshrl.u32 %v9858_v45, %v7014_v57 }
 0x1d6   : > { %v1813_v34 = vshll.u32 %v9858_v45, %v1801_v19  ;;  %v1814_v28 = vshrl.u32 %v9859_v48, %v7014_v57  ;;  %v1607_v49 = vadd.f32 0.041655596, %v1606_v44  ;;  %v1614_v53 = vadd.f32 0.008332121, %v1613_v39 }
 0x1d7   : > { %v1729_v29 = vsel %vm1727_vm6, %v1728_v2, %v1724_v56  ;;  %v1804_v26 = vshll.u32 %v9860_v30, %v1801_v19  ;;  %v1807_v52 = vshll.u32 %v9827_v47, %v1801_v19  ;;  %v1810_v63 = vshll.u32 %v9825_v51, %v1801_v19 }
 0x1d8   : > { %v1730_v16 = vadd.s32 %v1729_v29, %v1725_v55  ;;  %v1815_v35 = vor.u32 %v1814_v28, %v1813_v34  ;;  %v1608_v6 = vmul.f32 %v1607_v49, %v1605_v0  ;;  %v1615_v58 = vmul.f32 %v1614_v53, %v1605_v0 }
 0x1d9   : > { %v1816_v23 = vshll.u32 %v9859_v48, %v1801_v19  ;;  %v1817_v50 = vshrl.u32 %v9861_v31, %v7014_v57  ;;  %v7045_v12 = vor.u32 %v1805_v62, %v1804_v26  ;;  %v7047_v40 = vor.u32 %v1808_v10, %v1807_v52 }
 0x1da   : > { %v1731_v36 = vadd.s32 536870912, %v1730_v16  ;;  %v1812_v38 = vor.u32 %v1811_v5, %v1810_v63  ;;  %v1609_v13 = vadd.f32 -0.4999988, %v1608_v6  ;;  %v1616_v56 = vadd.f32 -0.16666654, %v1615_v58 }
 0x1db   : > { %v1818_v55 = vor.u32 %v1817_v50, %v1816_v23  ;;  %vm1822_vm7 = vcmp.lt.s32.totalorder %v7026_v60, 4  ;;  %v7052_v44 = vadd.f32 %v7040_v14, %v6891_v37  ;;  %v1622_v39 = vand.u32 3, %v1621_v27 }
 0x1dc   : > { %v7054_v19 = vshrl.u32 %v1731_v36, 30  ;;  %v1828_v2 = vsel %vm1822_vm7, %v1815_v35, 920167782  ;;  %v1610_v62 = vmul.f32 %v1609_v13, %v1605_v0  ;;  %v1617_v34 = vmul.f32 %v1616_v56, %v1605_v0 }
 0x1dd   : > { %vm1819_vm8 = vcmp.lt.s32.totalorder %v7026_v60, 1  ;;  %vm1821_vm9 = vcmp.lt.s32.totalorder %v7026_v60, 3  ;;  %vm1620_vm10 = vweird.f32 %v6666_v41  ;;  %v7068_v5 = vshll.u32 %v1795_v7, 8 }
 0x1de   : > { %v1733_v10 = vshll.u32 %v7054_v19, 30  ;;  %v1827_v37 = vsel %vm1819_vm8, %v7045_v12, %v7047_v40  ;;  %v1829_v27 = vsel %vm1821_vm9, %v1812_v38, %v1828_v2  ;;  %v1611_v28 = vadd.f32 1.0, %v1610_v62 }
 0x1df   : > { %v1618_v0 = vadd.f32 1.0, %v1617_v34  ;;  %v1831_v49 = vsel %vm1819_vm8, %v7047_v40, %v1812_v38  ;;  %v1832_v53 = vsel %vm1822_vm7, %v1818_v55, 1326507024  ;;  %vm1623_vm11 = vcmp.lt.s32.totalorder %v1622_v39, 2 }
 0x1e0   : > { %v1734_v29 = vsub.s32 %v1730_v16, %v1733_v10  ;;  %vm1820_vm12 = vcmp.lt.s32.totalorder %v7026_v60, 2  ;;  %v1833_v26 = vsel %vm1821_vm9, %v1815_v35, %v1832_v53  ;;  %v1628_v7 = vxor.u32 2147483648, %v1611_v28 }
 0x1e1   : > { %v1619_v52 = vmul.f32 %v1618_v0, %v7008_v33  ;;  %v1830_v63 = vsel %vm1820_vm12, %v1827_v37, %v1829_v27  ;;  %v1834_v6 = vsel %vm1820_vm12, %v1831_v49, %v1833_v26  ;;  %vm1627_vm14 = vcmp.eq.s32.totalorder %v1622_v39, 2 }
 0x1e2   : > { %vm1735_vm13 = vcmp.lt.s32.totalorder %v1734_v29, 0  ;;  %v1736_v58 = vsub.s32 0, %v1734_v29  ;;  %v1838_v23 = vand.u32 65535, %v1834_v6  ;;  %v1836_v16 = vand.u32 65535, %v7068_v5 }
 0x1e3   : > { %v1625_v50 = vxor.u32 2147483648, %v1619_v52  ;;  %v1837_v36 = vshrl.u32 %v7068_v5, 16  ;;  %v1839_v13 = vshrl.u32 %v1834_v6, 16  ;;  %vm1624_vm0 = vcmp.eq.s32.totalorder %v1622_v39, 0 }
 0x1e4   : > { %v1629_v35 = vsel %vm1627_vm14, %v1628_v7, %v1619_v52  ;;  %v1737_v33 = vsel %vm1735_vm13, %v1736_v58, %v1734_v29  ;;  %v1861_v56 = vshrl.u32 %v1830_v63, 16  ;;  %v1726_v37 = vadd.s32 %v7012_v61, %v7010_v11 }
 0x1e5   : > { %v1626_v55 = vsel %vm1624_vm0, %v1611_v28, %v1625_v50  ;;  %v1738_v2 = vclz %v1737_v33  ;;  %v1841_v62 = vmul.u32 %v1839_v13, %v1836_v16  ;;  %v1842_v34 = vmul.u32 %v1838_v23, %v1837_v36 }
 0x1e6   : > { %v1630_v10 = vsel %vm1623_vm11, %v1626_v55, %v1629_v35  ;;  %v1803_v27 = vshrl.u32 %v9860_v30, %v7014_v57  ;;  %v1860_v0 = vand.u32 65535, %v1830_v63  ;;  %v1840_v26 = vmul.u32 %v1838_v23, %v1836_v16 }
 0x1e7   : > { %v1631_v49 = vsel %vm1620_vm10, nan, %v1630_v10  ;;  %v5563_v53 = vadd.s32 4294967294, %v1738_v2  ;;  %v1844_v52 = vshll.u32 %v1841_v62, 16  ;;  %v1756_v28 = vsub.s32 4, %v7054_v19 }
 0x1e8   : > { %v1824_v7 = vsel %vm1822_vm7, %v1812_v38, 2102212464  ;;  %v1843_v39 = vmul.u32 %v1839_v13, %v1837_v36  ;;  %v1863_v6 = vmul.u32 %v1861_v56, %v1836_v16  ;;  %2879 = vst [vmem:[%s6274_s10 + $0x38] sm:$0xff] %v1631_v49  ;;  %vm1634_vm15 = vcmp.lt.s32.totalorder %v6804_v42, 0 }
 0x1e9   : > { %vm5564_vm1 = vcmp.lt.s32.totalorder %v5563_v53, 0  ;;  %v1846_v11 = vshll.u32 %v1842_v34, 16  ;;  %vm1848_vm2 = vc.u32 %v1840_v26, %v1844_v52  ;;  %v1850_v61 = vadd.s32 %v1844_v52, %v1840_v26 }
 0x1ea   : > { %v1741_v57 = vsel %vm5564_vm1, 0, %v5563_v53  ;;  %v1849_v41 = vsel %vm1848_vm2, 1, %v5787_v3  ;;  %v1864_v63 = vmul.u32 %v1860_v0, %v1837_v36  ;;  %v1866_v58 = vshll.u32 %v1863_v6, 16 }
 0x1eb   : > { %v1742_v23 = vsub.s32 32, %v1741_v57  ;;  %v1746_v50 = vsub.s32 4294967266, %v1741_v57  ;;  %v1851_v35 = vadd.s32 %v1849_v41, %v1843_v39  ;;  %v1862_v33 = vmul.u32 %v1860_v0, %v1836_v16 }
 0x1ec   : > { %v1743_v55 = vshll.u32 %v1734_v29, %v1741_v57  ;;  %v1845_v38 = vshrl.u32 %v1841_v62, 16  ;;  %vm1852_vm3 = vc.u32 %v1850_v61, %v1846_v11  ;;  %v1865_v13 = vmul.u32 %v1861_v56, %v1837_v36 }
 0x1ed   : > { %v1744_v2 = vshrl.u32 %v1726_v37, %v1742_v23  ;;  %v1747_v10 = vadd.s32 127, %v1746_v50  ;;  %v1853_v49 = vsel %vm1852_vm3, 1, %v5787_v3  ;;  %vm1870_vm4 = vc.u32 %v1862_v33, %v1866_v58 }
 0x1ee   : > { %v1855_v51 = vadd.s32 %v1853_v49, %v1851_v35  ;;  %v1868_v26 = vshll.u32 %v1864_v63, 16  ;;  %v1871_v53 = vsel %vm1870_vm4, 1, %v5787_v3  ;;  %v1872_v52 = vadd.s32 %v1866_v58, %v1862_v33 }
 0x1ef   : > { %v1745_v47 = vor.u32 %v1744_v2, %v1743_v55  ;;  %v1748_v18 = vshll.u32 %v1747_v10, 23  ;;  %v1873_v24 = vadd.s32 %v1871_v53, %v1865_v13  ;;  %v1942_v39 = vand.u32 2147483647, %v7052_v44 }
 0x1f0   : > { %v1823_v29 = vsel %vm1819_vm8, %v1803_v27, %v7045_v12  ;;  %v1825_v16 = vsel %vm1821_vm9, %v7047_v40, %v1824_v7  ;;  %v1856_v36 = vadd.s32 %v1855_v51, %v1845_v38  ;;  %vm1874_vm5 = vc.u32 %v1872_v52, %v1868_v26 }
 0x1f1   : > { %v1749_v56 = vor.u32 4788187, %v1748_v18  ;;  %v1847_v62 = vshrl.u32 %v1842_v34, 16  ;;  %v1875_v37 = vsel %vm1874_vm5, 1, %v5787_v3  ;;  %v1945_v0 = vand.u32 2139095040, %v7052_v44 }
 0x1f2   : > { %v1752_v11 = vcvt.s32.f32 %v1745_v47  ;;  %v1757_v61 = vsel %vm1634_vm15, %v1756_v28, %v7054_v19  ;;  %v1867_v57 = vshrl.u32 %v1863_v6, 16  ;;  %v1877_v41 = vadd.s32 %v1875_v37, %v1873_v24 }
 0x1f3   : > { %v1750_v12 = vand.u32 2147483647, %v1749_v56  ;;  %v1857_v27 = vadd.s32 %v1856_v36, %v1847_v62  ;;  %v1946_v58 = vshrl.u32 %v1945_v0, 23  ;;  %v1949_v51 = vand.u32 8388607, %v1942_v39 }
 0x1f4   : > { %v7116_v18 = vadd.f32 %v7040_v14, %v7018_v46  ;;  %v1869_v40 = vshrl.u32 %v1864_v63, 16  ;;  %v1878_v34 = vadd.s32 %v1877_v41, %v1867_v57  ;;  %v9866_v47 = vand.u32 2147483647, %v6804_v42 }
 0x1f5   : > { %v1753_v19 = vmul.f32 %v1752_v11, %v1750_v12  ;;  %v1876_v24 = vadd.s32 %v1872_v52, %v1868_v26  ;;  %v5568_v28 = vadd.s32 4294967169, %v1946_v58  ;;  %v1826_v23 = vsel %vm1820_vm12, %v1823_v29, %v1825_v16 }
 0x1f6   : > { %vm7120_vm6 = vcmp.le.f32.partialorder %v9866_v47, 0.7853982  ;;  %v1879_v50 = vadd.s32 %v1878_v34, %v1869_v40  ;;  %v1950_v63 = vor.u32 8388608, %v1949_v51  ;;  %v2100_v55 = vand.u32 2139095040, %v7116_v18 }
 0x1f7   : > { %v1759_v6 = vsel %vm7120_vm6, 0, %v1757_v61  ;;  %v1754_v46 = vxor.u32 2147483648, %v1753_v19  ;;  %vm1882_vm7 = vc.u32 %v1857_v27, %v1876_v24  ;;  %v1952_v35 = vadd.s32 1, %v5568_v28 }
 0x1f8   : > { %v1883_v33 = vadd.s32 1, %v1879_v50  ;;  %v1880_v13 = vmul.u32 %v7068_v5, %v1826_v23  ;;  %v1776_v60 = vadd.s32 3, %v1759_v6  ;;  %v7135_v29 = vshll.u32 %v1950_v63, 8 }
 0x1f9   : > { %v1755_v38 = vsel %vm1634_vm15, %v1754_v46, %v1753_v19  ;;  %vm1953_vm8 = vcmp.gt.s32.totalorder %v1952_v35, 0  ;;  %v2101_v16 = vshrl.u32 %v2100_v55, 23  ;;  %v7139_v5 = vmul.f32 %v6037_v1, %v5941_v20 }
 0x1fa   : > { %v1758_v2 = vsel %vm7120_vm6, %v6804_v42, %v1755_v38  ;;  %v1884_v10 = vsel %vm1882_vm7, %v1883_v33, %v1879_v50  ;;  %v1954_v49 = vsel %vm1953_vm8, %v1952_v35, 0  ;;  %v7141_v0 = vand.u32 3, %v1776_v60 }
 0x1fb   : > { %v1760_v26 = vmul.f32 %v1758_v2, %v1758_v2  ;;  %v1885_v53 = vadd.s32 %v1884_v10, %v1880_v13  ;;  %v1956_v52 = vand.u32 31, %v1954_v49  ;;  %v7143_v11 = vadd.s32 %v1876_v24, %v1857_v27 }
 0x1fc   : > { %v9833_v61 = vand.u32 2147483647, %v7116_v18  ;;  %vm1789_vm9 = vcmp.lt.s32.totalorder %v6874_v54, 0  ;;  %v7148_v58 = vand.u32 65535, %v7135_v29  ;;  %v7150_v51 = vshrl.u32 %v1954_v49, 5 }
 0x1fd   : > { %v1761_v36 = vmul.f32 -0.001358992, %v1760_v26  ;;  %v1768_v56 = vmul.f32 -0.00019511016, %v1760_v26  ;;  %v1886_v62 = vadd.s32 536870912, %v1885_v53  ;;  %v1957_v37 = vsub.s32 32, %v1956_v52 }
 0x1fe   : > { %v1959_v40 = vshll.u32 %v9860_v30, %v1956_v52  ;;  %v7154_v47 = vadd.s32 4294967169, %v2101_v16  ;;  %v9869_v24 = vmov 2475754826   ;;  %vm1782_vm10 = vcmp.eq.s32.totalorder %v7141_v0, 2 }
 0x1ff   : > { %v1762_v57 = vadd.f32 0.041655596, %v1761_v36  ;;  %v1769_v41 = vadd.f32 0.008332121, %v1768_v56  ;;  %v1887_v12 = vshrl.u32 %v1886_v62, 30  ;;  %v1966_v34 = vshrl.u32 %v9858_v45, %v1957_v37 }
 0x200   : > { %v1962_v28 = vshll.u32 %v9869_v24, %v1956_v52  ;;  %v1960_v6 = vshrl.u32 %v9869_v24, %v1957_v37  ;;  %v9870_v23 = vmov 2131351028   ;;  %v1969_v63 = vshrl.u32 %v9859_v48, %v1957_v37 }
 0x201   : > { %v1763_v27 = vmul.f32 %v1762_v57, %v1760_v26  ;;  %v1770_v7 = vmul.f32 %v1769_v41, %v1760_v26  ;;  %v1888_v19 = vshll.u32 %v1887_v12, 30  ;;  %v1963_v50 = vshrl.u32 %v9870_v23, %v1957_v37 }
 0x202   : > { %v1965_v46 = vshll.u32 %v9870_v23, %v1956_v52  ;;  %v1968_v38 = vshll.u32 %v9858_v45, %v1956_v52  ;;  %vm1779_vm11 = vcmp.eq.s32.totalorder %v7141_v0, 0  ;;  %v1911_v13 = vsub.s32 4, %v1887_v12 }
 0x203   : > { %v1764_v35 = vadd.f32 -0.4999988, %v1763_v27  ;;  %v1771_v33 = vadd.f32 -0.16666654, %v1770_v7  ;;  %v7162_v55 = vsub.s32 %v1885_v53, %v1888_v19  ;;  %v1958_v60 = vshrl.u32 %v9860_v30, %v1957_v37 }
 0x204   : > { %v1967_v10 = vor.u32 %v1966_v34, %v1965_v46  ;;  %v1972_v49 = vshrl.u32 %v9861_v31, %v1957_v37  ;;  %vm1778_vm12 = vcmp.lt.s32.totalorder %v7141_v0, 2  ;;  %vm1775_vm13 = vweird.f32 %v6804_v42 }
 0x205   : > { %v1765_v16 = vmul.f32 %v1764_v35, %v1760_v26  ;;  %v1772_v36 = vmul.f32 %v1771_v33, %v1760_v26  ;;  %vm1890_vm14 = vcmp.lt.s32.totalorder %v7162_v55, 0  ;;  %v1891_v56 = vsub.s32 0, %v7162_v55 }
 0x206   : > { %v1961_v53 = vor.u32 %v1960_v6, %v1959_v40  ;;  %v1964_v62 = vor.u32 %v1963_v50, %v1962_v28  ;;  %v1970_v57 = vor.u32 %v1969_v63, %v1968_v38  ;;  %v1971_v41 = vshll.u32 %v9859_v48, %v1956_v52 }
 0x207   : > { %v1766_v27 = vadd.f32 1.0, %v1765_v16  ;;  %v1773_v7 = vadd.f32 1.0, %v1772_v36  ;;  %v1892_v34 = vsel %vm1890_vm14, %v1891_v56, %v7162_v55  ;;  %vm1977_vm0 = vcmp.lt.s32.totalorder %v7150_v51, 4 }
 0x208   : > { %v1893_v26 = vclz %v1892_v34  ;;  %v7177_v37 = vsel %vm1789_vm9, %v1911_v13, %v1887_v12  ;;  %v1973_v19 = vor.u32 %v1972_v49, %v1971_v41  ;;  %v1979_v46 = vsel %vm1977_vm0, %v1967_v10, 2102212464 }
 0x209   : > { %v1774_v40 = vmul.f32 %v1773_v7, %v1758_v2  ;;  %v1783_v28 = vxor.u32 2147483648, %v1766_v27  ;;  %v9871_v6 = vand.u32 2147483647, %v6874_v54  ;;  %vm1974_vm1 = vcmp.lt.s32.totalorder %v7150_v51, 1 }
 0x20a   : > { %vm1975_vm2 = vcmp.lt.s32.totalorder %v7150_v51, 2  ;;  %v5566_v50 = vadd.s32 4294967294, %v1893_v26  ;;  %vm1976_vm3 = vcmp.lt.s32.totalorder %v7150_v51, 3  ;;  %v1978_v12 = vsel %vm1974_vm1, %v1958_v60, %v1961_v53 }
 0x20b   : > { %vm7183_vm15 = vcmp.le.f32.partialorder %v9871_v6, 0.7853982  ;;  %v1982_v63 = vsel %vm1974_vm1, %v1961_v53, %v1964_v62  ;;  %v1780_v35 = vxor.u32 2147483648, %v1774_v40  ;;  %v1784_v2 = vsel %vm1782_vm10, %v1783_v28, %v1774_v40 }
 0x20c   : > { %v1980_v33 = vsel %vm1976_vm3, %v1964_v62, %v1979_v46  ;;  %v1983_v38 = vsel %vm1977_vm0, %v1970_v57, 920167782  ;;  %vm5567_vm4 = vcmp.lt.s32.totalorder %v5566_v50, 0  ;;  %v1986_v49 = vsel %vm1974_vm1, %v1964_v62, %v1967_v10 }
 0x20d   : > { %v1984_v13 = vsel %vm1976_vm3, %v1967_v10, %v1983_v38  ;;  %v1987_v16 = vsel %vm1977_vm0, %v1973_v19, 1326507024  ;;  %v1781_v36 = vsel %vm1779_vm11, %v1766_v27, %v1780_v35  ;;  %v1896_v60 = vsel %vm5567_vm4, 0, %v5566_v50 }
 0x20e   : > { %v1985_v56 = vsel %vm1975_vm2, %v1982_v63, %v1984_v13  ;;  %v1988_v53 = vsel %vm1976_vm3, %v1970_v57, %v1987_v16  ;;  %v1785_v41 = vsel %vm1778_vm12, %v1781_v36, %v1784_v2  ;;  %v1897_v7 = vsub.s32 32, %v1896_v60 }
 0x20f   : > { %v1898_v34 = vshll.u32 %v7162_v55, %v1896_v60  ;;  %v1901_v26 = vsub.s32 4294967266, %v1896_v60  ;;  %v1786_v10 = vsel %vm1775_vm13, nan, %v1785_v41  ;;  %v1989_v62 = vsel %vm1975_vm2, %v1986_v49, %v1988_v53 }
 0x210   : > { %v2015_v27 = vand.u32 65535, %v1985_v56  ;;  %v2016_v19 = vshrl.u32 %v1985_v56, 16  ;;  %v1899_v46 = vshrl.u32 %v7143_v11, %v1897_v7  ;;  %v1993_v28 = vand.u32 65535, %v1989_v62  ;;  %2880 = vst [vmem:[%s6274_s10 + $0x40] sm:$0xff] %v1786_v10 }
 0x211   : > { %v1902_v40 = vadd.s32 127, %v1901_v26  ;;  %v1994_v57 = vshrl.u32 %v1989_v62, 16  ;;  %v1992_v0 = vshrl.u32 %v7135_v29, 16  ;;  %v7213_v55 = vand.u32 8388607, %v9833_v61 }
 0x212   : > { %v2018_v6 = vmul.u32 %v2016_v19, %v7148_v58  ;;  %v2107_v42 = vadd.s32 1, %v7154_v47  ;;  %v1900_v50 = vor.u32 %v1899_v46, %v1898_v34  ;;  %v1914_v11 = vsel %vm7183_vm15, 0, %v7177_v37 }
 0x213   : > { %v1903_v63 = vshll.u32 %v1902_v40, 23  ;;  %v1996_v35 = vmul.u32 %v1994_v57, %v7148_v58  ;;  %v7222_v2 = vsel %vm1975_vm2, %v1978_v12, %v1980_v33  ;;  %v1997_v38 = vmul.u32 %v1993_v28, %v1992_v0 }
 0x214   : > { %v2019_v13 = vmul.u32 %v2015_v27, %v1992_v0  ;;  %v2021_v49 = vshll.u32 %v2018_v6, 16  ;;  %v1995_v36 = vmul.u32 %v1993_v28, %v7148_v58  ;;  %v2017_v47 = vmul.u32 %v2015_v27, %v7148_v58 }
 0x215   : > { %v1904_v16 = vor.u32 4788187, %v1903_v63  ;;  %v1999_v60 = vshll.u32 %v1996_v35, 16  ;;  %v1907_v56 = vcvt.s32.f32 %v1900_v50  ;;  %v1998_v53 = vmul.u32 %v1994_v57, %v1992_v0 }
 0x216   : > { %v2001_v41 = vshll.u32 %v1997_v38, 16  ;;  %v2020_v7 = vmul.u32 %v2016_v19, %v1992_v0  ;;  %vm2025_vm6 = vc.u32 %v2017_v47, %v2021_v49  ;;  %v2023_v12 = vshll.u32 %v2019_v13, 16 }
 0x217   : > { %v1905_v37 = vand.u32 2147483647, %v1904_v16  ;;  %vm2003_vm5 = vc.u32 %v1995_v36, %v1999_v60  ;;  %v2005_v34 = vadd.s32 %v1999_v60, %v1995_v36  ;;  %v2026_v33 = vsel %vm2025_vm6, 1, %v5787_v3 }
 0x218   : > { %v2004_v51 = vsel %vm2003_vm5, 1, %v5787_v3  ;;  %v2027_v26 = vadd.s32 %v2021_v49, %v2017_v47  ;;  %v2028_v46 = vadd.s32 %v2026_v33, %v2020_v7  ;;  %v2000_v40 = vshrl.u32 %v1996_v35, 16 }
 0x219   : > { %v1908_v10 = vmul.f32 %v1907_v56, %v1905_v37  ;;  %v2006_v62 = vadd.s32 %v2004_v51, %v1998_v53  ;;  %vm2007_vm7 = vc.u32 %v2005_v34, %v2001_v41  ;;  %vm2108_vm10 = vcmp.gt.s32.totalorder %v2107_v42, 0 }
 0x21a   : > { %v2008_v58 = vsel %vm2007_vm7, 1, %v5787_v3  ;;  %vm2029_vm8 = vc.u32 %v2027_v26, %v2023_v12  ;;  %v2109_v57 = vsel %vm2108_vm10, %v2107_v42, 0  ;;  %v1931_v0 = vadd.s32 3, %v1914_v11 }
 0x21b   : > { %v1909_v27 = vxor.u32 2147483648, %v1908_v10  ;;  %v2010_v19 = vadd.s32 %v2008_v58, %v2006_v62  ;;  %v2030_v28 = vsel %vm2029_vm8, 1, %v5787_v3  ;;  %v2022_v50 = vshrl.u32 %v2018_v6, 16 }
 0x21c   : > { %v2032_v63 = vadd.s32 %v2030_v28, %v2028_v46  ;;  %v2111_v16 = vand.u32 31, %v2109_v57  ;;  %v2002_v36 = vshrl.u32 %v1997_v38, 16  ;;  %v2024_v47 = vshrl.u32 %v2019_v13, 16 }
 0x21d   : > { %v1910_v49 = vsel %vm1789_vm9, %v1909_v27, %v1908_v10  ;;  %v2011_v60 = vadd.s32 %v2010_v19, %v2000_v40  ;;  %v2035_v53 = vmul.u32 %v7135_v29, %v7222_v2  ;;  %v7241_v11 = vadd.s32 %v2027_v26, %v2023_v12 }
 0x21e   : > { %v1913_v35 = vsel %vm7183_vm15, %v6874_v54, %v1910_v49  ;;  %v2033_v56 = vadd.s32 %v2032_v63, %v2022_v50  ;;  %v7237_v41 = vsub.s32 32, %v2111_v16  ;;  %v7243_v7 = vshrl.u32 %v2109_v57, 5  ;;  %v7266_v57 = vpop.permute.xlu2 %368 }
 0x21f   : > { %v1915_v42 = vmul.f32 %v1913_v35, %v1913_v35  ;;  %v7239_v6 = vadd.s32 %v2011_v60, %v2002_v36  ;;  %v2114_v13 = vshll.u32 %v9860_v30, %v2111_v16  ;;  %v2117_v2 = vshll.u32 %v9869_v24, %v2111_v16 }
 0x220   : > { %v2034_v38 = vadd.s32 %v2033_v56, %v2024_v47  ;;  %v2115_v52 = vshrl.u32 %v9869_v24, %v7237_v41  ;;  %v2118_v37 = vshrl.u32 %v9870_v23, %v7237_v41  ;;  %v2120_v33 = vshll.u32 %v9870_v23, %v2111_v16 }
 0x221   : > { %v1916_v34 = vmul.f32 -0.001358992, %v1915_v42  ;;  %v1923_v29 = vmul.f32 -0.00019511016, %v1915_v42  ;;  %vm2037_vm9 = vc.u32 %v7239_v6, %v7241_v11  ;;  %v2121_v26 = vshrl.u32 %v9858_v45, %v7237_v41 }
 0x222   : > { %v2038_v51 = vadd.s32 1, %v2034_v38  ;;  %v7253_v12 = vor.u32 %v2115_v52, %v2114_v13  ;;  %v2123_v46 = vshll.u32 %v9858_v45, %v2111_v16  ;;  %v2124_v40 = vshrl.u32 %v9859_v48, %v7237_v41 }
 0x223   : > { %v1917_v10 = vadd.f32 0.041655596, %v1916_v34  ;;  %v1924_v62 = vadd.f32 0.008332121, %v1923_v29  ;;  %v7261_v27 = vor.u32 %v2118_v37, %v2117_v2  ;;  %v2126_v19 = vshll.u32 %v9859_v48, %v2111_v16 }
 0x224   : > { %v2039_v58 = vsel %vm2037_vm9, %v2038_v51, %v2034_v38  ;;  %v2127_v28 = vshrl.u32 %v9861_v31, %v7237_v41  ;;  %v2125_v36 = vor.u32 %v2124_v40, %v2123_v46  ;;  %v7270_v60 = vadd.f32 %v7266_v57, %v7139_v5 }
 0x225   : > { %v1918_v50 = vmul.f32 %v1917_v10, %v1915_v42  ;;  %v1925_v63 = vmul.f32 %v1924_v62, %v1915_v42  ;;  %v2040_v49 = vadd.s32 %v2039_v58, %v2035_v53  ;;  %v2105_v47 = vor.u32 8388608, %v7213_v55 }
 0x226   : > { %v7273_v56 = vor.u32 %v2121_v26, %v2120_v33  ;;  %v2128_v38 = vor.u32 %v2127_v28, %v2126_v19  ;;  %vm2132_vm11 = vcmp.lt.s32.totalorder %v7243_v7, 4  ;;  %v1932_v37 = vand.u32 3, %v1931_v0 }
 0x227   : > { %v1919_v13 = vadd.f32 -0.4999988, %v1918_v50  ;;  %v1926_v16 = vadd.f32 -0.16666654, %v1925_v63  ;;  %v2041_v52 = vadd.s32 536870912, %v2040_v49  ;;  %vm2129_vm12 = vcmp.lt.s32.totalorder %v7243_v7, 1 }
 0x228   : > { %vm2131_vm14 = vcmp.lt.s32.totalorder %v7243_v7, 3  ;;  %v2138_v53 = vsel %vm2132_vm11, %v2125_v36, 920167782  ;;  %v2137_v55 = vsel %vm2129_vm12, %v7253_v12, %v7261_v27  ;;  %vm2130_vm13 = vcmp.lt.s32.totalorder %v7243_v7, 2 }
 0x229   : > { %v1920_v5 = vmul.f32 %v1919_v13, %v1915_v42  ;;  %v1927_v34 = vmul.f32 %v1926_v16, %v1915_v42  ;;  %v2042_v29 = vshrl.u32 %v2041_v52, 30  ;;  %v2139_v0 = vsel %vm2131_vm14, %v7273_v56, %v2138_v53 }
 0x22a   : > { %v2142_v2 = vsel %vm2132_vm11, %v2128_v38, 1326507024  ;;  %v2141_v42 = vsel %vm2129_vm12, %v7261_v27, %v7273_v56  ;;  %v2140_v10 = vsel %vm2130_vm13, %v2137_v55, %v2139_v0  ;;  %v7298_v46 = vshll.u32 %v2105_v47, 8 }
 0x22b   : > { %v1921_v51 = vadd.f32 1.0, %v1920_v5  ;;  %v1928_v33 = vadd.f32 1.0, %v1927_v34  ;;  %v2043_v26 = vshll.u32 %v2042_v29, 30  ;;  %v2143_v62 = vsel %vm2131_vm14, %v2125_v36, %v2142_v2 }
 0x22c   : > { %v2255_v40 = vand.u32 2139095040, %v7270_v60  ;;  %vm1933_vm0 = vcmp.lt.s32.totalorder %v1932_v37, 2  ;;  %vm1934_vm15 = vcmp.eq.s32.totalorder %v1932_v37, 0  ;;  %vm1937_vm1 = vcmp.eq.s32.totalorder %v1932_v37, 2 }
 0x22d   : > { %v1929_v58 = vmul.f32 %v1928_v33, %v1913_v35  ;;  %v1938_v19 = vxor.u32 2147483648, %v1921_v51  ;;  %v2044_v28 = vsub.s32 %v2040_v49, %v2043_v26  ;;  %v2144_v50 = vsel %vm2130_vm13, %v2141_v42, %v2143_v62 }
 0x22e   : > { %v2171_v63 = vshrl.u32 %v2140_v10, 16  ;;  %v2066_v16 = vsub.s32 4, %v2042_v29  ;;  %v2146_v36 = vand.u32 65535, %v7298_v46  ;;  %v2147_v47 = vshrl.u32 %v7298_v46, 16 }
 0x22f   : > { %v1935_v38 = vxor.u32 2147483648, %v1929_v58  ;;  %vm2045_vm2 = vcmp.lt.s32.totalorder %v2044_v28, 0  ;;  %v2046_v13 = vsub.s32 0, %v2044_v28  ;;  %v2148_v52 = vand.u32 65535, %v2144_v50 }
 0x230   : > { %v2149_v53 = vshrl.u32 %v2144_v50, 16  ;;  %v1939_v5 = vsel %vm1937_vm1, %v1938_v19, %v1929_v58  ;;  %v2170_v34 = vand.u32 65535, %v2140_v10  ;;  %vm1930_vm3 = vweird.f32 %v6874_v54 }
 0x231   : > { %v1936_v35 = vsel %vm1934_vm15, %v1921_v51, %v1935_v38  ;;  %v2047_v49 = vsel %vm2045_vm2, %v2046_v13, %v2044_v28  ;;  %v2173_v2 = vmul.u32 %v2171_v63, %v2146_v36  ;;  %vm1944_vm4 = vcmp.lt.s32.totalorder %v7052_v44, 0 }
 0x232   : > { %v1940_v55 = vsel %vm1933_vm0, %v1936_v35, %v1939_v5  ;;  %v2048_v0 = vclz %v2047_v49  ;;  %v2151_v26 = vmul.u32 %v2149_v53, %v2146_v36  ;;  %v2152_v42 = vmul.u32 %v2148_v52, %v2147_v47 }
 0x233   : > { %v1941_v33 = vsel %vm1930_vm3, nan, %v1940_v55  ;;  %v2036_v62 = vadd.s32 %v7241_v11, %v7239_v6  ;;  %v2067_v51 = vsel %vm1944_vm4, %v2066_v16, %v2042_v29  ;;  %v2256_v58 = vshrl.u32 %v2255_v40, 23 }
 0x234   : > { %v5569_v50 = vadd.s32 4294967294, %v2048_v0  ;;  %2881 = vst [vmem:[%s6274_s10 + $0x48] sm:$0xff] %v1941_v33  ;;  %vm7315_vm5 = vcmp.le.f32.partialorder %v1942_v39, 0.7853982  ;;  %v2150_v37 = vmul.u32 %v2148_v52, %v2146_v36  ;;  %v2154_v10 = vshll.u32 %v2151_v26, 16 }
 0x235   : > { %v2172_v19 = vmul.u32 %v2170_v34, %v2146_v36  ;;  %v2174_v38 = vmul.u32 %v2170_v34, %v2147_v47  ;;  %v2153_v13 = vmul.u32 %v2149_v53, %v2147_v47  ;;  %v2155_v35 = vshrl.u32 %v2151_v26, 16 }
 0x236   : > { %vm5570_vm6 = vcmp.lt.s32.totalorder %v5569_v50, 0  ;;  %v2176_v6 = vshll.u32 %v2173_v2, 16  ;;  %v2156_v5 = vshll.u32 %v2152_v42, 16  ;;  %vm2158_vm7 = vc.u32 %v2150_v37, %v2154_v10 }
 0x237   : > { %v2051_v11 = vsel %vm5570_vm6, 0, %v5569_v50  ;;  %v2160_v29 = vadd.s32 %v2154_v10, %v2150_v37  ;;  %v2159_v49 = vsel %vm2158_vm7, 1, %v5787_v3  ;;  %v2175_v39 = vmul.u32 %v2171_v63, %v2147_v47 }
 0x238   : > { %v2052_v40 = vsub.s32 32, %v2051_v11  ;;  %v2056_v16 = vsub.s32 4294967266, %v2051_v11  ;;  %v2053_v55 = vshll.u32 %v2044_v28, %v2051_v11  ;;  %v2161_v0 = vadd.s32 %v2159_v49, %v2153_v13 }
 0x239   : > { %vm2162_vm8 = vc.u32 %v2160_v29, %v2156_v5  ;;  %vm2180_vm10 = vc.u32 %v2172_v19, %v2176_v6  ;;  %v2178_v26 = vshll.u32 %v2174_v38, 16  ;;  %v2182_v50 = vadd.s32 %v2176_v6, %v2172_v19 }
 0x23a   : > { %v2054_v52 = vshrl.u32 %v2036_v62, %v2052_v40  ;;  %v2057_v36 = vadd.s32 127, %v2056_v16  ;;  %v2163_v34 = vsel %vm2162_vm8, 1, %v5787_v3  ;;  %v2181_v53 = vsel %vm2180_vm10, 1, %v5787_v3 }
 0x23b   : > { %v2165_v33 = vadd.s32 %v2163_v34, %v2161_v0  ;;  %v2183_v61 = vadd.s32 %v2181_v53, %v2175_v39  ;;  %v2252_v14 = vand.u32 2147483647, %v7270_v60  ;;  %v5574_v17 = vadd.s32 4294967169, %v2256_v58 }
 0x23c   : > { %v2055_v37 = vor.u32 %v2054_v52, %v2053_v55  ;;  %v2058_v10 = vshll.u32 %v2057_v36, 23  ;;  %v2113_v28 = vshrl.u32 %v9860_v30, %v7237_v41  ;;  %v2134_v63 = vsel %vm2132_vm11, %v7273_v56, 2102212464 }
 0x23d   : > { %v2166_v47 = vadd.s32 %v2165_v33, %v2155_v35  ;;  %vm2184_vm9 = vc.u32 %v2182_v50, %v2178_v26  ;;  %v2069_v13 = vsel %vm7315_vm5, 0, %v2067_v51  ;;  %v2157_v19 = vshrl.u32 %v2152_v42, 16 }
 0x23e   : > { %v2059_v62 = vor.u32 4788187, %v2058_v10  ;;  %v2185_v6 = vsel %vm2184_vm9, 1, %v5787_v3  ;;  %v2133_v58 = vsel %vm2129_vm12, %v2113_v28, %v7253_v12  ;;  %v2177_v11 = vshrl.u32 %v2173_v2, 16 }
 0x23f   : > { %v2187_v5 = vadd.s32 %v2185_v6, %v2183_v61  ;;  %v2262_v41 = vadd.s32 1, %v5574_v17  ;;  %v2062_v40 = vcvt.s32.f32 %v2055_v37  ;;  %v2135_v56 = vsel %vm2131_vm14, %v7261_v27, %v2134_v63 }
 0x240   : > { %v2060_v29 = vand.u32 2147483647, %v2059_v62  ;;  %v7337_v35 = vadd.s32 %v2166_v47, %v2157_v19  ;;  %v2086_v16 = vadd.s32 3, %v2069_v13  ;;  %v2179_v51 = vshrl.u32 %v2174_v38, 16 }
 0x241   : > { %v2188_v42 = vadd.s32 %v2187_v5, %v2177_v11  ;;  %vm2263_vm11 = vcmp.gt.s32.totalorder %v2262_v41, 0  ;;  %v7339_v39 = vadd.s32 %v2182_v50, %v2178_v26  ;;  %v2259_v12 = vand.u32 8388607, %v2252_v14 }
 0x242   : > { %v2063_v49 = vmul.f32 %v2062_v40, %v2060_v29  ;;  %v2264_v61 = vsel %vm2263_vm11, %v2262_v41, 0  ;;  %v2136_v17 = vsel %vm2130_vm13, %v2133_v58, %v2135_v56  ;;  %v333_v27 = vmul.f32 %v6037_v1, %v5943_v21 }
 0x243   : > { %v2189_v2 = vadd.s32 %v2188_v42, %v2179_v51  ;;  %v2266_v55 = vand.u32 31, %v2264_v61  ;;  %vm2192_vm12 = vc.u32 %v7337_v35, %v7339_v39  ;;  %v7349_v38 = vand.u32 3, %v2086_v16 }
 0x244   : > { %v2064_v0 = vxor.u32 2147483648, %v2063_v49  ;;  %v2190_v7 = vmul.u32 %v7298_v46, %v2136_v17  ;;  %v2260_v53 = vor.u32 8388608, %v2259_v12  ;;  %v7356_v33 = vshrl.u32 %v2264_v61, 5 }
 0x245   : > { %v2193_v52 = vadd.s32 1, %v2189_v2  ;;  %v7351_v36 = vsub.s32 32, %v2266_v55  ;;  %v2272_v37 = vshll.u32 %v9869_v24, %v2266_v55  ;;  %v2278_v10 = vshll.u32 %v9858_v45, %v2266_v55 }
 0x246   : > { %v2065_v34 = vsel %vm1944_vm4, %v2064_v0, %v2063_v49  ;;  %v2281_v13 = vshll.u32 %v9859_v48, %v2266_v55  ;;  %v2275_v5 = vshll.u32 %v9870_v23, %v2266_v55  ;;  %v2269_v41 = vshll.u32 %v9860_v30, %v2266_v55 }
 0x247   : > { %v7361_v26 = vsel %vm7315_vm5, %v7052_v44, %v2065_v34  ;;  %v2194_v50 = vsel %vm2192_vm12, %v2193_v52, %v2189_v2  ;;  %v2273_v46 = vshrl.u32 %v9870_v23, %v7351_v36  ;;  %v2276_v47 = vshrl.u32 %v9858_v45, %v7351_v36 }
 0x248   : > { %v2070_v28 = vmul.f32 %v7361_v26, %v7361_v26  ;;  %v2195_v63 = vadd.s32 %v2194_v50, %v2190_v7  ;;  %v2270_v54 = vshrl.u32 %v9869_v24, %v7351_v36  ;;  %v2279_v62 = vshrl.u32 %v9859_v48, %v7351_v36 }
 0x249   : > { %v2282_v19 = vshrl.u32 %v9861_v31, %v7351_v36  ;;  %v7380_v29 = vor.u32 %v2273_v46, %v2272_v37  ;;  %v7382_v49 = vor.u32 %v2276_v47, %v2275_v5  ;;  %v7385_v12 = vadd.f32 %v7266_v57, %v333_v27 }
 0x24a   : > { %v2071_v6 = vmul.f32 -0.001358992, %v2070_v28  ;;  %v2078_v58 = vmul.f32 -0.00019511016, %v2070_v28  ;;  %v2196_v11 = vadd.s32 536870912, %v2195_v63  ;;  %v2280_v40 = vor.u32 %v2279_v62, %v2278_v10 }
 0x24b   : > { %v2283_v56 = vor.u32 %v2282_v19, %v2281_v13  ;;  %v7387_v61 = vor.u32 %v2270_v54, %v2269_v41  ;;  %v7389_v17 = vshll.u32 %v2260_v53, 8  ;;  %vm2287_vm14 = vcmp.lt.s32.totalorder %v7356_v33, 4 }
 0x24c   : > { %v2072_v16 = vadd.f32 0.041655596, %v2071_v6  ;;  %v2079_v51 = vadd.f32 0.008332121, %v2078_v58  ;;  %v2197_v42 = vshrl.u32 %v2196_v11, 30  ;;  %vm2099_vm13 = vcmp.lt.s32.totalorder %v7116_v18, 0 }
 0x24d   : > { %vm2284_vm0 = vcmp.lt.s32.totalorder %v7356_v33, 1  ;;  %vm2286_vm15 = vcmp.lt.s32.totalorder %v7356_v33, 3  ;;  %v2293_v55 = vsel %vm2287_vm14, %v2280_v40, 920167782  ;;  %v2297_v27 = vsel %vm2287_vm14, %v2283_v56, 1326507024 }
 0x24e   : > { %v2073_v2 = vmul.f32 %v2072_v16, %v2070_v28  ;;  %v2080_v0 = vmul.f32 %v2079_v51, %v2070_v28  ;;  %v2198_v52 = vshll.u32 %v2197_v42, 30  ;;  %vm2092_vm1 = vcmp.eq.s32.totalorder %v7349_v38, 2 }
 0x24f   : > { %v2296_v50 = vsel %vm2284_vm0, %v7380_v29, %v7382_v49  ;;  %vm2089_vm2 = vcmp.eq.s32.totalorder %v7349_v38, 0  ;;  %vm2285_vm3 = vcmp.lt.s32.totalorder %v7356_v33, 2  ;;  %v2292_v37 = vsel %vm2284_vm0, %v7387_v61, %v7380_v29 }
 0x250   : > { %v2074_v34 = vadd.f32 -0.4999988, %v2073_v2  ;;  %v2081_v7 = vadd.f32 -0.16666654, %v2080_v0  ;;  %v7400_v53 = vsub.s32 %v2195_v63, %v2198_v52  ;;  %v2294_v10 = vsel %vm2286_vm15, %v7382_v49, %v2293_v55 }
 0x251   : > { %v2298_v63 = vsel %vm2286_vm15, %v2280_v40, %v2297_v27  ;;  %vm2088_vm4 = vcmp.lt.s32.totalorder %v7349_v38, 2  ;;  %vm2085_vm6 = vweird.f32 %v7052_v44  ;;  %v2221_v62 = vsub.s32 4, %v2197_v42 }
 0x252   : > { %v2075_v46 = vmul.f32 %v2074_v34, %v2070_v28  ;;  %v2082_v47 = vmul.f32 %v2081_v7, %v2070_v28  ;;  %vm2200_vm5 = vcmp.lt.s32.totalorder %v7400_v53, 0  ;;  %v2201_v54 = vsub.s32 0, %v7400_v53 }
 0x253   : > { %v2299_v13 = vsel %vm2285_vm3, %v2296_v50, %v2298_v63  ;;  %v9838_v19 = vand.u32 2147483647, %v7385_v12  ;;  %v2410_v6 = vand.u32 2139095040, %v7385_v12  ;;  %v2295_v40 = vsel %vm2285_vm3, %v2292_v37, %v2294_v10 }
 0x254   : > { %v2076_v58 = vadd.f32 1.0, %v2075_v46  ;;  %v2083_v11 = vadd.f32 1.0, %v2082_v47  ;;  %v2202_v28 = vsel %vm2200_vm5, %v2201_v54, %v7400_v53  ;;  %v2303_v5 = vand.u32 65535, %v2299_v13 }
 0x255   : > { %v2203_v41 = vclz %v2202_v28  ;;  %v2302_v56 = vshrl.u32 %v7389_v17, 16  ;;  %v2304_v16 = vshrl.u32 %v2299_v13, 16  ;;  %v2191_v0 = vadd.s32 %v7339_v39, %v7337_v35 }
 0x256   : > { %v2084_v51 = vmul.f32 %v2083_v11, %v7361_v26  ;;  %v2093_v2 = vxor.u32 2147483648, %v2076_v58  ;;  %v2301_v52 = vand.u32 65535, %v7389_v17  ;;  %v2268_v27 = vshrl.u32 %v9860_v30, %v7351_v36 }
 0x257   : > { %v5572_v55 = vadd.s32 4294967294, %v2203_v41  ;;  %v2307_v34 = vmul.u32 %v2303_v5, %v2302_v56  ;;  %v2411_v7 = vshrl.u32 %v2410_v6, 23  ;;  %v2222_v37 = vsel %vm2099_vm13, %v2221_v62, %v2197_v42 }
 0x258   : > { %v2090_v50 = vxor.u32 2147483648, %v2084_v51  ;;  %v2306_v10 = vmul.u32 %v2304_v16, %v2301_v52  ;;  %v2325_v63 = vand.u32 65535, %v2295_v40  ;;  %v2094_v26 = vsel %vm2092_vm1, %v2093_v2, %v2084_v51 }
 0x259   : > { %v9876_v46 = vand.u32 2147483647, %v7116_v18  ;;  %vm5573_vm8 = vcmp.lt.s32.totalorder %v5572_v55, 0  ;;  %v2305_v39 = vmul.u32 %v2303_v5, %v2301_v52  ;;  %v2326_v36 = vshrl.u32 %v2295_v40, 16 }
 0x25a   : > { %v2091_v47 = vsel %vm2089_vm2, %v2076_v58, %v2090_v50  ;;  %v2206_v54 = vsel %vm5573_vm8, 0, %v5572_v55  ;;  %v2308_v42 = vmul.u32 %v2304_v16, %v2302_v56  ;;  %v2309_v62 = vshll.u32 %v2306_v10, 16 }
 0x25b   : > { %vm7441_vm7 = vcmp.le.f32.partialorder %v9876_v46, 0.7853982  ;;  %v2095_v13 = vsel %vm2088_vm4, %v2091_v47, %v2094_v26  ;;  %v2207_v6 = vsub.s32 32, %v2206_v54  ;;  %v2211_v11 = vsub.s32 4294967266, %v2206_v54 }
 0x25c   : > { %v2311_v28 = vshll.u32 %v2307_v34, 16  ;;  %v2096_v41 = vsel %vm2085_vm6, nan, %v2095_v13  ;;  %v2208_v51 = vshll.u32 %v7400_v53, %v2206_v54  ;;  %vm2313_vm10 = vc.u32 %v2305_v39, %v2309_v62 }
 0x25d   : > { %v2315_v5 = vadd.s32 %v2309_v62, %v2305_v39  ;;  %v2209_v40 = vshrl.u32 %v2191_v0, %v2207_v6  ;;  %v2212_v2 = vadd.s32 127, %v2211_v11  ;;  %v2314_v58 = vsel %vm2313_vm10, 1, %v5787_v3  ;;  %2882 = vst [vmem:[%s6274_s10 + $0x50] sm:$0xff] %v2096_v41 }
 0x25e   : > { %v2328_v55 = vmul.u32 %v2326_v36, %v2301_v52  ;;  %v2316_v16 = vadd.s32 %v2314_v58, %v2308_v42  ;;  %v2327_v38 = vmul.u32 %v2325_v63, %v2301_v52  ;;  %v2329_v50 = vmul.u32 %v2325_v63, %v2302_v56 }
 0x25f   : > { %vm2317_vm9 = vc.u32 %v2315_v5, %v2311_v28  ;;  %v2210_v26 = vor.u32 %v2209_v40, %v2208_v51  ;;  %v2213_v46 = vshll.u32 %v2212_v2, 23  ;;  %v2289_v53 = vsel %vm2287_vm14, %v7382_v49, 2102212464 }
 0x260   : > { %v2318_v47 = vsel %vm2317_vm9, 1, %v5787_v3  ;;  %v2331_v44 = vshll.u32 %v2328_v55, 16  ;;  %v2310_v39 = vshrl.u32 %v2306_v10, 16  ;;  %v2330_v54 = vmul.u32 %v2326_v36, %v2302_v56 }
 0x261   : > { %v2320_v0 = vadd.s32 %v2318_v47, %v2316_v16  ;;  %v2214_v62 = vor.u32 4788187, %v2213_v46  ;;  %v2333_v13 = vshll.u32 %v2329_v50, 16  ;;  %v2224_v52 = vsel %vm7441_vm7, 0, %v2222_v37 }
 0x262   : > { %vm2335_vm11 = vc.u32 %v2327_v38, %v2331_v44  ;;  %v2337_v6 = vadd.s32 %v2331_v44, %v2327_v38  ;;  %v5577_v11 = vadd.s32 4294967169, %v2411_v7  ;;  %v2217_v41 = vcvt.s32.f32 %v2210_v26 }
 0x263   : > { %v2321_v63 = vadd.s32 %v2320_v0, %v2310_v39  ;;  %v2336_v42 = vsel %vm2335_vm11, 1, %v5787_v3  ;;  %v2215_v28 = vand.u32 2147483647, %v2214_v62  ;;  %v2288_v49 = vsel %vm2284_vm0, %v2268_v27, %v7387_v61 }
 0x264   : > { %v2338_v51 = vadd.s32 %v2336_v42, %v2330_v54  ;;  %vm2339_vm12 = vc.u32 %v2337_v6, %v2333_v13  ;;  %v2312_v56 = vshrl.u32 %v2307_v34, 16  ;;  %v2417_v36 = vadd.s32 1, %v5577_v11 }
 0x265   : > { %v2340_v10 = vsel %vm2339_vm12, 1, %v5787_v3  ;;  %v2218_v5 = vmul.f32 %v2217_v41, %v2215_v28  ;;  %v2290_v37 = vsel %vm2286_vm15, %v7380_v29, %v2289_v53  ;;  %v2332_v40 = vshrl.u32 %v2328_v55, 16 }
 0x266   : > { %v2342_v2 = vadd.s32 %v2340_v10, %v2338_v51  ;;  %v2241_v7 = vadd.s32 3, %v2224_v52  ;;  %v7468_v58 = vadd.s32 %v2321_v63, %v2312_v56  ;;  %vm2418_vm14 = vcmp.gt.s32.totalorder %v2417_v36, 0 }
 0x267   : > { %v2219_v16 = vxor.u32 2147483648, %v2218_v5  ;;  %v2334_v38 = vshrl.u32 %v2329_v50, 16  ;;  %v2419_v46 = vsel %vm2418_vm14, %v2417_v36, 0  ;;  %v2291_v61 = vsel %vm2285_vm3, %v2288_v49, %v2290_v37  ;;  %v7508_v49 = vpop.permute.xlu0 %373 }
 0x268   : > { %v2343_v26 = vadd.s32 %v2342_v2, %v2332_v40  ;;  %v7472_v27 = vadd.s32 %v2337_v6, %v2333_v13  ;;  %v2421_v34 = vand.u32 31, %v2419_v46  ;;  %v334_v47 = vmul.f32 %v6239_v43, %v5941_v20 }
 0x269   : > { %v2220_v29 = vsel %vm2099_vm13, %v2219_v16, %v2218_v5  ;;  %v2414_v44 = vand.u32 8388607, %v9838_v19  ;;  %v7485_v33 = vand.u32 3, %v2241_v7  ;;  %v2345_v39 = vmul.u32 %v7389_v17, %v2291_v61 }
 0x26a   : > { %v2344_v55 = vadd.s32 %v2343_v26, %v2334_v38  ;;  %v7483_v50 = vsel %vm7441_vm7, %v7116_v18, %v2220_v29  ;;  %vm2347_vm0 = vc.u32 %v7468_v58, %v7472_v27  ;;  %v7489_v53 = vsub.s32 32, %v2421_v34 }
 0x26b   : > { %v2225_v20 = vmul.f32 %v7483_v50, %v7483_v50  ;;  %v2424_v54 = vshll.u32 %v9860_v30, %v2421_v34  ;;  %v2427_v62 = vshll.u32 %v9869_v24, %v2421_v34  ;;  %v7504_v28 = vshrl.u32 %v2419_v46, 5 }
 0x26c   : > { %v2348_v0 = vadd.s32 1, %v2344_v55  ;;  %v2425_v35 = vshrl.u32 %v9869_v24, %v7489_v53  ;;  %v2428_v13 = vshrl.u32 %v9870_v23, %v7489_v53  ;;  %v2431_v6 = vshrl.u32 %v9858_v45, %v7489_v53 }
 0x26d   : > { %v2226_v52 = vmul.f32 -0.001358992, %v2225_v20  ;;  %v2233_v63 = vmul.f32 -0.00019511016, %v2225_v20  ;;  %v2434_v17 = vshrl.u32 %v9859_v48, %v7489_v53  ;;  %v2430_v41 = vshll.u32 %v9870_v23, %v2421_v34 }
 0x26e   : > { %v2349_v42 = vsel %vm2347_vm0, %v2348_v0, %v2344_v55  ;;  %v2433_v51 = vshll.u32 %v9858_v45, %v2421_v34  ;;  %v7510_v36 = vor.u32 %v2425_v35, %v2424_v54  ;;  %v7512_v5 = vor.u32 %v2428_v13, %v2427_v62 }
 0x26f   : > { %v2350_v11 = vadd.s32 %v2349_v42, %v2345_v39  ;;  %v2227_v56 = vadd.f32 0.041655596, %v2226_v52  ;;  %v2234_v10 = vadd.f32 0.008332121, %v2233_v63  ;;  %v2436_v2 = vshll.u32 %v9859_v48, %v2421_v34 }
 0x270   : > { %v2435_v40 = vor.u32 %v2434_v17, %v2433_v51  ;;  %v2437_v7 = vshrl.u32 %v9861_v31, %v7489_v53  ;;  %v7519_v16 = vmul.f32 %v6239_v43, %v5943_v21  ;;  %v2432_v46 = vor.u32 %v2431_v6, %v2430_v41 }
 0x271   : > { %v2351_v37 = vadd.s32 536870912, %v2350_v11  ;;  %v2228_v38 = vmul.f32 %v2227_v56, %v2225_v20  ;;  %v2235_v26 = vmul.f32 %v2234_v10, %v2225_v20  ;;  %v7522_v61 = vadd.f32 %v7508_v49, %v334_v47 }
 0x272   : > { %v2415_v55 = vor.u32 8388608, %v2414_v44  ;;  %v2438_v39 = vor.u32 %v2437_v7, %v2436_v2  ;;  %vm2439_vm13 = vcmp.lt.s32.totalorder %v7504_v28, 1  ;;  %vm2442_vm15 = vcmp.lt.s32.totalorder %v7504_v28, 4 }
 0x273   : > { %v7524_v29 = vshrl.u32 %v2351_v37, 30  ;;  %v2229_v0 = vadd.f32 -0.4999988, %v2228_v38  ;;  %v2236_v54 = vadd.f32 -0.16666654, %v2235_v26  ;;  %vm2244_vm1 = vcmp.eq.s32.totalorder %v7485_v33, 0 }
 0x274   : > { %vm2441_vm2 = vcmp.lt.s32.totalorder %v7504_v28, 3  ;;  %v2447_v34 = vsel %vm2439_vm13, %v7510_v36, %v7512_v5  ;;  %v2448_v47 = vsel %vm2442_vm15, %v2435_v40, 920167782  ;;  %vm2243_vm3 = vcmp.lt.s32.totalorder %v7485_v33, 2 }
 0x275   : > { %v2353_v21 = vshll.u32 %v7524_v29, 30  ;;  %v2230_v44 = vmul.f32 %v2229_v0, %v2225_v20  ;;  %v2237_v35 = vmul.f32 %v2236_v54, %v2225_v20  ;;  %v2449_v62 = vsel %vm2441_vm2, %v2432_v46, %v2448_v47 }
 0x276   : > { %v2451_v13 = vsel %vm2439_vm13, %v7512_v5, %v2432_v46  ;;  %vm2240_vm4 = vweird.f32 %v7116_v18  ;;  %vm2247_vm5 = vcmp.eq.s32.totalorder %v7485_v33, 2  ;;  %v2452_v52 = vsel %vm2442_vm15, %v2438_v39, 1326507024 }
 0x277   : > { %v2354_v6 = vsub.s32 %v2350_v11, %v2353_v21  ;;  %v7547_v63 = vshll.u32 %v2415_v55, 8  ;;  %v2231_v20 = vadd.f32 1.0, %v2230_v44  ;;  %v2238_v42 = vadd.f32 1.0, %v2237_v35 }
 0x278   : > { %vm2440_vm6 = vcmp.lt.s32.totalorder %v7504_v28, 2  ;;  %v2453_v17 = vsel %vm2441_vm2, %v2435_v40, %v2452_v52  ;;  %v2346_v7 = vadd.s32 %v7472_v27, %v7468_v58  ;;  %v2562_v40 = vand.u32 2147483647, %v7522_v61 }
 0x279   : > { %vm2355_vm7 = vcmp.lt.s32.totalorder %v2354_v6, 0  ;;  %v2356_v41 = vsub.s32 0, %v2354_v6  ;;  %v2450_v51 = vsel %vm2440_vm6, %v2447_v34, %v2449_v62  ;;  %v2454_v11 = vsel %vm2440_vm6, %v2451_v13, %v2453_v17 }
 0x27a   : > { %v2239_v56 = vmul.f32 %v2238_v42, %v7483_v50  ;;  %v2248_v10 = vxor.u32 2147483648, %v2231_v20  ;;  %v2458_v37 = vand.u32 65535, %v2454_v11  ;;  %v2459_v2 = vshrl.u32 %v2454_v11, 16 }
 0x27b   : > { %v2357_v38 = vsel %vm2355_vm7, %v2356_v41, %v2354_v6  ;;  %v2456_v26 = vand.u32 65535, %v7547_v63  ;;  %v2423_v0 = vshrl.u32 %v9860_v30, %v7489_v53  ;;  %v2457_v54 = vshrl.u32 %v7547_v63, 16 }
 0x27c   : > { %v2245_v55 = vxor.u32 2147483648, %v2239_v56  ;;  %v2358_v39 = vclz %v2357_v38  ;;  %v2444_v50 = vsel %vm2442_vm15, %v2432_v46, 2102212464  ;;  %v2480_v34 = vand.u32 65535, %v2450_v51 }
 0x27d   : > { %v2461_v21 = vmul.u32 %v2459_v2, %v2456_v26  ;;  %v2481_v47 = vshrl.u32 %v2450_v51, 16  ;;  %v2249_v27 = vsel %vm2247_vm5, %v2248_v10, %v2239_v56  ;;  %v2462_v35 = vmul.u32 %v2458_v37, %v2457_v54 }
 0x27e   : > { %v2246_v58 = vsel %vm2244_vm1, %v2231_v20, %v2245_v55  ;;  %v5575_v44 = vadd.s32 4294967294, %v2358_v39  ;;  %v2376_v62 = vsub.s32 4, %v7524_v29  ;;  %v2460_v13 = vmul.u32 %v2458_v37, %v2456_v26 }
 0x27f   : > { %v2250_v53 = vsel %vm2243_vm3, %v2246_v58, %v2249_v27  ;;  %v2464_v52 = vshll.u32 %v2461_v21, 16  ;;  %vm2254_vm8 = vcmp.lt.s32.totalorder %v7270_v60, 0  ;;  %v2463_v20 = vmul.u32 %v2459_v2, %v2457_v54 }
 0x280   : > { %v2251_v46 = vsel %vm2240_vm4, nan, %v2250_v53  ;;  %vm5576_vm10 = vcmp.lt.s32.totalorder %v5575_v44, 0  ;;  %v2466_v42 = vshll.u32 %v2462_v35, 16  ;;  %v2483_v51 = vmul.u32 %v2481_v47, %v2456_v26 }
 0x281   : > { %v2361_v17 = vsel %vm5576_vm10, 0, %v5575_v44  ;;  %vm2468_vm9 = vc.u32 %v2460_v13, %v2464_v52  ;;  %v2470_v41 = vadd.s32 %v2464_v52, %v2460_v13  ;;  %2883 = vst [vmem:[%s6274_s10 + $0x58] sm:$0xff] %v2251_v46  ;;  %v2482_v10 = vmul.u32 %v2480_v34, %v2456_v26 }
 0x282   : > { %v2362_v11 = vsub.s32 32, %v2361_v17  ;;  %v2366_v33 = vsub.s32 4294967266, %v2361_v17  ;;  %v2469_v56 = vsel %vm2468_vm9, 1, %v5787_v3  ;;  %v2363_v37 = vshll.u32 %v2354_v6, %v2361_v17 }
 0x283   : > { %v2471_v38 = vadd.s32 %v2469_v56, %v2463_v20  ;;  %vm2472_vm11 = vc.u32 %v2470_v41, %v2466_v42  ;;  %v2484_v18 = vmul.u32 %v2480_v34, %v2457_v54  ;;  %v2486_v2 = vshll.u32 %v2483_v51, 16 }
 0x284   : > { %v2364_v55 = vshrl.u32 %v2346_v7, %v2362_v11  ;;  %v2367_v39 = vadd.s32 127, %v2366_v33  ;;  %v2473_v58 = vsel %vm2472_vm11, 1, %v5787_v3  ;;  %v2465_v27 = vshrl.u32 %v2461_v21, 16 }
 0x285   : > { %v2475_v44 = vadd.s32 %v2473_v58, %v2471_v38  ;;  %v2485_v53 = vmul.u32 %v2481_v47, %v2457_v54  ;;  %v2488_v13 = vshll.u32 %v2484_v18, 16  ;;  %vm2490_vm12 = vc.u32 %v2482_v10, %v2486_v2 }
 0x286   : > { %v2365_v52 = vor.u32 %v2364_v55, %v2363_v37  ;;  %v2368_v46 = vshll.u32 %v2367_v39, 23  ;;  %v2492_v19 = vadd.s32 %v2486_v2, %v2482_v10  ;;  %v2443_v6 = vsel %vm2439_vm13, %v2423_v0, %v7510_v36 }
 0x287   : > { %v2476_v26 = vadd.s32 %v2475_v44, %v2465_v27  ;;  %v2491_v34 = vsel %vm2490_vm12, 1, %v5787_v3  ;;  %v2565_v7 = vand.u32 2139095040, %v7522_v61  ;;  %v2445_v21 = vsel %vm2441_vm2, %v7512_v5, %v2444_v50 }
 0x288   : > { %v2369_v20 = vor.u32 4788187, %v2368_v46  ;;  %v2493_v54 = vadd.s32 %v2491_v34, %v2485_v53  ;;  %vm2494_vm14 = vc.u32 %v2492_v19, %v2488_v13  ;;  %v2377_v47 = vsel %vm2254_vm8, %v2376_v62, %v7524_v29 }
 0x289   : > { %v2467_v42 = vshrl.u32 %v2462_v35, 16  ;;  %v2495_v17 = vsel %vm2494_vm14, 1, %v5787_v3  ;;  %v2566_v36 = vshrl.u32 %v2565_v7, 23  ;;  %v2372_v41 = vcvt.s32.f32 %v2365_v52 }
 0x28a   : > { %v2370_v0 = vand.u32 2147483647, %v2369_v20  ;;  %v2487_v11 = vshrl.u32 %v2483_v51, 16  ;;  %v2497_v33 = vadd.s32 %v2495_v17, %v2493_v54  ;;  %vm7593_vm0 = vcmp.le.f32.partialorder %v2252_v14, 0.7853982 }
 0x28b   : > { %v2477_v5 = vadd.s32 %v2476_v26, %v2467_v42  ;;  %v5580_v50 = vadd.s32 4294967169, %v2566_v36  ;;  %v2569_v10 = vand.u32 8388607, %v2562_v40  ;;  %v2379_v35 = vsel %vm7593_vm0, 0, %v2377_v47 }
 0x28c   : > { %v2373_v29 = vmul.f32 %v2372_v41, %v2370_v0  ;;  %v2489_v62 = vshrl.u32 %v2484_v18, 16  ;;  %v2498_v37 = vadd.s32 %v2497_v33, %v2487_v11  ;;  %v7603_v51 = vadd.f32 %v7508_v49, %v7519_v16 }
 0x28d   : > { %v2446_v14 = vsel %vm2440_vm6, %v2443_v6, %v2445_v21  ;;  %v2496_v38 = vadd.s32 %v2492_v19, %v2488_v13  ;;  %v2572_v55 = vadd.s32 1, %v5580_v50  ;;  %v2396_v2 = vadd.s32 3, %v2379_v35 }
 0x28e   : > { %v2374_v39 = vxor.u32 2147483648, %v2373_v29  ;;  %v2499_v58 = vadd.s32 %v2498_v37, %v2489_v62  ;;  %v2570_v27 = vor.u32 8388608, %v2569_v10  ;;  %v2500_v18 = vmul.u32 %v7547_v63, %v2446_v14 }
 0x28f   : > { %vm2502_vm13 = vc.u32 %v2477_v5, %v2496_v38  ;;  %vm2573_vm15 = vcmp.gt.s32.totalorder %v2572_v55, 0  ;;  %v2717_v19 = vand.u32 2147483647, %v7603_v51  ;;  %v2720_v13 = vand.u32 2139095040, %v7603_v51 }
 0x290   : > { %v2375_v44 = vsel %vm2254_vm8, %v2374_v39, %v2373_v29  ;;  %v2503_v53 = vadd.s32 1, %v2499_v58  ;;  %v2574_v52 = vsel %vm2573_vm15, %v2572_v55, 0  ;;  %v7615_v7 = vshll.u32 %v2570_v27, 8 }
 0x291   : > { %v2378_v28 = vsel %vm7593_vm0, %v7270_v60, %v2375_v44  ;;  %v2576_v16 = vand.u32 31, %v2574_v52  ;;  %v7617_v63 = vand.u32 3, %v2396_v2  ;;  %v7619_v54 = vadd.s32 %v2496_v38, %v2477_v5 }
 0x292   : > { %v2380_v46 = vmul.f32 %v2378_v28, %v2378_v28  ;;  %v2504_v6 = vsel %vm2502_vm13, %v2503_v53, %v2499_v58  ;;  %v2721_v42 = vshrl.u32 %v2720_v13, 23  ;;  %v7623_v17 = vand.u32 8388607, %v2717_v19 }
 0x293   : > { %v2505_v26 = vadd.s32 %v2504_v6, %v2500_v18  ;;  %v2577_v34 = vsub.s32 32, %v2576_v16  ;;  %v2579_v56 = vshll.u32 %v9860_v30, %v2576_v16  ;;  %v7630_v5 = vand.u32 65535, %v7615_v7 }
 0x294   : > { %v2381_v20 = vmul.f32 -0.001358992, %v2380_v46  ;;  %v2388_v21 = vmul.f32 -0.00019511016, %v2380_v46  ;;  %v2582_v35 = vshll.u32 %v9869_v24, %v2576_v16  ;;  %vm2409_vm1 = vcmp.lt.s32.totalorder %v7385_v12, 0 }
 0x295   : > { %v2506_v47 = vadd.s32 536870912, %v2505_v26  ;;  %v2580_v41 = vshrl.u32 %v9869_v24, %v2577_v34  ;;  %v2583_v11 = vshrl.u32 %v9870_v23, %v2577_v34  ;;  %v2589_v50 = vshrl.u32 %v9859_v48, %v2577_v34 }
 0x296   : > { %v2382_v36 = vadd.f32 0.041655596, %v2381_v20  ;;  %v2389_v0 = vadd.f32 0.008332121, %v2388_v21  ;;  %v2586_v62 = vshrl.u32 %v9858_v45, %v2577_v34  ;;  %v7635_v14 = vshrl.u32 %v2574_v52, 5 }
 0x297   : > { %v2507_v33 = vshrl.u32 %v2506_v47, 30  ;;  %v2585_v38 = vshll.u32 %v9870_v23, %v2576_v16  ;;  %v2588_v55 = vshll.u32 %v9858_v45, %v2576_v16  ;;  %vm2402_vm2 = vcmp.eq.s32.totalorder %v7617_v63, 2 }
 0x298   : > { %v2383_v10 = vmul.f32 %v2382_v36, %v2380_v46  ;;  %v2390_v29 = vmul.f32 %v2389_v0, %v2380_v46  ;;  %v2581_v2 = vor.u32 %v2580_v41, %v2579_v56  ;;  %v2584_v27 = vor.u32 %v2583_v11, %v2582_v35 }
 0x299   : > { %v2508_v37 = vshll.u32 %v2507_v33, 30  ;;  %vm2399_vm3 = vcmp.eq.s32.totalorder %v7617_v63, 0  ;;  %v2590_v18 = vor.u32 %v2589_v50, %v2588_v55  ;;  %v2591_v53 = vshll.u32 %v9859_v48, %v2576_v16 }
 0x29a   : > { %v2384_v39 = vadd.f32 -0.4999988, %v2383_v10  ;;  %v2391_v58 = vadd.f32 -0.16666654, %v2390_v29  ;;  %v2592_v52 = vshrl.u32 %v9861_v31, %v2577_v34  ;;  %vm2398_vm4 = vcmp.lt.s32.totalorder %v7617_v63, 2 }
 0x29b   : > { %v7641_v44 = vsub.s32 %v2505_v26, %v2508_v37  ;;  %v2531_v20 = vsub.s32 4, %v2507_v33  ;;  %v2587_v21 = vor.u32 %v2586_v62, %v2585_v38  ;;  %vm2395_vm5 = vweird.f32 %v7270_v60 }
 0x29c   : > { %v2385_v13 = vmul.f32 %v2384_v39, %v2380_v46  ;;  %v2392_v6 = vmul.f32 %v2391_v58, %v2380_v46  ;;  %vm2594_vm7 = vcmp.lt.s32.totalorder %v7635_v14, 1  ;;  %vm2595_vm8 = vcmp.lt.s32.totalorder %v7635_v14, 2 }
 0x29d   : > { %vm2510_vm6 = vcmp.lt.s32.totalorder %v7641_v44, 0  ;;  %v2511_v47 = vsub.s32 0, %v7641_v44  ;;  %vm2597_vm10 = vcmp.lt.s32.totalorder %v7635_v14, 4  ;;  %v2602_v46 = vsel %vm2594_vm7, %v2581_v2, %v2584_v27 }
 0x29e   : > { %v2386_v26 = vadd.f32 1.0, %v2385_v13  ;;  %v2393_v16 = vadd.f32 1.0, %v2392_v6  ;;  %v2593_v0 = vor.u32 %v2592_v52, %v2591_v53  ;;  %vm2596_vm9 = vcmp.lt.s32.totalorder %v7635_v14, 3 }
 0x29f   : > { %v2512_v36 = vsel %vm2510_vm6, %v2511_v47, %v7641_v44  ;;  %v2603_v41 = vsel %vm2597_vm10, %v2590_v18, 920167782  ;;  %v2578_v29 = vshrl.u32 %v9860_v30, %v2577_v34  ;;  %v2612_v62 = vshrl.u32 %v7615_v7, 16 }
 0x2a0   : > { %v2394_v11 = vmul.f32 %v2393_v16, %v2378_v28  ;;  %v2403_v56 = vxor.u32 2147483648, %v2386_v26  ;;  %v2513_v50 = vclz %v2512_v36  ;;  %v2604_v10 = vsel %vm2596_vm9, %v2587_v21, %v2603_v41 }
 0x2a1   : > { %v2605_v35 = vsel %vm2595_vm8, %v2602_v46, %v2604_v10  ;;  %v5583_v37 = vadd.s32 4294967169, %v2721_v42  ;;  %v7666_v39 = vsel %vm2409_vm1, %v2531_v20, %v2507_v33  ;;  %v2606_v28 = vsel %vm2594_vm7, %v2584_v27, %v2587_v21 }
 0x2a2   : > { %v2400_v38 = vxor.u32 2147483648, %v2394_v11  ;;  %v5578_v55 = vadd.s32 4294967294, %v2513_v50  ;;  %v2404_v58 = vsel %vm2402_vm2, %v2403_v56, %v2394_v11  ;;  %v2599_v34 = vsel %vm2597_vm10, %v2587_v21, 2102212464 }
 0x2a3   : > { %v2607_v53 = vsel %vm2597_vm10, %v2593_v0, 1326507024  ;;  %v2636_v52 = vshrl.u32 %v2605_v35, 16  ;;  %v2635_v13 = vand.u32 65535, %v2605_v35  ;;  %v2598_v21 = vsel %vm2594_vm7, %v2578_v29, %v2581_v2 }
 0x2a4   : > { %v2401_v42 = vsel %vm2399_vm3, %v2386_v26, %v2400_v38  ;;  %vm5579_vm11 = vcmp.lt.s32.totalorder %v5578_v55, 0  ;;  %v2608_v33 = vsel %vm2596_vm9, %v2590_v18, %v2607_v53  ;;  %v2600_v36 = vsel %vm2596_vm9, %v2584_v27, %v2599_v34 }
 0x2a5   : > { %v2405_v6 = vsel %vm2398_vm4, %v2401_v42, %v2404_v58  ;;  %v2516_v20 = vsel %vm5579_vm11, 0, %v5578_v55  ;;  %v2609_v47 = vsel %vm2595_vm8, %v2606_v28, %v2608_v33  ;;  %v2638_v63 = vmul.u32 %v2636_v52, %v7630_v5 }
 0x2a6   : > { %v2406_v16 = vsel %vm2395_vm5, nan, %v2405_v6  ;;  %v2517_v26 = vsub.s32 32, %v2516_v20  ;;  %v2521_v46 = vsub.s32 4294967266, %v2516_v20  ;;  %v2613_v18 = vand.u32 65535, %v2609_v47 }
 0x2a7   : > { %v2614_v0 = vshrl.u32 %v2609_v47, 16  ;;  %v2727_v41 = vadd.s32 1, %v5583_v37  ;;  %2884 = vst [vmem:[%s6274_s10 + $0x60] sm:$0xff] %v2406_v16  ;;  %v2518_v11 = vshll.u32 %v7641_v44, %v2516_v20  ;;  %v2639_v50 = vmul.u32 %v2635_v13, %v2612_v62 }
 0x2a8   : > { %v2519_v2 = vshrl.u32 %v7619_v54, %v2517_v26  ;;  %v2522_v56 = vadd.s32 127, %v2521_v46  ;;  %v9881_v60 = vand.u32 2147483647, %v7385_v12  ;;  %v7702_v27 = vsel %vm2595_vm8, %v2598_v21, %v2600_v36 }
 0x2a9   : > { %v2616_v29 = vmul.u32 %v2614_v0, %v7630_v5  ;;  %v2617_v35 = vmul.u32 %v2613_v18, %v2612_v62  ;;  %v2637_v37 = vmul.u32 %v2635_v13, %v7630_v5  ;;  %v2640_v54 = vmul.u32 %v2636_v52, %v2612_v62 }
 0x2aa   : > { %vm7696_vm12 = vcmp.le.f32.partialorder %v9881_v60, 0.7853982  ;;  %v2520_v44 = vor.u32 %v2519_v2, %v2518_v11  ;;  %v2523_v38 = vshll.u32 %v2522_v56, 23  ;;  %v2641_v55 = vshll.u32 %v2638_v63, 16 }
 0x2ab   : > { %v2615_v28 = vmul.u32 %v2613_v18, %v7630_v5  ;;  %v2618_v58 = vmul.u32 %v2614_v0, %v2612_v62  ;;  %v2619_v34 = vshll.u32 %v2616_v29, 16  ;;  %vm2728_vm14 = vcmp.gt.s32.totalorder %v2727_v41, 0 }
 0x2ac   : > { %v2524_v53 = vor.u32 4788187, %v2523_v38  ;;  %v2527_v42 = vcvt.s32.f32 %v2520_v44  ;;  %v2621_v33 = vshll.u32 %v2617_v35, 16  ;;  %v2643_v14 = vshll.u32 %v2639_v50, 16 }
 0x2ad   : > { %vm2623_vm0 = vc.u32 %v2615_v28, %v2619_v34  ;;  %v2625_v6 = vadd.s32 %v2619_v34, %v2615_v28  ;;  %vm2645_vm13 = vc.u32 %v2637_v37, %v2641_v55  ;;  %v2647_v20 = vadd.s32 %v2641_v55, %v2637_v37 }
 0x2ae   : > { %v2525_v21 = vand.u32 2147483647, %v2524_v53  ;;  %v2624_v13 = vsel %vm2623_vm0, 1, %v5787_v3  ;;  %v2646_v47 = vsel %vm2645_vm13, 1, %v5787_v3  ;;  %v2729_v52 = vsel %vm2728_vm14, %v2727_v41, 0 }
 0x2af   : > { %v2626_v16 = vadd.s32 %v2624_v13, %v2618_v58  ;;  %vm2627_vm15 = vc.u32 %v2625_v6, %v2621_v33  ;;  %v2648_v5 = vadd.s32 %v2646_v47, %v2640_v54  ;;  %vm2649_vm2 = vc.u32 %v2647_v20, %v2643_v14 }
 0x2b0   : > { %v2528_v62 = vmul.f32 %v2527_v42, %v2525_v21  ;;  %v2628_v26 = vsel %vm2627_vm15, 1, %v5787_v3  ;;  %v2642_v46 = vshrl.u32 %v2638_v63, 16  ;;  %v2650_v36 = vsel %vm2649_vm2, 1, %v5787_v3 }
 0x2b1   : > { %v2620_v18 = vshrl.u32 %v2616_v29, 16  ;;  %v2630_v0 = vadd.s32 %v2628_v26, %v2626_v16  ;;  %v2652_v11 = vadd.s32 %v2650_v36, %v2648_v5  ;;  %v2731_v2 = vand.u32 31, %v2729_v52 }
 0x2b2   : > { %v2529_v56 = vxor.u32 2147483648, %v2528_v62  ;;  %v2534_v60 = vsel %vm7696_vm12, 0, %v7666_v39  ;;  %v2622_v41 = vshrl.u32 %v2617_v35, 16  ;;  %v2655_v37 = vmul.u32 %v7615_v7, %v7702_v27 }
 0x2b3   : > { %v2631_v44 = vadd.s32 %v2630_v0, %v2620_v18  ;;  %v2644_v38 = vshrl.u32 %v2639_v50, 16  ;;  %v2653_v54 = vadd.s32 %v2652_v11, %v2642_v46  ;;  %v7716_v55 = vsub.s32 32, %v2731_v2 }
 0x2b4   : > { %v2530_v63 = vsel %vm2409_vm1, %v2529_v56, %v2528_v62  ;;  %v7720_v29 = vadd.s32 %v2647_v20, %v2643_v14  ;;  %v7722_v28 = vshrl.u32 %v2729_v52, 5  ;;  %v2734_v58 = vshll.u32 %v9860_v30, %v2731_v2 }
 0x2b5   : > { %v2533_v39 = vsel %vm7696_vm12, %v7385_v12, %v2530_v63  ;;  %v7728_v35 = vadd.s32 %v2631_v44, %v2622_v41  ;;  %v2654_v7 = vadd.s32 %v2653_v54, %v2644_v38  ;;  %v2737_v50 = vshll.u32 %v9869_v24, %v2731_v2 }
 0x2b6   : > { %v2535_v27 = vmul.f32 %v2533_v39, %v2533_v39  ;;  %v2735_v34 = vshrl.u32 %v9869_v24, %v7716_v55  ;;  %v2738_v53 = vshrl.u32 %v9870_v23, %v7716_v55  ;;  %v2743_v42 = vshll.u32 %v9858_v45, %v2731_v2 }
 0x2b7   : > { %vm2657_vm1 = vc.u32 %v7728_v35, %v7720_v29  ;;  %v2658_v33 = vadd.s32 1, %v2654_v7  ;;  %v2741_v10 = vshrl.u32 %v9858_v45, %v7716_v55  ;;  %v2744_v14 = vshrl.u32 %v9859_v48, %v7716_v55 }
 0x2b8   : > { %v2536_v6 = vmul.f32 -0.001358992, %v2535_v27  ;;  %v2543_v20 = vmul.f32 -0.00019511016, %v2535_v27  ;;  %v7742_v21 = vor.u32 %v2735_v34, %v2734_v58  ;;  %v2740_v13 = vshll.u32 %v9870_v23, %v2731_v2 }
 0x2b9   : > { %v2659_v47 = vsel %vm2657_vm1, %v2658_v33, %v2654_v7  ;;  %v7745_v52 = vor.u32 %v2738_v53, %v2737_v50  ;;  %v2745_v16 = vor.u32 %v2744_v14, %v2743_v42  ;;  %v2746_v5 = vshll.u32 %v9859_v48, %v2731_v2 }
 0x2ba   : > { %v2537_v62 = vadd.f32 0.041655596, %v2536_v6  ;;  %v2544_v26 = vadd.f32 0.008332121, %v2543_v20  ;;  %v2660_v46 = vadd.s32 %v2659_v47, %v2655_v37  ;;  %v2747_v36 = vshrl.u32 %v9861_v31, %v7716_v55 }
 0x2bb   : > { %v2725_v18 = vor.u32 8388608, %v7623_v17  ;;  %v7751_v0 = vor.u32 %v2741_v10, %v2740_v13  ;;  %vm2752_vm3 = vcmp.lt.s32.totalorder %v7722_v28, 4  ;;  %v2551_v38 = vadd.s32 3, %v2534_v60 }
 0x2bc   : > { %v2538_v11 = vmul.f32 %v2537_v62, %v2535_v27  ;;  %v2545_v56 = vmul.f32 %v2544_v26, %v2535_v27  ;;  %v2661_v41 = vadd.s32 536870912, %v2660_v46  ;;  %v2748_v44 = vor.u32 %v2747_v36, %v2746_v5 }
 0x2bd   : > { %vm2749_vm4 = vcmp.lt.s32.totalorder %v7722_v28, 1  ;;  %vm2751_vm5 = vcmp.lt.s32.totalorder %v7722_v28, 3  ;;  %v2758_v2 = vsel %vm2752_vm3, %v2745_v16, 920167782  ;;  %vm2750_vm6 = vcmp.lt.s32.totalorder %v7722_v28, 2 }
 0x2be   : > { %v2539_v37 = vadd.f32 -0.4999988, %v2538_v11  ;;  %v2546_v54 = vadd.f32 -0.16666654, %v2545_v56  ;;  %v7758_v63 = vshrl.u32 %v2661_v41, 30  ;;  %v2757_v17 = vsel %vm2749_vm4, %v7742_v21, %v7745_v52 }
 0x2bf   : > { %v2759_v60 = vsel %vm2751_vm5, %v7751_v0, %v2758_v2  ;;  %v2762_v58 = vsel %vm2752_vm3, %v2748_v44, 1326507024  ;;  %v2761_v53 = vsel %vm2749_vm4, %v7745_v52, %v7751_v0  ;;  %v2552_v42 = vand.u32 3, %v2551_v38  ;;  %v7789_v11 = vld [vmem:[%s254_s13] sm:$0x3] }
 0x2c0   : > { %v2540_v7 = vmul.f32 %v2539_v37, %v2535_v27  ;;  %v2547_v50 = vmul.f32 %v2546_v54, %v2535_v27  ;;  %v2663_v34 = vshll.u32 %v7758_v63, 30  ;;  %v2760_v33 = vsel %vm2750_vm6, %v2757_v17, %v2759_v60 }
 0x2c1   : > { %v2763_v10 = vsel %vm2751_vm5, %v2745_v16, %v2762_v58  ;;  %v7779_v14 = vshll.u32 %v2725_v18, 8  ;;  %v2791_v47 = vshrl.u32 %v2760_v33, 16  ;;  %vm2553_vm8 = vcmp.lt.s32.totalorder %v2552_v42, 2 }
 0x2c2   : > { %v2541_v6 = vadd.f32 1.0, %v2540_v7  ;;  %v2548_v20 = vadd.f32 1.0, %v2547_v50  ;;  %v2664_v13 = vsub.s32 %v2660_v46, %v2663_v34  ;;  %v2764_v27 = vsel %vm2750_vm6, %v2761_v53, %v2763_v10 }
 0x2c3   : > { %v2766_v16 = vand.u32 65535, %v7779_v14  ;;  %v2768_v36 = vand.u32 65535, %v2764_v27  ;;  %v2769_v18 = vshrl.u32 %v2764_v27, 16  ;;  %vm2554_vm10 = vcmp.eq.s32.totalorder %v2552_v42, 0 }
 0x2c4   : > { %v2549_v5 = vmul.f32 %v2548_v20, %v2533_v39  ;;  %v2558_v62 = vxor.u32 2147483648, %v2541_v6  ;;  %vm2665_vm7 = vcmp.lt.s32.totalorder %v2664_v13, 0  ;;  %v2666_v26 = vsub.s32 0, %v2664_v13 }
 0x2c5   : > { %v2767_v41 = vshrl.u32 %v7779_v14, 16  ;;  %vm2557_vm9 = vcmp.eq.s32.totalorder %v2552_v42, 2  ;;  %v2771_v38 = vmul.u32 %v2769_v18, %v2766_v16  ;;  %v2790_v2 = vand.u32 65535, %v2760_v33 }
 0x2c6   : > { %v2555_v46 = vxor.u32 2147483648, %v2549_v5  ;;  %v2667_v56 = vsel %vm2665_vm7, %v2666_v26, %v2664_v13  ;;  %v2559_v37 = vsel %vm2557_vm9, %v2558_v62, %v2549_v5  ;;  %v2793_v17 = vmul.u32 %v2791_v47, %v2766_v16 }
 0x2c7   : > { %v2668_v44 = vclz %v2667_v56  ;;  %v2772_v54 = vmul.u32 %v2768_v36, %v2767_v41  ;;  %vm2550_vm11 = vweird.f32 %v7385_v12  ;;  %v7795_v7 = vperm.slane %v7789_v11, 0 }
 0x2c8   : > { %v2556_v39 = vsel %vm2554_vm10, %v2541_v6, %v2555_v46  ;;  %v2656_v34 = vadd.s32 %v7720_v29, %v7728_v35  ;;  %v2770_v53 = vmul.u32 %v2768_v36, %v2766_v16  ;;  %v2774_v10 = vshll.u32 %v2771_v38, 16 }
 0x2c9   : > { %v2560_v60 = vsel %vm2553_vm8, %v2556_v39, %v2559_v37  ;;  %v5581_v58 = vadd.s32 4294967294, %v2668_v44  ;;  %v2773_v33 = vmul.u32 %v2769_v18, %v2767_v41  ;;  %v2776_v6 = vshll.u32 %v2772_v54, 16 }
 0x2ca   : > { %v2561_v50 = vsel %vm2550_vm11, nan, %v2560_v60  ;;  %v2794_v20 = vmul.u32 %v2790_v2, %v2767_v41  ;;  %vm2778_vm14 = vc.u32 %v2770_v53, %v2774_v10  ;;  %v2780_v12 = vadd.s32 %v2774_v10, %v2770_v53 }
 0x2cb   : > { %vm5582_vm12 = vcmp.lt.s32.totalorder %v5581_v58, 0  ;;  %2885 = vst [vmem:[%s6274_s10 + $0x68] sm:$0xff] %v2561_v50  ;;  %v2796_v42 = vshll.u32 %v2793_v17, 16  ;;  %v2779_v26 = vsel %vm2778_vm14, 1, %v5787_v3  ;;  %v2792_v46 = vmul.u32 %v2790_v2, %v2766_v16 }
 0x2cc   : > { %v2671_v27 = vsel %vm5582_vm12, 0, %v5581_v58  ;;  %v2775_v56 = vshrl.u32 %v2771_v38, 16  ;;  %v2781_v44 = vadd.s32 %v2779_v26, %v2773_v33  ;;  %vm2782_vm0 = vc.u32 %v2780_v12, %v2776_v6 }
 0x2cd   : > { %v2672_v5 = vsub.s32 32, %v2671_v27  ;;  %v2676_v62 = vsub.s32 4294967266, %v2671_v27  ;;  %v2795_v29 = vmul.u32 %v2791_v47, %v2767_v41  ;;  %v2673_v35 = vshll.u32 %v2664_v13, %v2671_v27 }
 0x2ce   : > { %v2783_v18 = vsel %vm2782_vm0, 1, %v5787_v3  ;;  %v2798_v60 = vshll.u32 %v2794_v20, 16  ;;  %vm2800_vm13 = vc.u32 %v2792_v46, %v2796_v42  ;;  %v2802_v58 = vadd.s32 %v2796_v42, %v2792_v46 }
 0x2cf   : > { %v2674_v36 = vshrl.u32 %v2656_v34, %v2672_v5  ;;  %v2677_v39 = vadd.s32 127, %v2676_v62  ;;  %v2785_v37 = vadd.s32 %v2783_v18, %v2781_v44  ;;  %v2733_v10 = vshrl.u32 %v9860_v30, %v7716_v55 }
 0x2d0   : > { %v2801_v16 = vsel %vm2800_vm13, 1, %v5787_v3  ;;  %v2754_v47 = vsel %vm2752_vm3, %v7751_v0, 2102212464  ;;  %vm2804_vm15 = vc.u32 %v2802_v58, %v2798_v60  ;;  %v2777_v2 = vshrl.u32 %v2772_v54, 16 }
 0x2d1   : > { %v2675_v50 = vor.u32 %v2674_v36, %v2673_v35  ;;  %v2678_v53 = vshll.u32 %v2677_v39, 23  ;;  %v2786_v13 = vadd.s32 %v2785_v37, %v2775_v56  ;;  %v2803_v41 = vadd.s32 %v2801_v16, %v2795_v29 }
 0x2d2   : > { %v2805_v34 = vsel %vm2804_vm15, 1, %v5787_v3  ;;  %v2686_v33 = vsub.s32 4, %v7758_v63  ;;  %v2753_v6 = vsel %vm2749_vm4, %v2733_v10, %v7742_v21  ;;  %v2797_v55 = vshrl.u32 %v2793_v17, 16 }
 0x2d3   : > { %v2679_v38 = vor.u32 4788187, %v2678_v53  ;;  %v2807_v27 = vadd.s32 %v2805_v34, %v2803_v41  ;;  %v2682_v42 = vcvt.s32.f32 %v2675_v50  ;;  %v2755_v0 = vsel %vm2751_vm5, %v7745_v52, %v2754_v47 }
 0x2d4   : > { %v7816_v5 = vadd.s32 %v2786_v13, %v2777_v2  ;;  %v2799_v62 = vshrl.u32 %v2794_v20, 16  ;;  %v2893_v26 = vmul.f32 %v7795_v7, %v5945_v22  ;;  %vm2564_vm2 = vcmp.lt.s32.totalorder %v7522_v61, 0 }
 0x2d5   : > { %v2680_v12 = vand.u32 2147483647, %v2679_v38  ;;  %v2808_v54 = vadd.s32 %v2807_v27, %v2797_v55  ;;  %v2806_v56 = vadd.s32 %v2802_v58, %v2798_v60  ;;  %v2687_v21 = vsel %vm2564_vm2, %v2686_v33, %v7758_v63 }
 0x2d6   : > { %v2756_v17 = vsel %vm2750_vm6, %v2753_v6, %v2755_v0  ;;  %v7825_v29 = vperm.slane %v7789_v11, 1  ;;  %vm2563_vm3 = vcmp.le.f32.partialorder %v2562_v40, 0.7853982  ;;  %v7831_v35 = vadd.f32 %v2893_v26, %v5951_v25 }
 0x2d7   : > { %v2683_v46 = vmul.f32 %v2682_v42, %v2680_v12  ;;  %v2809_v44 = vadd.s32 %v2808_v54, %v2799_v62  ;;  %vm2812_vm1 = vc.u32 %v7816_v5, %v2806_v56  ;;  %v2689_v39 = vsel %vm2563_vm3, 0, %v2687_v21 }
 0x2d8   : > { %v2810_v63 = vmul.u32 %v7779_v14, %v2756_v17  ;;  %v2894_v11 = vmul.f32 %v7825_v29, %v5945_v22  ;;  %v2706_v58 = vadd.s32 3, %v2689_v39  ;;  %v2925_v50 = vand.u32 2147483647, %v7831_v35 }
 0x2d9   : > { %v2684_v52 = vxor.u32 2147483648, %v2683_v46  ;;  %v2813_v20 = vadd.s32 1, %v2809_v44  ;;  %v2928_v40 = vand.u32 2139095040, %v7831_v35  ;;  %vm2719_vm4 = vcmp.lt.s32.totalorder %v7603_v51, 0 }
 0x2da   : > { %v7840_v47 = vadd.f32 %v2894_v11, %v5951_v25  ;;  %v2932_v13 = vand.u32 8388607, %v2925_v50  ;;  %v2707_v2 = vand.u32 3, %v2706_v58  ;;  %vm7850_vm5 = vcmp.le.f32.partialorder %v2717_v19, 0.7853982 }
 0x2db   : > { %v2685_v36 = vsel %vm2564_vm2, %v2684_v52, %v2683_v46  ;;  %v2814_v18 = vsel %vm2812_vm1, %v2813_v20, %v2809_v44  ;;  %v2929_v14 = vshrl.u32 %v2928_v40, 23  ;;  %vm2705_vm10 = vweird.f32 %v7522_v61 }
 0x2dc   : > { %v2688_v28 = vsel %vm2563_vm3, %v7522_v61, %v2685_v36  ;;  %v2815_v60 = vadd.s32 %v2814_v18, %v2810_v63  ;;  %v2933_v33 = vor.u32 8388608, %v2932_v13  ;;  %v3083_v25 = vand.u32 2139095040, %v7840_v47 }
 0x2dd   : > { %v2690_v37 = vmul.f32 %v2688_v28, %v2688_v28  ;;  %v5586_v34 = vadd.s32 4294967169, %v2929_v14  ;;  %vm2708_vm7 = vcmp.lt.s32.totalorder %v2707_v2, 2  ;;  %vm2709_vm9 = vcmp.eq.s32.totalorder %v2707_v2, 0 }
 0x2de   : > { %v2816_v16 = vadd.s32 536870912, %v2815_v60  ;;  %v7854_v21 = vshll.u32 %v2933_v33, 8  ;;  %v3084_v39 = vshrl.u32 %v3083_v25, 23  ;;  %vm2712_vm11 = vcmp.eq.s32.totalorder %v2707_v2, 2 }
 0x2df   : > { %v2691_v53 = vmul.f32 -0.001358992, %v2690_v37  ;;  %v2698_v10 = vmul.f32 -0.00019511016, %v2690_v37  ;;  %v2935_v42 = vadd.s32 1, %v5586_v34 }
 0x2e0   : > { %v2817_v22 = vshrl.u32 %v2816_v16, 30  ;;  %v3080_v16 = vand.u32 2147483647, %v7840_v47 }
 0x2e1   : > { %v2692_v41 = vadd.f32 0.041655596, %v2691_v53  ;;  %v2699_v38 = vadd.f32 0.008332121, %v2698_v10  ;;  %vm2936_vm6 = vcmp.gt.s32.totalorder %v2935_v42, 0  ;;  %v7863_v10 = vand.u32 65535, %v7854_v21 }
 0x2e2   : > { %v2818_v27 = vshll.u32 %v2817_v22, 30  ;;  %v2841_v12 = vsub.s32 4, %v2817_v22  ;;  %v2937_v36 = vsel %vm2936_vm6, %v2935_v42, 0 }
 0x2e3   : > { %v2693_v6 = vmul.f32 %v2692_v41, %v2690_v37  ;;  %v2700_v55 = vmul.f32 %v2699_v38, %v2690_v37  ;;  %v7859_v11 = vshrl.u32 %v2937_v36, 5  ;;  %v2939_v58 = vand.u32 31, %v2937_v36 }
 0x2e4   : > { %v2819_v54 = vsub.s32 %v2815_v60, %v2818_v27  ;;  %v2842_v26 = vsel %vm2719_vm4, %v2841_v12, %v2817_v22  ;;  %v2811_v60 = vadd.s32 %v2806_v56, %v7816_v5  ;;  %v7867_v41 = vshrl.u32 %v7854_v21, 16 }
 0x2e5   : > { %v2694_v0 = vadd.f32 -0.4999988, %v2693_v6  ;;  %v2701_v62 = vadd.f32 -0.16666654, %v2700_v55  ;;  %v2844_v20 = vsel %vm7850_vm5, 0, %v2842_v26  ;;  %v7869_v38 = vadd.s32 4294967169, %v3084_v39 }
 0x2e6   : > { %vm2820_vm8 = vcmp.lt.s32.totalorder %v2819_v54, 0  ;;  %v2821_v52 = vsub.s32 0, %v2819_v54  ;;  %v2861_v13 = vadd.s32 3, %v2844_v20  ;;  %v2940_v33 = vsub.s32 32, %v2939_v58 }
 0x2e7   : > { %v2695_v17 = vmul.f32 %v2694_v0, %v2690_v37  ;;  %v2702_v44 = vmul.f32 %v2701_v62, %v2690_v37  ;;  %vm2957_vm12 = vcmp.lt.s32.totalorder %v7859_v11, 1  ;;  %v2942_v5 = vshll.u32 %v9860_v30, %v2939_v58 }
 0x2e8   : > { %v2822_v18 = vsel %vm2820_vm8, %v2821_v52, %v2819_v54  ;;  %v2945_v56 = vshll.u32 %v9869_v24, %v2939_v58  ;;  %v2943_v27 = vshrl.u32 %v9869_v24, %v2940_v33  ;;  %v2951_v12 = vshll.u32 %v9858_v45, %v2939_v58 }
 0x2e9   : > { %v2696_v19 = vadd.f32 1.0, %v2695_v17  ;;  %v2703_v63 = vadd.f32 1.0, %v2702_v44  ;;  %v2823_v37 = vclz %v2822_v18  ;;  %v2941_v62 = vshrl.u32 %v9860_v30, %v2940_v33 }
 0x2ea   : > { %v2944_v17 = vor.u32 %v2943_v27, %v2942_v5  ;;  %v2946_v44 = vshrl.u32 %v9870_v23, %v2940_v33  ;;  %v2949_v52 = vshrl.u32 %v9858_v45, %v2940_v33  ;;  %v2954_v18 = vshll.u32 %v9859_v48, %v2939_v58 }
 0x2eb   : > { %v2704_v40 = vmul.f32 %v2703_v63, %v2688_v28  ;;  %v2713_v53 = vxor.u32 2147483648, %v2696_v19  ;;  %v5584_v14 = vadd.s32 4294967294, %v2823_v37  ;;  %v2948_v28 = vshll.u32 %v9870_v23, %v2939_v58 }
 0x2ec   : > { %v2947_v2 = vor.u32 %v2946_v44, %v2945_v56  ;;  %v2955_v37 = vshrl.u32 %v9861_v31, %v2940_v33  ;;  %vm2960_vm0 = vcmp.lt.s32.totalorder %v7859_v11, 4  ;;  %vm2959_vm13 = vcmp.lt.s32.totalorder %v7859_v11, 3 }
 0x2ed   : > { %v2710_v22 = vxor.u32 2147483648, %v2704_v40  ;;  %v2714_v34 = vsel %vm2712_vm11, %v2713_v53, %v2704_v40  ;;  %vm5585_vm14 = vcmp.lt.s32.totalorder %v5584_v14, 0  ;;  %v2950_v63 = vor.u32 %v2949_v52, %v2948_v28 }
 0x2ee   : > { %v2826_v55 = vsel %vm5585_vm14, 0, %v5584_v14  ;;  %v2956_v14 = vor.u32 %v2955_v37, %v2954_v18  ;;  %vm2958_vm15 = vcmp.lt.s32.totalorder %v7859_v11, 2  ;;  %v7899_v52 = vand.u32 3, %v2861_v13 }
 0x2ef   : > { %v2711_v6 = vsel %vm2709_vm9, %v2696_v19, %v2710_v22  ;;  %v2827_v25 = vsub.s32 32, %v2826_v55  ;;  %v2831_v0 = vsub.s32 4294967266, %v2826_v55  ;;  %v2828_v20 = vshll.u32 %v2819_v54, %v2826_v55 }
 0x2f0   : > { %v2715_v42 = vsel %vm2708_vm7, %v2711_v6, %v2714_v34  ;;  %v2952_v19 = vshrl.u32 %v9859_v48, %v2940_v33  ;;  %v2962_v54 = vsel %vm2960_vm0, %v2950_v63, 2102212464  ;;  %v2961_v34 = vsel %vm2957_vm12, %v2941_v62, %v2944_v17 }
 0x2f1   : > { %v2716_v26 = vsel %vm2705_vm10, nan, %v2715_v42  ;;  %v2829_v36 = vshrl.u32 %v2811_v60, %v2827_v25  ;;  %v2832_v39 = vadd.s32 127, %v2831_v0  ;;  %v2965_v60 = vsel %vm2957_vm12, %v2944_v17, %v2947_v2 }
 0x2f2   : > { %2886 = vst [vmem:[%s6274_s10 + $0x70] sm:$0xff] %v2716_v26  ;;  %v2953_v53 = vor.u32 %v2952_v19, %v2951_v12  ;;  %v2963_v5 = vsel %vm2959_vm13, %v2947_v2, %v2962_v54  ;;  %v2969_v56 = vsel %vm2957_vm12, %v2947_v2, %v2950_v63  ;;  %v2970_v28 = vsel %vm2960_vm0, %v2956_v14, 1326507024 }
 0x2f3   : > { %v2830_v40 = vor.u32 %v2829_v36, %v2828_v20  ;;  %v2833_v61 = vshll.u32 %v2832_v39, 23  ;;  %v7897_v42 = vsel %vm2958_vm15, %v2961_v34, %v2963_v5  ;;  %v7905_v36 = vand.u32 8388607, %v3080_v16 }
 0x2f4   : > { %v2966_v58 = vsel %vm2960_vm0, %v2953_v53, 920167782  ;;  %v2971_v12 = vsel %vm2959_vm13, %v2953_v53, %v2970_v28  ;;  %vm2863_vm6 = vcmp.lt.s32.totalorder %v7899_v52, 2  ;;  %vm2860_vm8 = vweird.f32 %v7603_v51 }
 0x2f5   : > { %v2834_v22 = vor.u32 4788187, %v2833_v61  ;;  %v2967_v33 = vsel %vm2959_vm13, %v2950_v63, %v2966_v58  ;;  %v2837_v55 = vcvt.s32.f32 %v2830_v40  ;;  %v2972_v25 = vsel %vm2958_vm15, %v2969_v56, %v2971_v12 }
 0x2f6   : > { %v2968_v27 = vsel %vm2958_vm15, %v2965_v60, %v2967_v33  ;;  %v2976_v62 = vand.u32 65535, %v2972_v25  ;;  %v2977_v17 = vshrl.u32 %v2972_v25, 16  ;;  %v3018_v63 = vmul.u32 %v7854_v21, %v7897_v42 }
 0x2f7   : > { %v2835_v6 = vand.u32 2147483647, %v2834_v22  ;;  %v2998_v0 = vand.u32 65535, %v2968_v27  ;;  %v2999_v26 = vshrl.u32 %v2968_v27, 16  ;;  %v3090_v40 = vadd.s32 1, %v7869_v38 }
 0x2f8   : > { %v2979_v19 = vmul.u32 %v2977_v17, %v7863_v10  ;;  %v2980_v2 = vmul.u32 %v2976_v62, %v7867_v41  ;;  %v2978_v53 = vmul.u32 %v2976_v62, %v7863_v10  ;;  %v2981_v14 = vmul.u32 %v2977_v17, %v7867_v41 }
 0x2f9   : > { %v2838_v44 = vmul.f32 %v2837_v55, %v2835_v6  ;;  %v3001_v20 = vmul.u32 %v2999_v26, %v7863_v10  ;;  %v3002_v11 = vmul.u32 %v2998_v0, %v7867_v41  ;;  %v3000_v18 = vmul.u32 %v2998_v0, %v7863_v10 }
 0x2fa   : > { %v3003_v13 = vmul.u32 %v2999_v26, %v7867_v41  ;;  %v2982_v54 = vshll.u32 %v2979_v19, 16  ;;  %v2984_v22 = vshll.u32 %v2980_v2, 16  ;;  %vm3091_vm3 = vcmp.gt.s32.totalorder %v3090_v40, 0 }
 0x2fb   : > { %v2839_v39 = vxor.u32 2147483648, %v2838_v44  ;;  %v3004_v37 = vshll.u32 %v3001_v20, 16  ;;  %v3006_v34 = vshll.u32 %v3002_v11, 16  ;;  %v2983_v55 = vshrl.u32 %v2979_v19, 16 }
 0x2fc   : > { %vm2986_vm1 = vc.u32 %v2978_v53, %v2982_v54  ;;  %v2988_v58 = vadd.s32 %v2982_v54, %v2978_v53  ;;  %v3092_v27 = vsel %vm3091_vm3, %v3090_v40, 0  ;;  %v3005_v62 = vshrl.u32 %v3001_v20, 16 }
 0x2fd   : > { %v2840_v61 = vsel %vm2719_vm4, %v2839_v39, %v2838_v44  ;;  %vm3008_vm2 = vc.u32 %v3000_v18, %v3004_v37  ;;  %v2987_v33 = vsel %vm2986_vm1, 1, %v5787_v3  ;;  %v3010_v56 = vadd.s32 %v3004_v37, %v3000_v18 }
 0x2fe   : > { %v2843_v60 = vsel %vm7850_vm5, %v7603_v51, %v2840_v61  ;;  %v3009_v38 = vsel %vm3008_vm2, 1, %v5787_v3  ;;  %v2989_v6 = vadd.s32 %v2987_v33, %v2981_v14  ;;  %vm2990_vm4 = vc.u32 %v2988_v58, %v2984_v22 }
 0x2ff   : > { %v2845_v5 = vmul.f32 %v2843_v60, %v2843_v60  ;;  %v3011_v28 = vadd.s32 %v3009_v38, %v3003_v13  ;;  %v2991_v46 = vsel %vm2990_vm4, 1, %v5787_v3  ;;  %vm3012_vm5 = vc.u32 %v3010_v56, %v3006_v34 }
 0x300   : > { %v2993_v0 = vadd.s32 %v2991_v46, %v2989_v6  ;;  %v3013_v26 = vsel %vm3012_vm5, 1, %v5787_v3  ;;  %v2985_v44 = vshrl.u32 %v2980_v2, 16  ;;  %v3094_v39 = vand.u32 31, %v3092_v27 }
 0x301   : > { %v2846_v10 = vmul.f32 -0.001358992, %v2845_v5  ;;  %v2853_v41 = vmul.f32 -0.00019511016, %v2845_v5  ;;  %v3015_v17 = vadd.s32 %v3013_v26, %v3011_v28  ;;  %v3007_v61 = vshrl.u32 %v3002_v11, 16 }
 0x302   : > { %v2994_v37 = vadd.s32 %v2993_v0, %v2983_v55  ;;  %v7925_v53 = vadd.s32 %v3010_v56, %v3006_v34  ;;  %v7927_v14 = vshrl.u32 %v3092_v27, 5  ;;  %v7929_v54 = vsub.s32 32, %v3094_v39 }
 0x303   : > { %v2847_v12 = vadd.f32 0.041655596, %v2846_v10  ;;  %v2854_v25 = vadd.f32 0.008332121, %v2853_v41  ;;  %v3016_v19 = vadd.s32 %v3015_v17, %v3005_v62  ;;  %v3097_v2 = vshll.u32 %v9860_v30, %v3094_v39 }
 0x304   : > { %v7931_v58 = vadd.s32 %v2994_v37, %v2985_v44  ;;  %v3098_v38 = vshrl.u32 %v9869_v24, %v7929_v54  ;;  %v3100_v33 = vshll.u32 %v9869_v24, %v3094_v39  ;;  %v3101_v11 = vshrl.u32 %v9870_v23, %v7929_v54 }
 0x305   : > { %v2848_v18 = vmul.f32 %v2847_v12, %v2845_v5  ;;  %v2855_v13 = vmul.f32 %v2854_v25, %v2845_v5  ;;  %v3017_v20 = vadd.s32 %v3016_v19, %v3007_v61  ;;  %v3103_v28 = vshll.u32 %v9870_v23, %v3094_v39 }
 0x306   : > { %vm3020_vm7 = vc.u32 %v7931_v58, %v7925_v53  ;;  %v7944_v41 = vor.u32 %v3098_v38, %v3097_v2  ;;  %v7946_v6 = vor.u32 %v3101_v11, %v3100_v33  ;;  %v3104_v55 = vshrl.u32 %v9858_v45, %v7929_v54 }
 0x307   : > { %v2849_v40 = vadd.f32 -0.4999988, %v2848_v18  ;;  %v2856_v22 = vadd.f32 -0.16666654, %v2855_v13  ;;  %v3021_v10 = vadd.s32 1, %v3017_v20  ;;  %v3107_v12 = vshrl.u32 %v9859_v48, %v7929_v54 }
 0x308   : > { %v3105_v0 = vor.u32 %v3104_v55, %v3103_v28  ;;  %v3109_v26 = vshll.u32 %v9859_v48, %v3094_v39  ;;  %v3110_v44 = vshrl.u32 %v9861_v31, %v7929_v54  ;;  %vm2864_vm10 = vcmp.eq.s32.totalorder %v7899_v52, 0 }
 0x309   : > { %v2850_v34 = vmul.f32 %v2849_v40, %v2845_v5  ;;  %v2857_v56 = vmul.f32 %v2856_v22, %v2845_v5  ;;  %v3106_v5 = vshll.u32 %v9858_v45, %v3094_v39  ;;  %v3022_v25 = vsel %vm3020_vm7, %v3021_v10, %v3017_v20 }
 0x30a   : > { %v3023_v18 = vadd.s32 %v3022_v25, %v3018_v63  ;;  %vm2867_vm9 = vcmp.eq.s32.totalorder %v7899_v52, 2  ;;  %v3088_v37 = vor.u32 8388608, %v7905_v36  ;;  %v3111_v61 = vor.u32 %v3110_v44, %v3109_v26 }
 0x30b   : > { %v2851_v46 = vadd.f32 1.0, %v2850_v34  ;;  %v2858_v27 = vadd.f32 1.0, %v2857_v56  ;;  %v3108_v13 = vor.u32 %v3107_v12, %v3106_v5  ;;  %vm3112_vm11 = vcmp.lt.s32.totalorder %v7927_v14, 1 }
 0x30c   : > { %v3024_v40 = vadd.s32 536870912, %v3023_v18  ;;  %vm3115_vm12 = vcmp.lt.s32.totalorder %v7927_v14, 4  ;;  %vm3113_vm14 = vcmp.lt.s32.totalorder %v7927_v14, 2  ;;  %vm3114_vm0 = vcmp.lt.s32.totalorder %v7927_v14, 3 }
 0x30d   : > { %v2859_v62 = vmul.f32 %v2858_v27, %v2843_v60  ;;  %v2868_v17 = vxor.u32 2147483648, %v2851_v46  ;;  %v3120_v21 = vsel %vm3112_vm11, %v7944_v41, %v7946_v6  ;;  %v3121_v42 = vsel %vm3115_vm12, %v3108_v13, 920167782 }
 0x30e   : > { %v7972_v60 = vshrl.u32 %v3024_v40, 30  ;;  %v3122_v39 = vsel %vm3114_vm0, %v3105_v0, %v3121_v42  ;;  %v3124_v20 = vsel %vm3112_vm11, %v7946_v6, %v3105_v0  ;;  %v7983_v38 = vshll.u32 %v3088_v37, 8 }
 0x30f   : > { %v2865_v19 = vxor.u32 2147483648, %v2859_v62  ;;  %v2869_v63 = vsel %vm2867_vm9, %v2868_v17, %v2859_v62  ;;  %v3123_v2 = vsel %vm3113_vm14, %v3120_v21, %v3122_v39  ;;  %v3125_v34 = vsel %vm3115_vm12, %v3111_v61, 1326507024 }
 0x310   : > { %v3026_v11 = vshll.u32 %v7972_v60, 30  ;;  %v2895_v52 = vmul.f32 %v7795_v7, %v5992_v9  ;;  %v3126_v56 = vsel %vm3114_vm0, %v3108_v13, %v3125_v34  ;;  %v3153_v55 = vand.u32 65535, %v3123_v2 }
 0x311   : > { %v2866_v36 = vsel %vm2864_vm10, %v2851_v46, %v2865_v19  ;;  %v3127_v10 = vsel %vm3113_vm14, %v3124_v20, %v3126_v56  ;;  %v3154_v46 = vshrl.u32 %v3123_v2, 16  ;;  %v3129_v51 = vand.u32 65535, %v7983_v38 }
 0x312   : > { %v2870_v22 = vsel %vm2863_vm6, %v2866_v36, %v2869_v63  ;;  %v3027_v28 = vsub.s32 %v3023_v18, %v3026_v11  ;;  %v3130_v27 = vshrl.u32 %v7983_v38, 16  ;;  %v3131_v5 = vand.u32 65535, %v3127_v10 }
 0x313   : > { %v2871_v33 = vsel %vm2860_vm8, nan, %v2870_v22  ;;  %v3132_v12 = vshrl.u32 %v3127_v10, 16  ;;  %v2896_v25 = vmul.f32 %v7825_v29, %v5992_v9  ;;  %v8002_v26 = vadd.f32 %v2895_v52, %v6070_v59 }
 0x314   : > { %2887 = vst [vmem:[%s6274_s10 + $0x78] sm:$0xff] %v2871_v33  ;;  %vm3028_vm13 = vcmp.lt.s32.totalorder %v3027_v28, 0  ;;  %v3029_v44 = vsub.s32 0, %v3027_v28  ;;  %v3096_v62 = vshrl.u32 %v9860_v30, %v7929_v54  ;;  %v3135_v18 = vmul.u32 %v3131_v5, %v3130_v27 }
 0x315   : > { %v3134_v17 = vmul.u32 %v3132_v12, %v3129_v51  ;;  %v3156_v13 = vmul.u32 %v3154_v46, %v3129_v51  ;;  %v8007_v37 = vadd.f32 %v2896_v25, %v6070_v59  ;;  %v3019_v61 = vadd.s32 %v7925_v53, %v7931_v58 }
 0x316   : > { %v3030_v19 = vsel %vm3028_vm13, %v3029_v44, %v3027_v28  ;;  %v3157_v40 = vmul.u32 %v3153_v55, %v3130_v27  ;;  %v3116_v21 = vsel %vm3112_vm11, %v3096_v62, %v7944_v41  ;;  %v3133_v42 = vmul.u32 %v3131_v5, %v3129_v51 }
 0x317   : > { %v3031_v9 = vclz %v3030_v19  ;;  %v3137_v36 = vshll.u32 %v3134_v17, 16  ;;  %v3117_v54 = vsel %vm3115_vm12, %v3105_v0, 2102212464  ;;  %v3136_v63 = vmul.u32 %v3132_v12, %v3130_v27 }
 0x318   : > { %v3139_v39 = vshll.u32 %v3135_v18, 16  ;;  %v3155_v22 = vmul.u32 %v3153_v55, %v3129_v51  ;;  %v3159_v20 = vshll.u32 %v3156_v13, 16  ;;  %vm2927_vm2 = vcmp.lt.s32.totalorder %v7831_v35, 0 }
 0x319   : > { %v5587_v59 = vadd.s32 4294967294, %v3031_v9  ;;  %vm3141_vm15 = vc.u32 %v3133_v42, %v3137_v36  ;;  %v3143_v2 = vadd.s32 %v3137_v36, %v3133_v42  ;;  %v3049_v53 = vsub.s32 4, %v7972_v60 }
 0x31a   : > { %v3142_v58 = vsel %vm3141_vm15, 1, %v5787_v3  ;;  %v3158_v33 = vmul.u32 %v3154_v46, %v3130_v27  ;;  %v3161_v41 = vshll.u32 %v3157_v40, 16  ;;  %vm3163_vm4 = vc.u32 %v3155_v22, %v3159_v20 }
 0x31b   : > { %vm5588_vm1 = vcmp.lt.s32.totalorder %v5587_v59, 0  ;;  %v3144_v11 = vadd.s32 %v3142_v58, %v3136_v63  ;;  %vm3145_vm3 = vc.u32 %v3143_v2, %v3139_v39  ;;  %v3164_v52 = vsel %vm3163_vm4, 1, %v5787_v3 }
 0x31c   : > { %v3034_v0 = vsel %vm5588_vm1, 0, %v5587_v59  ;;  %v3146_v34 = vsel %vm3145_vm3, 1, %v5787_v3  ;;  %v3165_v56 = vadd.s32 %v3159_v20, %v3155_v22  ;;  %v3138_v51 = vshrl.u32 %v3134_v17, 16 }
 0x31d   : > { %v3035_v10 = vsub.s32 32, %v3034_v0  ;;  %v3039_v55 = vsub.s32 4294967266, %v3034_v0  ;;  %v3148_v5 = vadd.s32 %v3146_v34, %v3144_v11  ;;  %v3036_v12 = vshll.u32 %v3027_v28, %v3034_v0 }
 0x31e   : > { %v3140_v25 = vshrl.u32 %v3135_v18, 16  ;;  %v3166_v44 = vadd.s32 %v3164_v52, %v3158_v33  ;;  %vm3167_vm5 = vc.u32 %v3165_v56, %v3161_v41  ;;  %v3160_v9 = vshrl.u32 %v3156_v13, 16 }
 0x31f   : > { %v3037_v46 = vshrl.u32 %v3019_v61, %v3035_v10  ;;  %v3040_v27 = vadd.s32 127, %v3039_v55  ;;  %v3149_v62 = vadd.s32 %v3148_v5, %v3138_v51  ;;  %v3168_v19 = vsel %vm3167_vm5, 1, %v5787_v3 }
 0x320   : > { %v3170_v42 = vadd.s32 %v3168_v19, %v3166_v44  ;;  %v3235_v36 = vand.u32 2147483647, %v8002_v26  ;;  %v3238_v63 = vand.u32 2139095040, %v8002_v26  ;;  %v3118_v28 = vsel %vm3114_vm0, %v7946_v6, %v3117_v54 }
 0x321   : > { %v3038_v39 = vor.u32 %v3037_v46, %v3036_v12  ;;  %v3041_v22 = vshll.u32 %v3040_v27, 23  ;;  %v3150_v17 = vadd.s32 %v3149_v62, %v3140_v25  ;;  %v3162_v18 = vshrl.u32 %v3157_v40, 16 }
 0x322   : > { %v3171_v59 = vadd.s32 %v3170_v42, %v3160_v9  ;;  %v3239_v61 = vshrl.u32 %v3238_v63, 23  ;;  %v3242_v2 = vand.u32 8388607, %v3235_v36  ;;  %v3050_v13 = vsel %vm2927_vm2, %v3049_v53, %v7972_v60 }
 0x323   : > { %v3042_v20 = vor.u32 4788187, %v3041_v22  ;;  %v3169_v58 = vadd.s32 %v3165_v56, %v3161_v41  ;;  %vm8034_vm6 = vcmp.le.f32.partialorder %v2925_v50, 0.7853982  ;;  %v3119_v6 = vsel %vm3113_vm14, %v3116_v21, %v3118_v28 }
 0x324   : > { %v3172_v40 = vadd.s32 %v3171_v59, %v3162_v18  ;;  %v5592_v54 = vadd.s32 4294967169, %v3239_v61  ;;  %v3045_v0 = vcvt.s32.f32 %v3038_v39  ;;  %v3393_v34 = vand.u32 2139095040, %v8007_v37 }
 0x325   : > { %v3043_v11 = vand.u32 2147483647, %v3042_v20  ;;  %vm3175_vm7 = vc.u32 %v3150_v17, %v3169_v58  ;;  %v3052_v60 = vsel %vm8034_vm6, 0, %v3050_v13  ;;  %v3243_v41 = vor.u32 8388608, %v3242_v2 }
 0x326   : > { %v3176_v53 = vadd.s32 1, %v3172_v40  ;;  %v3245_v52 = vadd.s32 1, %v5592_v54  ;;  %v3173_v56 = vmul.u32 %v7983_v38, %v3119_v6  ;;  %v3394_v14 = vshrl.u32 %v3393_v34, 23 }
 0x327   : > { %v3046_v50 = vmul.f32 %v3045_v0, %v3043_v11  ;;  %v3069_v55 = vadd.s32 3, %v3052_v60  ;;  %v8044_v25 = vshll.u32 %v3243_v41, 8  ;;  %v3390_v44 = vand.u32 2147483647, %v8007_v37 }
 0x328   : > { %v3177_v10 = vsel %vm3175_vm7, %v3176_v53, %v3172_v40  ;;  %vm3246_vm8 = vcmp.gt.s32.totalorder %v3245_v52, 0  ;;  %v5595_v19 = vadd.s32 4294967169, %v3394_v14  ;;  %v8056_v9 = vmul.f32 %v7795_v7, %v6151_v32 }
 0x329   : > { %v3047_v21 = vxor.u32 2147483648, %v3046_v50  ;;  %v3178_v51 = vadd.s32 %v3177_v10, %v3173_v56  ;;  %v3247_v5 = vsel %vm3246_vm8, %v3245_v52, 0  ;;  %v8060_v63 = vand.u32 3, %v3069_v55 }
 0x32a   : > { %v3249_v12 = vand.u32 31, %v3247_v5  ;;  %vm3082_vm10 = vcmp.lt.s32.totalorder %v7840_v47, 0  ;;  %v8063_v22 = vadd.s32 %v3169_v58, %v3150_v17  ;;  %v8066_v28 = vand.u32 65535, %v8044_v25 }
 0x32b   : > { %v3048_v46 = vsel %vm2927_vm2, %v3047_v21, %v3046_v50  ;;  %v3179_v27 = vadd.s32 536870912, %v3178_v51  ;;  %v8069_v18 = vshrl.u32 %v8044_v25, 16  ;;  %v8073_v59 = vand.u32 8388607, %v3390_v44 }
 0x32c   : > { %v8052_v38 = vsel %vm8034_vm6, %v7831_v35, %v3048_v46  ;;  %v3250_v62 = vsub.s32 32, %v3249_v12  ;;  %v8075_v13 = vshrl.u32 %v3247_v5, 5  ;;  %v3252_v33 = vshll.u32 %v9860_v30, %v3249_v12 }
 0x32d   : > { %v3053_v42 = vmul.f32 %v8052_v38, %v8052_v38  ;;  %v3180_v39 = vshrl.u32 %v3179_v27, 30  ;;  %v8080_v6 = vadd.s32 1, %v5595_v19  ;;  %v3255_v60 = vshll.u32 %v9869_v24, %v3249_v12 }
 0x32e   : > { %v3253_v17 = vshrl.u32 %v9869_v24, %v3250_v62  ;;  %v3256_v58 = vshrl.u32 %v9870_v23, %v3250_v62  ;;  %v3262_v0 = vshrl.u32 %v9859_v48, %v3250_v62  ;;  %v3259_v53 = vshrl.u32 %v9858_v45, %v3250_v62 }
 0x32f   : > { %v3054_v61 = vmul.f32 -0.001358992, %v3053_v42  ;;  %v3061_v2 = vmul.f32 -0.00019511016, %v3053_v42  ;;  %v3181_v20 = vshll.u32 %v3180_v39, 30  ;;  %v3204_v34 = vsub.s32 4, %v3180_v39 }
 0x330   : > { %v3261_v41 = vshll.u32 %v9858_v45, %v3249_v12  ;;  %vm8090_vm9 = vcmp.le.f32.partialorder %v3080_v16, 0.7853982  ;;  %v3254_v14 = vor.u32 %v3253_v17, %v3252_v33  ;;  %v8096_v21 = vor.u32 %v3256_v58, %v3255_v60 }
 0x331   : > { %v3055_v40 = vadd.f32 0.041655596, %v3054_v61  ;;  %v3062_v54 = vadd.f32 0.008332121, %v3061_v2  ;;  %v8082_v11 = vsub.s32 %v3178_v51, %v3181_v20  ;;  %v3258_v55 = vshll.u32 %v9870_v23, %v3249_v12 }
 0x332   : > { %v3265_v51 = vshrl.u32 %v9861_v31, %v3250_v62  ;;  %v3263_v19 = vor.u32 %v3262_v0, %v3261_v41  ;;  %vm3072_vm12 = vcmp.eq.s32.totalorder %v8060_v63, 0  ;;  %vm3075_vm14 = vcmp.eq.s32.totalorder %v8060_v63, 2 }
 0x333   : > { %v3056_v52 = vmul.f32 %v3055_v40, %v3053_v42  ;;  %v3063_v50 = vmul.f32 %v3062_v54, %v3053_v42  ;;  %vm3183_vm11 = vcmp.lt.s32.totalorder %v8082_v11, 0  ;;  %v3184_v10 = vsub.s32 0, %v8082_v11 }
 0x334   : > { %v3251_v61 = vshrl.u32 %v9860_v30, %v3250_v62  ;;  %v3260_v2 = vor.u32 %v3259_v53, %v3258_v55  ;;  %v3264_v20 = vshll.u32 %v9859_v48, %v3249_v12  ;;  %vm3071_vm0 = vcmp.lt.s32.totalorder %v8060_v63, 2 }
 0x335   : > { %v3057_v5 = vadd.f32 -0.4999988, %v3056_v52  ;;  %v3064_v46 = vadd.f32 -0.16666654, %v3063_v50  ;;  %v3185_v27 = vsel %vm3183_vm11, %v3184_v10, %v8082_v11  ;;  %v3205_v58 = vsel %vm3082_vm10, %v3204_v34, %v3180_v39 }
 0x336   : > { %v3186_v16 = vclz %v3185_v27  ;;  %vm3267_vm13 = vcmp.lt.s32.totalorder %v8075_v13, 1  ;;  %vm3068_vm15 = vweird.f32 %v7831_v35  ;;  %v3266_v54 = vor.u32 %v3265_v51, %v3264_v20 }
 0x337   : > { %v3058_v33 = vmul.f32 %v3057_v5, %v3053_v42  ;;  %v3065_v17 = vmul.f32 %v3064_v46, %v3053_v42  ;;  %vm3270_vm2 = vcmp.lt.s32.totalorder %v8075_v13, 4  ;;  %v3275_v62 = vsel %vm3267_vm13, %v3254_v14, %v8096_v21 }
 0x338   : > { %v5590_v40 = vadd.s32 4294967294, %v3186_v16  ;;  %vm3269_vm1 = vcmp.lt.s32.totalorder %v8075_v13, 3  ;;  %v3276_v42 = vsel %vm3270_vm2, %v3263_v19, 920167782  ;;  %vm3268_vm4 = vcmp.lt.s32.totalorder %v8075_v13, 2 }
 0x339   : > { %v3059_v12 = vadd.f32 1.0, %v3058_v33  ;;  %v3066_v0 = vadd.f32 1.0, %v3065_v17  ;;  %v3277_v39 = vsel %vm3269_vm1, %v3260_v2, %v3276_v42  ;;  %v3279_v34 = vsel %vm3267_vm13, %v8096_v21, %v3260_v2 }
 0x33a   : > { %vm5591_vm3 = vcmp.lt.s32.totalorder %v5590_v40, 0  ;;  %v3278_v52 = vsel %vm3268_vm4, %v3275_v62, %v3277_v39  ;;  %v3207_v55 = vsel %vm8090_vm9, 0, %v3205_v58  ;;  %v3280_v51 = vsel %vm3270_vm2, %v3266_v54, 1326507024 }
 0x33b   : > { %v3067_v60 = vmul.f32 %v3066_v0, %v8052_v38  ;;  %v3076_v53 = vxor.u32 2147483648, %v3059_v12  ;;  %v3189_v41 = vsel %vm5591_vm3, 0, %v5590_v40  ;;  %v3281_v27 = vsel %vm3269_vm1, %v3263_v19, %v3280_v51 }
 0x33c   : > { %v3190_v50 = vsub.s32 32, %v3189_v41  ;;  %v3194_v10 = vsub.s32 4294967266, %v3189_v41  ;;  %v3191_v46 = vshll.u32 %v8082_v11, %v3189_v41  ;;  %v3308_v38 = vand.u32 65535, %v3278_v52 }
 0x33d   : > { %v3073_v5 = vxor.u32 2147483648, %v3067_v60  ;;  %v3282_v33 = vsel %vm3268_vm4, %v3279_v34, %v3281_v27  ;;  %v3309_v17 = vshrl.u32 %v3278_v52, 16  ;;  %v3077_v40 = vsel %vm3075_vm14, %v3076_v53, %v3067_v60 }
 0x33e   : > { %v3192_v16 = vshrl.u32 %v8063_v22, %v3190_v50  ;;  %v3195_v20 = vadd.s32 127, %v3194_v10  ;;  %v3286_v54 = vand.u32 65535, %v3282_v33  ;;  %v3287_v11 = vshrl.u32 %v3282_v33, 16 }
 0x33f   : > { %v3074_v58 = vsel %vm3072_vm12, %v3059_v12, %v3073_v5  ;;  %v3311_v22 = vmul.u32 %v3309_v17, %v8066_v28  ;;  %v3224_v39 = vadd.s32 3, %v3207_v55  ;;  %v3271_v60 = vsel %vm3267_vm13, %v3251_v61, %v3254_v14 }
 0x340   : > { %v3078_v19 = vsel %vm3071_vm0, %v3074_v58, %v3077_v40  ;;  %v3193_v62 = vor.u32 %v3192_v16, %v3191_v46  ;;  %v3196_v0 = vshll.u32 %v3195_v20, 23  ;;  %v3289_v34 = vmul.u32 %v3287_v11, %v8066_v28 }
 0x341   : > { %v3079_v42 = vsel %vm3068_vm15, nan, %v3078_v19  ;;  %v3290_v12 = vmul.u32 %v3286_v54, %v8069_v18  ;;  %v3272_v63 = vsel %vm3270_vm2, %v3260_v2, 2102212464  ;;  %v3312_v53 = vmul.u32 %v3308_v38, %v8069_v18 }
 0x342   : > { %v3197_v41 = vor.u32 4788187, %v3196_v0  ;;  %5405 = vst [vmem:[%s6274_s10 + $0x80] sm:$0xff] %v3079_v42  ;;  %v3200_v52 = vcvt.s32.f32 %v3193_v62  ;;  %v3288_v50 = vmul.u32 %v3286_v54, %v8066_v28  ;;  %v3292_v35 = vshll.u32 %v3289_v34, 16 }
 0x343   : > { %v3310_v10 = vmul.u32 %v3308_v38, %v8066_v28  ;;  %v3291_v51 = vmul.u32 %v3287_v11, %v8069_v18  ;;  %v3294_v5 = vshll.u32 %v3290_v12, 16  ;;  %v3314_v46 = vshll.u32 %v3311_v22, 16 }
 0x344   : > { %v3198_v55 = vand.u32 2147483647, %v3197_v41  ;;  %vm3296_vm5 = vc.u32 %v3288_v50, %v3292_v35  ;;  %v3298_v27 = vadd.s32 %v3292_v35, %v3288_v50  ;;  %v3313_v14 = vmul.u32 %v3309_v17, %v8069_v18 }
 0x345   : > { %v3316_v61 = vshll.u32 %v3312_v53, 16  ;;  %v3297_v16 = vsel %vm3296_vm5, 1, %v5787_v3  ;;  %vm3318_vm6 = vc.u32 %v3310_v10, %v3314_v46  ;;  %v3320_v20 = vadd.s32 %v3314_v46, %v3310_v10 }
 0x346   : > { %v3201_v2 = vmul.f32 %v3200_v52, %v3198_v55  ;;  %v3273_v33 = vsel %vm3269_vm1, %v8096_v21, %v3272_v63  ;;  %v3299_v28 = vadd.s32 %v3297_v16, %v3291_v51  ;;  %vm3300_vm7 = vc.u32 %v3298_v27, %v3294_v5 }
 0x347   : > { %v3319_v38 = vsel %vm3318_vm6, 1, %v5787_v3  ;;  %v3301_v40 = vsel %vm3300_vm7, 1, %v5787_v3  ;;  %vm3322_vm8 = vc.u32 %v3320_v20, %v3316_v61  ;;  %v3293_v18 = vshrl.u32 %v3289_v34, 16 }
 0x348   : > { %v3202_v58 = vxor.u32 2147483648, %v3201_v2  ;;  %v3321_v54 = vadd.s32 %v3319_v38, %v3313_v14  ;;  %v3303_v17 = vadd.s32 %v3301_v40, %v3299_v28  ;;  %v3323_v11 = vsel %vm3322_vm8, 1, %v5787_v3 }
 0x349   : > { %vm3401_vm11 = vcmp.gt.s32.totalorder %v8080_v6, 0  ;;  %v3315_v62 = vshrl.u32 %v3311_v22, 16  ;;  %v3295_v41 = vshrl.u32 %v3290_v12, 16  ;;  %v3274_v50 = vsel %vm3268_vm4, %v3271_v60, %v3273_v33 }
 0x34a   : > { %v3203_v19 = vsel %vm3082_vm10, %v3202_v58, %v3201_v2  ;;  %v3325_v21 = vadd.s32 %v3323_v11, %v3321_v54  ;;  %v3402_v0 = vsel %vm3401_vm11, %v8080_v6, 0  ;;  %v3304_v63 = vadd.s32 %v3303_v17, %v3293_v18 }
 0x34b   : > { %v3206_v42 = vsel %vm8090_vm9, %v7840_v47, %v3203_v19  ;;  %v3404_v52 = vand.u32 31, %v3402_v0  ;;  %v3317_v35 = vshrl.u32 %v3312_v53, 16  ;;  %v8175_v55 = vmul.f32 %v7825_v29, %v6151_v32 }
 0x34c   : > { %v3208_v34 = vmul.f32 %v3206_v42, %v3206_v42  ;;  %v3326_v10 = vadd.s32 %v3325_v21, %v3315_v62  ;;  %v8177_v22 = vadd.s32 %v3304_v63, %v3295_v41  ;;  %v8179_v6 = vadd.s32 %v3320_v20, %v3316_v61 }
 0x34d   : > { %v8181_v51 = vsub.s32 32, %v3404_v52  ;;  %v3398_v46 = vor.u32 8388608, %v8073_v59  ;;  %v8184_v27 = vand.u32 3, %v3224_v39  ;;  %v3328_v13 = vmul.u32 %v8044_v25, %v3274_v50 }
 0x34e   : > { %v3209_v56 = vmul.f32 -0.001358992, %v3208_v34  ;;  %v3216_v12 = vmul.f32 -0.00019511016, %v3208_v34  ;;  %v3327_v5 = vadd.s32 %v3326_v10, %v3317_v35  ;;  %vm3330_vm10 = vc.u32 %v8177_v22, %v8179_v6 }
 0x34f   : > { %v8189_v32 = vshrl.u32 %v3402_v0, 5  ;;  %v3408_v61 = vshrl.u32 %v9869_v24, %v8181_v51  ;;  %v3411_v2 = vshrl.u32 %v9870_v23, %v8181_v51  ;;  %v3414_v59 = vshrl.u32 %v9858_v45, %v8181_v51 }
 0x350   : > { %v3210_v60 = vadd.f32 0.041655596, %v3209_v56  ;;  %v3217_v53 = vadd.f32 0.008332121, %v3216_v12  ;;  %v3331_v14 = vadd.s32 1, %v3327_v5  ;;  %v3416_v39 = vshll.u32 %v9858_v45, %v3404_v52 }
 0x351   : > { %v3417_v25 = vshrl.u32 %v9859_v48, %v8181_v51  ;;  %v3407_v28 = vshll.u32 %v9860_v30, %v3404_v52  ;;  %v3410_v58 = vshll.u32 %v9869_v24, %v3404_v52  ;;  %v3413_v40 = vshll.u32 %v9870_v23, %v3404_v52 }
 0x352   : > { %v3211_v16 = vmul.f32 %v3210_v60, %v3208_v34  ;;  %v3218_v20 = vmul.f32 %v3217_v53, %v3208_v34  ;;  %v3332_v33 = vsel %vm3330_vm10, %v3331_v14, %v3327_v5  ;;  %v3419_v11 = vshll.u32 %v9859_v48, %v3404_v52 }
 0x353   : > { %v3333_v38 = vadd.s32 %v3332_v33, %v3328_v13  ;;  %v3418_v54 = vor.u32 %v3417_v25, %v3416_v39  ;;  %v3420_v19 = vshrl.u32 %v9861_v31, %v8181_v51  ;;  %v8206_v21 = vor.u32 %v3408_v61, %v3407_v28 }
 0x354   : > { %v3212_v18 = vadd.f32 -0.4999988, %v3211_v16  ;;  %v3219_v17 = vadd.f32 -0.16666654, %v3218_v20  ;;  %v8208_v0 = vor.u32 %v3411_v2, %v3410_v58  ;;  %v3415_v41 = vor.u32 %v3414_v59, %v3413_v40 }
 0x355   : > { %v3334_v62 = vadd.s32 536870912, %v3333_v38  ;;  %v3421_v35 = vor.u32 %v3420_v19, %v3419_v11  ;;  %vm3425_vm9 = vcmp.lt.s32.totalorder %v8189_v32, 4  ;;  %vm3223_vm12 = vweird.f32 %v7840_v47 }
 0x356   : > { %v3213_v63 = vmul.f32 %v3212_v18, %v3208_v34  ;;  %v3220_v50 = vmul.f32 %v3219_v17, %v3208_v34  ;;  %vm3226_vm14 = vcmp.lt.s32.totalorder %v8184_v27, 2  ;;  %v3431_v52 = vsel %vm3425_vm9, %v3418_v54, 920167782 }
 0x357   : > { %v8213_v10 = vshrl.u32 %v3334_v62, 30  ;;  %vm3422_vm0 = vcmp.lt.s32.totalorder %v8189_v32, 1  ;;  %vm3424_vm13 = vcmp.lt.s32.totalorder %v8189_v32, 3  ;;  %v8226_v60 = vshll.u32 %v3398_v46, 8 }
 0x358   : > { %v3214_v56 = vadd.f32 1.0, %v3213_v63  ;;  %v3221_v12 = vadd.f32 1.0, %v3220_v50  ;;  %v3430_v5 = vsel %vm3422_vm0, %v8206_v21, %v8208_v0  ;;  %v3432_v13 = vsel %vm3424_vm13, %v3415_v41, %v3431_v52 }
 0x359   : > { %v3336_v34 = vshll.u32 %v8213_v10, 30  ;;  %v3434_v61 = vsel %vm3422_vm0, %v8208_v0, %v3415_v41  ;;  %v3435_v2 = vsel %vm3425_vm9, %v3421_v35, 1326507024  ;;  %vm3227_vm15 = vcmp.eq.s32.totalorder %v8184_v27, 0 }
 0x35a   : > { %v3222_v53 = vmul.f32 %v3221_v12, %v3206_v42  ;;  %v3231_v14 = vxor.u32 2147483648, %v3214_v56  ;;  %vm3423_vm2 = vcmp.lt.s32.totalorder %v8189_v32, 2  ;;  %v3436_v39 = vsel %vm3424_vm13, %v3418_v54, %v3435_v2 }
 0x35b   : > { %v3337_v59 = vsub.s32 %v3333_v38, %v3336_v34  ;;  %vm3230_vm1 = vcmp.eq.s32.totalorder %v8184_v27, 2  ;;  %v3433_v42 = vsel %vm3423_vm2, %v3430_v5, %v3432_v13  ;;  %v3437_v46 = vsel %vm3423_vm2, %v3434_v61, %v3436_v39 }
 0x35c   : > { %v3228_v25 = vxor.u32 2147483648, %v3222_v53  ;;  %v3439_v20 = vand.u32 65535, %v8226_v60  ;;  %v3441_v33 = vand.u32 65535, %v3437_v46  ;;  %v3232_v38 = vsel %vm3230_vm1, %v3231_v14, %v3222_v53 }
 0x35d   : > { %vm3338_vm3 = vcmp.lt.s32.totalorder %v3337_v59, 0  ;;  %v3339_v16 = vsub.s32 0, %v3337_v59  ;;  %v3440_v58 = vshrl.u32 %v8226_v60, 16  ;;  %v3442_v40 = vshrl.u32 %v3437_v46, 16 }
 0x35e   : > { %v3229_v28 = vsel %vm3227_vm15, %v3214_v56, %v3228_v25  ;;  %v3463_v17 = vand.u32 65535, %v3433_v42  ;;  %v3464_v11 = vshrl.u32 %v3433_v42, 16  ;;  %v8250_v35 = vadd.f32 %v8056_v9, %v6286_v8 }
 0x35f   : > { %v3233_v54 = vsel %vm3226_vm14, %v3229_v28, %v3232_v38  ;;  %v3340_v18 = vsel %vm3338_vm3, %v3339_v16, %v3337_v59  ;;  %v3444_v63 = vmul.u32 %v3442_v40, %v3439_v20  ;;  %v3445_v50 = vmul.u32 %v3441_v33, %v3440_v58 }
 0x360   : > { %v3234_v19 = vsel %vm3223_vm12, nan, %v3233_v54  ;;  %v3341_v62 = vclz %v3340_v18  ;;  %v8254_v52 = vadd.f32 %v8175_v55, %v6286_v8  ;;  %v3329_v27 = vadd.s32 %v8179_v6, %v8177_v22 }
 0x361   : > { %v3406_v56 = vshrl.u32 %v9860_v30, %v8181_v51  ;;  %5406 = vst [vmem:[%s6274_s10 + $0x88] sm:$0xff] %v3234_v19  ;;  %v3427_v12 = vsel %vm3425_vm9, %v3415_v41, 2102212464  ;;  %v3443_v34 = vmul.u32 %v3441_v33, %v3439_v20  ;;  %v3447_v5 = vshll.u32 %v3444_v63, 16 }
 0x362   : > { %v5593_v47 = vadd.s32 4294967294, %v3341_v62  ;;  %v3359_v9 = vsub.s32 4, %v8213_v10  ;;  %v3446_v13 = vmul.u32 %v3442_v40, %v3440_v58  ;;  %v3465_v53 = vmul.u32 %v3463_v17, %v3439_v20 }
 0x363   : > { %v3466_v14 = vmul.u32 %v3464_v11, %v3439_v20  ;;  %v3449_v8 = vshll.u32 %v3445_v50, 16  ;;  %vm3451_vm5 = vc.u32 %v3443_v34, %v3447_v5  ;;  %v3453_v55 = vadd.s32 %v3447_v5, %v3443_v34 }
 0x364   : > { %vm5594_vm4 = vcmp.lt.s32.totalorder %v5593_v47, 0  ;;  %v3452_v6 = vsel %vm3451_vm5, 1, %v5787_v3  ;;  %v3467_v51 = vmul.u32 %v3463_v17, %v3440_v58  ;;  %v3448_v25 = vshrl.u32 %v3444_v63, 16 }
 0x365   : > { %v3344_v22 = vsel %vm5594_vm4, 0, %v5593_v47  ;;  %v3469_v61 = vshll.u32 %v3466_v14, 16  ;;  %v3454_v41 = vadd.s32 %v3452_v6, %v3446_v13  ;;  %vm3455_vm6 = vc.u32 %v3453_v55, %v3449_v8 }
 0x366   : > { %v3345_v2 = vsub.s32 32, %v3344_v22  ;;  %v3349_v39 = vsub.s32 4294967266, %v3344_v22  ;;  %v3346_v42 = vshll.u32 %v3337_v59, %v3344_v22  ;;  %v3468_v46 = vmul.u32 %v3464_v11, %v3440_v58 }
 0x367   : > { %vm3473_vm7 = vc.u32 %v3465_v53, %v3469_v61  ;;  %v3456_v20 = vsel %vm3455_vm6, 1, %v5787_v3  ;;  %v3471_v40 = vshll.u32 %v3467_v51, 16  ;;  %v3475_v54 = vadd.s32 %v3469_v61, %v3465_v53 }
 0x368   : > { %v3347_v16 = vshrl.u32 %v3329_v27, %v3345_v2  ;;  %v3350_v33 = vadd.s32 127, %v3349_v39  ;;  %v3474_v28 = vsel %vm3473_vm7, 1, %v5787_v3  ;;  %v3458_v38 = vadd.s32 %v3456_v20, %v3454_v41 }
 0x369   : > { %v3476_v18 = vadd.s32 %v3474_v28, %v3468_v46  ;;  %vm3237_vm8 = vcmp.lt.s32.totalorder %v8002_v26, 0  ;;  %v3426_v59 = vsel %vm3422_vm0, %v3406_v56, %v8206_v21  ;;  %v3428_v58 = vsel %vm3424_vm13, %v8208_v0, %v3427_v12 }
 0x36a   : > { %v3348_v17 = vor.u32 %v3347_v16, %v3346_v42  ;;  %v3351_v19 = vshll.u32 %v3350_v33, 23  ;;  %v3459_v11 = vadd.s32 %v3458_v38, %v3448_v25  ;;  %vm3477_vm11 = vc.u32 %v3475_v54, %v3471_v40 }
 0x36b   : > { %v3548_v62 = vand.u32 2139095040, %v8250_v35  ;;  %v3450_v27 = vshrl.u32 %v3445_v50, 16  ;;  %v3478_v47 = vsel %vm3477_vm11, 1, %v5787_v3  ;;  %v3545_v34 = vand.u32 2147483647, %v8250_v35 }
 0x36c   : > { %v3352_v63 = vor.u32 4788187, %v3351_v19  ;;  %v3360_v5 = vsel %vm3237_vm8, %v3359_v9, %v8213_v10  ;;  %v3470_v13 = vshrl.u32 %v3466_v14, 16  ;;  %v3480_v21 = vadd.s32 %v3478_v47, %v3476_v18 }
 0x36d   : > { %v3549_v56 = vshrl.u32 %v3548_v62, 23  ;;  %vm8282_vm10 = vcmp.le.f32.partialorder %v3235_v36, 0.7853982  ;;  %v3355_v53 = vcvt.s32.f32 %v3348_v17  ;;  %v3460_v50 = vadd.s32 %v3459_v11, %v3450_v27 }
 0x36e   : > { %v3353_v12 = vand.u32 2147483647, %v3352_v63  ;;  %v3429_v8 = vsel %vm3423_vm2, %v3426_v59, %v3428_v58  ;;  %v3472_v55 = vshrl.u32 %v3467_v51, 16  ;;  %v3481_v22 = vadd.s32 %v3480_v21, %v3470_v13 }
 0x36f   : > { %v5598_v6 = vadd.s32 4294967169, %v3549_v56  ;;  %v3362_v10 = vsel %vm8282_vm10, 0, %v3360_v5  ;;  %v3479_v9 = vadd.s32 %v3475_v54, %v3471_v40  ;;  %v3552_v36 = vand.u32 8388607, %v3545_v34 }
 0x370   : > { %v3356_v61 = vmul.f32 %v3355_v53, %v3353_v12  ;;  %v3482_v14 = vadd.s32 %v3481_v22, %v3472_v55  ;;  %v3379_v25 = vadd.s32 3, %v3362_v10  ;;  %v3483_v41 = vmul.u32 %v8226_v60, %v3429_v8 }
 0x371   : > { %v3555_v2 = vadd.s32 1, %v5598_v6  ;;  %vm3485_vm9 = vc.u32 %v3460_v50, %v3479_v9  ;;  %v3553_v42 = vor.u32 8388608, %v3552_v36  ;;  %v3700_v16 = vand.u32 2147483647, %v8254_v52 }
 0x372   : > { %v3357_v39 = vxor.u32 2147483648, %v3356_v61  ;;  %v3486_v32 = vadd.s32 1, %v3482_v14  ;;  %v3703_v38 = vand.u32 2139095040, %v8254_v52  ;;  %v8302_v60 = vmul.f32 %v7795_v7, %v6209_v15 }
 0x373   : > { %vm3556_vm12 = vcmp.gt.s32.totalorder %v3555_v2, 0  ;;  %v8306_v59 = vand.u32 3, %v3379_v25  ;;  %v8308_v11 = vadd.s32 %v3479_v9, %v3460_v50  ;;  %v8310_v62 = vshll.u32 %v3553_v42, 8 }
 0x374   : > { %v3358_v51 = vsel %vm3237_vm8, %v3357_v39, %v3356_v61  ;;  %v3557_v46 = vsel %vm3556_vm12, %v3555_v2, 0  ;;  %v3487_v20 = vsel %vm3485_vm9, %v3486_v32, %v3482_v14  ;;  %v3704_v63 = vshrl.u32 %v3703_v38, 23 }
 0x375   : > { %v3361_v33 = vsel %vm8282_vm10, %v8002_v26, %v3358_v51  ;;  %v3559_v28 = vand.u32 31, %v3557_v46  ;;  %v3488_v54 = vadd.s32 %v3487_v20, %v3483_v41  ;;  %v8314_v27 = vand.u32 8388607, %v3700_v16 }
 0x376   : > { %v3363_v40 = vmul.f32 %v3361_v33, %v3361_v33  ;;  %v8318_v56 = vshrl.u32 %v3557_v46, 5  ;;  %vm3392_vm14 = vcmp.lt.s32.totalorder %v8007_v37, 0  ;;  %vm3385_vm0 = vcmp.eq.s32.totalorder %v8306_v59, 2 }
 0x377   : > { %v8304_v18 = vsub.s32 32, %v3559_v28  ;;  %v3489_v58 = vadd.s32 536870912, %v3488_v54  ;;  %v3562_v22 = vshll.u32 %v9860_v30, %v3559_v28  ;;  %v3565_v6 = vshll.u32 %v9869_v24, %v3559_v28 }
 0x378   : > { %v3364_v17 = vmul.f32 -0.001358992, %v3363_v40  ;;  %v3371_v19 = vmul.f32 -0.00019511016, %v3363_v40  ;;  %v3568_v61 = vshll.u32 %v9870_v23, %v3559_v28  ;;  %v3571_v10 = vshll.u32 %v9858_v45, %v3559_v28 }
 0x379   : > { %v3490_v13 = vshrl.u32 %v3489_v58, 30  ;;  %v3563_v21 = vshrl.u32 %v9869_v24, %v8304_v18  ;;  %v3566_v0 = vshrl.u32 %v9870_v23, %v8304_v18  ;;  %v3569_v12 = vshrl.u32 %v9858_v45, %v8304_v18 }
 0x37a   : > { %v3365_v47 = vadd.f32 0.041655596, %v3364_v17  ;;  %v3372_v5 = vadd.f32 0.008332121, %v3371_v19  ;;  %v3572_v53 = vshrl.u32 %v9859_v48, %v8304_v18  ;;  %v3575_v9 = vshrl.u32 %v9861_v31, %v8304_v18 }
 0x37b   : > { %v3491_v55 = vshll.u32 %v3490_v13, 30  ;;  %v3564_v39 = vor.u32 %v3563_v21, %v3562_v22  ;;  %vm3382_vm13 = vcmp.eq.s32.totalorder %v8306_v59, 0  ;;  %v8337_v25 = vor.u32 %v3566_v0, %v3565_v6 }
 0x37c   : > { %v3366_v50 = vmul.f32 %v3365_v47, %v3363_v40  ;;  %v3373_v8 = vmul.f32 %v3372_v5, %v3363_v40  ;;  %v3570_v41 = vor.u32 %v3569_v12, %v3568_v61  ;;  %v3573_v32 = vor.u32 %v3572_v53, %v3571_v10 }
 0x37d   : > { %v8334_v2 = vsub.s32 %v3488_v54, %v3491_v55  ;;  %v3574_v51 = vshll.u32 %v9859_v48, %v3559_v28  ;;  %vm3381_vm15 = vcmp.lt.s32.totalorder %v8306_v59, 2  ;;  %vm3378_vm1 = vweird.f32 %v8002_v26 }
 0x37e   : > { %v3367_v36 = vadd.f32 -0.4999988, %v3366_v50  ;;  %v3374_v14 = vadd.f32 -0.16666654, %v3373_v8  ;;  %vm8346_vm3 = vcmp.le.f32.partialorder %v3390_v44, 0.7853982 }
 0x37f   : > { %vm3493_vm2 = vcmp.lt.s32.totalorder %v8334_v2, 0  ;;  %v3494_v20 = vsub.s32 0, %v8334_v2  ;;  %v3514_v54 = vsub.s32 4, %v3490_v13  ;;  %v3576_v17 = vor.u32 %v3575_v9, %v3574_v51 }
 0x380   : > { %v3368_v42 = vmul.f32 %v3367_v36, %v3363_v40  ;;  %v3375_v46 = vmul.f32 %v3374_v14, %v3363_v40  ;;  %vm3577_vm4 = vcmp.lt.s32.totalorder %v8318_v56, 1  ;;  %v3594_v28 = vand.u32 65535, %v8310_v62 }
 0x381   : > { %v3495_v58 = vsel %vm3493_vm2, %v3494_v20, %v8334_v2  ;;  %vm3580_vm5 = vcmp.lt.s32.totalorder %v8318_v56, 4  ;;  %vm3579_vm6 = vcmp.lt.s32.totalorder %v8318_v56, 3  ;;  %v3585_v44 = vsel %vm3577_vm4, %v3564_v39, %v8337_v25 }
 0x382   : > { %v3369_v40 = vadd.f32 1.0, %v3368_v42  ;;  %v3376_v19 = vadd.f32 1.0, %v3375_v46  ;;  %v3496_v47 = vclz %v3495_v58  ;;  %v3586_v5 = vsel %vm3580_vm5, %v3573_v32, 920167782 }
 0x383   : > { %v3587_v12 = vsel %vm3579_vm6, %v3570_v41, %v3586_v5  ;;  %v3595_v53 = vshrl.u32 %v8310_v62, 16  ;;  %vm3578_vm7 = vcmp.lt.s32.totalorder %v8318_v56, 2  ;;  %v3589_v8 = vsel %vm3577_vm4, %v8337_v25, %v3570_v41 }
 0x384   : > { %v3377_v21 = vmul.f32 %v3376_v19, %v3361_v33  ;;  %v3386_v0 = vxor.u32 2147483648, %v3369_v40  ;;  %v5596_v50 = vadd.s32 4294967294, %v3496_v47  ;;  %v5601_v55 = vadd.s32 4294967169, %v3704_v63 }
 0x385   : > { %v8369_v6 = vsel %vm3392_vm14, %v3514_v54, %v3490_v13  ;;  %v3588_v33 = vsel %vm3578_vm7, %v3585_v44, %v3587_v12  ;;  %v3590_v61 = vsel %vm3580_vm5, %v3576_v17, 1326507024  ;;  %v3561_v54 = vshrl.u32 %v9860_v30, %v8304_v18 }
 0x386   : > { %v3383_v22 = vxor.u32 2147483648, %v3377_v21  ;;  %v3387_v10 = vsel %vm3385_vm0, %v3386_v0, %v3377_v21  ;;  %vm5597_vm8 = vcmp.lt.s32.totalorder %v5596_v50, 0  ;;  %v3591_v9 = vsel %vm3579_vm6, %v3573_v32, %v3590_v61 }
 0x387   : > { %v3619_v36 = vshrl.u32 %v3588_v33, 16  ;;  %v3499_v13 = vsel %vm5597_vm8, 0, %v5596_v50  ;;  %v3592_v14 = vsel %vm3578_vm7, %v3589_v8, %v3591_v9  ;;  %v3618_v51 = vand.u32 65535, %v3588_v33 }
 0x388   : > { %v3384_v63 = vsel %vm3382_vm13, %v3369_v40, %v3383_v22  ;;  %v3500_v46 = vsub.s32 32, %v3499_v13  ;;  %v3504_v20 = vsub.s32 4294967266, %v3499_v13  ;;  %v3517_v17 = vsel %vm8346_vm3, 0, %v8369_v6 }
 0x389   : > { %v3388_v42 = vsel %vm3381_vm15, %v3384_v63, %v3387_v10  ;;  %v3596_v40 = vand.u32 65535, %v3592_v14  ;;  %v3597_v19 = vshrl.u32 %v3592_v14, 16  ;;  %v3501_v58 = vshll.u32 %v8334_v2, %v3499_v13 }
 0x38a   : > { %v3389_v32 = vsel %vm3378_vm1, nan, %v3388_v42  ;;  %v3502_v47 = vshrl.u32 %v8308_v11, %v3500_v46  ;;  %v3505_v59 = vadd.s32 127, %v3504_v20  ;;  %v3621_v44 = vmul.u32 %v3619_v36, %v3594_v28 }
 0x38b   : > { %5407 = vst [vmem:[%s6274_s10 + $0x90] sm:$0xff] %v3389_v32  ;;  %v3581_v5 = vsel %vm3577_vm4, %v3561_v54, %v3564_v39  ;;  %v3599_v18 = vmul.u32 %v3597_v19, %v3594_v28  ;;  %v3600_v21 = vmul.u32 %v3596_v40, %v3595_v53  ;;  %v3622_v26 = vmul.u32 %v3618_v51, %v3595_v53 }
 0x38c   : > { %v3503_v0 = vor.u32 %v3502_v47, %v3501_v58  ;;  %v3506_v12 = vshll.u32 %v3505_v59, 23  ;;  %v3582_v50 = vsel %vm3580_vm5, %v3570_v41, 2102212464  ;;  %v3624_v8 = vshll.u32 %v3621_v44, 16 }
 0x38d   : > { %v3598_v22 = vmul.u32 %v3596_v40, %v3594_v28  ;;  %v3601_v6 = vmul.u32 %v3597_v19, %v3595_v53  ;;  %v3602_v2 = vshll.u32 %v3599_v18, 16  ;;  %v3620_v33 = vmul.u32 %v3618_v51, %v3594_v28 }
 0x38e   : > { %v3507_v11 = vor.u32 4788187, %v3506_v12  ;;  %v3510_v61 = vcvt.s32.f32 %v3503_v0  ;;  %v3604_v10 = vshll.u32 %v3600_v21, 16  ;;  %v3623_v9 = vmul.u32 %v3619_v36, %v3595_v53 }
 0x38f   : > { %vm3606_vm11 = vc.u32 %v3598_v22, %v3602_v2  ;;  %v3608_v63 = vadd.s32 %v3602_v2, %v3598_v22  ;;  %v3626_v39 = vshll.u32 %v3622_v26, 16  ;;  %vm3628_vm10 = vc.u32 %v3620_v33, %v3624_v8 }
 0x390   : > { %v3508_v13 = vand.u32 2147483647, %v3507_v11  ;;  %v3607_v14 = vsel %vm3606_vm11, 1, %v5787_v3  ;;  %v3629_v42 = vsel %vm3628_vm10, 1, %v5787_v3  ;;  %v3630_v46 = vadd.s32 %v3624_v8, %v3620_v33 }
 0x391   : > { %v3609_v41 = vadd.s32 %v3607_v14, %v3601_v6  ;;  %vm3610_vm9 = vc.u32 %v3608_v63, %v3604_v10  ;;  %v3631_v20 = vadd.s32 %v3629_v42, %v3623_v9  ;;  %v3710_v54 = vadd.s32 1, %v5601_v55 }
 0x392   : > { %v3511_v32 = vmul.f32 %v3510_v61, %v3508_v13  ;;  %v3583_v28 = vsel %vm3579_vm6, %v8337_v25, %v3582_v50  ;;  %v3611_v53 = vsel %vm3610_vm9, 1, %v5787_v3  ;;  %vm3632_vm12 = vc.u32 %v3630_v46, %v3626_v39 }
 0x393   : > { %v3603_v36 = vshrl.u32 %v3599_v18, 16  ;;  %v3613_v51 = vadd.s32 %v3611_v53, %v3609_v41  ;;  %v3633_v40 = vsel %vm3632_vm12, 1, %v5787_v3  ;;  %vm3711_vm0 = vcmp.gt.s32.totalorder %v3710_v54, 0 }
 0x394   : > { %v3512_v19 = vxor.u32 2147483648, %v3511_v32  ;;  %v3625_v58 = vshrl.u32 %v3621_v44, 16  ;;  %v3635_v47 = vadd.s32 %v3633_v40, %v3631_v20  ;;  %v3712_v59 = vsel %vm3711_vm0, %v3710_v54, 0 }
 0x395   : > { %v3534_v0 = vadd.s32 3, %v3517_v17  ;;  %v3605_v12 = vshrl.u32 %v3600_v21, 16  ;;  %v3614_v55 = vadd.s32 %v3613_v51, %v3603_v36  ;;  %v3714_v8 = vand.u32 31, %v3712_v59 }
 0x396   : > { %v3513_v22 = vsel %vm3392_vm14, %v3512_v19, %v3511_v32  ;;  %v3584_v25 = vsel %vm3578_vm7, %v3581_v5, %v3583_v28  ;;  %v3627_v50 = vshrl.u32 %v3622_v26, 16  ;;  %v3636_v18 = vadd.s32 %v3635_v47, %v3625_v58 }
 0x397   : > { %v8413_v6 = vsel %vm8346_vm3, %v8007_v37, %v3513_v22  ;;  %v8415_v44 = vadd.s32 %v3614_v55, %v3605_v12  ;;  %v8417_v2 = vadd.s32 %v3630_v46, %v3626_v39  ;;  %v8419_v17 = vsub.s32 32, %v3714_v8 }
 0x398   : > { %v8423_v21 = vadd.f32 %v8302_v60, %v6539_v4  ;;  %v3518_v56 = vmul.f32 %v8413_v6, %v8413_v6  ;;  %v3637_v5 = vadd.s32 %v3636_v18, %v3627_v50  ;;  %v3708_v26 = vor.u32 8388608, %v8314_v27 }
 0x399   : > { %v8428_v33 = vand.u32 3, %v3534_v0  ;;  %v3638_v38 = vmul.u32 %v8310_v62, %v3584_v25  ;;  %vm3640_vm14 = vc.u32 %v8415_v44, %v8417_v2  ;;  %v8433_v11 = vshrl.u32 %v3712_v59, 5 }
 0x39a   : > { %v3519_v61 = vmul.f32 -0.001358992, %v3518_v56  ;;  %v3526_v10 = vmul.f32 -0.00019511016, %v3518_v56  ;;  %v3641_v9 = vadd.s32 1, %v3637_v5  ;;  %v3718_v60 = vshrl.u32 %v9869_v24, %v8419_v17 }
 0x39b   : > { %v3721_v63 = vshrl.u32 %v9870_v23, %v8419_v17  ;;  %v3724_v27 = vshrl.u32 %v9858_v45, %v8419_v17  ;;  %v3726_v39 = vshll.u32 %v9858_v45, %v3714_v8  ;;  %v3727_v62 = vshrl.u32 %v9859_v48, %v8419_v17 }
 0x39c   : > { %v3520_v13 = vadd.f32 0.041655596, %v3519_v61  ;;  %v3527_v14 = vadd.f32 0.008332121, %v3526_v10  ;;  %v3642_v42 = vsel %vm3640_vm14, %v3641_v9, %v3637_v5  ;;  %v3717_v46 = vshll.u32 %v9860_v30, %v3714_v8 }
 0x39d   : > { %v3643_v41 = vadd.s32 %v3642_v42, %v3638_v38  ;;  %v3720_v20 = vshll.u32 %v9869_v24, %v3714_v8  ;;  %v3723_v54 = vshll.u32 %v9870_v23, %v3714_v8  ;;  %v3728_v32 = vor.u32 %v3727_v62, %v3726_v39 }
 0x39e   : > { %v3521_v28 = vmul.f32 %v3520_v13, %v3518_v56  ;;  %v3528_v53 = vmul.f32 %v3527_v14, %v3518_v56  ;;  %v3729_v36 = vshll.u32 %v9859_v48, %v3714_v8  ;;  %v3730_v51 = vshrl.u32 %v9861_v31, %v8419_v17 }
 0x39f   : > { %v3644_v40 = vadd.s32 536870912, %v3643_v41  ;;  %v8450_v19 = vor.u32 %v3718_v60, %v3717_v46  ;;  %v8452_v58 = vor.u32 %v3721_v63, %v3720_v20  ;;  %v3725_v47 = vor.u32 %v3724_v27, %v3723_v54 }
 0x3a0   : > { %v3522_v59 = vadd.f32 -0.4999988, %v3521_v28  ;;  %v3529_v0 = vadd.f32 -0.16666654, %v3528_v53  ;;  %v3731_v12 = vor.u32 %v3730_v51, %v3729_v36  ;;  %vm3735_vm13 = vcmp.lt.s32.totalorder %v8433_v11, 4 }
 0x3a1   : > { %vm3537_vm15 = vcmp.eq.s32.totalorder %v8428_v33, 0  ;;  %v3645_v55 = vshrl.u32 %v3644_v40, 30  ;;  %v3741_v8 = vsel %vm3735_vm13, %v3728_v32, 920167782  ;;  %v3858_v22 = vand.u32 2139095040, %v8423_v21 }
 0x3a2   : > { %v3523_v25 = vmul.f32 %v3522_v59, %v3518_v56  ;;  %v3530_v50 = vmul.f32 %v3529_v0, %v3518_v56  ;;  %vm3536_vm2 = vcmp.lt.s32.totalorder %v8428_v33, 2  ;;  %vm3732_vm1 = vcmp.lt.s32.totalorder %v8433_v11, 1 }
 0x3a3   : > { %vm3734_vm3 = vcmp.lt.s32.totalorder %v8433_v11, 3  ;;  %vm3533_vm4 = vweird.f32 %v8007_v37  ;;  %v3646_v18 = vshll.u32 %v3645_v55, 30  ;;  %v3740_v5 = vsel %vm3732_vm1, %v8450_v19, %v8452_v58 }
 0x3a4   : > { %v3742_v38 = vsel %vm3734_vm3, %v3725_v47, %v3741_v8  ;;  %v8469_v61 = vshll.u32 %v3708_v26, 8  ;;  %v3524_v56 = vadd.f32 1.0, %v3523_v25  ;;  %v3531_v10 = vadd.f32 1.0, %v3530_v50 }
 0x3a5   : > { %vm3547_vm5 = vcmp.lt.s32.totalorder %v8250_v35, 0  ;;  %v3744_v9 = vsel %vm3732_vm1, %v8452_v58, %v3725_v47  ;;  %v3745_v60 = vsel %vm3735_vm13, %v3731_v12, 1326507024  ;;  %vm3540_vm6 = vcmp.eq.s32.totalorder %v8428_v33, 2 }
 0x3a6   : > { %v3647_v63 = vsub.s32 %v3643_v41, %v3646_v18  ;;  %vm3733_vm7 = vcmp.lt.s32.totalorder %v8433_v11, 2  ;;  %v3746_v26 = vsel %vm3734_vm3, %v3728_v32, %v3745_v60  ;;  %v3532_v27 = vmul.f32 %v3531_v10, %v8413_v6 }
 0x3a7   : > { %v3541_v39 = vxor.u32 2147483648, %v3524_v56  ;;  %v3743_v62 = vsel %vm3733_vm7, %v3740_v5, %v3742_v38  ;;  %v3747_v13 = vsel %vm3733_vm7, %v3744_v9, %v3746_v26  ;;  %v3749_v42 = vand.u32 65535, %v8469_v61 }
 0x3a8   : > { %vm3648_vm8 = vcmp.lt.s32.totalorder %v3647_v63, 0  ;;  %v3649_v14 = vsub.s32 0, %v3647_v63  ;;  %v3751_v46 = vand.u32 65535, %v3747_v13  ;;  %v3538_v41 = vxor.u32 2147483648, %v3532_v27 }
 0x3a9   : > { %v3750_v20 = vshrl.u32 %v8469_v61, 16  ;;  %v3752_v54 = vshrl.u32 %v3747_v13, 16  ;;  %v3859_v28 = vshrl.u32 %v3858_v22, 23  ;;  %v3542_v6 = vsel %vm3540_vm6, %v3541_v39, %v3532_v27 }
 0x3aa   : > { %v3650_v32 = vsel %vm3648_vm8, %v3649_v14, %v3647_v63  ;;  %v3669_v53 = vsub.s32 4, %v3645_v55  ;;  %v3774_v36 = vshrl.u32 %v3743_v62, 16  ;;  %v3539_v51 = vsel %vm3537_vm15, %v3524_v56, %v3538_v41 }
 0x3ab   : > { %v3651_v40 = vclz %v3650_v32  ;;  %v3754_v59 = vmul.u32 %v3752_v54, %v3749_v42  ;;  %v3755_v0 = vmul.u32 %v3751_v46, %v3750_v20  ;;  %v3543_v12 = vsel %vm3536_vm2, %v3539_v51, %v3542_v6 }
 0x3ac   : > { %v3639_v8 = vadd.s32 %v8417_v2, %v8415_v44  ;;  %v3716_v22 = vshrl.u32 %v9860_v30, %v8419_v17  ;;  %v3773_v25 = vand.u32 65535, %v3743_v62  ;;  %v3544_v50 = vsel %vm3533_vm4, nan, %v3543_v12 }
 0x3ad   : > { %v5599_v18 = vadd.s32 4294967294, %v3651_v40  ;;  %v3753_v5 = vmul.u32 %v3751_v46, %v3749_v42  ;;  %v3757_v38 = vshll.u32 %v3754_v59, 16  ;;  %v3670_v56 = vsel %vm3547_vm5, %v3669_v53, %v3645_v55  ;;  %5408 = vst [vmem:[%s6274_s10 + $0x98] sm:$0xff] %v3544_v50 }
 0x3ae   : > { %v3737_v33 = vsel %vm3735_vm13, %v3725_v47, 2102212464  ;;  %v3756_v10 = vmul.u32 %v3752_v54, %v3750_v20  ;;  %v3776_v9 = vmul.u32 %v3774_v36, %v3749_v42  ;;  %vm8507_vm11 = vcmp.le.f32.partialorder %v3545_v34, 0.7853982 }
 0x3af   : > { %vm5600_vm10 = vcmp.lt.s32.totalorder %v5599_v18, 0  ;;  %v3759_v37 = vshll.u32 %v3755_v0, 16  ;;  %vm3761_vm9 = vc.u32 %v3753_v5, %v3757_v38  ;;  %v3763_v2 = vadd.s32 %v3757_v38, %v3753_v5 }
 0x3b0   : > { %v3654_v17 = vsel %vm5600_vm10, 0, %v5599_v18  ;;  %v3762_v60 = vsel %vm3761_vm9, 1, %v5787_v3  ;;  %v3777_v55 = vmul.u32 %v3773_v25, %v3750_v20  ;;  %v3779_v26 = vshll.u32 %v3776_v9, 16 }
 0x3b1   : > { %v3655_v27 = vsub.s32 32, %v3654_v17  ;;  %v3659_v47 = vsub.s32 4294967266, %v3654_v17  ;;  %v3764_v39 = vadd.s32 %v3762_v60, %v3756_v10  ;;  %v3775_v62 = vmul.u32 %v3773_v25, %v3749_v42 }
 0x3b2   : > { %v3656_v13 = vshll.u32 %v3647_v63, %v3654_v17  ;;  %v3758_v14 = vshrl.u32 %v3754_v59, 16  ;;  %vm3765_vm12 = vc.u32 %v3763_v2, %v3759_v37  ;;  %v3778_v34 = vmul.u32 %v3774_v36, %v3750_v20 }
 0x3b3   : > { %v3657_v46 = vshrl.u32 %v3639_v8, %v3655_v27  ;;  %v3660_v41 = vadd.s32 127, %v3659_v47  ;;  %v3766_v54 = vsel %vm3765_vm12, 1, %v5787_v3  ;;  %vm3783_vm0 = vc.u32 %v3775_v62, %v3779_v26 }
 0x3b4   : > { %v3768_v6 = vadd.s32 %v3766_v54, %v3764_v39  ;;  %v3781_v32 = vshll.u32 %v3777_v55, 16  ;;  %v3784_v53 = vsel %vm3783_vm0, 1, %v5787_v3  ;;  %v3785_v51 = vadd.s32 %v3779_v26, %v3775_v62 }
 0x3b5   : > { %v3658_v40 = vor.u32 %v3657_v46, %v3656_v13  ;;  %v3661_v12 = vshll.u32 %v3660_v41, 23  ;;  %v3786_v50 = vadd.s32 %v3784_v53, %v3778_v34  ;;  %v5604_v18 = vadd.s32 4294967169, %v3859_v28 }
 0x3b6   : > { %v3736_v63 = vsel %vm3732_vm1, %v3716_v22, %v8450_v19  ;;  %v3738_v42 = vsel %vm3734_vm3, %v8452_v58, %v3737_v33  ;;  %v3769_v20 = vadd.s32 %v3768_v6, %v3758_v14  ;;  %vm3787_vm14 = vc.u32 %v3785_v51, %v3781_v32 }
 0x3b7   : > { %v3662_v36 = vor.u32 4788187, %v3661_v12  ;;  %v3760_v59 = vshrl.u32 %v3755_v0, 16  ;;  %v3788_v8 = vsel %vm3787_vm14, 1, %v5787_v3  ;;  %v3865_v25 = vadd.s32 1, %v5604_v18 }
 0x3b8   : > { %v3672_v5 = vsel %vm8507_vm11, 0, %v3670_v56  ;;  %v3780_v38 = vshrl.u32 %v3776_v9, 16  ;;  %v3790_v28 = vadd.s32 %v3788_v8, %v3786_v50  ;;  %v3855_v10 = vand.u32 2147483647, %v8423_v21 }
 0x3b9   : > { %v3663_v37 = vand.u32 2147483647, %v3662_v36  ;;  %v3665_v19 = vcvt.s32.f32 %v3658_v40  ;;  %v8524_v22 = vadd.s32 %v3769_v20, %v3760_v59  ;;  %vm3866_vm13 = vcmp.gt.s32.totalorder %v3865_v25, 0 }
 0x3ba   : > { %v3739_v58 = vsel %vm3733_vm7, %v3736_v63, %v3738_v42  ;;  %v3782_v33 = vshrl.u32 %v3777_v55, 16  ;;  %v3791_v0 = vadd.s32 %v3790_v28, %v3780_v38  ;;  %v3867_v2 = vsel %vm3866_vm13, %v3865_v25, 0 }
 0x3bb   : > { %v3666_v17 = vmul.f32 %v3665_v19, %v3663_v37  ;;  %v8528_v60 = vadd.s32 %v3785_v51, %v3781_v32  ;;  %v3869_v26 = vand.u32 31, %v3867_v2  ;;  %v2900_v56 = vmul.f32 %v7825_v29, %v6209_v15 }
 0x3bc   : > { %v3689_v9 = vadd.s32 3, %v3672_v5  ;;  %v3792_v27 = vadd.s32 %v3791_v0, %v3782_v33  ;;  %v3793_v39 = vmul.u32 %v8469_v61, %v3739_v58  ;;  %v3862_v62 = vand.u32 8388607, %v3855_v10 }
 0x3bd   : > { %v3667_v47 = vxor.u32 2147483648, %v3666_v17  ;;  %vm3795_vm15 = vc.u32 %v8524_v22, %v8528_v60  ;;  %v8535_v11 = vsub.s32 32, %v3869_v26  ;;  %v8539_v13 = vshrl.u32 %v3867_v2, 5 }
 0x3be   : > { %v3796_v55 = vadd.s32 1, %v3792_v27  ;;  %v3875_v14 = vshll.u32 %v9869_v24, %v3869_v26  ;;  %v3881_v46 = vshll.u32 %v9858_v45, %v3869_v26  ;;  %v3872_v40 = vshll.u32 %v9860_v30, %v3869_v26 }
 0x3bf   : > { %v3668_v15 = vsel %vm3547_vm5, %v3667_v47, %v3666_v17  ;;  %v3873_v34 = vshrl.u32 %v9869_v24, %v8535_v11  ;;  %v3876_v61 = vshrl.u32 %v9870_v23, %v8535_v11  ;;  %v3879_v6 = vshrl.u32 %v9858_v45, %v8535_v11 }
 0x3c0   : > { %v3671_v41 = vsel %vm8507_vm11, %v8250_v35, %v3668_v15  ;;  %v3797_v54 = vsel %vm3795_vm15, %v3796_v55, %v3792_v27  ;;  %v3882_v32 = vshrl.u32 %v9859_v48, %v8535_v11  ;;  %v3878_v12 = vshll.u32 %v9870_v23, %v3869_v26 }
 0x3c1   : > { %v3673_v53 = vmul.f32 %v3671_v41, %v3671_v41  ;;  %v3798_v51 = vadd.s32 %v3797_v54, %v3793_v39  ;;  %v8558_v50 = vor.u32 %v3876_v61, %v3875_v14  ;;  %v3884_v63 = vshll.u32 %v9859_v48, %v3869_v26 }
 0x3c2   : > { %v3883_v18 = vor.u32 %v3882_v32, %v3881_v46  ;;  %v3885_v44 = vshrl.u32 %v9861_v31, %v8535_v11  ;;  %v3880_v59 = vor.u32 %v3879_v6, %v3878_v12  ;;  %v8563_v8 = vand.u32 3, %v3689_v9 }
 0x3c3   : > { %v3674_v42 = vmul.f32 -0.001358992, %v3673_v53  ;;  %v3681_v20 = vmul.f32 -0.00019511016, %v3673_v53  ;;  %v3799_v36 = vadd.s32 536870912, %v3798_v51  ;;  %v3863_v25 = vor.u32 8388608, %v3862_v62 }
 0x3c4   : > { %v8565_v5 = vor.u32 %v3873_v34, %v3872_v40  ;;  %v3886_v38 = vor.u32 %v3885_v44, %v3884_v63  ;;  %vm3890_vm2 = vcmp.lt.s32.totalorder %v8539_v13, 4  ;;  %vm3887_vm1 = vcmp.lt.s32.totalorder %v8539_v13, 1 }
 0x3c5   : > { %v3675_v28 = vadd.f32 0.041655596, %v3674_v42  ;;  %v3682_v37 = vadd.f32 0.008332121, %v3681_v20  ;;  %v8567_v19 = vshrl.u32 %v3799_v36, 30  ;;  %vm3889_vm3 = vcmp.lt.s32.totalorder %v8539_v13, 3 }
 0x3c6   : > { %v3896_v58 = vsel %vm3890_vm2, %v3883_v18, 920167782  ;;  %v3900_v33 = vsel %vm3890_vm2, %v3886_v38, 1326507024  ;;  %v3899_v26 = vsel %vm3887_vm1, %v8558_v50, %v3880_v59  ;;  %v8581_v9 = vadd.f32 %v2900_v56, %v6539_v4 }
 0x3c7   : > { %v3676_v0 = vmul.f32 %v3675_v28, %v3673_v53  ;;  %v3683_v2 = vmul.f32 %v3682_v37, %v3673_v53  ;;  %v3801_v17 = vshll.u32 %v8567_v19, 30  ;;  %v3901_v27 = vsel %vm3889_vm3, %v3883_v18, %v3900_v33 }
 0x3c8   : > { %v8585_v47 = vshll.u32 %v3863_v25, 8  ;;  %vm3888_vm4 = vcmp.lt.s32.totalorder %v8539_v13, 2  ;;  %vm3692_vm5 = vcmp.eq.s32.totalorder %v8563_v8, 0  ;;  %v3895_v14 = vsel %vm3887_vm1, %v8565_v5, %v8558_v50 }
 0x3c9   : > { %v3677_v39 = vadd.f32 -0.4999988, %v3676_v0  ;;  %v3684_v55 = vadd.f32 -0.16666654, %v3683_v2  ;;  %v8587_v62 = vsub.s32 %v3798_v51, %v3801_v17  ;;  %v3897_v4 = vsel %vm3889_vm3, %v3880_v59, %v3896_v58 }
 0x3ca   : > { %v3902_v56 = vsel %vm3888_vm4, %v3899_v26, %v3901_v27  ;;  %vm3691_vm6 = vcmp.lt.s32.totalorder %v8563_v8, 2  ;;  %vm3688_vm8 = vweird.f32 %v8250_v35  ;;  %vm3695_vm11 = vcmp.eq.s32.totalorder %v8563_v8, 2 }
 0x3cb   : > { %v3678_v15 = vmul.f32 %v3677_v39, %v3673_v53  ;;  %v3685_v34 = vmul.f32 %v3684_v55, %v3673_v53  ;;  %vm3803_vm7 = vcmp.lt.s32.totalorder %v8587_v62, 0  ;;  %v3804_v61 = vsub.s32 0, %v8587_v62 }
 0x3cc   : > { %v3904_v46 = vand.u32 65535, %v8585_v47  ;;  %v3906_v54 = vand.u32 65535, %v3902_v56  ;;  %v3907_v6 = vshrl.u32 %v3902_v56, 16  ;;  %v3905_v53 = vshrl.u32 %v8585_v47, 16 }
 0x3cd   : > { %v3679_v32 = vadd.f32 1.0, %v3678_v15  ;;  %v3686_v51 = vadd.f32 1.0, %v3685_v34  ;;  %v3805_v40 = vsel %vm3803_vm7, %v3804_v61, %v8587_v62  ;;  %v3794_v12 = vadd.s32 %v8528_v60, %v8524_v22 }
 0x3ce   : > { %v3806_v18 = vclz %v3805_v40  ;;  %v3898_v63 = vsel %vm3888_vm4, %v3895_v14, %v3897_v4  ;;  %v3909_v44 = vmul.u32 %v3907_v6, %v3904_v46  ;;  %v8611_v36 = vmul.u32 %v3906_v54, %v3905_v53 }
 0x3cf   : > { %v3687_v42 = vmul.f32 %v3686_v51, %v3671_v41  ;;  %v3696_v20 = vxor.u32 2147483648, %v3679_v32  ;;  %v4013_v25 = vand.u32 2139095040, %v8581_v9  ;;  %vm3702_vm10 = vcmp.lt.s32.totalorder %v8254_v52, 0 }
 0x3d0   : > { %v5602_v38 = vadd.s32 4294967294, %v3806_v18  ;;  %v3824_v28 = vsub.s32 4, %v8567_v19  ;;  %v3871_v37 = vshrl.u32 %v9860_v30, %v8535_v11  ;;  %v3892_v22 = vsel %vm3890_vm2, %v3880_v59, 2102212464 }
 0x3d1   : > { %v3693_v60 = vxor.u32 2147483648, %v3687_v42  ;;  %v3908_v58 = vmul.u32 %v3906_v54, %v3904_v46  ;;  %v3912_v33 = vshll.u32 %v3909_v44, 16  ;;  %v3928_v41 = vand.u32 65535, %v3898_v63 }
 0x3d2   : > { %v3697_v0 = vsel %vm3695_vm11, %v3696_v20, %v3687_v42  ;;  %vm5603_vm9 = vcmp.lt.s32.totalorder %v5602_v38, 0  ;;  %v3914_v2 = vshll.u32 %v8611_v36, 16  ;;  %v3929_v17 = vshrl.u32 %v3898_v63, 16 }
 0x3d3   : > { %v3694_v26 = vsel %vm3692_vm5, %v3679_v32, %v3693_v60  ;;  %v3809_v27 = vsel %vm5603_vm9, 0, %v5602_v38  ;;  %vm3916_vm12 = vc.u32 %v3908_v58, %v3912_v33  ;;  %v3918_v11 = vadd.s32 %v3912_v33, %v3908_v58 }
 0x3d4   : > { %v3698_v59 = vsel %vm3691_vm6, %v3694_v26, %v3697_v0  ;;  %vm8629_vm0 = vcmp.le.f32.partialorder %v3700_v16, 0.7853982  ;;  %v3810_v55 = vsub.s32 32, %v3809_v27  ;;  %v3814_v14 = vsub.s32 4294967266, %v3809_v27 }
 0x3d5   : > { %v3911_v4 = vmul.u32 %v3907_v6, %v3905_v53  ;;  %v3699_v56 = vsel %vm3688_vm8, nan, %v3698_v59  ;;  %v3811_v15 = vshll.u32 %v8587_v62, %v3809_v27  ;;  %v3917_v34 = vsel %vm3916_vm12, 1, %v5787_v3 }
 0x3d6   : > { %vm3920_vm14 = vc.u32 %v3918_v11, %v3914_v2  ;;  %v3812_v61 = vshrl.u32 %v3794_v12, %v3810_v55  ;;  %v3815_v8 = vadd.s32 127, %v3814_v14  ;;  %5409 = vst [vmem:[%s6274_s10 + $0xa0] sm:$0xff] %v3699_v56  ;;  %v3891_v16 = vsel %vm3887_vm1, %v3871_v37, %v8565_v5 }
 0x3d7   : > { %v3919_v54 = vadd.s32 %v3917_v34, %v3911_v4  ;;  %v3921_v32 = vsel %vm3920_vm14, 1, %v5787_v3  ;;  %v3913_v51 = vshrl.u32 %v3909_v44, 16  ;;  %v3931_v6 = vmul.u32 %v3929_v17, %v3904_v46 }
 0x3d8   : > { %v3932_v40 = vmul.u32 %v3928_v41, %v3905_v53  ;;  %v3813_v35 = vor.u32 %v3812_v61, %v3811_v15  ;;  %v3816_v18 = vshll.u32 %v3815_v8, 23  ;;  %v4014_v62 = vshrl.u32 %v4013_v25, 23 }
 0x3d9   : > { %v3923_v63 = vadd.s32 %v3921_v32, %v3919_v54  ;;  %v3825_v12 = vsel %vm3702_vm10, %v3824_v28, %v8567_v19  ;;  %v3893_v42 = vsel %vm3889_vm3, %v8558_v50, %v3892_v22  ;;  %v3930_v20 = vmul.u32 %v3928_v41, %v3904_v46 }
 0x3da   : > { %v3934_v38 = vshll.u32 %v3931_v6, 16  ;;  %v3817_v60 = vor.u32 4788187, %v3816_v18  ;;  %v3915_v5 = vshrl.u32 %v8611_v36, 16  ;;  %v5607_v37 = vadd.s32 4294967169, %v4014_v62 }
 0x3db   : > { %v3924_v44 = vadd.s32 %v3923_v63, %v3913_v51  ;;  %v3933_v58 = vmul.u32 %v3929_v17, %v3905_v53  ;;  %v3936_v33 = vshll.u32 %v3932_v40, 16  ;;  %v3820_v2 = vcvt.s32.f32 %v3813_v35 }
 0x3dc   : > { %vm3938_vm13 = vc.u32 %v3930_v20, %v3934_v38  ;;  %v3940_v0 = vadd.s32 %v3934_v38, %v3930_v20  ;;  %v3818_v25 = vand.u32 2147483647, %v3817_v60  ;;  %v4020_v19 = vadd.s32 1, %v5607_v37 }
 0x3dd   : > { %v3939_v26 = vsel %vm3938_vm13, 1, %v5787_v3  ;;  %v3827_v28 = vsel %vm8629_vm0, 0, %v3825_v12  ;;  %v4010_v46 = vand.u32 2147483647, %v8581_v9  ;;  %v8653_v36 = vadd.s32 %v3924_v44, %v3915_v5 }
 0x3de   : > { %v3941_v50 = vadd.s32 %v3939_v26, %v3933_v58  ;;  %vm3942_vm15 = vc.u32 %v3940_v0, %v3936_v33  ;;  %v3821_v22 = vmul.f32 %v3820_v2, %v3818_v25  ;;  %vm4021_vm2 = vcmp.gt.s32.totalorder %v4020_v19, 0  ;;  %v9898_v2 = vld [vmem:[#allocation5_spill] sm:$0xff] }
 0x3df   : > { %v3943_v53 = vsel %vm3942_vm15, 1, %v5787_v3  ;;  %v3894_v41 = vsel %vm3888_vm4, %v3891_v16, %v3893_v42  ;;  %v3935_v17 = vshrl.u32 %v3931_v6, 16  ;;  %v4022_v11 = vsel %vm4021_vm2, %v4020_v19, 0 }
 0x3e0   : > { %v3945_v27 = vadd.s32 %v3943_v53, %v3941_v50  ;;  %v3822_v59 = vxor.u32 2147483648, %v3821_v22  ;;  %v8658_v55 = vadd.s32 %v3940_v0, %v3936_v33  ;;  %v4024_v14 = vand.u32 31, %v4022_v11 }
 0x3e1   : > { %v3844_v4 = vadd.s32 3, %v3827_v28  ;;  %v3937_v56 = vshrl.u32 %v3932_v40, 16  ;;  %v4017_v34 = vand.u32 8388607, %v4010_v46  ;;  %v3948_v8 = vmul.u32 %v8585_v47, %v3894_v41 }
 0x3e2   : > { %v3946_v15 = vadd.s32 %v3945_v27, %v3935_v17  ;;  %v3823_v61 = vsel %vm3702_vm10, %v3822_v59, %v3821_v22  ;;  %vm3950_vm1 = vc.u32 %v8653_v36, %v8658_v55  ;;  %v8667_v13 = vsub.s32 32, %v4024_v14 }
 0x3e3   : > { %v3826_v54 = vsel %vm8629_vm0, %v8254_v52, %v3823_v61  ;;  %v8672_v16 = vshrl.u32 %v4022_v11, 5  ;;  %v4027_v51 = vshll.u32 %v9860_v30, %v4024_v14  ;;  %v4030_v47 = vshll.u32 %v9869_v24, %v4024_v14 }
 0x3e4   : > { %v3947_v32 = vadd.s32 %v3946_v15, %v3937_v56  ;;  %v3828_v6 = vmul.f32 %v3826_v54, %v3826_v54  ;;  %v4028_v40 = vshrl.u32 %v9869_v24, %v8667_v13  ;;  %v4031_v35 = vshrl.u32 %v9870_v23, %v8667_v13  ;;  %v9899_v56 = vld [vmem:[#allocation7_spill] sm:$0xff] }
 0x3e5   : > { %v4034_v63 = vshrl.u32 %v9858_v45, %v8667_v13  ;;  %v4036_v39 = vshll.u32 %v9858_v45, %v4024_v14  ;;  %v4037_v62 = vshrl.u32 %v9859_v48, %v8667_v13  ;;  %v4033_v20 = vshll.u32 %v9870_v23, %v4024_v14 }
 0x3e6   : > { %v3951_v18 = vadd.s32 1, %v3947_v32  ;;  %v3829_v12 = vmul.f32 -0.001358992, %v3828_v6  ;;  %v3836_v42 = vmul.f32 -0.00019511016, %v3828_v6  ;;  %v4039_v38 = vshll.u32 %v9859_v48, %v4024_v14 }
 0x3e7   : > { %v8690_v5 = vor.u32 %v4028_v40, %v4027_v51  ;;  %v4038_v44 = vor.u32 %v4037_v62, %v4036_v39  ;;  %v4040_v37 = vshrl.u32 %v9861_v31, %v8667_v13  ;;  %v8694_v25 = vor.u32 %v4031_v35, %v4030_v47 }
 0x3e8   : > { %v3952_v60 = vsel %vm3950_vm1, %v3951_v18, %v3947_v32  ;;  %v3830_v58 = vadd.f32 0.041655596, %v3829_v12  ;;  %v3837_v33 = vadd.f32 0.008332121, %v3836_v42  ;;  %v2901_v26 = vmul.f32 %v7795_v7, %v9898_v2 }
 0x3e9   : > { %v3953_v0 = vadd.s32 %v3952_v60, %v3948_v8  ;;  %v3845_v19 = vand.u32 3, %v3844_v4  ;;  %v4035_v28 = vor.u32 %v4034_v63, %v4033_v20  ;;  %v4041_v50 = vor.u32 %v4040_v37, %v4039_v38 }
 0x3ea   : > { %v3831_v22 = vmul.f32 %v3830_v58, %v3828_v6  ;;  %v3838_v53 = vmul.f32 %v3837_v33, %v3828_v6  ;;  %vm4045_vm3 = vcmp.lt.s32.totalorder %v8672_v16, 4  ;;  %v4018_v17 = vor.u32 8388608, %v4017_v34 }
 0x3eb   : > { %v3954_v41 = vadd.s32 536870912, %v3953_v0  ;;  %vm4042_vm4 = vcmp.lt.s32.totalorder %v8672_v16, 1  ;;  %vm4044_vm5 = vcmp.lt.s32.totalorder %v8672_v16, 3  ;;  %v4051_v27 = vsel %vm4045_vm3, %v4038_v44, 920167782 }
 0x3ec   : > { %v3832_v11 = vadd.f32 -0.4999988, %v3831_v22  ;;  %v3839_v59 = vadd.f32 -0.16666654, %v3838_v53  ;;  %v4050_v4 = vsel %vm4042_vm4, %v8690_v5, %v8694_v25  ;;  %v8710_v15 = vadd.f32 %v2901_v26, %v9899_v56 }
 0x3ed   : > { %v8703_v14 = vshrl.u32 %v3954_v41, 30  ;;  %vm4043_vm6 = vcmp.lt.s32.totalorder %v8672_v16, 2  ;;  %v4052_v34 = vsel %vm4044_vm5, %v4035_v28, %v4051_v27  ;;  %v4055_v61 = vsel %vm4045_vm3, %v4041_v50, 1326507024 }
 0x3ee   : > { %v3833_v8 = vmul.f32 %v3832_v11, %v3828_v6  ;;  %v3840_v32 = vmul.f32 %v3839_v59, %v3828_v6  ;;  %v4054_v40 = vsel %vm4042_vm4, %v8694_v25, %v4035_v28  ;;  %vm3843_vm7 = vweird.f32 %v8254_v52 }
 0x3ef   : > { %v3956_v51 = vshll.u32 %v8703_v14, 30  ;;  %vm3846_vm8 = vcmp.lt.s32.totalorder %v3845_v19, 2  ;;  %v4053_v47 = vsel %vm4043_vm6, %v4050_v4, %v4052_v34  ;;  %v4056_v35 = vsel %vm4044_vm5, %v4038_v44, %v4055_v61 }
 0x3f0   : > { %v8726_v18 = vshll.u32 %v4018_v17, 8  ;;  %v3834_v63 = vadd.f32 1.0, %v3833_v8  ;;  %v3841_v39 = vadd.f32 1.0, %v3840_v32  ;;  %vm3847_vm11 = vcmp.eq.s32.totalorder %v3845_v19, 0 }
 0x3f1   : > { %v3957_v6 = vsub.s32 %v3953_v0, %v3956_v51  ;;  %vm3850_vm10 = vcmp.eq.s32.totalorder %v3845_v19, 2  ;;  %v4057_v62 = vsel %vm4043_vm6, %v4054_v40, %v4056_v35  ;;  %v4084_v12 = vshrl.u32 %v4053_v47, 16 }
 0x3f2   : > { %v4165_v42 = vand.u32 2147483647, %v8710_v15  ;;  %v3842_v20 = vmul.f32 %v3841_v39, %v3826_v54  ;;  %v3851_v38 = vxor.u32 2147483648, %v3834_v63  ;;  %v4059_v37 = vand.u32 65535, %v8726_v18 }
 0x3f3   : > { %vm3958_vm9 = vcmp.lt.s32.totalorder %v3957_v6, 0  ;;  %v3959_v60 = vsub.s32 0, %v3957_v6  ;;  %v4061_v44 = vand.u32 65535, %v4057_v62  ;;  %v4062_v58 = vshrl.u32 %v4057_v62, 16 }
 0x3f4   : > { %v4168_v33 = vand.u32 2139095040, %v8710_v15  ;;  %v3848_v26 = vxor.u32 2147483648, %v3842_v20  ;;  %v4060_v0 = vshrl.u32 %v8726_v18, 16  ;;  %v4083_v22 = vand.u32 65535, %v4053_v47 }
 0x3f5   : > { %v3960_v50 = vsel %vm3958_vm9, %v3959_v60, %v3957_v6  ;;  %v3949_v53 = vadd.s32 %v8658_v55, %v8653_v36  ;;  %v4026_v54 = vshrl.u32 %v9860_v30, %v8667_v13  ;;  %v4064_v17 = vmul.u32 %v4062_v58, %v4059_v37 }
 0x3f6   : > { %v3961_v41 = vclz %v3960_v50  ;;  %v3849_v27 = vsel %vm3847_vm11, %v3834_v63, %v3848_v26  ;;  %v3852_v11 = vsel %vm3850_vm10, %v3851_v38, %v3842_v20  ;;  %v4065_v59 = vmul.u32 %v4061_v44, %v4060_v0 }
 0x3f7   : > { %v4086_v4 = vmul.u32 %v4084_v12, %v4059_v37  ;;  %v3853_v34 = vsel %vm3846_vm8, %v3849_v27, %v3852_v11  ;;  %v4047_v8 = vsel %vm4045_vm3, %v4035_v28, 2102212464  ;;  %v4169_v32 = vshrl.u32 %v4168_v33, 23 }
 0x3f8   : > { %v5605_v61 = vadd.s32 4294967294, %v3961_v41  ;;  %v3854_v36 = vsel %vm3843_vm7, nan, %v3853_v34  ;;  %v4063_v55 = vmul.u32 %v4061_v44, %v4059_v37  ;;  %v4067_v13 = vshll.u32 %v4064_v17, 16 }
 0x3f9   : > { %v4085_v51 = vmul.u32 %v4083_v22, %v4059_v37  ;;  %v4066_v40 = vmul.u32 %v4062_v58, %v4060_v0  ;;  %v4069_v47 = vshll.u32 %v4065_v59, 16  ;;  %v4087_v35 = vmul.u32 %v4083_v22, %v4060_v0  ;;  %5410 = vst [vmem:[%s6274_s10 + $0xa8] sm:$0xff] %v3854_v36 }
 0x3fa   : > { %vm5606_vm12 = vcmp.lt.s32.totalorder %v5605_v61, 0  ;;  %vm3857_vm0 = vcmp.lt.s32.totalorder %v8423_v21, 0  ;;  %vm4071_vm14 = vc.u32 %v4063_v55, %v4067_v13  ;;  %v4073_v63 = vadd.s32 %v4067_v13, %v4063_v55 }
 0x3fb   : > { %v3964_v19 = vsel %vm5606_vm12, 0, %v5605_v61  ;;  %v4089_v39 = vshll.u32 %v4086_v4, 16  ;;  %v4068_v20 = vshrl.u32 %v4064_v17, 16  ;;  %v4072_v52 = vsel %vm4071_vm14, 1, %v5787_v3 }
 0x3fc   : > { %v3965_v62 = vsub.s32 32, %v3964_v19  ;;  %v3969_v28 = vsub.s32 4294967266, %v3964_v19  ;;  %v3966_v38 = vshll.u32 %v3957_v6, %v3964_v19  ;;  %v4074_v60 = vadd.s32 %v4072_v52, %v4066_v40 }
 0x3fd   : > { %vm4075_vm13 = vc.u32 %v4073_v63, %v4069_v47  ;;  %v4088_v37 = vmul.u32 %v4084_v12, %v4060_v0  ;;  %v4091_v26 = vshll.u32 %v4087_v35, 16  ;;  %vm4093_vm15 = vc.u32 %v4085_v51, %v4089_v39 }
 0x3fe   : > { %v3967_v44 = vshrl.u32 %v3949_v53, %v3965_v62  ;;  %v3970_v58 = vadd.s32 127, %v3969_v28  ;;  %v4076_v33 = vsel %vm4075_vm13, 1, %v5787_v3  ;;  %v4095_v22 = vadd.s32 %v4089_v39, %v4085_v51 }
 0x3ff   : > { %v4078_v50 = vadd.s32 %v4076_v33, %v4074_v60  ;;  %v5610_v41 = vadd.s32 4294967169, %v4169_v32  ;;  %v3979_v34 = vsub.s32 4, %v8703_v14  ;;  %v4094_v17 = vsel %vm4093_vm15, 1, %v5787_v3 }
 0x400   : > { %v3968_v27 = vor.u32 %v3967_v44, %v3966_v38  ;;  %v3971_v11 = vshll.u32 %v3970_v58, 23  ;;  %v4046_v6 = vsel %vm4042_vm4, %v4026_v54, %v8690_v5  ;;  %v4096_v0 = vadd.s32 %v4094_v17, %v4088_v37 }
 0x401   : > { %v4079_v12 = vadd.s32 %v4078_v50, %v4068_v20  ;;  %vm4097_vm2 = vc.u32 %v4095_v22, %v4091_v26  ;;  %v4048_v61 = vsel %vm4044_vm5, %v8694_v25, %v4047_v8  ;;  %v4070_v36 = vshrl.u32 %v4065_v59, 16 }
 0x402   : > { %v3972_v53 = vor.u32 4788187, %v3971_v11  ;;  %v4098_v32 = vsel %vm4097_vm2, 1, %v5787_v3  ;;  %vm8760_vm1 = vcmp.le.f32.partialorder %v3855_v10, 0.7853982  ;;  %v4090_v13 = vshrl.u32 %v4086_v4, 16 }
 0x403   : > { %v4100_v51 = vadd.s32 %v4098_v32, %v4096_v0  ;;  %v4175_v5 = vadd.s32 1, %v5610_v41  ;;  %v3975_v40 = vcvt.s32.f32 %v3968_v27  ;;  %v3980_v47 = vsel %vm3857_vm0, %v3979_v34, %v8703_v14 }
 0x404   : > { %v3973_v54 = vand.u32 2147483647, %v3972_v53  ;;  %v8767_v19 = vadd.s32 %v4079_v12, %v4070_v36  ;;  %v4049_v25 = vsel %vm4043_vm6, %v4046_v6, %v4048_v61  ;;  %v4092_v59 = vshrl.u32 %v4087_v35, 16 }
 0x405   : > { %v4101_v8 = vadd.s32 %v4100_v51, %v4090_v13  ;;  %vm4176_vm3 = vcmp.gt.s32.totalorder %v4175_v5, 0  ;;  %v8771_v63 = vadd.s32 %v4095_v22, %v4091_v26  ;;  %v4172_v4 = vand.u32 8388607, %v4165_v42 }
 0x406   : > { %v3976_v10 = vmul.f32 %v3975_v40, %v3973_v54  ;;  %v4177_v39 = vsel %vm4176_vm3, %v4175_v5, 0  ;;  %v3982_v62 = vsel %vm8760_vm1, 0, %v3980_v47  ;;  %v2902_v16 = vmul.f32 %v7825_v29, %v9898_v2 }
 0x407   : > { %v4102_v28 = vadd.s32 %v4101_v8, %v4092_v59  ;;  %v4179_v14 = vand.u32 31, %v4177_v39  ;;  %vm4105_vm4 = vc.u32 %v8767_v19, %v8771_v63  ;;  %v4103_v35 = vmul.u32 %v8726_v18, %v4049_v25 }
 0x408   : > { %v3977_v20 = vxor.u32 2147483648, %v3976_v10  ;;  %v3999_v37 = vadd.s32 3, %v3982_v62  ;;  %v4173_v44 = vor.u32 8388608, %v4172_v4  ;;  %v8786_v58 = vshrl.u32 %v4177_v39, 5 }
 0x409   : > { %v4106_v52 = vadd.s32 1, %v4102_v28  ;;  %v8782_v38 = vsub.s32 32, %v4179_v14  ;;  %v4185_v50 = vshll.u32 %v9869_v24, %v4179_v14  ;;  %v4191_v2 = vshll.u32 %v9858_v45, %v4179_v14 }
 0x40a   : > { %v3978_v60 = vsel %vm3857_vm0, %v3977_v20, %v3976_v10  ;;  %v4194_v17 = vshll.u32 %v9859_v48, %v4179_v14  ;;  %v4188_v61 = vshll.u32 %v9870_v23, %v4179_v14  ;;  %v4182_v36 = vshll.u32 %v9860_v30, %v4179_v14 }
 0x40b   : > { %v3981_v33 = vsel %vm8760_vm1, %v8423_v21, %v3978_v60  ;;  %v4107_v26 = vsel %vm4105_vm4, %v4106_v52, %v4102_v28  ;;  %v4186_v41 = vshrl.u32 %v9870_v23, %v8782_v38  ;;  %v4189_v27 = vshrl.u32 %v9858_v45, %v8782_v38 }
 0x40c   : > { %v3983_v18 = vmul.f32 %v3981_v33, %v3981_v33  ;;  %v4108_v22 = vadd.s32 %v4107_v26, %v4103_v35  ;;  %v4183_v11 = vshrl.u32 %v9869_v24, %v8782_v38  ;;  %v4192_v34 = vshrl.u32 %v9859_v48, %v8782_v38 }
 0x40d   : > { %v4195_v6 = vshrl.u32 %v9861_v31, %v8782_v38  ;;  %v8806_v32 = vor.u32 %v4186_v41, %v4185_v50  ;;  %v8810_v40 = vor.u32 %v4189_v27, %v4188_v61  ;;  %v8813_v47 = vadd.f32 %v2902_v16, %v9899_v56 }
 0x40e   : > { %v3984_v12 = vmul.f32 -0.001358992, %v3983_v18  ;;  %v3991_v0 = vmul.f32 -0.00019511016, %v3983_v18  ;;  %v4109_v53 = vadd.s32 536870912, %v4108_v22  ;;  %v4193_v55 = vor.u32 %v4192_v34, %v4191_v2 }
 0x40f   : > { %v4196_v13 = vor.u32 %v4195_v6, %v4194_v17  ;;  %v4000_v25 = vand.u32 3, %v3999_v37  ;;  %v8815_v59 = vor.u32 %v4183_v11, %v4182_v36  ;;  %v8817_v8 = vshll.u32 %v4173_v44, 8 }
 0x410   : > { %v3985_v51 = vadd.f32 0.041655596, %v3984_v12  ;;  %v3992_v5 = vadd.f32 0.008332121, %v3991_v0  ;;  %v8808_v54 = vshrl.u32 %v4109_v53, 30  ;;  %vm4200_vm5 = vcmp.lt.s32.totalorder %v8786_v58, 4 }
 0x411   : > { %vm4197_vm6 = vcmp.lt.s32.totalorder %v8786_v58, 1  ;;  %vm4199_vm7 = vcmp.lt.s32.totalorder %v8786_v58, 3  ;;  %v4206_v62 = vsel %vm4200_vm5, %v4193_v55, 920167782  ;;  %v4210_v56 = vsel %vm4200_vm5, %v4196_v13, 1326507024 }
 0x412   : > { %v3986_v10 = vmul.f32 %v3985_v51, %v3983_v18  ;;  %v3993_v4 = vmul.f32 %v3992_v5, %v3983_v18  ;;  %v4111_v39 = vshll.u32 %v8808_v54, 30  ;;  %v4209_v16 = vsel %vm4197_vm6, %v8806_v32, %v8810_v40 }
 0x413   : > { %vm4198_vm8 = vcmp.lt.s32.totalorder %v8786_v58, 2  ;;  %v4205_v35 = vsel %vm4197_vm6, %v8815_v59, %v8806_v32  ;;  %v4207_v52 = vsel %vm4199_vm7, %v8810_v40, %v4206_v62  ;;  %v4211_v60 = vsel %vm4199_vm7, %v4193_v55, %v4210_v56 }
 0x414   : > { %v3987_v28 = vadd.f32 -0.4999988, %v3986_v10  ;;  %v3994_v14 = vadd.f32 -0.16666654, %v3993_v4  ;;  %v4112_v20 = vsub.s32 %v4108_v22, %v4111_v39  ;;  %vm3998_vm10 = vweird.f32 %v8423_v21 }
 0x415   : > { %vm4001_vm9 = vcmp.lt.s32.totalorder %v4000_v25, 2  ;;  %vm4002_vm12 = vcmp.eq.s32.totalorder %v4000_v25, 0  ;;  %vm4005_vm0 = vcmp.eq.s32.totalorder %v4000_v25, 2  ;;  %v4212_v50 = vsel %vm4198_vm8, %v4209_v16, %v4211_v60 }
 0x416   : > { %v3988_v37 = vmul.f32 %v3987_v28, %v3983_v18  ;;  %v3995_v44 = vmul.f32 %v3994_v14, %v3983_v18  ;;  %vm4113_vm11 = vcmp.lt.s32.totalorder %v4112_v20, 0  ;;  %v4114_v26 = vsub.s32 0, %v4112_v20 }
 0x417   : > { %v4216_v27 = vand.u32 65535, %v4212_v50  ;;  %v4208_v34 = vsel %vm4198_vm8, %v4205_v35, %v4207_v52  ;;  %v4215_v18 = vshrl.u32 %v8817_v8, 16  ;;  %v4217_v17 = vshrl.u32 %v4212_v50, 16 }
 0x418   : > { %v3989_v2 = vadd.f32 1.0, %v3988_v37  ;;  %v3996_v22 = vadd.f32 1.0, %v3995_v44  ;;  %v4115_v41 = vsel %vm4113_vm11, %v4114_v26, %v4112_v20  ;;  %v4214_v0 = vand.u32 65535, %v8817_v8 }
 0x419   : > { %v4116_v11 = vclz %v4115_v41  ;;  %v4320_v53 = vand.u32 2147483647, %v8813_v47  ;;  %v4104_v61 = vadd.s32 %v8771_v63, %v8767_v19  ;;  %v8851_v55 = vmul.u32 %v4216_v27, %v4215_v18 }
 0x41a   : > { %v3997_v6 = vmul.f32 %v3996_v22, %v3981_v33  ;;  %v4006_v12 = vxor.u32 2147483648, %v3989_v2  ;;  %v4323_v13 = vand.u32 2139095040, %v8813_v47  ;;  %v4181_v5 = vshrl.u32 %v9860_v30, %v8782_v38 }
 0x41b   : > { %v5608_v36 = vadd.s32 4294967294, %v4116_v11  ;;  %v4219_v10 = vmul.u32 %v4217_v17, %v4214_v0  ;;  %v4238_v4 = vand.u32 65535, %v4208_v34  ;;  %v4218_v39 = vmul.u32 %v4216_v27, %v4214_v0 }
 0x41c   : > { %v4003_v51 = vxor.u32 2147483648, %v3997_v6  ;;  %v4007_v33 = vsel %vm4005_vm0, %v4006_v12, %v3997_v6  ;;  %v4239_v62 = vshrl.u32 %v4208_v34, 16  ;;  %v4221_v19 = vmul.u32 %v4217_v17, %v4215_v18 }
 0x41d   : > { %vm5609_vm14 = vcmp.lt.s32.totalorder %v5608_v36, 0  ;;  %v4222_v63 = vshll.u32 %v4219_v10, 16  ;;  %vm4012_vm13 = vcmp.lt.s32.totalorder %v8581_v9, 0  ;;  %v4224_v38 = vshll.u32 %v8851_v55, 16 }
 0x41e   : > { %v4004_v56 = vsel %vm4002_vm12, %v3989_v2, %v4003_v51  ;;  %v4119_v28 = vsel %vm5609_vm14, 0, %v5608_v36  ;;  %v4241_v2 = vmul.u32 %v4239_v62, %v4214_v0  ;;  %v4240_v22 = vmul.u32 %v4238_v4, %v4214_v0 }
 0x41f   : > { %v4008_v14 = vsel %vm4001_vm9, %v4004_v56, %v4007_v33  ;;  %v4120_v16 = vsub.s32 32, %v4119_v28  ;;  %v4124_v35 = vsub.s32 4294967266, %v4119_v28  ;;  %v4121_v60 = vshll.u32 %v4112_v20, %v4119_v28 }
 0x420   : > { %v4009_v52 = vsel %vm3998_vm10, nan, %v4008_v14  ;;  %vm4226_vm15 = vc.u32 %v4218_v39, %v4222_v63  ;;  %v4228_v37 = vadd.s32 %v4222_v63, %v4218_v39  ;;  %v4242_v41 = vmul.u32 %v4238_v4, %v4215_v18 }
 0x421   : > { %v4122_v44 = vshrl.u32 %v4104_v61, %v4120_v16  ;;  %v4125_v26 = vadd.s32 127, %v4124_v35  ;;  %v4227_v50 = vsel %vm4226_vm15, 1, %v5787_v3  ;;  %5411 = vst [vmem:[%s6274_s10 + $0xb0] sm:$0xff] %v4009_v52  ;;  %v4244_v17 = vshll.u32 %v4241_v2, 16 }
 0x422   : > { %v4229_v25 = vadd.s32 %v4227_v50, %v4221_v19  ;;  %vm4230_vm2 = vc.u32 %v4228_v37, %v4224_v38  ;;  %v4134_v21 = vsub.s32 4, %v8808_v54  ;;  %v4223_v20 = vshrl.u32 %v4219_v10, 16 }
 0x423   : > { %v4123_v27 = vor.u32 %v4122_v44, %v4121_v60  ;;  %v4126_v11 = vshll.u32 %v4125_v26, 23  ;;  %v4231_v34 = vsel %vm4230_vm2, 1, %v5787_v3  ;;  %v4243_v12 = vmul.u32 %v4239_v62, %v4215_v18 }
 0x424   : > { %v4233_v6 = vadd.s32 %v4231_v34, %v4229_v25  ;;  %v4246_v36 = vshll.u32 %v4242_v41, 16  ;;  %vm4248_vm1 = vc.u32 %v4240_v22, %v4244_v17  ;;  %v4250_v51 = vadd.s32 %v4244_v17, %v4240_v22 }
 0x425   : > { %v4127_v61 = vor.u32 4788187, %v4126_v11  ;;  %v4202_v33 = vsel %vm4200_vm5, %v8810_v40, 2102212464  ;;  %v4249_v4 = vsel %vm4248_vm1, 1, %v5787_v3  ;;  %v4324_v39 = vshrl.u32 %v4323_v13, 23 }
 0x426   : > { %v4234_v0 = vadd.s32 %v4233_v6, %v4223_v20  ;;  %v4130_v28 = vcvt.s32.f32 %v4123_v27  ;;  %v4251_v19 = vadd.s32 %v4249_v4, %v4243_v12  ;;  %vm4252_vm3 = vc.u32 %v4250_v51, %v4246_v36 }
 0x427   : > { %v4128_v56 = vand.u32 2147483647, %v4127_v61  ;;  %v4135_v18 = vsel %vm4012_vm13, %v4134_v21, %v8808_v54  ;;  %v4225_v10 = vshrl.u32 %v8851_v55, 16  ;;  %v4253_v62 = vsel %vm4252_vm3, 1, %v5787_v3  ;;  %v9905_v21 = vld [vmem:[#allocation8_spill] sm:$0xff] }
 0x428   : > { %v5613_v63 = vadd.s32 4294967169, %v4324_v39  ;;  %vm8878_vm4 = vcmp.le.f32.partialorder %v4010_v46, 0.7853982  ;;  %v4245_v14 = vshrl.u32 %v4241_v2, 16  ;;  %v4255_v16 = vadd.s32 %v4253_v62, %v4251_v19 }
 0x429   : > { %v4131_v13 = vmul.f32 %v4130_v28, %v4128_v56  ;;  %v4201_v35 = vsel %vm4197_vm6, %v4181_v5, %v8815_v59  ;;  %v4203_v54 = vsel %vm4199_vm7, %v8806_v32, %v4202_v33  ;;  %v4235_v55 = vadd.s32 %v4234_v0, %v4225_v10 }
 0x42a   : > { %v4330_v38 = vadd.s32 1, %v5613_v63  ;;  %v4137_v46 = vsel %vm8878_vm4, 0, %v4135_v18  ;;  %v4247_v60 = vshrl.u32 %v4242_v41, 16  ;;  %v4256_v37 = vadd.s32 %v4255_v16, %v4245_v14  ;;  %v9904_v41 = vld [vmem:[#allocation6_spill] sm:$0xff] }
 0x42b   : > { %v4132_v52 = vxor.u32 2147483648, %v4131_v13  ;;  %v4254_v44 = vadd.s32 %v4250_v51, %v4246_v36  ;;  %v4327_v26 = vand.u32 8388607, %v4320_v53  ;;  %v4204_v5 = vsel %vm4198_vm8, %v4201_v35, %v4203_v54 }
 0x42c   : > { %vm4331_vm5 = vcmp.gt.s32.totalorder %v4330_v38, 0  ;;  %v4257_v32 = vadd.s32 %v4256_v37, %v4247_v60  ;;  %v4154_v25 = vadd.s32 3, %v4137_v46  ;;  %v2903_v27 = vmul.f32 %v7795_v7, %v9904_v41 }
 0x42d   : > { %v4133_v59 = vsel %vm4012_vm13, %v4132_v52, %v4131_v13  ;;  %v4332_v50 = vsel %vm4331_vm5, %v4330_v38, 0  ;;  %vm4260_vm6 = vc.u32 %v4235_v55, %v4254_v44  ;;  %v4258_v58 = vmul.u32 %v8817_v8, %v4204_v5 }
 0x42e   : > { %v8899_v2 = vsel %vm8878_vm4, %v8581_v9, %v4133_v59  ;;  %v4334_v22 = vand.u32 31, %v4332_v50  ;;  %v4261_v34 = vadd.s32 1, %v4257_v32  ;;  %v8909_v20 = vadd.f32 %v2903_v27, %v9905_v21 }
 0x42f   : > { %v4138_v11 = vmul.f32 %v8899_v2, %v8899_v2  ;;  %v8911_v36 = vand.u32 3, %v4154_v25  ;;  %v4328_v33 = vor.u32 8388608, %v4327_v26  ;;  %v8913_v0 = vshrl.u32 %v4332_v50, 5 }
 0x430   : > { %v8906_v17 = vsub.s32 32, %v4334_v22  ;;  %v4262_v61 = vsel %vm4260_vm6, %v4261_v34, %v4257_v32  ;;  %v4346_v10 = vshll.u32 %v9858_v45, %v4334_v22  ;;  %v4337_v40 = vshll.u32 %v9860_v30, %v4334_v22 }
 0x431   : > { %v4139_v6 = vmul.f32 -0.001358992, %v4138_v11  ;;  %v4146_v12 = vmul.f32 -0.00019511016, %v4138_v11  ;;  %v4263_v51 = vadd.s32 %v4262_v61, %v4258_v58  ;;  %v4340_v13 = vshll.u32 %v9869_v24, %v4334_v22 }
 0x432   : > { %v4338_v56 = vshrl.u32 %v9869_v24, %v8906_v17  ;;  %v4347_v8 = vshrl.u32 %v9859_v48, %v8906_v17  ;;  %v4341_v19 = vshrl.u32 %v9870_v23, %v8906_v17  ;;  %v4344_v18 = vshrl.u32 %v9858_v45, %v8906_v17 }
 0x433   : > { %v4140_v4 = vadd.f32 0.041655596, %v4139_v6  ;;  %v4147_v39 = vadd.f32 0.008332121, %v4146_v12  ;;  %v4264_v28 = vadd.s32 536870912, %v4263_v51  ;;  %v4343_v16 = vshll.u32 %v9870_v23, %v4334_v22 }
 0x434   : > { %v4348_v35 = vor.u32 %v4347_v8, %v4346_v10  ;;  %v4350_v54 = vshrl.u32 %v9861_v31, %v8906_v17  ;;  %vm4160_vm7 = vcmp.eq.s32.totalorder %v8911_v36, 2  ;;  %v8932_v46 = vadd.s32 %v4254_v44, %v4235_v55 }
 0x435   : > { %v4141_v62 = vmul.f32 %v4140_v4, %v4138_v11  ;;  %v4148_v63 = vmul.f32 %v4147_v39, %v4138_v11  ;;  %v8926_v14 = vshrl.u32 %v4264_v28, 30  ;;  %v8934_v60 = vor.u32 %v4338_v56, %v4337_v40 }
 0x436   : > { %vm4157_vm8 = vcmp.eq.s32.totalorder %v8911_v36, 0  ;;  %v8938_v26 = vor.u32 %v4341_v19, %v4340_v13  ;;  %v4345_v59 = vor.u32 %v4344_v18, %v4343_v16  ;;  %v4349_v5 = vshll.u32 %v9859_v48, %v4334_v22 }
 0x437   : > { %v4142_v38 = vadd.f32 -0.4999988, %v4141_v62  ;;  %v4149_v52 = vadd.f32 -0.16666654, %v4148_v63  ;;  %v4266_v37 = vshll.u32 %v8926_v14, 30  ;;  %vm4156_vm11 = vcmp.lt.s32.totalorder %v8911_v36, 2 }
 0x438   : > { %vm4355_vm10 = vcmp.lt.s32.totalorder %v8913_v0, 4  ;;  %v8943_v25 = vshll.u32 %v4328_v33, 8  ;;  %vm4153_vm9 = vweird.f32 %v8581_v9  ;;  %v4351_v44 = vor.u32 %v4350_v54, %v4349_v5 }
 0x439   : > { %v4143_v32 = vmul.f32 %v4142_v38, %v4138_v11  ;;  %v4150_v50 = vmul.f32 %v4149_v52, %v4138_v11  ;;  %v8946_v55 = vsub.s32 %v4263_v51, %v4266_v37  ;;  %v4361_v27 = vsel %vm4355_vm10, %v4348_v35, 920167782 }
 0x43a   : > { %v4478_v34 = vand.u32 2139095040, %v8909_v20  ;;  %vm4167_vm12 = vcmp.lt.s32.totalorder %v8710_v15, 0  ;;  %vm4352_vm0 = vcmp.lt.s32.totalorder %v8913_v0, 1  ;;  %vm4354_vm14 = vcmp.lt.s32.totalorder %v8913_v0, 3 }
 0x43b   : > { %v4144_v58 = vadd.f32 1.0, %v4143_v32  ;;  %v4151_v22 = vadd.f32 1.0, %v4150_v50  ;;  %vm4268_vm13 = vcmp.lt.s32.totalorder %v8946_v55, 0  ;;  %v4269_v11 = vsub.s32 0, %v8946_v55 }
 0x43c   : > { %v4360_v6 = vsel %vm4352_vm0, %v8934_v60, %v8938_v26  ;;  %v4362_v12 = vsel %vm4354_vm14, %v4345_v59, %v4361_v27  ;;  %v4364_v33 = vsel %vm4352_vm0, %v8938_v26, %v4345_v59  ;;  %v4369_v4 = vand.u32 65535, %v8943_v25 }
 0x43d   : > { %v4152_v61 = vmul.f32 %v4151_v22, %v8899_v2  ;;  %v4161_v51 = vxor.u32 2147483648, %v4144_v58  ;;  %v4270_v39 = vsel %vm4268_vm13, %v4269_v11, %v8946_v55  ;;  %vm4353_vm15 = vcmp.lt.s32.totalorder %v8913_v0, 2 }
 0x43e   : > { %v4365_v56 = vsel %vm4355_vm10, %v4351_v44, 1326507024  ;;  %v4370_v8 = vshrl.u32 %v8943_v25, 16  ;;  %v4271_v19 = vclz %v4270_v39  ;;  %v4363_v2 = vsel %vm4353_vm15, %v4360_v6, %v4362_v12 }
 0x43f   : > { %v4158_v28 = vxor.u32 2147483648, %v4152_v61  ;;  %v4366_v18 = vsel %vm4354_vm14, %v4348_v35, %v4365_v56  ;;  %v4162_v10 = vsel %vm4160_vm7, %v4161_v51, %v4152_v61  ;;  %v4289_v62 = vsub.s32 4, %v8926_v14 }
 0x440   : > { %v4367_v63 = vsel %vm4353_vm15, %v4364_v33, %v4366_v18  ;;  %v4479_v40 = vshrl.u32 %v4478_v34, 23  ;;  %v5611_v16 = vadd.s32 4294967294, %v4271_v19  ;;  %v4336_v35 = vshrl.u32 %v9860_v30, %v8906_v17 }
 0x441   : > { %v4159_v13 = vsel %vm4157_vm8, %v4144_v58, %v4158_v28  ;;  %v4371_v54 = vand.u32 65535, %v4367_v63  ;;  %v4372_v38 = vshrl.u32 %v4367_v63, 16  ;;  %v4393_v37 = vand.u32 65535, %v4363_v2 }
 0x442   : > { %v4163_v52 = vsel %vm4156_vm11, %v4159_v13, %v4162_v10  ;;  %v4394_v5 = vshrl.u32 %v4363_v2, 16  ;;  %vm5612_vm2 = vcmp.lt.s32.totalorder %v5611_v16, 0  ;;  %v4357_v50 = vsel %vm4355_vm10, %v4345_v59, 2102212464 }
 0x443   : > { %v4164_v32 = vsel %vm4153_vm9, nan, %v4163_v52  ;;  %v4374_v44 = vmul.u32 %v4372_v38, %v4369_v4  ;;  %v4274_v27 = vsel %vm5612_vm2, 0, %v5611_v16  ;;  %v4290_v34 = vsel %vm4167_vm12, %v4289_v62, %v8926_v14 }
 0x444   : > { %v4375_v36 = vmul.u32 %v4371_v54, %v4370_v8  ;;  %v4396_v58 = vmul.u32 %v4394_v5, %v4369_v4  ;;  %5412 = vst [vmem:[%s6274_s10 + $0xb8] sm:$0xff] %v4164_v32  ;;  %v4275_v22 = vsub.s32 32, %v4274_v27  ;;  %v4279_v17 = vsub.s32 4294967266, %v4274_v27 }
 0x445   : > { %v4373_v11 = vmul.u32 %v4371_v54, %v4369_v4  ;;  %v4377_v6 = vshll.u32 %v4374_v44, 16  ;;  %v4276_v9 = vshll.u32 %v8946_v55, %v4274_v27  ;;  %v4376_v12 = vmul.u32 %v4372_v38, %v4370_v8 }
 0x446   : > { %v4379_v61 = vshll.u32 %v4375_v36, 16  ;;  %v4397_v51 = vmul.u32 %v4393_v37, %v4370_v8  ;;  %vm8998_vm1 = vcmp.le.f32.partialorder %v4165_v42, 0.7853982  ;;  %v4277_v14 = vshrl.u32 %v8932_v46, %v4275_v22 }
 0x447   : > { %v4280_v33 = vadd.s32 127, %v4279_v17  ;;  %vm4381_vm3 = vc.u32 %v4373_v11, %v4377_v6  ;;  %v4383_v39 = vadd.s32 %v4377_v6, %v4373_v11  ;;  %v4395_v28 = vmul.u32 %v4393_v37, %v4369_v4 }
 0x448   : > { %v4382_v56 = vsel %vm4381_vm3, 1, %v5787_v3  ;;  %v4398_v19 = vmul.u32 %v4394_v5, %v4370_v8  ;;  %v4399_v2 = vshll.u32 %v4396_v58, 16  ;;  %v4278_v55 = vor.u32 %v4277_v14, %v4276_v9 }
 0x449   : > { %v4281_v18 = vshll.u32 %v4280_v33, 23  ;;  %v4384_v10 = vadd.s32 %v4382_v56, %v4376_v12  ;;  %vm4385_vm4 = vc.u32 %v4383_v39, %v4379_v61  ;;  %v4401_v42 = vshll.u32 %v4397_v51, 16 }
 0x44a   : > { %v4386_v62 = vsel %vm4385_vm4, 1, %v5787_v3  ;;  %vm4403_vm5 = vc.u32 %v4395_v28, %v4399_v2  ;;  %v4405_v63 = vadd.s32 %v4399_v2, %v4395_v28  ;;  %v4378_v16 = vshrl.u32 %v4374_v44, 16 }
 0x44b   : > { %v4282_v13 = vor.u32 4788187, %v4281_v18  ;;  %v4388_v46 = vadd.s32 %v4386_v62, %v4384_v10  ;;  %v4404_v54 = vsel %vm4403_vm5, 1, %v5787_v3  ;;  %v4285_v38 = vcvt.s32.f32 %v4278_v55 }
 0x44c   : > { %v4380_v52 = vshrl.u32 %v4375_v36, 16  ;;  %v4406_v32 = vadd.s32 %v4404_v54, %v4398_v19  ;;  %vm4407_vm6 = vc.u32 %v4405_v63, %v4401_v42  ;;  %v5616_v5 = vadd.s32 4294967169, %v4479_v40 }
 0x44d   : > { %v4283_v4 = vand.u32 2147483647, %v4282_v13  ;;  %v4389_v8 = vadd.s32 %v4388_v46, %v4378_v16  ;;  %v4408_v37 = vsel %vm4407_vm6, 1, %v5787_v3  ;;  %v4356_v27 = vsel %vm4352_vm0, %v4336_v35, %v8934_v60 }
 0x44e   : > { %v4400_v22 = vshrl.u32 %v4396_v58, 16  ;;  %v4410_v17 = vadd.s32 %v4408_v37, %v4406_v32  ;;  %v4475_v44 = vand.u32 2147483647, %v8909_v20  ;;  %v4358_v36 = vsel %vm4354_vm14, %v8938_v26, %v4357_v50 }
 0x44f   : > { %v4286_v11 = vmul.f32 %v4285_v38, %v4283_v4  ;;  %v9014_v6 = vadd.s32 %v4389_v8, %v4380_v52  ;;  %v4485_v9 = vadd.s32 1, %v5616_v5  ;;  %v4292_v12 = vsel %vm8998_vm1, 0, %v4290_v34 }
 0x450   : > { %v4402_v40 = vshrl.u32 %v4397_v51, 16  ;;  %v4411_v61 = vadd.s32 %v4410_v17, %v4400_v22  ;;  %v9018_v33 = vadd.s32 %v4405_v63, %v4401_v42  ;;  %v4359_v60 = vsel %vm4353_vm15, %v4356_v27, %v4358_v36 }
 0x451   : > { %v4287_v14 = vxor.u32 2147483648, %v4286_v11  ;;  %vm4486_vm7 = vcmp.gt.s32.totalorder %v4485_v9, 0  ;;  %v4482_v58 = vand.u32 8388607, %v4475_v44  ;;  %v4309_v39 = vadd.s32 3, %v4292_v12 }
 0x452   : > { %v4412_v35 = vadd.s32 %v4411_v61, %v4402_v40  ;;  %v4487_v26 = vsel %vm4486_vm7, %v4485_v9, 0  ;;  %vm4415_vm8 = vc.u32 %v9014_v6, %v9018_v33  ;;  %v2904_v51 = vmul.f32 %v7825_v29, %v9904_v41 }
 0x453   : > { %v4288_v50 = vsel %vm4167_vm12, %v4287_v14, %v4286_v11  ;;  %v4489_v34 = vand.u32 31, %v4487_v26  ;;  %v4413_v19 = vmul.u32 %v8943_v25, %v4359_v60  ;;  %v9038_v55 = vmul.f32 %v7795_v7, %v6037_v1 }
 0x454   : > { %v4291_v0 = vsel %vm8998_vm1, %v8710_v15, %v4288_v50  ;;  %v4416_v56 = vadd.s32 1, %v4412_v35  ;;  %v9041_v18 = vadd.f32 %v2904_v51, %v9905_v21  ;;  %v4483_v62 = vor.u32 8388608, %v4482_v58 }
 0x455   : > { %v4293_v28 = vmul.f32 %v4291_v0, %v4291_v0  ;;  %v9034_v2 = vsub.s32 32, %v4489_v34  ;;  %v9043_v63 = vand.u32 3, %v4309_v39  ;;  %v9045_v13 = vshrl.u32 %v4487_v26, 5 }
 0x456   : > { %v4417_v10 = vsel %vm4415_vm8, %v4416_v56, %v4412_v35  ;;  %v4501_v52 = vshll.u32 %v9858_v45, %v4489_v34  ;;  %v4495_v4 = vshll.u32 %v9869_v24, %v4489_v34  ;;  %v4498_v8 = vshll.u32 %v9870_v23, %v4489_v34 }
 0x457   : > { %v4294_v41 = vmul.f32 -0.001358992, %v4293_v28  ;;  %v4301_v42 = vmul.f32 -0.00019511016, %v4293_v28  ;;  %v4418_v59 = vadd.s32 %v4417_v10, %v4413_v19  ;;  %v4496_v25 = vshrl.u32 %v9870_v23, %v9034_v2 }
 0x458   : > { %v4499_v16 = vshrl.u32 %v9858_v45, %v9034_v2  ;;  %v4502_v46 = vshrl.u32 %v9859_v48, %v9034_v2  ;;  %v4493_v32 = vshrl.u32 %v9869_v24, %v9034_v2  ;;  %v4505_v37 = vshrl.u32 %v9861_v31, %v9034_v2 }
 0x459   : > { %v4295_v21 = vadd.f32 0.041655596, %v4294_v41  ;;  %v4302_v54 = vadd.f32 0.008332121, %v4301_v42  ;;  %v4419_v38 = vadd.s32 536870912, %v4418_v59  ;;  %v4492_v11 = vshll.u32 %v9860_v30, %v4489_v34 }
 0x45a   : > { %v4503_v17 = vor.u32 %v4502_v46, %v4501_v52  ;;  %v9063_v36 = vor.u32 %v4496_v25, %v4495_v4  ;;  %v9065_v9 = vor.u32 %v4499_v16, %v4498_v8  ;;  %v4504_v12 = vshll.u32 %v9859_v48, %v4489_v34 }
 0x45b   : > { %v4296_v5 = vmul.f32 %v4295_v21, %v4293_v28  ;;  %v4303_v27 = vmul.f32 %v4302_v54, %v4293_v28  ;;  %v9060_v22 = vshrl.u32 %v4419_v38, 30  ;;  %v9069_v60 = vshll.u32 %v4483_v62, 8 }
 0x45c   : > { %vm4312_vm11 = vcmp.eq.s32.totalorder %v9043_v63, 0  ;;  %vm4315_vm10 = vcmp.eq.s32.totalorder %v9043_v63, 2  ;;  %v9073_v35 = vor.u32 %v4493_v32, %v4492_v11  ;;  %v4506_v58 = vor.u32 %v4505_v37, %v4504_v12 }
 0x45d   : > { %v4297_v40 = vadd.f32 -0.4999988, %v4296_v5  ;;  %v4304_v61 = vadd.f32 -0.16666654, %v4303_v27  ;;  %v4421_v14 = vshll.u32 %v9060_v22, 30  ;;  %vm4507_vm9 = vcmp.lt.s32.totalorder %v9045_v13, 1 }
 0x45e   : > { %vm4510_vm12 = vcmp.lt.s32.totalorder %v9045_v13, 4  ;;  %vm4311_vm0 = vcmp.lt.s32.totalorder %v9043_v63, 2  ;;  %vm4308_vm14 = vweird.f32 %v8710_v15  ;;  %vm4509_vm13 = vcmp.lt.s32.totalorder %v9045_v13, 3 }
 0x45f   : > { %v4298_v26 = vmul.f32 %v4297_v40, %v4293_v28  ;;  %v4305_v50 = vmul.f32 %v4304_v61, %v4293_v28  ;;  %v9078_v39 = vsub.s32 %v4418_v59, %v4421_v14  ;;  %v4516_v34 = vsel %vm4510_vm12, %v4503_v17, 920167782 }
 0x460   : > { %v4519_v51 = vsel %vm4507_vm9, %v9063_v36, %v9065_v9  ;;  %v4630_v56 = vand.u32 2147483647, %v9041_v18  ;;  %v4633_v28 = vand.u32 2139095040, %v9041_v18  ;;  %vm4508_vm2 = vcmp.lt.s32.totalorder %v9045_v13, 2 }
 0x461   : > { %v4299_v19 = vadd.f32 1.0, %v4298_v26  ;;  %v4306_v10 = vadd.f32 1.0, %v4305_v50  ;;  %vm4423_vm15 = vcmp.lt.s32.totalorder %v9078_v39, 0  ;;  %v4424_v62 = vsub.s32 0, %v9078_v39 }
 0x462   : > { %v4515_v41 = vsel %vm4507_vm9, %v9073_v35, %v9063_v36  ;;  %v4517_v42 = vsel %vm4509_vm13, %v9065_v9, %v4516_v34  ;;  %v4520_v59 = vsel %vm4510_vm12, %v4506_v58, 1326507024  ;;  %v4524_v52 = vand.u32 65535, %v9069_v60 }
 0x463   : > { %v4307_v25 = vmul.f32 %v4306_v10, %v4291_v0  ;;  %v4316_v16 = vxor.u32 2147483648, %v4299_v19  ;;  %v4425_v46 = vsel %vm4423_vm15, %v4424_v62, %v9078_v39  ;;  %v4521_v21 = vsel %vm4509_vm13, %v4503_v17, %v4520_v59 }
 0x464   : > { %v4426_v54 = vclz %v4425_v46  ;;  %v4522_v38 = vsel %vm4508_vm2, %v4519_v51, %v4521_v21  ;;  %v4525_v32 = vshrl.u32 %v9069_v60, 16  ;;  %v4518_v8 = vsel %vm4508_vm2, %v4515_v41, %v4517_v42 }
 0x465   : > { %v4313_v4 = vxor.u32 2147483648, %v4307_v25  ;;  %v4526_v37 = vand.u32 65535, %v4522_v38  ;;  %v4527_v0 = vshrl.u32 %v4522_v38, 16  ;;  %v4414_v5 = vadd.s32 %v9018_v33, %v9014_v6 }
 0x466   : > { %v5614_v27 = vadd.s32 4294967294, %v4426_v54  ;;  %v4491_v17 = vshrl.u32 %v9860_v30, %v9034_v2  ;;  %v4634_v11 = vshrl.u32 %v4633_v28, 23  ;;  %v4317_v40 = vsel %vm4315_vm10, %v4316_v16, %v4307_v25 }
 0x467   : > { %v4314_v12 = vsel %vm4312_vm11, %v4299_v19, %v4313_v4  ;;  %v4529_v61 = vmul.u32 %v4527_v0, %v4524_v52  ;;  %v4530_v14 = vmul.u32 %v4526_v37, %v4525_v32  ;;  %vm4322_vm1 = vcmp.lt.s32.totalorder %v8813_v47, 0 }
 0x468   : > { %v4318_v58 = vsel %vm4311_vm0, %v4314_v12, %v4317_v40  ;;  %vm5615_vm3 = vcmp.lt.s32.totalorder %v5614_v27, 0  ;;  %v4548_v6 = vand.u32 65535, %v4518_v8  ;;  %v4549_v33 = vshrl.u32 %v4518_v8, 16 }
 0x469   : > { %v4319_v2 = vsel %vm4308_vm14, nan, %v4318_v58  ;;  %v4429_v26 = vsel %vm5615_vm3, 0, %v5614_v27  ;;  %v4528_v50 = vmul.u32 %v4526_v37, %v4524_v52  ;;  %v4532_v34 = vshll.u32 %v4529_v61, 16 }
 0x46a   : > { %v4430_v51 = vsub.s32 32, %v4429_v26  ;;  %v4434_v28 = vsub.s32 4294967266, %v4429_v26  ;;  %v4444_v19 = vsub.s32 4, %v9060_v22  ;;  %v4531_v10 = vmul.u32 %v4527_v0, %v4525_v32  ;;  %5413 = vst [vmem:[%s6274_s10 + $0xc0] sm:$0xff] %v4319_v2 }
 0x46b   : > { %v4431_v63 = vshll.u32 %v9078_v39, %v4429_v26  ;;  %v4534_v62 = vshll.u32 %v4530_v14, 16  ;;  %vm4536_vm4 = vc.u32 %v4528_v50, %v4532_v34  ;;  %v4538_v41 = vadd.s32 %v4532_v34, %v4528_v50 }
 0x46c   : > { %vm9129_vm5 = vcmp.le.f32.partialorder %v4320_v53, 0.7853982  ;;  %v4432_v15 = vshrl.u32 %v4414_v5, %v4430_v51  ;;  %v4435_v59 = vadd.s32 127, %v4434_v28  ;;  %v4537_v25 = vsel %vm4536_vm4, 1, %v5787_v3 }
 0x46d   : > { %v4551_v16 = vmul.u32 %v4549_v33, %v4524_v52  ;;  %v4539_v46 = vadd.s32 %v4537_v25, %v4531_v10  ;;  %vm4540_vm6 = vc.u32 %v4538_v41, %v4534_v62  ;;  %v4550_v21 = vmul.u32 %v4548_v6, %v4524_v52 }
 0x46e   : > { %v4552_v54 = vmul.u32 %v4548_v6, %v4525_v32  ;;  %v4433_v38 = vor.u32 %v4432_v15, %v4431_v63  ;;  %v4436_v39 = vshll.u32 %v4435_v59, 23  ;;  %v4541_v4 = vsel %vm4540_vm6, 1, %v5787_v3 }
 0x46f   : > { %v4554_v8 = vshll.u32 %v4551_v16, 16  ;;  %v4512_v53 = vsel %vm4510_vm12, %v9065_v9, 2102212464  ;;  %v4533_v37 = vshrl.u32 %v4529_v61, 16  ;;  %v4543_v0 = vadd.s32 %v4541_v4, %v4539_v46 }
 0x470   : > { %v4553_v5 = vmul.u32 %v4549_v33, %v4525_v32  ;;  %v4437_v27 = vor.u32 4788187, %v4436_v39  ;;  %v4556_v12 = vshll.u32 %v4552_v54, 16  ;;  %v4445_v52 = vsel %vm4322_vm1, %v4444_v19, %v9060_v22 }
 0x471   : > { %vm4558_vm7 = vc.u32 %v4550_v21, %v4554_v8  ;;  %v4560_v40 = vadd.s32 %v4554_v8, %v4550_v21  ;;  %v4544_v58 = vadd.s32 %v4543_v0, %v4533_v37  ;;  %v5619_v2 = vadd.s32 4294967169, %v4634_v11 }
 0x472   : > { %v4559_v6 = vsel %vm4558_vm7, 1, %v5787_v3  ;;  %v4438_v26 = vand.u32 2147483647, %v4437_v27  ;;  %v4440_v50 = vcvt.s32.f32 %v4433_v38  ;;  %v4511_v9 = vsel %vm4507_vm9, %v4491_v17, %v9073_v35 }
 0x473   : > { %v4561_v34 = vadd.s32 %v4559_v6, %v4553_v5  ;;  %vm4562_vm8 = vc.u32 %v4560_v40, %v4556_v12  ;;  %v4535_v32 = vshrl.u32 %v4530_v14, 16  ;;  %v4640_v33 = vadd.s32 1, %v5619_v2 }
 0x474   : > { %v4563_v61 = vsel %vm4562_vm8, 1, %v5787_v3  ;;  %v4441_v51 = vmul.f32 %v4440_v50, %v4438_v26  ;;  %v4513_v22 = vsel %vm4509_vm13, %v9063_v36, %v4512_v53  ;;  %v4555_v28 = vshrl.u32 %v4551_v16, 16 }
 0x475   : > { %v4565_v19 = vadd.s32 %v4563_v61, %v4561_v34  ;;  %v4447_v11 = vsel %vm9129_vm5, 0, %v4445_v52  ;;  %v9151_v10 = vadd.s32 %v4544_v58, %v4535_v32  ;;  %vm4641_vm11 = vcmp.gt.s32.totalorder %v4640_v33, 0 }
 0x476   : > { %v4442_v63 = vxor.u32 2147483648, %v4441_v51  ;;  %v4557_v62 = vshrl.u32 %v4552_v54, 16  ;;  %v4642_v17 = vsel %vm4641_vm11, %v4640_v33, 0  ;;  %v4514_v14 = vsel %vm4508_vm2, %v4511_v9, %v4513_v22 }
 0x477   : > { %v4566_v35 = vadd.s32 %v4565_v19, %v4555_v28  ;;  %v9155_v41 = vadd.s32 %v4560_v40, %v4556_v12  ;;  %v4644_v15 = vand.u32 31, %v4642_v17  ;;  %v9159_v36 = vadd.f32 %v9038_v55, %v7266_v57 }
 0x478   : > { %v4443_v59 = vsel %vm4322_vm1, %v4442_v63, %v4441_v51  ;;  %v4637_v16 = vand.u32 8388607, %v4630_v56  ;;  %v4464_v13 = vadd.s32 3, %v4447_v11  ;;  %v4568_v55 = vmul.u32 %v9069_v60, %v4514_v14 }
 0x479   : > { %v4567_v25 = vadd.s32 %v4566_v35, %v4557_v62  ;;  %v4446_v46 = vsel %vm9129_vm5, %v8813_v47, %v4443_v59  ;;  %vm4570_vm10 = vc.u32 %v9151_v10, %v9155_v41  ;;  %v9170_v21 = vsub.s32 32, %v4644_v15 }
 0x47a   : > { %v4448_v54 = vmul.f32 %v4446_v46, %v4446_v46  ;;  %v4647_v39 = vshll.u32 %v9860_v30, %v4644_v15  ;;  %v4650_v8 = vshll.u32 %v9869_v24, %v4644_v15  ;;  %v9183_v12 = vshrl.u32 %v4642_v17, 5 }
 0x47b   : > { %v4571_v38 = vadd.s32 1, %v4567_v25  ;;  %v4648_v4 = vshrl.u32 %v9869_v24, %v9170_v21  ;;  %v4651_v42 = vshrl.u32 %v9870_v23, %v9170_v21  ;;  %v4654_v53 = vshrl.u32 %v9858_v45, %v9170_v21 }
 0x47c   : > { %v4449_v37 = vmul.f32 -0.001358992, %v4448_v54  ;;  %v4456_v0 = vmul.f32 -0.00019511016, %v4448_v54  ;;  %v4657_v60 = vshrl.u32 %v9859_v48, %v9170_v21  ;;  %v4653_v40 = vshll.u32 %v9870_v23, %v4644_v15 }
 0x47d   : > { %v4572_v5 = vsel %vm4570_vm10, %v4571_v38, %v4567_v25  ;;  %v4656_v52 = vshll.u32 %v9858_v45, %v4644_v15  ;;  %v9187_v2 = vor.u32 %v4648_v4, %v4647_v39  ;;  %v9189_v26 = vor.u32 %v4651_v42, %v4650_v8 }
 0x47e   : > { %v4573_v27 = vadd.s32 %v4572_v5, %v4568_v55  ;;  %v4450_v58 = vadd.f32 0.041655596, %v4449_v37  ;;  %v4457_v6 = vadd.f32 0.008332121, %v4456_v0  ;;  %v4659_v9 = vshll.u32 %v9859_v48, %v4644_v15 }
 0x47f   : > { %v4658_v34 = vor.u32 %v4657_v60, %v4656_v52  ;;  %v4660_v32 = vshrl.u32 %v9861_v31, %v9170_v21  ;;  %v9194_v51 = vor.u32 %v4654_v53, %v4653_v40  ;;  %v4785_v22 = vand.u32 2147483647, %v9159_v36 }
 0x480   : > { %v4574_v50 = vadd.s32 536870912, %v4573_v27  ;;  %v4451_v61 = vmul.f32 %v4450_v58, %v4448_v54  ;;  %v4458_v33 = vmul.f32 %v4457_v6, %v4448_v54  ;;  %v4465_v28 = vand.u32 3, %v4464_v13 }
 0x481   : > { %v4638_v11 = vor.u32 8388608, %v4637_v16  ;;  %v4661_v63 = vor.u32 %v4660_v32, %v4659_v9  ;;  %vm4662_vm9 = vcmp.lt.s32.totalorder %v9183_v12, 1  ;;  %vm4665_vm12 = vcmp.lt.s32.totalorder %v9183_v12, 4 }
 0x482   : > { %v9197_v19 = vshrl.u32 %v4574_v50, 30  ;;  %v4452_v62 = vadd.f32 -0.4999988, %v4451_v61  ;;  %v4459_v35 = vadd.f32 -0.16666654, %v4458_v33  ;;  %vm4664_vm0 = vcmp.lt.s32.totalorder %v9183_v12, 3 }
 0x483   : > { %v4670_v14 = vsel %vm4662_vm9, %v9187_v2, %v9189_v26  ;;  %v4671_v15 = vsel %vm4665_vm12, %v4658_v34, 920167782  ;;  %v4674_v13 = vsel %vm4662_vm9, %v9189_v26, %v9194_v51  ;;  %vm4463_vm14 = vweird.f32 %v8813_v47 }
 0x484   : > { %v4576_v17 = vshll.u32 %v9197_v19, 30  ;;  %v4453_v59 = vmul.f32 %v4452_v62, %v4448_v54  ;;  %v4460_v25 = vmul.f32 %v4459_v35, %v4448_v54  ;;  %v4672_v16 = vsel %vm4664_vm0, %v9194_v51, %v4671_v15 }
 0x485   : > { %vm4466_vm13 = vcmp.lt.s32.totalorder %v4465_v28, 2  ;;  %v4675_v38 = vsel %vm4665_vm12, %v4661_v63, 1326507024  ;;  %v9221_v39 = vshll.u32 %v4638_v11, 8  ;;  %vm4663_vm15 = vcmp.lt.s32.totalorder %v9183_v12, 2 }
 0x486   : > { %v9217_v55 = vsub.s32 %v4573_v27, %v4576_v17  ;;  %v4454_v54 = vadd.f32 1.0, %v4453_v59  ;;  %v4461_v4 = vadd.f32 1.0, %v4460_v25  ;;  %v4676_v8 = vsel %vm4664_vm0, %v4658_v34, %v4675_v38 }
 0x487   : > { %v4673_v53 = vsel %vm4663_vm15, %v4670_v14, %v4672_v16  ;;  %v4677_v37 = vsel %vm4663_vm15, %v4674_v13, %v4676_v8  ;;  %vm4467_vm1 = vcmp.eq.s32.totalorder %v4465_v28, 0  ;;  %vm4470_vm3 = vcmp.eq.s32.totalorder %v4465_v28, 2 }
 0x488   : > { %vm4578_vm2 = vcmp.lt.s32.totalorder %v9217_v55, 0  ;;  %v4579_v42 = vsub.s32 0, %v9217_v55  ;;  %v4462_v0 = vmul.f32 %v4461_v4, %v4446_v46  ;;  %v4471_v5 = vxor.u32 2147483648, %v4454_v54 }
 0x489   : > { %v4681_v60 = vand.u32 65535, %v4677_v37  ;;  %v4682_v27 = vshrl.u32 %v4677_v37, 16  ;;  %v4679_v52 = vand.u32 65535, %v9221_v39  ;;  %v4569_v6 = vadd.s32 %v9155_v41, %v9151_v10 }
 0x48a   : > { %v4580_v40 = vsel %vm4578_vm2, %v4579_v42, %v9217_v55  ;;  %v4468_v58 = vxor.u32 2147483648, %v4462_v0  ;;  %v4680_v34 = vshrl.u32 %v9221_v39, 16  ;;  %v4703_v32 = vand.u32 65535, %v4673_v53 }
 0x48b   : > { %v4581_v50 = vclz %v4580_v40  ;;  %v4684_v9 = vmul.u32 %v4682_v27, %v4679_v52  ;;  %v4704_v61 = vshrl.u32 %v4673_v53, 16  ;;  %v4788_v46 = vand.u32 2139095040, %v9159_v36 }
 0x48c   : > { %v4469_v33 = vsel %vm4467_vm1, %v4454_v54, %v4468_v58  ;;  %v4472_v11 = vsel %vm4470_vm3, %v4471_v5, %v4462_v0  ;;  %v4685_v62 = vmul.u32 %v4681_v60, %v4680_v34  ;;  %v4599_v17 = vsub.s32 4, %v9197_v19 }
 0x48d   : > { %v5617_v63 = vadd.s32 4294967294, %v4581_v50  ;;  %v4473_v35 = vsel %vm4466_vm13, %v4469_v33, %v4472_v11  ;;  %v4683_v14 = vmul.u32 %v4681_v60, %v4679_v52  ;;  %v4687_v15 = vshll.u32 %v4684_v9, 16 }
 0x48e   : > { %v4474_v10 = vsel %vm4463_vm14, nan, %v4473_v35  ;;  %vm4477_vm4 = vcmp.lt.s32.totalorder %v8909_v20, 0  ;;  %v4686_v41 = vmul.u32 %v4682_v27, %v4680_v34  ;;  %v4689_v59 = vshll.u32 %v4685_v62, 16 }
 0x48f   : > { %vm5618_vm5 = vcmp.lt.s32.totalorder %v5617_v63, 0  ;;  %vm4691_vm6 = vc.u32 %v4683_v14, %v4687_v15  ;;  %v4693_v16 = vadd.s32 %v4687_v15, %v4683_v14  ;;  %v4706_v13 = vmul.u32 %v4704_v61, %v4679_v52  ;;  %5414 = vst [vmem:[%s6274_s10 + $0xc8] sm:$0xff] %v4474_v10 }
 0x490   : > { %v4584_v25 = vsel %vm5618_vm5, 0, %v5617_v63  ;;  %v4692_v54 = vsel %vm4691_vm6, 1, %v5787_v3  ;;  %v4705_v4 = vmul.u32 %v4703_v32, %v4679_v52  ;;  %vm9247_vm7 = vcmp.le.f32.partialorder %v4475_v44, 0.7853982 }
 0x491   : > { %v4585_v38 = vsub.s32 32, %v4584_v25  ;;  %v4589_v28 = vsub.s32 4294967266, %v4584_v25  ;;  %v4586_v8 = vshll.u32 %v9217_v55, %v4584_v25  ;;  %v4694_v42 = vadd.s32 %v4692_v54, %v4686_v41 }
 0x492   : > { %vm4695_vm8 = vc.u32 %v4693_v16, %v4689_v59  ;;  %v4707_v53 = vmul.u32 %v4703_v32, %v4680_v34  ;;  %v4709_v60 = vshll.u32 %v4706_v13, 16  ;;  %v4688_v27 = vshrl.u32 %v4684_v9, 16 }
 0x493   : > { %v4587_v37 = vshrl.u32 %v4569_v6, %v4585_v38  ;;  %v4590_v0 = vadd.s32 127, %v4589_v28  ;;  %v4696_v5 = vsel %vm4695_vm8, 1, %v5787_v3  ;;  %v4708_v58 = vmul.u32 %v4704_v61, %v4680_v34 }
 0x494   : > { %v4698_v40 = vadd.s32 %v4696_v5, %v4694_v42  ;;  %v4711_v52 = vshll.u32 %v4707_v53, 16  ;;  %vm4713_vm11 = vc.u32 %v4705_v4, %v4709_v60  ;;  %v4715_v44 = vadd.s32 %v4709_v60, %v4705_v4 }
 0x495   : > { %v4588_v50 = vor.u32 %v4587_v37, %v4586_v8  ;;  %v4591_v33 = vshll.u32 %v4590_v0, 23  ;;  %v4646_v11 = vshrl.u32 %v9860_v30, %v9170_v21  ;;  %v4714_v63 = vsel %vm4713_vm11, 1, %v5787_v3 }
 0x496   : > { %v4699_v55 = vadd.s32 %v4698_v40, %v4688_v27  ;;  %v4789_v32 = vshrl.u32 %v4788_v46, 23  ;;  %v4667_v35 = vsel %vm4665_vm12, %v9194_v51, 2102212464  ;;  %v4716_v9 = vadd.s32 %v4714_v63, %v4708_v58 }
 0x497   : > { %v4592_v6 = vor.u32 4788187, %v4591_v33  ;;  %vm4717_vm10 = vc.u32 %v4715_v44, %v4711_v52  ;;  %v4600_v34 = vsel %vm4477_vm4, %v4599_v17, %v9197_v19  ;;  %v4690_v61 = vshrl.u32 %v4685_v62, 16 }
 0x498   : > { %v4718_v14 = vsel %vm4717_vm10, 1, %v5787_v3  ;;  %v5622_v15 = vadd.s32 4294967169, %v4789_v32  ;;  %v4595_v10 = vcvt.s32.f32 %v4588_v50  ;;  %v4710_v41 = vshrl.u32 %v4706_v13, 16 }
 0x499   : > { %v4593_v21 = vand.u32 2147483647, %v4592_v6  ;;  %v4720_v59 = vadd.s32 %v4718_v14, %v4716_v9  ;;  %v4666_v46 = vsel %vm4662_vm9, %v4646_v11, %v9187_v2  ;;  %v4668_v51 = vsel %vm4664_vm0, %v9189_v26, %v4667_v35 }
 0x49a   : > { %v9269_v25 = vadd.s32 %v4699_v55, %v4690_v61  ;;  %v4795_v16 = vadd.s32 1, %v5622_v15  ;;  %v4602_v62 = vsel %vm9247_vm7, 0, %v4600_v34  ;;  %v4712_v17 = vshrl.u32 %v4707_v53, 16 }
 0x49b   : > { %v4596_v19 = vmul.f32 %v4595_v10, %v4593_v21  ;;  %v4721_v38 = vadd.s32 %v4720_v59, %v4710_v41  ;;  %v9273_v28 = vadd.s32 %v4715_v44, %v4711_v52  ;;  %v4669_v2 = vsel %vm4663_vm15, %v4666_v46, %v4668_v51 }
 0x49c   : > { %vm4796_vm12 = vcmp.gt.s32.totalorder %v4795_v16, 0  ;;  %v4619_v8 = vadd.s32 3, %v4602_v62  ;;  %v4792_v26 = vand.u32 8388607, %v4785_v22  ;;  %v2906_v0 = vmul.f32 %v7825_v29, %v6037_v1 }
 0x49d   : > { %v4597_v13 = vxor.u32 2147483648, %v4596_v19  ;;  %v4722_v54 = vadd.s32 %v4721_v38, %v4712_v17  ;;  %v4797_v4 = vsel %vm4796_vm12, %v4795_v16, 0  ;;  %vm4725_vm9 = vc.u32 %v9269_v25, %v9273_v28 }
 0x49e   : > { %v4799_v42 = vand.u32 31, %v4797_v4  ;;  %v4723_v5 = vmul.u32 %v9221_v39, %v4669_v2  ;;  %v9295_v27 = vmul.f32 %v7795_v7, %v6239_v43  ;;  %v9299_v40 = vmul.f32 %v7825_v29, %v6239_v43 }
 0x49f   : > { %v4598_v53 = vsel %vm4477_vm4, %v4597_v13, %v4596_v19  ;;  %v4726_v37 = vadd.s32 1, %v4722_v54  ;;  %v9303_v52 = vand.u32 3, %v4619_v8  ;;  %v4793_v50 = vor.u32 8388608, %v4792_v26 }
 0x4a0   : > { %v9288_v12 = vsel %vm9247_vm7, %v8909_v20, %v4598_v53  ;;  %v9291_v60 = vsub.s32 32, %v4799_v42  ;;  %v9311_v11 = vshrl.u32 %v4797_v4, 5  ;;  %v4811_v63 = vshll.u32 %v9858_v45, %v4799_v42 }
 0x4a1   : > { %v4603_v1 = vmul.f32 %v9288_v12, %v9288_v12  ;;  %v4727_v58 = vsel %vm4725_vm9, %v4726_v37, %v4722_v54  ;;  %v4802_v35 = vshll.u32 %v9860_v30, %v4799_v42  ;;  %v4805_v9 = vshll.u32 %v9869_v24, %v4799_v42 }
 0x4a2   : > { %v4728_v47 = vadd.s32 %v4727_v58, %v4723_v5  ;;  %v4803_v39 = vshrl.u32 %v9869_v24, %v9291_v60  ;;  %v4806_v7 = vshrl.u32 %v9870_v23, %v9291_v60  ;;  %v4812_v43 = vshrl.u32 %v9859_v48, %v9291_v60 }
 0x4a3   : > { %v4604_v33 = vmul.f32 -0.001358992, %v4603_v1  ;;  %v4611_v44 = vmul.f32 -0.00019511016, %v4603_v1  ;;  %v4809_v55 = vshrl.u32 %v9858_v45, %v9291_v60  ;;  %v4808_v61 = vshll.u32 %v9870_v23, %v4799_v42 }
 0x4a4   : > { %v4729_v29 = vadd.s32 536870912, %v4728_v47  ;;  %v4813_v14 = vor.u32 %v4812_v43, %v4811_v63  ;;  %v4815_v15 = vshrl.u32 %v9861_v31, %v9291_v60  ;;  %v4804_v41 = vor.u32 %v4803_v39, %v4802_v35 }
 0x4a5   : > { %v4605_v32 = vadd.f32 0.041655596, %v4604_v33  ;;  %v4612_v6 = vadd.f32 0.008332121, %v4611_v44  ;;  %v9323_v59 = vor.u32 %v4806_v7, %v4805_v9  ;;  %v9326_v46 = vadd.f32 %v2906_v0, %v7266_v57 }
 0x4a6   : > { %v9318_v34 = vshrl.u32 %v4729_v29, 30  ;;  %v4810_v16 = vor.u32 %v4809_v55, %v4808_v61  ;;  %v4814_v19 = vshll.u32 %v9859_v48, %v4799_v42  ;;  %vm4820_vm0 = vcmp.lt.s32.totalorder %v9311_v11, 4 }
 0x4a7   : > { %v4606_v21 = vmul.f32 %v4605_v32, %v4603_v1  ;;  %v4613_v10 = vmul.f32 %v4612_v6, %v4603_v1  ;;  %v9331_v38 = vshll.u32 %v4793_v50, 8  ;;  %vm4622_vm14 = vcmp.eq.s32.totalorder %v9303_v52, 0 }
 0x4a8   : > { %v4731_v51 = vshll.u32 %v9318_v34, 30  ;;  %vm4625_vm13 = vcmp.eq.s32.totalorder %v9303_v52, 2  ;;  %v4816_v2 = vor.u32 %v4815_v15, %v4814_v19  ;;  %vm4817_vm15 = vcmp.lt.s32.totalorder %v9311_v11, 1 }
 0x4a9   : > { %v4607_v62 = vadd.f32 -0.4999988, %v4606_v21  ;;  %v4614_v17 = vadd.f32 -0.16666654, %v4613_v10  ;;  %v4826_v57 = vsel %vm4820_vm0, %v4813_v14, 920167782  ;;  %v4825_v8 = vsel %vm4817_vm15, %v4804_v41, %v9323_v59 }
 0x4aa   : > { %v9335_v13 = vsub.s32 %v4728_v47, %v4731_v51  ;;  %vm4621_vm2 = vcmp.lt.s32.totalorder %v9303_v52, 2  ;;  %vm4819_vm1 = vcmp.lt.s32.totalorder %v9311_v11, 3  ;;  %vm4618_vm3 = vweird.f32 %v8909_v20 }
 0x4ab   : > { %v4608_v54 = vmul.f32 %v4607_v62, %v4603_v1  ;;  %v4615_v4 = vmul.f32 %v4614_v17, %v4603_v1  ;;  %v4827_v42 = vsel %vm4819_vm1, %v4810_v16, %v4826_v57  ;;  %v4943_v53 = vand.u32 2139095040, %v9326_v46 }
 0x4ac   : > { %vm4733_vm4 = vcmp.lt.s32.totalorder %v9335_v13, 0  ;;  %v4734_v26 = vsub.s32 0, %v9335_v13  ;;  %vm4818_vm5 = vcmp.lt.s32.totalorder %v9311_v11, 2  ;;  %v4829_v5 = vsel %vm4817_vm15, %v9323_v59, %v4810_v16 }
 0x4ad   : > { %v4609_v37 = vadd.f32 1.0, %v4608_v54  ;;  %v4616_v0 = vadd.f32 1.0, %v4615_v4  ;;  %v4724_v1 = vadd.s32 %v9273_v28, %v9269_v25  ;;  %v4828_v47 = vsel %vm4818_vm5, %v4825_v8, %v4827_v42 }
 0x4ae   : > { %v4735_v58 = vsel %vm4733_vm4, %v4734_v26, %v9335_v13  ;;  %v4830_v50 = vsel %vm4820_vm0, %v4816_v2, 1326507024  ;;  %v4801_v43 = vshrl.u32 %v9860_v30, %v9291_v60  ;;  %v4834_v28 = vand.u32 65535, %v9331_v38 }
 0x4af   : > { %v4617_v39 = vmul.f32 %v4616_v0, %v9288_v12  ;;  %v4626_v33 = vxor.u32 2147483648, %v4609_v37  ;;  %v4736_v44 = vclz %v4735_v58  ;;  %v4831_v7 = vsel %vm4819_vm1, %v4813_v14, %v4830_v50 }
 0x4b0   : > { %v4832_v25 = vsel %vm4818_vm5, %v4829_v5, %v4831_v7  ;;  %v4835_v29 = vshrl.u32 %v9331_v38, 16  ;;  %v4944_v6 = vshrl.u32 %v4943_v53, 23  ;;  %v4754_v12 = vsub.s32 4, %v9318_v34 }
 0x4b1   : > { %v4623_v55 = vxor.u32 2147483648, %v4617_v39  ;;  %v5620_v63 = vadd.s32 4294967294, %v4736_v44  ;;  %v4836_v32 = vand.u32 65535, %v4832_v25  ;;  %v9374_v35 = vsel %vm4817_vm15, %v4801_v43, %v4804_v41 }
 0x4b2   : > { %v4837_v9 = vshrl.u32 %v4832_v25, 16  ;;  %v4858_v61 = vand.u32 65535, %v4828_v47  ;;  %v4627_v14 = vsel %vm4625_vm13, %v4626_v33, %v4617_v39  ;;  %v4859_v15 = vshrl.u32 %v4828_v47, 16 }
 0x4b3   : > { %v4624_v60 = vsel %vm4622_vm14, %v4609_v37, %v4623_v55  ;;  %vm5621_vm6 = vcmp.lt.s32.totalorder %v5620_v63, 0  ;;  %vm4632_vm7 = vcmp.lt.s32.totalorder %v9041_v18, 0  ;;  %v4840_v41 = vmul.u32 %v4836_v32, %v4835_v29 }
 0x4b4   : > { %v4628_v21 = vsel %vm4621_vm2, %v4624_v60, %v4627_v14  ;;  %v4739_v10 = vsel %vm5621_vm6, 0, %v5620_v63  ;;  %v4839_v51 = vmul.u32 %v4837_v9, %v4834_v28  ;;  %v4822_v2 = vsel %vm4820_vm0, %v4810_v16, 2102212464 }
 0x4b5   : > { %v4629_v19 = vsel %vm4618_vm3, nan, %v4628_v21  ;;  %v4740_v62 = vsub.s32 32, %v4739_v10  ;;  %v4744_v17 = vsub.s32 4294967266, %v4739_v10  ;;  %v4838_v57 = vmul.u32 %v4836_v32, %v4834_v28 }
 0x4b6   : > { %v4842_v54 = vshll.u32 %v4839_v51, 16  ;;  %v4860_v4 = vmul.u32 %v4858_v61, %v4834_v28  ;;  %v4862_v8 = vmul.u32 %v4858_v61, %v4835_v29  ;;  %5415 = vst [vmem:[%s6274_s10 + $0xd0] sm:$0xff] %v4629_v19  ;;  %vm9390_vm8 = vcmp.le.f32.partialorder %v4630_v56, 0.7853982 }
 0x4b7   : > { %v4741_v26 = vshll.u32 %v9335_v13, %v4739_v10  ;;  %v4742_v20 = vshrl.u32 %v4724_v1, %v4740_v62  ;;  %v4745_v42 = vadd.s32 127, %v4744_v17  ;;  %v4861_v53 = vmul.u32 %v4859_v15, %v4834_v28 }
 0x4b8   : > { %v4841_v37 = vmul.u32 %v4837_v9, %v4835_v29  ;;  %v4844_v0 = vshll.u32 %v4840_v41, 16  ;;  %vm4846_vm11 = vc.u32 %v4838_v57, %v4842_v54  ;;  %v4848_v16 = vadd.s32 %v4842_v54, %v4838_v57 }
 0x4b9   : > { %v4743_v5 = vor.u32 %v4742_v20, %v4741_v26  ;;  %v4746_v58 = vshll.u32 %v4745_v42, 23  ;;  %v4847_v47 = vsel %vm4846_vm11, 1, %v5787_v3  ;;  %v4864_v50 = vshll.u32 %v4861_v53, 16 }
 0x4ba   : > { %v4843_v39 = vshrl.u32 %v4839_v51, 16  ;;  %v4849_v33 = vadd.s32 %v4847_v47, %v4841_v37  ;;  %vm4850_vm10 = vc.u32 %v4848_v16, %v4844_v0  ;;  %v4863_v56 = vmul.u32 %v4859_v15, %v4835_v29 }
 0x4bb   : > { %v4747_v44 = vor.u32 4788187, %v4746_v58  ;;  %v4851_v7 = vsel %vm4850_vm10, 1, %v5787_v3  ;;  %v4866_v13 = vshll.u32 %v4862_v8, 16  ;;  %vm4868_vm12 = vc.u32 %v4860_v4, %v4864_v50 }
 0x4bc   : > { %v4853_v1 = vadd.s32 %v4851_v7, %v4849_v33  ;;  %v4869_v43 = vsel %vm4868_vm12, 1, %v5787_v3  ;;  %v4870_v25 = vadd.s32 %v4864_v50, %v4860_v4  ;;  %v5625_v28 = vadd.s32 4294967169, %v4944_v6 }
 0x4bd   : > { %v4748_v55 = vand.u32 2147483647, %v4747_v44  ;;  %v4750_v63 = vcvt.s32.f32 %v4743_v5  ;;  %v4755_v32 = vsel %vm4632_vm7, %v4754_v12, %v9318_v34  ;;  %v4871_v9 = vadd.s32 %v4869_v43, %v4863_v56 }
 0x4be   : > { %v4823_v29 = vsel %vm4819_vm1, %v9323_v59, %v4822_v2  ;;  %v4854_v61 = vadd.s32 %v4853_v1, %v4843_v39  ;;  %vm4872_vm9 = vc.u32 %v4870_v25, %v4866_v13  ;;  %v4950_v60 = vadd.s32 1, %v5625_v28 }
 0x4bf   : > { %v4751_v14 = vmul.f32 %v4750_v63, %v4748_v55  ;;  %v4845_v15 = vshrl.u32 %v4840_v41, 16  ;;  %v4873_v21 = vsel %vm4872_vm9, 1, %v5787_v3  ;;  %v4940_v6 = vand.u32 2147483647, %v9326_v46 }
 0x4c0   : > { %v4757_v10 = vsel %vm9390_vm8, 0, %v4755_v32  ;;  %v4865_v51 = vshrl.u32 %v4861_v53, 16  ;;  %v4875_v19 = vadd.s32 %v4873_v21, %v4871_v9  ;;  %vm4951_vm0 = vcmp.gt.s32.totalorder %v4950_v60, 0 }
 0x4c1   : > { %v4752_v34 = vxor.u32 2147483648, %v4751_v14  ;;  %v4824_v59 = vsel %vm4818_vm5, %v9374_v35, %v4823_v29  ;;  %v9411_v12 = vadd.s32 %v4854_v61, %v4845_v15  ;;  %v4952_v62 = vsel %vm4951_vm0, %v4950_v60, 0 }
 0x4c2   : > { %v9415_v41 = vadd.f32 %v9295_v27, %v7508_v49  ;;  %v9419_v17 = vadd.f32 %v9299_v40, %v7508_v49  ;;  %v4867_v2 = vshrl.u32 %v4862_v8, 16  ;;  %v4876_v57 = vadd.s32 %v4875_v19, %v4865_v51 }
 0x4c3   : > { %v4753_v54 = vsel %vm4632_vm7, %v4752_v34, %v4751_v14  ;;  %v9423_v4 = vadd.s32 %v4870_v25, %v4866_v13  ;;  %v4947_v11 = vand.u32 8388607, %v4940_v6  ;;  %v4954_v35 = vand.u32 31, %v4952_v62 }
 0x4c4   : > { %v4756_v27 = vsel %vm9390_vm8, %v9041_v18, %v4753_v54  ;;  %v4774_v26 = vadd.s32 3, %v4757_v10  ;;  %v4877_v20 = vadd.s32 %v4876_v57, %v4867_v2  ;;  %v4878_v49 = vmul.u32 %v9331_v38, %v4824_v59 }
 0x4c5   : > { %v4758_v40 = vmul.f32 %v4756_v27, %v4756_v27  ;;  %vm4880_vm14 = vc.u32 %v9411_v12, %v9423_v4  ;;  %v9433_v8 = vshrl.u32 %v4952_v62, 5  ;;  %v9435_v42 = vsub.s32 32, %v4954_v35 }
 0x4c6   : > { %v4881_v53 = vadd.s32 1, %v4877_v20  ;;  %v4957_v37 = vshll.u32 %v9860_v30, %v4954_v35  ;;  %v4960_v0 = vshll.u32 %v9869_v24, %v4954_v35  ;;  %v4963_v52 = vshll.u32 %v9870_v23, %v4954_v35 }
 0x4c7   : > { %v4759_v16 = vmul.f32 -0.001358992, %v4758_v40  ;;  %v4766_v5 = vmul.f32 -0.00019511016, %v4758_v40  ;;  %v4958_v38 = vshrl.u32 %v9869_v24, %v9435_v42  ;;  %v4966_v58 = vshll.u32 %v9858_v45, %v4954_v35 }
 0x4c8   : > { %v4882_v47 = vsel %vm4880_vm14, %v4881_v53, %v4877_v20  ;;  %v4961_v50 = vshrl.u32 %v9870_v23, %v9435_v42  ;;  %v4964_v39 = vshrl.u32 %v9858_v45, %v9435_v42  ;;  %v4967_v33 = vshrl.u32 %v9859_v48, %v9435_v42 }
 0x4c9   : > { %v4760_v56 = vadd.f32 0.041655596, %v4759_v16  ;;  %v4767_v44 = vadd.f32 0.008332121, %v4766_v5  ;;  %v4883_v7 = vadd.s32 %v4882_v47, %v4878_v49  ;;  %v4969_v13 = vshll.u32 %v9859_v48, %v4954_v35 }
 0x4ca   : > { %v9450_v1 = vor.u32 %v4958_v38, %v4957_v37  ;;  %v9452_v43 = vor.u32 %v4961_v50, %v4960_v0  ;;  %v4968_v25 = vor.u32 %v4967_v33, %v4966_v58  ;;  %v4970_v28 = vshrl.u32 %v9861_v31, %v9435_v42 }
 0x4cb   : > { %v4761_v55 = vmul.f32 %v4760_v56, %v4758_v40  ;;  %v4768_v63 = vmul.f32 %v4767_v44, %v4758_v40  ;;  %v4884_v32 = vadd.s32 536870912, %v4883_v7  ;;  %v4965_v9 = vor.u32 %v4964_v39, %v4963_v52 }
 0x4cc   : > { %v4775_v29 = vand.u32 3, %v4774_v26  ;;  %v4948_v61 = vor.u32 8388608, %v4947_v11  ;;  %v4971_v60 = vor.u32 %v4970_v28, %v4969_v13  ;;  %vm4972_vm13 = vcmp.lt.s32.totalorder %v9433_v8, 1 }
 0x4cd   : > { %v4762_v14 = vadd.f32 -0.4999988, %v4761_v55  ;;  %v4769_v15 = vadd.f32 -0.16666654, %v4768_v63  ;;  %v9457_v21 = vshrl.u32 %v4884_v32, 30  ;;  %vm4975_vm15 = vcmp.lt.s32.totalorder %v9433_v8, 4 }
 0x4ce   : > { %vm4974_vm2 = vcmp.lt.s32.totalorder %v9433_v8, 3  ;;  %v4980_v10 = vsel %vm4972_vm13, %v9450_v1, %v9452_v43  ;;  %v4981_v51 = vsel %vm4975_vm15, %v4968_v25, 920167782  ;;  %v4985_v19 = vsel %vm4975_vm15, %v4971_v60, 1326507024 }
 0x4cf   : > { %v4763_v34 = vmul.f32 %v4762_v14, %v4758_v40  ;;  %v4770_v59 = vmul.f32 %v4769_v15, %v4758_v40  ;;  %v4886_v62 = vshll.u32 %v9457_v21, 30  ;;  %v4984_v2 = vsel %vm4972_vm13, %v9452_v43, %v4965_v9 }
 0x4d0   : > { %vm4773_vm1 = vweird.f32 %v9041_v18  ;;  %v4982_v57 = vsel %vm4974_vm2, %v4965_v9, %v4981_v51  ;;  %v4986_v54 = vsel %vm4974_vm2, %v4968_v25, %v4985_v19  ;;  %v9478_v11 = vshll.u32 %v4948_v61, 8 }
 0x4d1   : > { %v4764_v35 = vadd.f32 1.0, %v4763_v34  ;;  %v4771_v26 = vadd.f32 1.0, %v4770_v59  ;;  %v4887_v20 = vsub.s32 %v4883_v7, %v4886_v62  ;;  %vm4973_vm3 = vcmp.lt.s32.totalorder %v9433_v8, 2 }
 0x4d2   : > { %vm4776_vm4 = vcmp.lt.s32.totalorder %v4775_v29, 2  ;;  %vm4777_vm5 = vcmp.eq.s32.totalorder %v4775_v29, 0  ;;  %v4983_v49 = vsel %vm4973_vm3, %v4980_v10, %v4982_v57  ;;  %v4987_v40 = vsel %vm4973_vm3, %v4984_v2, %v4986_v54 }
 0x4d3   : > { %v4772_v53 = vmul.f32 %v4771_v26, %v4756_v27  ;;  %v4781_v37 = vxor.u32 2147483648, %v4764_v35  ;;  %vm4888_vm6 = vcmp.lt.s32.totalorder %v4887_v20, 0  ;;  %v4889_v0 = vsub.s32 0, %v4887_v20 }
 0x4d4   : > { %vm4780_vm7 = vcmp.eq.s32.totalorder %v4775_v29, 2  ;;  %v4989_v52 = vand.u32 65535, %v9478_v11  ;;  %v4991_v16 = vand.u32 65535, %v4987_v40  ;;  %v4992_v5 = vshrl.u32 %v4987_v40, 16 }
 0x4d5   : > { %v4778_v38 = vxor.u32 2147483648, %v4772_v53  ;;  %v4879_v58 = vadd.s32 %v9423_v4, %v9411_v12  ;;  %v4890_v47 = vsel %vm4888_vm6, %v4889_v0, %v4887_v20  ;;  %v4990_v50 = vshrl.u32 %v9478_v11, 16 }
 0x4d6   : > { %v4891_v39 = vclz %v4890_v47  ;;  %v4994_v33 = vmul.u32 %v4992_v5, %v4989_v52  ;;  %v5014_v56 = vshrl.u32 %v4983_v49, 16  ;;  %v5095_v27 = vand.u32 2147483647, %v9415_v41 }
 0x4d7   : > { %v4779_v44 = vsel %vm4777_vm5, %v4764_v35, %v4778_v38  ;;  %v4782_v7 = vsel %vm4780_vm7, %v4781_v37, %v4772_v53  ;;  %v4995_v13 = vmul.u32 %v4991_v16, %v4990_v50  ;;  %v5013_v25 = vand.u32 65535, %v4983_v49 }
 0x4d8   : > { %v4783_v28 = vsel %vm4776_vm4, %v4779_v44, %v4782_v7  ;;  %v5623_v55 = vadd.s32 4294967294, %v4891_v39  ;;  %v4956_v12 = vshrl.u32 %v9860_v30, %v9435_v42  ;;  %v4977_v4 = vsel %vm4975_vm15, %v4965_v9, 2102212464 }
 0x4d9   : > { %v4784_v63 = vsel %vm4773_vm1, nan, %v4783_v28  ;;  %vm4787_vm8 = vcmp.lt.s32.totalorder %v9159_v36, 0  ;;  %v4909_v32 = vsub.s32 4, %v9457_v21  ;;  %v4993_v61 = vmul.u32 %v4991_v16, %v4989_v52 }
 0x4da   : > { %v4997_v60 = vshll.u32 %v4994_v33, 16  ;;  %vm5624_vm11 = vcmp.lt.s32.totalorder %v5623_v55, 0  ;;  %v4996_v14 = vmul.u32 %v4992_v5, %v4990_v50  ;;  %v4999_v29 = vshll.u32 %v4995_v13, 16  ;;  %5416 = vst [vmem:[%s6274_s10 + $0xd8] sm:$0xff] %v4784_v63 }
 0x4db   : > { %v5016_v15 = vmul.u32 %v5014_v56, %v4989_v52  ;;  %v4894_v10 = vsel %vm5624_vm11, 0, %v5623_v55  ;;  %v5017_v51 = vmul.u32 %v5013_v25, %v4990_v50  ;;  %vm9503_vm12 = vcmp.le.f32.partialorder %v4785_v22, 0.7853982 }
 0x4dc   : > { %vm5001_vm10 = vc.u32 %v4993_v61, %v4997_v60  ;;  %v5003_v42 = vadd.s32 %v4997_v60, %v4993_v61  ;;  %v4895_v9 = vsub.s32 32, %v4894_v10  ;;  %v4899_v19 = vsub.s32 4294967266, %v4894_v10 }
 0x4dd   : > { %v5002_v34 = vsel %vm5001_vm10, 1, %v5787_v3  ;;  %v5015_v59 = vmul.u32 %v5013_v25, %v4989_v52  ;;  %v4998_v62 = vshrl.u32 %v4994_v33, 16  ;;  %v5019_v57 = vshll.u32 %v5016_v15, 16 }
 0x4de   : > { %v5004_v2 = vadd.s32 %v5002_v34, %v4996_v14  ;;  %vm5005_vm9 = vc.u32 %v5003_v42, %v4999_v29  ;;  %v4896_v54 = vshll.u32 %v4887_v20, %v4894_v10  ;;  %v4897_v35 = vshrl.u32 %v4879_v58, %v4895_v9 }
 0x4df   : > { %v4900_v26 = vadd.s32 127, %v4899_v19  ;;  %v5006_v49 = vsel %vm5005_vm9, 1, %v5787_v3  ;;  %v5018_v53 = vmul.u32 %v5014_v56, %v4990_v50  ;;  %v5021_v22 = vshll.u32 %v5017_v51, 16 }
 0x4e0   : > { %v5008_v40 = vadd.s32 %v5006_v49, %v5004_v2  ;;  %vm5023_vm0 = vc.u32 %v5015_v59, %v5019_v57  ;;  %v4898_v37 = vor.u32 %v4897_v35, %v4896_v54  ;;  %v5025_v5 = vadd.s32 %v5019_v57, %v5015_v59 }
 0x4e1   : > { %v4901_v0 = vshll.u32 %v4900_v26, 23  ;;  %v5024_v16 = vsel %vm5023_vm0, 1, %v5787_v3  ;;  %v4976_v52 = vsel %vm4972_vm13, %v4956_v12, %v9450_v1  ;;  %v5098_v20 = vand.u32 2139095040, %v9415_v41 }
 0x4e2   : > { %v5009_v38 = vadd.s32 %v5008_v40, %v4998_v62  ;;  %v5026_v47 = vadd.s32 %v5024_v16, %v5018_v53  ;;  %v4910_v50 = vsel %vm4787_vm8, %v4909_v32, %v9457_v21  ;;  %v4978_v39 = vsel %vm4974_vm2, %v9452_v43, %v4977_v4 }
 0x4e3   : > { %v4902_v58 = vor.u32 4788187, %v4901_v0  ;;  %vm5027_vm14 = vc.u32 %v5025_v5, %v5021_v22  ;;  %v5000_v33 = vshrl.u32 %v4995_v13, 16  ;;  %v5099_v44 = vshrl.u32 %v5098_v20, 23 }
 0x4e4   : > { %v5028_v56 = vsel %vm5027_vm14, 1, %v5787_v3  ;;  %v5102_v1 = vand.u32 8388607, %v5095_v27  ;;  %v4905_v25 = vcvt.s32.f32 %v4898_v37  ;;  %v5020_v28 = vshrl.u32 %v5016_v15, 16 }
 0x4e5   : > { %v4903_v7 = vand.u32 2147483647, %v4902_v58  ;;  %v5030_v55 = vadd.s32 %v5028_v56, %v5026_v47  ;;  %v4912_v12 = vsel %vm9503_vm12, 0, %v4910_v50  ;;  %v5010_v21 = vadd.s32 %v5009_v38, %v5000_v33 }
 0x4e6   : > { %v5628_v63 = vadd.s32 4294967169, %v5099_v44  ;;  %v4979_v43 = vsel %vm4973_vm3, %v4976_v52, %v4978_v39  ;;  %v5022_v13 = vshrl.u32 %v5017_v51, 16  ;;  %v5029_v61 = vadd.s32 %v5025_v5, %v5021_v22 }
 0x4e7   : > { %v4906_v32 = vmul.f32 %v4905_v25, %v4903_v7  ;;  %v5031_v4 = vadd.s32 %v5030_v55, %v5020_v28  ;;  %v5103_v60 = vor.u32 8388608, %v5102_v1  ;;  %v5253_v29 = vand.u32 2139095040, %v9419_v17 }
 0x4e8   : > { %v5105_v14 = vadd.s32 1, %v5628_v63  ;;  %v4929_v15 = vadd.s32 3, %v4912_v12  ;;  %v5033_v9 = vmul.u32 %v9478_v11, %v4979_v43  ;;  %vm5035_vm13 = vc.u32 %v5010_v21, %v5029_v61 }
 0x4e9   : > { %v4907_v10 = vxor.u32 2147483648, %v4906_v32  ;;  %v5032_v42 = vadd.s32 %v5031_v4, %v5022_v13  ;;  %v5250_v51 = vand.u32 2147483647, %v9419_v17  ;;  %v9535_v2 = vshll.u32 %v5103_v60, 8 }
 0x4ea   : > { %vm5106_vm15 = vcmp.gt.s32.totalorder %v5105_v14, 0  ;;  %v5254_v57 = vshrl.u32 %v5253_v29, 23  ;;  %v9537_v11 = vand.u32 3, %v4929_v15  ;;  %v9539_v22 = vadd.s32 %v5029_v61, %v5010_v21 }
 0x4eb   : > { %v4908_v19 = vsel %vm4787_vm8, %v4907_v10, %v4906_v32  ;;  %v5036_v34 = vadd.s32 1, %v5032_v42  ;;  %v5107_v8 = vsel %vm5106_vm15, %v5105_v14, 0  ;;  %v9543_v37 = vand.u32 8388607, %v5250_v51 }
 0x4ec   : > { %v4911_v59 = vsel %vm9503_vm12, %v9159_v36, %v4908_v19  ;;  %v5109_v62 = vand.u32 31, %v5107_v8  ;;  %v9546_v0 = vand.u32 65535, %v9535_v2  ;;  %v9549_v16 = vshrl.u32 %v9535_v2, 16 }
 0x4ed   : > { %v4913_v54 = vmul.f32 %v4911_v59, %v4911_v59  ;;  %v5037_v35 = vsel %vm5035_vm13, %v5036_v34, %v5032_v42  ;;  %v5631_v5 = vadd.s32 4294967169, %v5254_v57  ;;  %v9555_v50 = vshrl.u32 %v5107_v8, 5 }
 0x4ee   : > { %v5038_v26 = vadd.s32 %v5037_v35, %v5033_v9  ;;  %v5110_v49 = vsub.s32 32, %v5109_v62  ;;  %v5112_v1 = vshll.u32 %v9860_v30, %v5109_v62  ;;  %v5115_v7 = vshll.u32 %v9869_v24, %v5109_v62 }
 0x4ef   : > { %v4914_v40 = vmul.f32 -0.001358992, %v4913_v54  ;;  %v4921_v53 = vmul.f32 -0.00019511016, %v4913_v54  ;;  %v5118_v55 = vshll.u32 %v9870_v23, %v5109_v62  ;;  %v5121_v12 = vshll.u32 %v9858_v45, %v5109_v62 }
 0x4f0   : > { %v5039_v18 = vadd.s32 536870912, %v5038_v26  ;;  %v5113_v47 = vshrl.u32 %v9869_v24, %v5110_v49  ;;  %v5116_v20 = vshrl.u32 %v9870_v23, %v5110_v49  ;;  %v5119_v39 = vshrl.u32 %v9858_v45, %v5110_v49 }
 0x4f1   : > { %v4915_v52 = vadd.f32 0.041655596, %v4914_v40  ;;  %v4922_v38 = vadd.f32 0.008332121, %v4921_v53  ;;  %v5122_v33 = vshrl.u32 %v9859_v48, %v5110_v49  ;;  %v5111_v28 = vshrl.u32 %v9860_v30, %v5110_v49 }
 0x4f2   : > { %v9553_v58 = vshrl.u32 %v5039_v18, 30  ;;  %vm4935_vm2 = vcmp.eq.s32.totalorder %v9537_v11, 2  ;;  %v5114_v32 = vor.u32 %v5113_v47, %v5112_v1  ;;  %v5117_v43 = vor.u32 %v5116_v20, %v5115_v7 }
 0x4f3   : > { %v4916_v56 = vmul.f32 %v4915_v52, %v4913_v54  ;;  %v4923_v44 = vmul.f32 %v4922_v38, %v4913_v54  ;;  %vm4932_vm1 = vcmp.eq.s32.totalorder %v9537_v11, 0  ;;  %v5120_v4 = vor.u32 %v5119_v39, %v5118_v55 }
 0x4f4   : > { %v5041_v25 = vshll.u32 %v9553_v58, 30  ;;  %v5123_v61 = vor.u32 %v5122_v33, %v5121_v12  ;;  %v5125_v60 = vshrl.u32 %v9861_v31, %v5110_v49  ;;  %vm4931_vm3 = vcmp.lt.s32.totalorder %v9537_v11, 2 }
 0x4f5   : > { %v4917_v21 = vadd.f32 -0.4999988, %v4916_v56  ;;  %v4924_v63 = vadd.f32 -0.16666654, %v4923_v44  ;;  %vm4942_vm4 = vcmp.lt.s32.totalorder %v9326_v46, 0  ;;  %v5124_v10 = vshll.u32 %v9859_v48, %v5109_v62 }
 0x4f6   : > { %v9567_v13 = vsub.s32 %v5038_v26, %v5041_v25  ;;  %vm5127_vm5 = vcmp.lt.s32.totalorder %v9555_v50, 1  ;;  %vm4928_vm6 = vweird.f32 %v9159_v36  ;;  %vm5128_vm8 = vcmp.lt.s32.totalorder %v9555_v50, 2 }
 0x4f7   : > { %v4918_v14 = vmul.f32 %v4917_v21, %v4913_v54  ;;  %v4925_v29 = vmul.f32 %v4924_v63, %v4913_v54  ;;  %vm5129_vm11 = vcmp.lt.s32.totalorder %v9555_v50, 3  ;;  %vm5130_vm10 = vcmp.lt.s32.totalorder %v9555_v50, 4 }
 0x4f8   : > { %vm5043_vm7 = vcmp.lt.s32.totalorder %v9567_v13, 0  ;;  %v5044_v42 = vsub.s32 0, %v9567_v13  ;;  %v5135_v19 = vsel %vm5127_vm5, %v5114_v32, %v5117_v43  ;;  %v5126_v8 = vor.u32 %v5125_v60, %v5124_v10 }
 0x4f9   : > { %v4919_v15 = vadd.f32 1.0, %v4918_v14  ;;  %v4926_v9 = vadd.f32 1.0, %v4925_v29  ;;  %v5132_v62 = vsel %vm5130_vm10, %v5120_v4, 2102212464  ;;  %v5136_v57 = vsel %vm5130_vm10, %v5123_v61, 920167782 }
 0x4fa   : > { %v5045_v34 = vsel %vm5043_vm7, %v5044_v42, %v9567_v13  ;;  %v5137_v49 = vsel %vm5129_vm11, %v5120_v4, %v5136_v57  ;;  %v5064_v40 = vsub.s32 4, %v9553_v58  ;;  %v5258_v18 = vor.u32 8388608, %v9543_v37 }
 0x4fb   : > { %v4927_v54 = vmul.f32 %v4926_v9, %v4911_v59  ;;  %v4936_v35 = vxor.u32 2147483648, %v4919_v15  ;;  %v5046_v26 = vclz %v5045_v34  ;;  %v5138_v53 = vsel %vm5128_vm8, %v5135_v19, %v5137_v49 }
 0x4fc   : > { %v5260_v52 = vadd.s32 1, %v5631_v5  ;;  %v5131_v20 = vsel %vm5127_vm5, %v5111_v28, %v5114_v32  ;;  %v5139_v59 = vsel %vm5127_vm5, %v5117_v43, %v5120_v4  ;;  %v5133_v33 = vsel %vm5129_vm11, %v5117_v43, %v5132_v62 }
 0x4fd   : > { %v4933_v38 = vxor.u32 2147483648, %v4927_v54  ;;  %v5626_v47 = vadd.s32 4294967294, %v5046_v26  ;;  %v4937_v39 = vsel %vm4935_vm2, %v4936_v35, %v4927_v54  ;;  %v5140_v56 = vsel %vm5130_vm10, %v5126_v8, 1326507024 }
 0x4fe   : > { %v5169_v44 = vshrl.u32 %v5138_v53, 16  ;;  %v5141_v1 = vsel %vm5129_vm11, %v5123_v61, %v5140_v56  ;;  %v5168_v7 = vand.u32 65535, %v5138_v53  ;;  %v9612_v55 = vsel %vm4942_vm4, %v5064_v40, %v9553_v58 }
 0x4ff   : > { %v4934_v5 = vsel %vm4932_vm1, %v4919_v15, %v4933_v38  ;;  %vm5627_vm12 = vcmp.lt.s32.totalorder %v5626_v47, 0  ;;  %v5142_v12 = vsel %vm5128_vm8, %v5139_v59, %v5141_v1  ;;  %v9620_v43 = vsel %vm5128_vm8, %v5131_v20, %v5133_v33 }
 0x500   : > { %v4938_v25 = vsel %vm4931_vm3, %v4934_v5, %v4937_v39  ;;  %v5049_v28 = vsel %vm5627_vm12, 0, %v5626_v47  ;;  %v5146_v11 = vand.u32 65535, %v5142_v12  ;;  %v5147_v4 = vshrl.u32 %v5142_v12, 16 }
 0x501   : > { %v4939_v21 = vsel %vm4928_vm6, nan, %v4938_v25  ;;  %v5050_v63 = vsub.s32 32, %v5049_v28  ;;  %v5054_v32 = vsub.s32 4294967266, %v5049_v28  ;;  %v5171_v61 = vmul.u32 %v5169_v44, %v9546_v0 }
 0x502   : > { %vm5261_vm9 = vcmp.gt.s32.totalorder %v5260_v52, 0  ;;  %5417 = vst [vmem:[%s6274_s10 + $0xe0] sm:$0xff] %v4939_v21  ;;  %v5051_v58 = vshll.u32 %v9567_v13, %v5049_v28  ;;  %v5172_v36 = vmul.u32 %v5168_v7, %v9549_v16  ;;  %v5149_v29 = vmul.u32 %v5147_v4, %v9546_v0 }
 0x503   : > { %v5052_v60 = vshrl.u32 %v9539_v22, %v5050_v63  ;;  %v5055_v14 = vadd.s32 127, %v5054_v32  ;;  %v5150_v10 = vmul.u32 %v5146_v11, %v9549_v16  ;;  %v5170_v50 = vmul.u32 %v5168_v7, %v9546_v0 }
 0x504   : > { %v5188_v42 = vmul.u32 %v9535_v2, %v9620_v43  ;;  %v5173_v19 = vmul.u32 %v5169_v44, %v9549_v16  ;;  %v5174_v34 = vshll.u32 %v5171_v61, 16  ;;  %v5148_v13 = vmul.u32 %v5146_v11, %v9546_v0 }
 0x505   : > { %v5053_v15 = vor.u32 %v5052_v60, %v5051_v58  ;;  %v5056_v9 = vshll.u32 %v5055_v14, 23  ;;  %v5151_v22 = vmul.u32 %v5147_v4, %v9549_v16  ;;  %v5152_v8 = vshll.u32 %v5149_v29, 16 }
 0x506   : > { %v5262_v62 = vsel %vm5261_vm9, %v5260_v52, 0  ;;  %vm9638_vm0 = vcmp.le.f32.partialorder %v4940_v6, 0.7853982  ;;  %v5154_v26 = vshll.u32 %v5150_v10, 16  ;;  %v5176_v49 = vshll.u32 %v5172_v36, 16 }
 0x507   : > { %v5057_v54 = vor.u32 4788187, %v5056_v9  ;;  %v5060_v35 = vcvt.s32.f32 %v5053_v15  ;;  %vm5156_vm14 = vc.u32 %v5148_v13, %v5152_v8  ;;  %v5158_v40 = vadd.s32 %v5152_v8, %v5148_v13 }
 0x508   : > { %vm5178_vm13 = vc.u32 %v5170_v50, %v5174_v34  ;;  %v5180_v53 = vadd.s32 %v5174_v34, %v5170_v50  ;;  %v5157_v16 = vsel %vm5156_vm14, 1, %v5787_v3  ;;  %v9644_v52 = vshrl.u32 %v5262_v62, 5 }
 0x509   : > { %v5058_v0 = vand.u32 2147483647, %v5057_v54  ;;  %v5179_v38 = vsel %vm5178_vm13, 1, %v5787_v3  ;;  %v5159_v47 = vadd.s32 %v5157_v16, %v5151_v22  ;;  %vm5160_vm15 = vc.u32 %v5158_v40, %v5154_v26 }
 0x50a   : > { %v5181_v6 = vadd.s32 %v5179_v38, %v5173_v19  ;;  %vm5182_vm2 = vc.u32 %v5180_v53, %v5176_v49  ;;  %v5161_v59 = vsel %vm5160_vm15, 1, %v5787_v3  ;;  %v5175_v39 = vshrl.u32 %v5171_v61, 16 }
 0x50b   : > { %v5061_v20 = vmul.f32 %v5060_v35, %v5058_v0  ;;  %v5183_v33 = vsel %vm5182_vm2, 1, %v5787_v3  ;;  %v5153_v56 = vshrl.u32 %v5149_v29, 16  ;;  %v5163_v44 = vadd.s32 %v5161_v59, %v5159_v47 }
 0x50c   : > { %v5185_v5 = vadd.s32 %v5183_v33, %v5181_v6  ;;  %v5264_v1 = vand.u32 31, %v5262_v62  ;;  %v5155_v25 = vshrl.u32 %v5150_v10, 16  ;;  %v5177_v28 = vshrl.u32 %v5172_v36, 16 }
 0x50d   : > { %v5062_v7 = vxor.u32 2147483648, %v5061_v20  ;;  %v9648_v12 = vadd.s32 %v5180_v53, %v5176_v49  ;;  %v5164_v21 = vadd.s32 %v5163_v44, %v5153_v56  ;;  %vm5282_vm1 = vcmp.lt.s32.totalorder %v9644_v52, 1 }
 0x50e   : > { %v5186_v63 = vadd.s32 %v5185_v5, %v5175_v39  ;;  %v9650_v32 = vsub.s32 32, %v5264_v1  ;;  %v5267_v4 = vshll.u32 %v9860_v30, %v5264_v1  ;;  %v5270_v61 = vshll.u32 %v9869_v24, %v5264_v1 }
 0x50f   : > { %v5063_v11 = vsel %vm4942_vm4, %v5062_v7, %v5061_v20  ;;  %vm5285_vm3 = vcmp.lt.s32.totalorder %v9644_v52, 4  ;;  %v9661_v60 = vadd.s32 %v5164_v21, %v5155_v25  ;;  %v5273_v36 = vshll.u32 %v9870_v23, %v5264_v1 }
 0x510   : > { %v5066_v58 = vsel %vm9638_vm0, %v9326_v46, %v5063_v11  ;;  %v5187_v14 = vadd.s32 %v5186_v63, %v5177_v28  ;;  %v5268_v10 = vshrl.u32 %v9869_v24, %v9650_v32  ;;  %v5271_v50 = vshrl.u32 %v9870_v23, %v9650_v32 }
 0x511   : > { %v5068_v29 = vmul.f32 %v5066_v58, %v5066_v58  ;;  %v5274_v15 = vshrl.u32 %v9858_v45, %v9650_v32  ;;  %vm5190_vm4 = vc.u32 %v9661_v60, %v9648_v12  ;;  %v5276_v19 = vshll.u32 %v9858_v45, %v5264_v1 }
 0x512   : > { %v5191_v9 = vadd.s32 1, %v5187_v14  ;;  %v5277_v34 = vshrl.u32 %v9859_v48, %v9650_v32  ;;  %v9675_v8 = vor.u32 %v5268_v10, %v5267_v4  ;;  %v9677_v24 = vor.u32 %v5271_v50, %v5270_v61 }
 0x513   : > { %v5069_v13 = vmul.f32 -0.001358992, %v5068_v29  ;;  %v5076_v22 = vmul.f32 -0.00019511016, %v5068_v29  ;;  %v9679_v23 = vor.u32 %v5274_v15, %v5273_v36  ;;  %v5279_v35 = vshll.u32 %v9859_v48, %v5264_v1 }
 0x514   : > { %v5192_v62 = vsel %vm5190_vm4, %v5191_v9, %v5187_v14  ;;  %v5278_v54 = vor.u32 %v5277_v34, %v5276_v19  ;;  %v5280_v40 = vshrl.u32 %v9861_v31, %v9650_v32  ;;  %v5067_v53 = vsel %vm9638_vm0, 0, %v9612_v55 }
 0x515   : > { %v5070_v26 = vadd.f32 0.041655596, %v5069_v13  ;;  %v5077_v49 = vadd.f32 0.008332121, %v5076_v22  ;;  %v5193_v45 = vadd.s32 %v5192_v62, %v5188_v42  ;;  %vm5284_vm5 = vcmp.lt.s32.totalorder %v9644_v52, 3 }
 0x516   : > { %v5290_v48 = vsel %vm5282_vm1, %v9675_v8, %v9677_v24  ;;  %v5291_v0 = vsel %vm5285_vm3, %v5278_v54, 920167782  ;;  %v5281_v42 = vor.u32 %v5280_v40, %v5279_v35  ;;  %vm5283_vm6 = vcmp.lt.s32.totalorder %v9644_v52, 2 }
 0x517   : > { %v5071_v16 = vmul.f32 %v5070_v26, %v5068_v29  ;;  %v5078_v2 = vmul.f32 %v5077_v49, %v5068_v29  ;;  %v5194_v43 = vadd.s32 536870912, %v5193_v45  ;;  %v5292_v31 = vsel %vm5284_vm5, %v9679_v23, %v5291_v0 }
 0x518   : > { %v5084_v47 = vadd.s32 3, %v5067_v53  ;;  %v5293_v6 = vsel %vm5283_vm6, %v5290_v48, %v5292_v31  ;;  %v5295_v20 = vsel %vm5285_vm3, %v5281_v42, 1326507024  ;;  %v9709_v59 = vshll.u32 %v5258_v18, 8 }
 0x519   : > { %v5072_v57 = vadd.f32 -0.4999988, %v5071_v16  ;;  %v5079_v55 = vadd.f32 -0.16666654, %v5078_v2  ;;  %v9700_v38 = vshrl.u32 %v5194_v43, 30  ;;  %v5294_v44 = vsel %vm5282_vm1, %v9677_v24, %v9679_v23 }
 0x51a   : > { %v5296_v5 = vsel %vm5284_vm5, %v5278_v54, %v5295_v20  ;;  %v5324_v28 = vshrl.u32 %v5293_v6, 16  ;;  %v5085_v21 = vand.u32 3, %v5084_v47  ;;  %v5299_v18 = vand.u32 65535, %v9709_v59 }
 0x51b   : > { %v5073_v39 = vmul.f32 %v5072_v57, %v5068_v29  ;;  %v5080_v33 = vmul.f32 %v5079_v55, %v5068_v29  ;;  %v5196_v56 = vshll.u32 %v9700_v38, 30  ;;  %v5297_v37 = vsel %vm5283_vm6, %v5294_v44, %v5296_v5 }
 0x51c   : > { %vm5083_vm8 = vweird.f32 %v9326_v46  ;;  %v5301_v61 = vand.u32 65535, %v5297_v37  ;;  %v5302_v14 = vshrl.u32 %v5297_v37, 16  ;;  %v5323_v36 = vand.u32 65535, %v5293_v6 }
 0x51d   : > { %v5074_v1 = vadd.f32 1.0, %v5073_v39  ;;  %v5081_v7 = vadd.f32 1.0, %v5080_v33  ;;  %v5197_v25 = vsub.s32 %v5193_v45, %v5196_v56  ;;  %v5300_v50 = vshrl.u32 %v9709_v59, 16 }
 0x51e   : > { %v5326_v15 = vmul.u32 %v5324_v28, %v5299_v18  ;;  %vm5087_vm11 = vcmp.eq.s32.totalorder %v5085_v21, 0  ;;  %vm5090_vm10 = vcmp.eq.s32.totalorder %v5085_v21, 2  ;;  %v5304_v19 = vmul.u32 %v5302_v14, %v5299_v18 }
 0x51f   : > { %v5082_v63 = vmul.f32 %v5081_v7, %v5066_v58  ;;  %v5091_v11 = vxor.u32 2147483648, %v5074_v1  ;;  %vm5198_vm7 = vcmp.lt.s32.totalorder %v5197_v25, 0  ;;  %v5199_v4 = vsub.s32 0, %v5197_v25 }
 0x520   : > { %vm5086_vm12 = vcmp.lt.s32.totalorder %v5085_v21, 2  ;;  %v5305_v13 = vmul.u32 %v5301_v61, %v5300_v50  ;;  %v5189_v62 = vadd.s32 %v9648_v12, %v9661_v60  ;;  %v5325_v35 = vmul.u32 %v5323_v36, %v5299_v18 }
 0x521   : > { %v5088_v29 = vxor.u32 2147483648, %v5082_v63  ;;  %v5200_v10 = vsel %vm5198_vm7, %v5199_v4, %v5197_v25  ;;  %v5092_v34 = vsel %vm5090_vm10, %v5091_v11, %v5082_v63  ;;  %v5303_v49 = vmul.u32 %v5301_v61, %v5299_v18 }
 0x522   : > { %v5201_v9 = vclz %v5200_v10  ;;  %v5307_v45 = vshll.u32 %v5304_v19, 16  ;;  %v5329_v40 = vshll.u32 %v5326_v15, 16  ;;  %v5306_v53 = vmul.u32 %v5302_v14, %v5300_v50 }
 0x523   : > { %v5089_v58 = vsel %vm5087_vm11, %v5074_v1, %v5088_v29  ;;  %v5327_v48 = vmul.u32 %v5323_v36, %v5300_v50  ;;  %v5328_v0 = vmul.u32 %v5324_v28, %v5300_v50  ;;  %v5309_v2 = vshll.u32 %v5305_v13, 16 }
 0x524   : > { %v5093_v22 = vsel %vm5086_vm12, %v5089_v58, %v5092_v34  ;;  %v5629_v54 = vadd.s32 4294967294, %v5201_v9  ;;  %vm5311_vm0 = vc.u32 %v5303_v49, %v5307_v45  ;;  %v5313_v43 = vadd.s32 %v5307_v45, %v5303_v49 }
 0x525   : > { %v5094_v26 = vsel %vm5083_vm8, nan, %v5093_v22  ;;  %v5308_v12 = vshrl.u32 %v5304_v19, 16  ;;  %v5312_v60 = vsel %vm5311_vm0, 1, %v5787_v3  ;;  %vm5333_vm13 = vc.u32 %v5325_v35, %v5329_v40 }
 0x526   : > { %vm5630_vm9 = vcmp.lt.s32.totalorder %v5629_v54, 0  ;;  %5418 = vst [vmem:[%s6274_s10 + $0xe8] sm:$0xff] %v5094_v26  ;;  %v5314_v46 = vadd.s32 %v5312_v60, %v5306_v53  ;;  %vm5315_vm14 = vc.u32 %v5313_v43, %v5309_v2  ;;  %v5334_v20 = vsel %vm5333_vm13, 1, %v5787_v3 }
 0x527   : > { %v5204_v16 = vsel %vm5630_vm9, 0, %v5629_v54  ;;  %v5316_v6 = vsel %vm5315_vm14, 1, %v5787_v3  ;;  %v5331_v33 = vshll.u32 %v5327_v48, 16  ;;  %v5335_v56 = vadd.s32 %v5329_v40, %v5325_v35 }
 0x528   : > { %v5205_v42 = vsub.s32 32, %v5204_v16  ;;  %v5209_v31 = vsub.s32 4294967266, %v5204_v16  ;;  %v5206_v57 = vshll.u32 %v5197_v25, %v5204_v16  ;;  %v5318_v39 = vadd.s32 %v5316_v6, %v5314_v46 }
 0x529   : > { %v5336_v44 = vadd.s32 %v5334_v20, %v5328_v0  ;;  %v5266_v7 = vshrl.u32 %v9860_v30, %v9650_v32  ;;  %v5287_v25 = vsel %vm5285_vm3, %v9679_v23, 2102212464  ;;  %vm5337_vm15 = vc.u32 %v5335_v56, %v5331_v33 }
 0x52a   : > { %v5207_v55 = vshrl.u32 %v5189_v62, %v5205_v42  ;;  %v5210_v47 = vadd.s32 127, %v5209_v31  ;;  %v5319_v28 = vadd.s32 %v5318_v39, %v5308_v12  ;;  %v5310_v37 = vshrl.u32 %v5305_v13, 16 }
 0x52b   : > { %v5338_v18 = vsel %vm5337_vm15, 1, %v5787_v3  ;;  %v5286_v63 = vsel %vm5282_vm1, %v5266_v7, %v9675_v8  ;;  %v5330_v11 = vshrl.u32 %v5326_v15, 16  ;;  %v5288_v30 = vsel %vm5284_vm5, %v9677_v24, %v5287_v25 }
 0x52c   : > { %v5208_v5 = vor.u32 %v5207_v55, %v5206_v57  ;;  %v5211_v1 = vshll.u32 %v5210_v47, 23  ;;  %v5340_v4 = vadd.s32 %v5338_v18, %v5336_v44  ;;  %v5320_v32 = vadd.s32 %v5319_v28, %v5310_v37 }
 0x52d   : > { %v5332_v23 = vshrl.u32 %v5327_v48, 16  ;;  %v5339_v10 = vadd.s32 %v5335_v56, %v5331_v33  ;;  %v5289_v3 = vsel %vm5283_vm6, %v5286_v63, %v5288_v30  ;;  %vm5097_vm1 = vcmp.lt.s32.totalorder %v9415_v41, 0 }
 0x52e   : > { %v5212_v21 = vor.u32 4788187, %v5211_v1  ;;  %v5215_v14 = vcvt.s32.f32 %v5208_v5  ;;  %v5341_v36 = vadd.s32 %v5340_v4, %v5330_v11  ;;  %vm9748_vm3 = vcmp.le.f32.partialorder %v5095_v27, 0.7853982 }
 0x52f   : > { %vm5345_vm2 = vc.u32 %v5320_v32, %v5339_v10  ;;  %v5343_v19 = vmul.u32 %v9709_v59, %v5289_v3  ;;  %v5219_v58 = vsub.s32 4, %v9700_v38  ;;  %vm5238_vm5 = vweird.f32 %v9415_v41 }
 0x530   : > { %v5213_v61 = vand.u32 2147483647, %v5212_v21  ;;  %v5342_v50 = vadd.s32 %v5341_v36, %v5332_v23  ;;  %v5344_v1 = vadd.s32 %v5339_v10, %v5320_v32  ;;  %vm5252_vm10 = vcmp.lt.s32.totalorder %v9419_v17, 0 }
 0x531   : > { %v5220_v27 = vsel %vm5097_vm1, %v5219_v58, %v9700_v38  ;;  %vm5251_vm12 = vcmp.le.f32.partialorder %v5250_v51, 0.7853982  ;;  %vm5393_vm13 = vweird.f32 %v9419_v17 }
 0x532   : > { %v5216_v29 = vmul.f32 %v5215_v14, %v5213_v61  ;;  %v5346_v8 = vadd.s32 1, %v5342_v50  ;;  %v5222_v59 = vsel %vm9748_vm3, 0, %v5220_v27 }
 0x533   : > { %v5239_v43 = vadd.s32 3, %v5222_v59 }
 0x534   : > { %v5217_v9 = vxor.u32 2147483648, %v5216_v29  ;;  %v5347_v34 = vsel %vm5345_vm2, %v5346_v8, %v5342_v50 }
 0x535   : > { %v5348_v22 = vadd.s32 %v5347_v34, %v5343_v19  ;;  %v5240_v46 = vand.u32 3, %v5239_v43 }
 0x536   : > { %v5218_v24 = vsel %vm5097_vm1, %v5217_v9, %v5216_v29 }
 0x537   : > { %v5221_v52 = vsel %vm9748_vm3, %v9415_v41, %v5218_v24  ;;  %v5349_v35 = vadd.s32 536870912, %v5348_v22  ;;  %vm5242_vm6 = vcmp.eq.s32.totalorder %v5240_v46, 0  ;;  %vm5245_vm7 = vcmp.eq.s32.totalorder %v5240_v46, 2 }
 0x538   : > { %v5223_v13 = vmul.f32 %v5221_v52, %v5221_v52  ;;  %vm5241_vm11 = vcmp.lt.s32.totalorder %v5240_v46, 2 }
 0x539   : > { %v5350_v45 = vshrl.u32 %v5349_v35, 30 }
 0x53a   : > { %v5224_v62 = vmul.f32 -0.001358992, %v5223_v13  ;;  %v5231_v54 = vmul.f32 -0.00019511016, %v5223_v13 }
 0x53b   : > { %v5351_v48 = vshll.u32 %v5350_v45, 30  ;;  %v5374_v23 = vsub.s32 4, %v5350_v45 }
 0x53c   : > { %v5225_v26 = vadd.f32 0.041655596, %v5224_v62  ;;  %v5232_v49 = vadd.f32 0.008332121, %v5231_v54 }
 0x53d   : > { %v5352_v2 = vsub.s32 %v5348_v22, %v5351_v48  ;;  %v5375_v50 = vsel %vm5252_vm10, %v5374_v23, %v5350_v45 }
 0x53e   : > { %v5226_v40 = vmul.f32 %v5225_v26, %v5223_v13  ;;  %v5233_v53 = vmul.f32 %v5232_v49, %v5223_v13  ;;  %v5377_v15 = vsel %vm5251_vm12, 0, %v5375_v50 }
 0x53f   : > { %vm5353_vm4 = vcmp.lt.s32.totalorder %v5352_v2, 0  ;;  %v5354_v12 = vsub.s32 0, %v5352_v2  ;;  %v5394_v34 = vadd.s32 3, %v5377_v15 }
 0x540   : > { %v5227_v0 = vadd.f32 -0.4999988, %v5226_v40  ;;  %v5234_v16 = vadd.f32 -0.16666654, %v5233_v53 }
 0x541   : > { %v5355_v38 = vsel %vm5353_vm4, %v5354_v12, %v5352_v2  ;;  %v5395_v54 = vand.u32 3, %v5394_v34 }
 0x542   : > { %v5228_v42 = vmul.f32 %v5227_v0, %v5223_v13  ;;  %v5235_v31 = vmul.f32 %v5234_v16, %v5223_v13  ;;  %v5356_v55 = vclz %v5355_v38 }
 0x543   : > { %vm5397_vm9 = vcmp.eq.s32.totalorder %v5395_v54, 0  ;;  %vm5400_vm0 = vcmp.eq.s32.totalorder %v5395_v54, 2  ;;  %vm5396_vm14 = vcmp.lt.s32.totalorder %v5395_v54, 2 }
 0x544   : > { %v5229_v60 = vadd.f32 1.0, %v5228_v42  ;;  %v5236_v57 = vadd.f32 1.0, %v5235_v31  ;;  %v5632_v20 = vadd.s32 4294967294, %v5356_v55 }
 0x546   : > { %v5237_v47 = vmul.f32 %v5236_v57, %v5221_v52  ;;  %v5246_v6 = vxor.u32 2147483648, %v5229_v60  ;;  %vm5633_vm8 = vcmp.lt.s32.totalorder %v5632_v20, 0 }
 0x547   : > { %v5359_v44 = vsel %vm5633_vm8, 0, %v5632_v20 }
 0x548   : > { %v5243_v39 = vxor.u32 2147483648, %v5237_v47  ;;  %v5247_v56 = vsel %vm5245_vm7, %v5246_v6, %v5237_v47  ;;  %v5360_v7 = vsub.s32 32, %v5359_v44  ;;  %v5364_v25 = vsub.s32 4294967266, %v5359_v44 }
 0x549   : > { %v5361_v21 = vshll.u32 %v5352_v2, %v5359_v44 }
 0x54a   : > { %v5244_v33 = vsel %vm5242_vm6, %v5229_v60, %v5243_v39  ;;  %v5362_v37 = vshrl.u32 %v5344_v1, %v5360_v7  ;;  %v5365_v18 = vadd.s32 127, %v5364_v25 }
 0x54b   : > { %v5248_v5 = vsel %vm5241_vm11, %v5244_v33, %v5247_v56 }
 0x54c   : > { %v5249_v28 = vsel %vm5238_vm5, nan, %v5248_v5  ;;  %v5363_v63 = vor.u32 %v5362_v37, %v5361_v21  ;;  %v5366_v11 = vshll.u32 %v5365_v18, 23 }
 0x54d   : > { %5419 = vst [vmem:[%s6274_s10 + $0xf0] sm:$0xff] %v5249_v28 }
 0x54e   : > { %v5367_v41 = vor.u32 4788187, %v5366_v11  ;;  %v5370_v61 = vcvt.s32.f32 %v5363_v63 }
 0x550   : > { %v5368_v4 = vand.u32 2147483647, %v5367_v41 }
 0x552   : > { %v5371_v14 = vmul.f32 %v5370_v61, %v5368_v4 }
 0x554   : > { %v5372_v30 = vxor.u32 2147483648, %v5371_v14 }
 0x556   : > { %v5373_v32 = vsel %vm5252_vm10, %v5372_v30, %v5371_v14 }
 0x557   : > { %v5376_v36 = vsel %vm5251_vm12, %v9419_v17, %v5373_v32 }
 0x558   : > { %v5378_v29 = vmul.f32 %v5376_v36, %v5376_v36 }
 0x55a   : > { %v5379_v10 = vmul.f32 -0.001358992, %v5378_v29  ;;  %v5386_v3 = vmul.f32 -0.00019511016, %v5378_v29 }
 0x55c   : > { %v5380_v9 = vadd.f32 0.041655596, %v5379_v10  ;;  %v5387_v8 = vadd.f32 0.008332121, %v5386_v3 }
 0x55e   : > { %v5381_v24 = vmul.f32 %v5380_v9, %v5378_v29  ;;  %v5388_v19 = vmul.f32 %v5387_v8, %v5378_v29 }
 0x560   : > { %v5382_v58 = vadd.f32 -0.4999988, %v5381_v24  ;;  %v5389_v52 = vadd.f32 -0.16666654, %v5388_v19 }
 0x562   : > { %v5383_v51 = vmul.f32 %v5382_v58, %v5378_v29  ;;  %v5390_v13 = vmul.f32 %v5389_v52, %v5378_v29 }
 0x564   : > { %v5384_v22 = vadd.f32 1.0, %v5383_v51  ;;  %v5391_v62 = vadd.f32 1.0, %v5390_v13 }
 0x566   : > { %v5392_v35 = vmul.f32 %v5391_v62, %v5376_v36  ;;  %v5401_v27 = vxor.u32 2147483648, %v5384_v22 }
 0x568   : > { %v5398_v26 = vxor.u32 2147483648, %v5392_v35  ;;  %v5402_v45 = vsel %vm5400_vm0, %v5401_v27, %v5392_v35 }
 0x56a   : > { %v5399_v49 = vsel %vm5397_vm9, %v5384_v22, %v5398_v26 }
 0x56b   : > { %v5403_v59 = vsel %vm5396_vm14, %v5399_v49, %v5402_v45 }
 0x56c   : > { %v5404_v40 = vsel %vm5393_vm13, nan, %v5403_v59 }
 0x56d   : > { %5420 = vst [vmem:[%s6274_s10 + $0xf8] sm:$0xff] %v5404_v40 }
 0x56e   : > { %5734 = shalt.err (!%p5731_p5)
}
 0x56f   : > { %s5794_s8 = smov 256   ;;  %s5795_s10 = smov 16  }
 0x570   : > { %5640 = dma.vmem_to_hbm [thread:$0]  (%p5861_p4), %s5437_s26, 4096, %s5439_s29, %s5422_s18, %s5794_s8, %s5794_s8, %s5795_s10  }
 0x571 PF: > { %p5646_p6 = scmp.ge.s32.totalorder %s5785_s20, 2  ;;  %s5453_s13 = sand.u32 1, %s5765_s15  }
 0x572   : > { %s5454_s14 = scalar_lea.sflag [#allocation3], %s5453_s13 }
 0x573   : > { %p5643_p7 = pnand %p5646_p6, %p5868_p8 }
 0x575   : > { %p5644_p9 = pneg %p5643_p7 }
 0x577   : > { %5760 = dma.done.wait (%p5644_p9), %s5454_s14, 4096  }
 0x578   : > { %5762 = vsyncadd (%p5644_p9), %s5454_s14, 4294963200  ;;  %s17_s20 = sadd.s32 1, %s5785_s20   ;;  %s9920_s15 = smov %s5769_s16 }
 0x579   : > { %p14_p10 = scmp.ge.s32.totalorder %s17_s20, 4   ;;  %s9921_s16 = smov %s5773_s17 }
 0x57a   : > { %s9922_s17 = smov %s5874_s28  ;;  %s9923_s18 = smov %s5781_s19 }
 0x57b   : > { %s9924_s19 = smov %s9926_s23  ;;  %16 = sbr.rel (!%p14_p10) target bundleno = 4 (0x4), region = 74 }
 0x580   :  { %5460 = vsyncpa [#allocation3], 1 }
 0x581   :  { %5462 = vsyncpa [#allocation3 + $0x1], 1 }

</bundles_post_ra>
